<compile_context>
chip_gen: v7x
topology: tpu7x:2x2x1
jax: 0.10.0
libtpu: 0.0.40
codegen_flags: <defaults>
</compile_context>

<pallas_src>
import jax
import jax.numpy as jnp
from jax import lax
from jax.experimental import pallas as pl
from jax.experimental.pallas import tpu as pltpu

BN_EPS = 1e-5


def _round_up(x: int, m: int) -> int:
    return (x + m - 1) // m * m


def _make_xcorr_bn_kernel(NG, G, c, h, w, Hp_pad, L, n_elems):
    """Fused correlation + BatchNorm kernel for static shapes.

    Kernel refs (all full-array blocks, single grid step):
      slab_ref  : VMEM (NG*c*Hp_pad, L) f32  -- padded search, batch packed in lanes
      taps_ref  : VMEM (NG*c*h*w,    L) f32  -- query taps broadcast per lane strip
      mask_ref  : VMEM (NG*Hp_pad,   L) f32  -- 1.0 on valid (b, y<Ho, x<Wo) positions
      gamma_ref : SMEM (1,) f32
      beta_ref  : SMEM (1,) f32
      o_ref     : VMEM (NG*Hp_pad,   L) f32  -- packed correlation maps (normalized)
    """
    CHW = c * h * w
    n_elems = float(n_elems)

    def kernel(slab_ref, taps_ref, mask_ref, gamma_ref, beta_ref, o_ref):
        total = jnp.float32(0.0)
        total_sq = jnp.float32(0.0)

        for g in range(NG):                        # tiny static group count
            sbase = g * c * Hp_pad
            tbase = g * CHW

            acc = None
            # Horner over dj (descending): acc <- roll_lanes(acc, -1) + T_dj.
            # Cross-strip / wrapped lanes only ever land at strip columns >= Wo,
            # which are masked out of the BN stats and cropped by the wrapper.
            for dj in range(w - 1, -1, -1):
                if acc is not None:
                    acc = pltpu.roll(acc, shift=L - 1, axis=1)   # lane shift by -1
                t_dj = None
                for di in range(h):
                    row = None
                    for ci in range(c):
                        idx = tbase + (ci * h + di) * w + dj
                        tap = taps_ref[idx:idx + 1, :]            # (1, L) static slice
                        s_ci = slab_ref[sbase + ci * Hp_pad:
                                        sbase + (ci + 1) * Hp_pad, :]
                        term = tap * s_ci                         # VPU, lane-dense
                        row = term if row is None else row + term
                    if di:
                        # output row y needs input row y + di (sublane roll, XLU)
                        row = pltpu.roll(row, shift=Hp_pad - di, axis=0)
                    t_dj = row if t_dj is None else t_dj + row
                acc = t_dj if acc is None else acc + t_dj

            # Raw packed correlation map for this group (full-lane unmasked store).
            o_ref[g * Hp_pad:(g + 1) * Hp_pad, :] = acc

            # BatchNorm statistics over valid positions only (mask hoisted to wrapper).
            valid = acc * mask_ref[g * Hp_pad:(g + 1) * Hp_pad, :]
            total = total + jnp.sum(valid)
            total_sq = total_sq + jnp.sum(valid * valid)

        mean = total / n_elems
        var = total_sq / n_elems - mean * mean            # biased (BN training mode)
        scale = lax.rsqrt(var + BN_EPS) * gamma_ref[0]
        shift = beta_ref[0] - mean * scale
        o_ref[...] = o_ref[...] * scale + shift           # normalize in place

    return kernel


def xcorr_forward(query, search_map, gamma, beta):
    """Pallas implementation of Xcorr.forward (grouped correlation + BatchNorm2d(1))."""
    bs, c, h, w = query.shape
    _, _, Hs, Ws = search_map.shape
    ph, pw = h // 2, w // 2

    Hp = Hs + 2 * ph
    Wp = Ws + 2 * pw
    Ho = Hp - h + 1
    Wo = Wp - w + 1

    # Sublane / lane layout: H padded to a multiple of 8; batch elements packed
    # side-by-side along the 128-lane axis in strips of Wp lanes each.
    Hp_pad = _round_up(Hp, 8)
    if Wp <= 128:
        L = 128
        G = max(1, min(bs, 128 // Wp))      # batch elements per lane group
    else:
        L = _round_up(Wp, 128)
        G = 1
    NG = -(-bs // G)                        # ceil(bs / G) lane groups
    bs_pad = NG * G
    CHW = c * h * w

    f32 = jnp.float32

    # --- padded search slab, batch packed into lanes ------------------------
    sp = jnp.pad(search_map.astype(f32),
                 ((0, bs_pad - bs), (0, 0), (ph, ph + Hp_pad - Hp), (pw, pw)))
    # (bs_pad, c, Hp_pad, Wp) -> (NG, c, Hp_pad, G, Wp) -> (NG*c*Hp_pad, L)
    sp = sp.reshape(NG, G, c, Hp_pad, Wp).transpose(0, 2, 3, 1, 4)
    sp = sp.reshape(NG, c * Hp_pad, G * Wp)
    sp = jnp.pad(sp, ((0, 0), (0, 0), (0, L - G * Wp)))
    slab = sp.reshape(NG * c * Hp_pad, L)

    # --- query taps broadcast across their lane strip ------------------------
    q_flat = query.astype(f32).reshape(bs, CHW)
    q_flat = jnp.pad(q_flat, ((0, bs_pad - bs), (0, 0)))
    q_grp = q_flat.reshape(NG, G, CHW).transpose(0, 2, 1)          # (NG, CHW, G)
    taps = jnp.broadcast_to(q_grp[..., None], (NG, CHW, G, Wp))
    taps = taps.reshape(NG, CHW, G * Wp)
    taps = jnp.pad(taps, ((0, 0), (0, 0), (0, L - G * Wp)))
    taps = taps.reshape(NG * CHW, L)

    # --- hoisted BN valid-window mask ----------------------------------------
    row_valid = jnp.arange(Hp_pad) < Ho
    col_valid = jnp.arange(Wp) < Wo
    b_valid = (jnp.arange(bs_pad) < bs).reshape(NG, G)
    mask = (b_valid[:, None, :, None]
            & row_valid[None, :, None, None]
            & col_valid[None, None, None, :])                      # (NG, Hp_pad, G, Wp)
    mask = mask.reshape(NG, Hp_pad, G * Wp).astype(f32)
    mask = jnp.pad(mask, ((0, 0), (0, 0), (0, L - G * Wp)))
    mask = mask.reshape(NG * Hp_pad, L)

    gamma = gamma.astype(f32).reshape(1)
    beta = beta.astype(f32).reshape(1)

    kernel = _make_xcorr_bn_kernel(NG, G, c, h, w, Hp_pad, L, bs * Ho * Wo)

    out_slab = pl.pallas_call(
        kernel,
        out_shape=jax.ShapeDtypeStruct((NG * Hp_pad, L), jnp.float32),
        grid=(1,),
        in_specs=[
            pl.BlockSpec((NG * c * Hp_pad, L), lambda i: (0, 0)),            # slab
            pl.BlockSpec((NG * CHW, L), lambda i: (0, 0)),                   # taps
            pl.BlockSpec((NG * Hp_pad, L), lambda i: (0, 0)),                # mask
            pl.BlockSpec(memory_space=pltpu.MemorySpace.SMEM),               # gamma
            pl.BlockSpec(memory_space=pltpu.MemorySpace.SMEM),               # beta
        ],
        out_specs=pl.BlockSpec((NG * Hp_pad, L), lambda i: (0, 0)),
        compiler_params=pltpu.CompilerParams(
            # Single step; VMEM footprint (<0.5 MiB here) is far below the
            # scoped default on v5e/v6e/v7x. At production c, add a channel-
            # chunk grid axis + explicit vmem_limit_bytes (see TODO at top).
            dimension_semantics=("arbitrary",),
        ),
    )(slab, taps, mask, gamma, beta)

    # --- unpack lane strips and crop to the valid window ---------------------
    o = out_slab.reshape(NG, Hp_pad, L)[:, :Ho, :G * Wp]
    o = o.reshape(NG, Ho, G, Wp)[..., :Wo]                 # (NG, Ho, G, Wo)
    o = o.transpose(0, 2, 1, 3).reshape(bs_pad, Ho, Wo)[:bs]
    return o.reshape(bs, 1, Ho, Wo)


def _reference_forward(query, search_map, gamma, beta):
    """Pure-JAX reference mirroring the PyTorch module (for verification)."""
    bs, c, h, w = query.shape
    ph, pw = h // 2, w // 2
    sp = jnp.pad(search_map, ((0, 0), (0, 0), (ph, ph), (pw, pw)))
    inp = sp.reshape(1, bs * c, sp.shape[2], sp.shape[3])
    out = jax.lax.conv_general_dilated(
        inp, query, window_strides=(1, 1), padding="VALID",
        dimension_numbers=("NCHW", "OIHW", "NCHW"),
        feature_group_count=bs)
    out = jnp.transpose(out, (1, 0, 2, 3))            # (bs, 1, Ho, Wo)
    mean = out.mean()
    var = out.var()                                   # biased, like BN training
    return (out - mean) / jnp.sqrt(var + BN_EPS) * gamma[0] + beta[0]


if __name__ == "__main__":
    key = jax.random.PRNGKey(0)
    kq, ks = jax.random.split(key)

    bs, c = 2, 4
    qh, qw = 8, 8
    Hs, Ws = 16, 16

    query = jax.random.normal(kq, (bs, c, qh, qw), dtype=jnp.float32)
    search_map = jax.random.normal(ks, (bs, c, Hs, Ws), dtype=jnp.float32)

    # BatchNorm2d(1) parameters, PyTorch default init (deterministic).
    gamma = jnp.ones((1,), dtype=jnp.float32)
    beta = jnp.zeros((1,), dtype=jnp.float32)

    out = jax.block_until_ready(xcorr_forward(query, search_map, gamma, beta))
    ref = jax.block_until_ready(_reference_forward(query, search_map, gamma, beta))

    assert out.shape == ref.shape, (out.shape, ref.shape)
    assert jnp.allclose(out, ref, rtol=1e-4, atol=1e-4), float(jnp.max(jnp.abs(out - ref)))

    print("KERNEL_OK")
</pallas_src>

<mosaic_0001>
module attributes {stable_mosaic.version = 11 : i64} {
  func.func @kernel(%arg0: i32, %arg1: memref<96x128xf32, #tpu.memory_space<vmem>>, %arg2: memref<256x128xf32, #tpu.memory_space<vmem>>, %arg3: memref<24x128xf32, #tpu.memory_space<vmem>>, %arg4: memref<1xf32, #tpu.memory_space<smem>>, %arg5: memref<1xf32, #tpu.memory_space<smem>>, %arg6: memref<24x128xf32, #tpu.memory_space<vmem>>) attributes {dimension_semantics = [#tpu.dimension_semantics<arbitrary>], iteration_bounds = array<i64: 1>, scalar_prefetch = 0 : i64, scratch_operands = 0 : i64, tpu.core_type = #tpu.core_type<tc>, window_params = [{pipeline_mode = #tpu.pipeline_mode<synchronous>, transform_indices = @transform_0, window_bounds = array<i64: 96, 128>}, {pipeline_mode = #tpu.pipeline_mode<synchronous>, transform_indices = @transform_1, window_bounds = array<i64: 256, 128>}, {pipeline_mode = #tpu.pipeline_mode<synchronous>, transform_indices = @transform_2, window_bounds = array<i64: 24, 128>}, {transform_indices = @transform_3, window_bounds = array<i64: 1>}, {transform_indices = @transform_4, window_bounds = array<i64: 1>}, {pipeline_mode = #tpu.pipeline_mode<synchronous>, transform_indices = @transform_5, window_bounds = array<i64: 24, 128>}]} {
    %c7 = arith.constant 7 : index
    %c0 = arith.constant 0 : index
    %0 = vector.load %arg2[%c7, %c0] : memref<256x128xf32, #tpu.memory_space<vmem>>, vector<1x128xf32>
    %c0_0 = arith.constant 0 : index
    %c0_1 = arith.constant 0 : index
    %1 = vector.load %arg1[%c0_0, %c0_1] : memref<96x128xf32, #tpu.memory_space<vmem>>, vector<24x128xf32>
    %2 = vector.broadcast %0 : vector<1x128xf32> to vector<24x128xf32>
    %3 = arith.mulf %2, %1 : vector<24x128xf32>
    %c71 = arith.constant 71 : index
    %c0_2 = arith.constant 0 : index
    %4 = vector.load %arg2[%c71, %c0_2] : memref<256x128xf32, #tpu.memory_space<vmem>>, vector<1x128xf32>
    %c24 = arith.constant 24 : index
    %c0_3 = arith.constant 0 : index
    %5 = vector.load %arg1[%c24, %c0_3] : memref<96x128xf32, #tpu.memory_space<vmem>>, vector<24x128xf32>
    %6 = vector.broadcast %4 : vector<1x128xf32> to vector<24x128xf32>
    %7 = arith.mulf %6, %5 : vector<24x128xf32>
    %8 = arith.addf %3, %7 : vector<24x128xf32>
    %c135 = arith.constant 135 : index
    %c0_4 = arith.constant 0 : index
    %9 = vector.load %arg2[%c135, %c0_4] : memref<256x128xf32, #tpu.memory_space<vmem>>, vector<1x128xf32>
    %c48 = arith.constant 48 : index
    %c0_5 = arith.constant 0 : index
    %10 = vector.load %arg1[%c48, %c0_5] : memref<96x128xf32, #tpu.memory_space<vmem>>, vector<24x128xf32>
    %11 = vector.broadcast %9 : vector<1x128xf32> to vector<24x128xf32>
    %12 = arith.mulf %11, %10 : vector<24x128xf32>
    %13 = arith.addf %8, %12 : vector<24x128xf32>
    %c199 = arith.constant 199 : index
    %c0_6 = arith.constant 0 : index
    %14 = vector.load %arg2[%c199, %c0_6] : memref<256x128xf32, #tpu.memory_space<vmem>>, vector<1x128xf32>
    %c72 = arith.constant 72 : index
    %c0_7 = arith.constant 0 : index
    %15 = vector.load %arg1[%c72, %c0_7] : memref<96x128xf32, #tpu.memory_space<vmem>>, vector<24x128xf32>
    %16 = vector.broadcast %14 : vector<1x128xf32> to vector<24x128xf32>
    %17 = arith.mulf %16, %15 : vector<24x128xf32>
    %18 = arith.addf %13, %17 : vector<24x128xf32>
    %c15 = arith.constant 15 : index
    %c0_8 = arith.constant 0 : index
    %19 = vector.load %arg2[%c15, %c0_8] : memref<256x128xf32, #tpu.memory_space<vmem>>, vector<1x128xf32>
    %c0_9 = arith.constant 0 : index
    %c0_10 = arith.constant 0 : index
    %20 = vector.load %arg1[%c0_9, %c0_10] : memref<96x128xf32, #tpu.memory_space<vmem>>, vector<24x128xf32>
    %21 = vector.broadcast %19 : vector<1x128xf32> to vector<24x128xf32>
    %22 = arith.mulf %21, %20 : vector<24x128xf32>
    %c79 = arith.constant 79 : index
    %c0_11 = arith.constant 0 : index
    %23 = vector.load %arg2[%c79, %c0_11] : memref<256x128xf32, #tpu.memory_space<vmem>>, vector<1x128xf32>
    %c24_12 = arith.constant 24 : index
    %c0_13 = arith.constant 0 : index
    %24 = vector.load %arg1[%c24_12, %c0_13] : memref<96x128xf32, #tpu.memory_space<vmem>>, vector<24x128xf32>
    %25 = vector.broadcast %23 : vector<1x128xf32> to vector<24x128xf32>
    %26 = arith.mulf %25, %24 : vector<24x128xf32>
    %27 = arith.addf %22, %26 : vector<24x128xf32>
    %c143 = arith.constant 143 : index
    %c0_14 = arith.constant 0 : index
    %28 = vector.load %arg2[%c143, %c0_14] : memref<256x128xf32, #tpu.memory_space<vmem>>, vector<1x128xf32>
    %c48_15 = arith.constant 48 : index
    %c0_16 = arith.constant 0 : index
    %29 = vector.load %arg1[%c48_15, %c0_16] : memref<96x128xf32, #tpu.memory_space<vmem>>, vector<24x128xf32>
    %30 = vector.broadcast %28 : vector<1x128xf32> to vector<24x128xf32>
    %31 = arith.mulf %30, %29 : vector<24x128xf32>
    %32 = arith.addf %27, %31 : vector<24x128xf32>
    %c207 = arith.constant 207 : index
    %c0_17 = arith.constant 0 : index
    %33 = vector.load %arg2[%c207, %c0_17] : memref<256x128xf32, #tpu.memory_space<vmem>>, vector<1x128xf32>
    %c72_18 = arith.constant 72 : index
    %c0_19 = arith.constant 0 : index
    %34 = vector.load %arg1[%c72_18, %c0_19] : memref<96x128xf32, #tpu.memory_space<vmem>>, vector<24x128xf32>
    %35 = vector.broadcast %33 : vector<1x128xf32> to vector<24x128xf32>
    %36 = arith.mulf %35, %34 : vector<24x128xf32>
    %37 = arith.addf %32, %36 : vector<24x128xf32>
    %c23_i32 = arith.constant 23 : i32
    %38 = tpu.dynamic_rotate %37 by %c23_i32 dim 0 : vector<24x128xf32>, i32 -> vector<24x128xf32>
    %39 = arith.addf %18, %38 : vector<24x128xf32>
    %c23 = arith.constant 23 : index
    %c0_20 = arith.constant 0 : index
    %40 = vector.load %arg2[%c23, %c0_20] : memref<256x128xf32, #tpu.memory_space<vmem>>, vector<1x128xf32>
    %c0_21 = arith.constant 0 : index
    %c0_22 = arith.constant 0 : index
    %41 = vector.load %arg1[%c0_21, %c0_22] : memref<96x128xf32, #tpu.memory_space<vmem>>, vector<24x128xf32>
    %42 = vector.broadcast %40 : vector<1x128xf32> to vector<24x128xf32>
    %43 = arith.mulf %42, %41 : vector<24x128xf32>
    %c87 = arith.constant 87 : index
    %c0_23 = arith.constant 0 : index
    %44 = vector.load %arg2[%c87, %c0_23] : memref<256x128xf32, #tpu.memory_space<vmem>>, vector<1x128xf32>
    %c24_24 = arith.constant 24 : index
    %c0_25 = arith.constant 0 : index
    %45 = vector.load %arg1[%c24_24, %c0_25] : memref<96x128xf32, #tpu.memory_space<vmem>>, vector<24x128xf32>
    %46 = vector.broadcast %44 : vector<1x128xf32> to vector<24x128xf32>
    %47 = arith.mulf %46, %45 : vector<24x128xf32>
    %48 = arith.addf %43, %47 : vector<24x128xf32>
    %c151 = arith.constant 151 : index
    %c0_26 = arith.constant 0 : index
    %49 = vector.load %arg2[%c151, %c0_26] : memref<256x128xf32, #tpu.memory_space<vmem>>, vector<1x128xf32>
    %c48_27 = arith.constant 48 : index
    %c0_28 = arith.constant 0 : index
    %50 = vector.load %arg1[%c48_27, %c0_28] : memref<96x128xf32, #tpu.memory_space<vmem>>, vector<24x128xf32>
    %51 = vector.broadcast %49 : vector<1x128xf32> to vector<24x128xf32>
    %52 = arith.mulf %51, %50 : vector<24x128xf32>
    %53 = arith.addf %48, %52 : vector<24x128xf32>
    %c215 = arith.constant 215 : index
    %c0_29 = arith.constant 0 : index
    %54 = vector.load %arg2[%c215, %c0_29] : memref<256x128xf32, #tpu.memory_space<vmem>>, vector<1x128xf32>
    %c72_30 = arith.constant 72 : index
    %c0_31 = arith.constant 0 : index
    %55 = vector.load %arg1[%c72_30, %c0_31] : memref<96x128xf32, #tpu.memory_space<vmem>>, vector<24x128xf32>
    %56 = vector.broadcast %54 : vector<1x128xf32> to vector<24x128xf32>
    %57 = arith.mulf %56, %55 : vector<24x128xf32>
    %58 = arith.addf %53, %57 : vector<24x128xf32>
    %c22_i32 = arith.constant 22 : i32
    %59 = tpu.dynamic_rotate %58 by %c22_i32 dim 0 : vector<24x128xf32>, i32 -> vector<24x128xf32>
    %60 = arith.addf %39, %59 : vector<24x128xf32>
    %c31 = arith.constant 31 : index
    %c0_32 = arith.constant 0 : index
    %61 = vector.load %arg2[%c31, %c0_32] : memref<256x128xf32, #tpu.memory_space<vmem>>, vector<1x128xf32>
    %c0_33 = arith.constant 0 : index
    %c0_34 = arith.constant 0 : index
    %62 = vector.load %arg1[%c0_33, %c0_34] : memref<96x128xf32, #tpu.memory_space<vmem>>, vector<24x128xf32>
    %63 = vector.broadcast %61 : vector<1x128xf32> to vector<24x128xf32>
    %64 = arith.mulf %63, %62 : vector<24x128xf32>
    %c95 = arith.constant 95 : index
    %c0_35 = arith.constant 0 : index
    %65 = vector.load %arg2[%c95, %c0_35] : memref<256x128xf32, #tpu.memory_space<vmem>>, vector<1x128xf32>
    %c24_36 = arith.constant 24 : index
    %c0_37 = arith.constant 0 : index
    %66 = vector.load %arg1[%c24_36, %c0_37] : memref<96x128xf32, #tpu.memory_space<vmem>>, vector<24x128xf32>
    %67 = vector.broadcast %65 : vector<1x128xf32> to vector<24x128xf32>
    %68 = arith.mulf %67, %66 : vector<24x128xf32>
    %69 = arith.addf %64, %68 : vector<24x128xf32>
    %c159 = arith.constant 159 : index
    %c0_38 = arith.constant 0 : index
    %70 = vector.load %arg2[%c159, %c0_38] : memref<256x128xf32, #tpu.memory_space<vmem>>, vector<1x128xf32>
    %c48_39 = arith.constant 48 : index
    %c0_40 = arith.constant 0 : index
    %71 = vector.load %arg1[%c48_39, %c0_40] : memref<96x128xf32, #tpu.memory_space<vmem>>, vector<24x128xf32>
    %72 = vector.broadcast %70 : vector<1x128xf32> to vector<24x128xf32>
    %73 = arith.mulf %72, %71 : vector<24x128xf32>
    %74 = arith.addf %69, %73 : vector<24x128xf32>
    %c223 = arith.constant 223 : index
    %c0_41 = arith.constant 0 : index
    %75 = vector.load %arg2[%c223, %c0_41] : memref<256x128xf32, #tpu.memory_space<vmem>>, vector<1x128xf32>
    %c72_42 = arith.constant 72 : index
    %c0_43 = arith.constant 0 : index
    %76 = vector.load %arg1[%c72_42, %c0_43] : memref<96x128xf32, #tpu.memory_space<vmem>>, vector<24x128xf32>
    %77 = vector.broadcast %75 : vector<1x128xf32> to vector<24x128xf32>
    %78 = arith.mulf %77, %76 : vector<24x128xf32>
    %79 = arith.addf %74, %78 : vector<24x128xf32>
    %c21_i32 = arith.constant 21 : i32
    %80 = tpu.dynamic_rotate %79 by %c21_i32 dim 0 : vector<24x128xf32>, i32 -> vector<24x128xf32>
    %81 = arith.addf %60, %80 : vector<24x128xf32>
    %c39 = arith.constant 39 : index
    %c0_44 = arith.constant 0 : index
    %82 = vector.load %arg2[%c39, %c0_44] : memref<256x128xf32, #tpu.memory_space<vmem>>, vector<1x128xf32>
    %c0_45 = arith.constant 0 : index
    %c0_46 = arith.constant 0 : index
    %83 = vector.load %arg1[%c0_45, %c0_46] : memref<96x128xf32, #tpu.memory_space<vmem>>, vector<24x128xf32>
    %84 = vector.broadcast %82 : vector<1x128xf32> to vector<24x128xf32>
    %85 = arith.mulf %84, %83 : vector<24x128xf32>
    %c103 = arith.constant 103 : index
    %c0_47 = arith.constant 0 : index
    %86 = vector.load %arg2[%c103, %c0_47] : memref<256x128xf32, #tpu.memory_space<vmem>>, vector<1x128xf32>
    %c24_48 = arith.constant 24 : index
    %c0_49 = arith.constant 0 : index
    %87 = vector.load %arg1[%c24_48, %c0_49] : memref<96x128xf32, #tpu.memory_space<vmem>>, vector<24x128xf32>
    %88 = vector.broadcast %86 : vector<1x128xf32> to vector<24x128xf32>
    %89 = arith.mulf %88, %87 : vector<24x128xf32>
    %90 = arith.addf %85, %89 : vector<24x128xf32>
    %c167 = arith.constant 167 : index
    %c0_50 = arith.constant 0 : index
    %91 = vector.load %arg2[%c167, %c0_50] : memref<256x128xf32, #tpu.memory_space<vmem>>, vector<1x128xf32>
    %c48_51 = arith.constant 48 : index
    %c0_52 = arith.constant 0 : index
    %92 = vector.load %arg1[%c48_51, %c0_52] : memref<96x128xf32, #tpu.memory_space<vmem>>, vector<24x128xf32>
    %93 = vector.broadcast %91 : vector<1x128xf32> to vector<24x128xf32>
    %94 = arith.mulf %93, %92 : vector<24x128xf32>
    %95 = arith.addf %90, %94 : vector<24x128xf32>
    %c231 = arith.constant 231 : index
    %c0_53 = arith.constant 0 : index
    %96 = vector.load %arg2[%c231, %c0_53] : memref<256x128xf32, #tpu.memory_space<vmem>>, vector<1x128xf32>
    %c72_54 = arith.constant 72 : index
    %c0_55 = arith.constant 0 : index
    %97 = vector.load %arg1[%c72_54, %c0_55] : memref<96x128xf32, #tpu.memory_space<vmem>>, vector<24x128xf32>
    %98 = vector.broadcast %96 : vector<1x128xf32> to vector<24x128xf32>
    %99 = arith.mulf %98, %97 : vector<24x128xf32>
    %100 = arith.addf %95, %99 : vector<24x128xf32>
    %c20_i32 = arith.constant 20 : i32
    %101 = tpu.dynamic_rotate %100 by %c20_i32 dim 0 : vector<24x128xf32>, i32 -> vector<24x128xf32>
    %102 = arith.addf %81, %101 : vector<24x128xf32>
    %c47 = arith.constant 47 : index
    %c0_56 = arith.constant 0 : index
    %103 = vector.load %arg2[%c47, %c0_56] : memref<256x128xf32, #tpu.memory_space<vmem>>, vector<1x128xf32>
    %c0_57 = arith.constant 0 : index
    %c0_58 = arith.constant 0 : index
    %104 = vector.load %arg1[%c0_57, %c0_58] : memref<96x128xf32, #tpu.memory_space<vmem>>, vector<24x128xf32>
    %105 = vector.broadcast %103 : vector<1x128xf32> to vector<24x128xf32>
    %106 = arith.mulf %105, %104 : vector<24x128xf32>
    %c111 = arith.constant 111 : index
    %c0_59 = arith.constant 0 : index
    %107 = vector.load %arg2[%c111, %c0_59] : memref<256x128xf32, #tpu.memory_space<vmem>>, vector<1x128xf32>
    %c24_60 = arith.constant 24 : index
    %c0_61 = arith.constant 0 : index
    %108 = vector.load %arg1[%c24_60, %c0_61] : memref<96x128xf32, #tpu.memory_space<vmem>>, vector<24x128xf32>
    %109 = vector.broadcast %107 : vector<1x128xf32> to vector<24x128xf32>
    %110 = arith.mulf %109, %108 : vector<24x128xf32>
    %111 = arith.addf %106, %110 : vector<24x128xf32>
    %c175 = arith.constant 175 : index
    %c0_62 = arith.constant 0 : index
    %112 = vector.load %arg2[%c175, %c0_62] : memref<256x128xf32, #tpu.memory_space<vmem>>, vector<1x128xf32>
    %c48_63 = arith.constant 48 : index
    %c0_64 = arith.constant 0 : index
    %113 = vector.load %arg1[%c48_63, %c0_64] : memref<96x128xf32, #tpu.memory_space<vmem>>, vector<24x128xf32>
    %114 = vector.broadcast %112 : vector<1x128xf32> to vector<24x128xf32>
    %115 = arith.mulf %114, %113 : vector<24x128xf32>
    %116 = arith.addf %111, %115 : vector<24x128xf32>
    %c239 = arith.constant 239 : index
    %c0_65 = arith.constant 0 : index
    %117 = vector.load %arg2[%c239, %c0_65] : memref<256x128xf32, #tpu.memory_space<vmem>>, vector<1x128xf32>
    %c72_66 = arith.constant 72 : index
    %c0_67 = arith.constant 0 : index
    %118 = vector.load %arg1[%c72_66, %c0_67] : memref<96x128xf32, #tpu.memory_space<vmem>>, vector<24x128xf32>
    %119 = vector.broadcast %117 : vector<1x128xf32> to vector<24x128xf32>
    %120 = arith.mulf %119, %118 : vector<24x128xf32>
    %121 = arith.addf %116, %120 : vector<24x128xf32>
    %c19_i32 = arith.constant 19 : i32
    %122 = tpu.dynamic_rotate %121 by %c19_i32 dim 0 : vector<24x128xf32>, i32 -> vector<24x128xf32>
    %123 = arith.addf %102, %122 : vector<24x128xf32>
    %c55 = arith.constant 55 : index
    %c0_68 = arith.constant 0 : index
    %124 = vector.load %arg2[%c55, %c0_68] : memref<256x128xf32, #tpu.memory_space<vmem>>, vector<1x128xf32>
    %c0_69 = arith.constant 0 : index
    %c0_70 = arith.constant 0 : index
    %125 = vector.load %arg1[%c0_69, %c0_70] : memref<96x128xf32, #tpu.memory_space<vmem>>, vector<24x128xf32>
    %126 = vector.broadcast %124 : vector<1x128xf32> to vector<24x128xf32>
    %127 = arith.mulf %126, %125 : vector<24x128xf32>
    %c119 = arith.constant 119 : index
    %c0_71 = arith.constant 0 : index
    %128 = vector.load %arg2[%c119, %c0_71] : memref<256x128xf32, #tpu.memory_space<vmem>>, vector<1x128xf32>
    %c24_72 = arith.constant 24 : index
    %c0_73 = arith.constant 0 : index
    %129 = vector.load %arg1[%c24_72, %c0_73] : memref<96x128xf32, #tpu.memory_space<vmem>>, vector<24x128xf32>
    %130 = vector.broadcast %128 : vector<1x128xf32> to vector<24x128xf32>
    %131 = arith.mulf %130, %129 : vector<24x128xf32>
    %132 = arith.addf %127, %131 : vector<24x128xf32>
    %c183 = arith.constant 183 : index
    %c0_74 = arith.constant 0 : index
    %133 = vector.load %arg2[%c183, %c0_74] : memref<256x128xf32, #tpu.memory_space<vmem>>, vector<1x128xf32>
    %c48_75 = arith.constant 48 : index
    %c0_76 = arith.constant 0 : index
    %134 = vector.load %arg1[%c48_75, %c0_76] : memref<96x128xf32, #tpu.memory_space<vmem>>, vector<24x128xf32>
    %135 = vector.broadcast %133 : vector<1x128xf32> to vector<24x128xf32>
    %136 = arith.mulf %135, %134 : vector<24x128xf32>
    %137 = arith.addf %132, %136 : vector<24x128xf32>
    %c247 = arith.constant 247 : index
    %c0_77 = arith.constant 0 : index
    %138 = vector.load %arg2[%c247, %c0_77] : memref<256x128xf32, #tpu.memory_space<vmem>>, vector<1x128xf32>
    %c72_78 = arith.constant 72 : index
    %c0_79 = arith.constant 0 : index
    %139 = vector.load %arg1[%c72_78, %c0_79] : memref<96x128xf32, #tpu.memory_space<vmem>>, vector<24x128xf32>
    %140 = vector.broadcast %138 : vector<1x128xf32> to vector<24x128xf32>
    %141 = arith.mulf %140, %139 : vector<24x128xf32>
    %142 = arith.addf %137, %141 : vector<24x128xf32>
    %c18_i32 = arith.constant 18 : i32
    %143 = tpu.dynamic_rotate %142 by %c18_i32 dim 0 : vector<24x128xf32>, i32 -> vector<24x128xf32>
    %144 = arith.addf %123, %143 : vector<24x128xf32>
    %c63 = arith.constant 63 : index
    %c0_80 = arith.constant 0 : index
    %145 = vector.load %arg2[%c63, %c0_80] : memref<256x128xf32, #tpu.memory_space<vmem>>, vector<1x128xf32>
    %c0_81 = arith.constant 0 : index
    %c0_82 = arith.constant 0 : index
    %146 = vector.load %arg1[%c0_81, %c0_82] : memref<96x128xf32, #tpu.memory_space<vmem>>, vector<24x128xf32>
    %147 = vector.broadcast %145 : vector<1x128xf32> to vector<24x128xf32>
    %148 = arith.mulf %147, %146 : vector<24x128xf32>
    %c127 = arith.constant 127 : index
    %c0_83 = arith.constant 0 : index
    %149 = vector.load %arg2[%c127, %c0_83] : memref<256x128xf32, #tpu.memory_space<vmem>>, vector<1x128xf32>
    %c24_84 = arith.constant 24 : index
    %c0_85 = arith.constant 0 : index
    %150 = vector.load %arg1[%c24_84, %c0_85] : memref<96x128xf32, #tpu.memory_space<vmem>>, vector<24x128xf32>
    %151 = vector.broadcast %149 : vector<1x128xf32> to vector<24x128xf32>
    %152 = arith.mulf %151, %150 : vector<24x128xf32>
    %153 = arith.addf %148, %152 : vector<24x128xf32>
    %c191 = arith.constant 191 : index
    %c0_86 = arith.constant 0 : index
    %154 = vector.load %arg2[%c191, %c0_86] : memref<256x128xf32, #tpu.memory_space<vmem>>, vector<1x128xf32>
    %c48_87 = arith.constant 48 : index
    %c0_88 = arith.constant 0 : index
    %155 = vector.load %arg1[%c48_87, %c0_88] : memref<96x128xf32, #tpu.memory_space<vmem>>, vector<24x128xf32>
    %156 = vector.broadcast %154 : vector<1x128xf32> to vector<24x128xf32>
    %157 = arith.mulf %156, %155 : vector<24x128xf32>
    %158 = arith.addf %153, %157 : vector<24x128xf32>
    %c255 = arith.constant 255 : index
    %c0_89 = arith.constant 0 : index
    %159 = vector.load %arg2[%c255, %c0_89] : memref<256x128xf32, #tpu.memory_space<vmem>>, vector<1x128xf32>
    %c72_90 = arith.constant 72 : index
    %c0_91 = arith.constant 0 : index
    %160 = vector.load %arg1[%c72_90, %c0_91] : memref<96x128xf32, #tpu.memory_space<vmem>>, vector<24x128xf32>
    %161 = vector.broadcast %159 : vector<1x128xf32> to vector<24x128xf32>
    %162 = arith.mulf %161, %160 : vector<24x128xf32>
    %163 = arith.addf %158, %162 : vector<24x128xf32>
    %c17_i32 = arith.constant 17 : i32
    %164 = tpu.dynamic_rotate %163 by %c17_i32 dim 0 : vector<24x128xf32>, i32 -> vector<24x128xf32>
    %165 = arith.addf %144, %164 : vector<24x128xf32>
    %c127_i32 = arith.constant 127 : i32
    %166 = tpu.dynamic_rotate %165 by %c127_i32 dim 1 : vector<24x128xf32>, i32 -> vector<24x128xf32>
    %c6 = arith.constant 6 : index
    %c0_92 = arith.constant 0 : index
    %167 = vector.load %arg2[%c6, %c0_92] : memref<256x128xf32, #tpu.memory_space<vmem>>, vector<1x128xf32>
    %c0_93 = arith.constant 0 : index
    %c0_94 = arith.constant 0 : index
    %168 = vector.load %arg1[%c0_93, %c0_94] : memref<96x128xf32, #tpu.memory_space<vmem>>, vector<24x128xf32>
    %169 = vector.broadcast %167 : vector<1x128xf32> to vector<24x128xf32>
    %170 = arith.mulf %169, %168 : vector<24x128xf32>
    %c70 = arith.constant 70 : index
    %c0_95 = arith.constant 0 : index
    %171 = vector.load %arg2[%c70, %c0_95] : memref<256x128xf32, #tpu.memory_space<vmem>>, vector<1x128xf32>
    %c24_96 = arith.constant 24 : index
    %c0_97 = arith.constant 0 : index
    %172 = vector.load %arg1[%c24_96, %c0_97] : memref<96x128xf32, #tpu.memory_space<vmem>>, vector<24x128xf32>
    %173 = vector.broadcast %171 : vector<1x128xf32> to vector<24x128xf32>
    %174 = arith.mulf %173, %172 : vector<24x128xf32>
    %175 = arith.addf %170, %174 : vector<24x128xf32>
    %c134 = arith.constant 134 : index
    %c0_98 = arith.constant 0 : index
    %176 = vector.load %arg2[%c134, %c0_98] : memref<256x128xf32, #tpu.memory_space<vmem>>, vector<1x128xf32>
    %c48_99 = arith.constant 48 : index
    %c0_100 = arith.constant 0 : index
    %177 = vector.load %arg1[%c48_99, %c0_100] : memref<96x128xf32, #tpu.memory_space<vmem>>, vector<24x128xf32>
    %178 = vector.broadcast %176 : vector<1x128xf32> to vector<24x128xf32>
    %179 = arith.mulf %178, %177 : vector<24x128xf32>
    %180 = arith.addf %175, %179 : vector<24x128xf32>
    %c198 = arith.constant 198 : index
    %c0_101 = arith.constant 0 : index
    %181 = vector.load %arg2[%c198, %c0_101] : memref<256x128xf32, #tpu.memory_space<vmem>>, vector<1x128xf32>
    %c72_102 = arith.constant 72 : index
    %c0_103 = arith.constant 0 : index
    %182 = vector.load %arg1[%c72_102, %c0_103] : memref<96x128xf32, #tpu.memory_space<vmem>>, vector<24x128xf32>
    %183 = vector.broadcast %181 : vector<1x128xf32> to vector<24x128xf32>
    %184 = arith.mulf %183, %182 : vector<24x128xf32>
    %185 = arith.addf %180, %184 : vector<24x128xf32>
    %c14 = arith.constant 14 : index
    %c0_104 = arith.constant 0 : index
    %186 = vector.load %arg2[%c14, %c0_104] : memref<256x128xf32, #tpu.memory_space<vmem>>, vector<1x128xf32>
    %c0_105 = arith.constant 0 : index
    %c0_106 = arith.constant 0 : index
    %187 = vector.load %arg1[%c0_105, %c0_106] : memref<96x128xf32, #tpu.memory_space<vmem>>, vector<24x128xf32>
    %188 = vector.broadcast %186 : vector<1x128xf32> to vector<24x128xf32>
    %189 = arith.mulf %188, %187 : vector<24x128xf32>
    %c78 = arith.constant 78 : index
    %c0_107 = arith.constant 0 : index
    %190 = vector.load %arg2[%c78, %c0_107] : memref<256x128xf32, #tpu.memory_space<vmem>>, vector<1x128xf32>
    %c24_108 = arith.constant 24 : index
    %c0_109 = arith.constant 0 : index
    %191 = vector.load %arg1[%c24_108, %c0_109] : memref<96x128xf32, #tpu.memory_space<vmem>>, vector<24x128xf32>
    %192 = vector.broadcast %190 : vector<1x128xf32> to vector<24x128xf32>
    %193 = arith.mulf %192, %191 : vector<24x128xf32>
    %194 = arith.addf %189, %193 : vector<24x128xf32>
    %c142 = arith.constant 142 : index
    %c0_110 = arith.constant 0 : index
    %195 = vector.load %arg2[%c142, %c0_110] : memref<256x128xf32, #tpu.memory_space<vmem>>, vector<1x128xf32>
    %c48_111 = arith.constant 48 : index
    %c0_112 = arith.constant 0 : index
    %196 = vector.load %arg1[%c48_111, %c0_112] : memref<96x128xf32, #tpu.memory_space<vmem>>, vector<24x128xf32>
    %197 = vector.broadcast %195 : vector<1x128xf32> to vector<24x128xf32>
    %198 = arith.mulf %197, %196 : vector<24x128xf32>
    %199 = arith.addf %194, %198 : vector<24x128xf32>
    %c206 = arith.constant 206 : index
    %c0_113 = arith.constant 0 : index
    %200 = vector.load %arg2[%c206, %c0_113] : memref<256x128xf32, #tpu.memory_space<vmem>>, vector<1x128xf32>
    %c72_114 = arith.constant 72 : index
    %c0_115 = arith.constant 0 : index
    %201 = vector.load %arg1[%c72_114, %c0_115] : memref<96x128xf32, #tpu.memory_space<vmem>>, vector<24x128xf32>
    %202 = vector.broadcast %200 : vector<1x128xf32> to vector<24x128xf32>
    %203 = arith.mulf %202, %201 : vector<24x128xf32>
    %204 = arith.addf %199, %203 : vector<24x128xf32>
    %c23_i32_116 = arith.constant 23 : i32
    %205 = tpu.dynamic_rotate %204 by %c23_i32_116 dim 0 : vector<24x128xf32>, i32 -> vector<24x128xf32>
    %206 = arith.addf %185, %205 : vector<24x128xf32>
    %c22 = arith.constant 22 : index
    %c0_117 = arith.constant 0 : index
    %207 = vector.load %arg2[%c22, %c0_117] : memref<256x128xf32, #tpu.memory_space<vmem>>, vector<1x128xf32>
    %c0_118 = arith.constant 0 : index
    %c0_119 = arith.constant 0 : index
    %208 = vector.load %arg1[%c0_118, %c0_119] : memref<96x128xf32, #tpu.memory_space<vmem>>, vector<24x128xf32>
    %209 = vector.broadcast %207 : vector<1x128xf32> to vector<24x128xf32>
    %210 = arith.mulf %209, %208 : vector<24x128xf32>
    %c86 = arith.constant 86 : index
    %c0_120 = arith.constant 0 : index
    %211 = vector.load %arg2[%c86, %c0_120] : memref<256x128xf32, #tpu.memory_space<vmem>>, vector<1x128xf32>
    %c24_121 = arith.constant 24 : index
    %c0_122 = arith.constant 0 : index
    %212 = vector.load %arg1[%c24_121, %c0_122] : memref<96x128xf32, #tpu.memory_space<vmem>>, vector<24x128xf32>
    %213 = vector.broadcast %211 : vector<1x128xf32> to vector<24x128xf32>
    %214 = arith.mulf %213, %212 : vector<24x128xf32>
    %215 = arith.addf %210, %214 : vector<24x128xf32>
    %c150 = arith.constant 150 : index
    %c0_123 = arith.constant 0 : index
    %216 = vector.load %arg2[%c150, %c0_123] : memref<256x128xf32, #tpu.memory_space<vmem>>, vector<1x128xf32>
    %c48_124 = arith.constant 48 : index
    %c0_125 = arith.constant 0 : index
    %217 = vector.load %arg1[%c48_124, %c0_125] : memref<96x128xf32, #tpu.memory_space<vmem>>, vector<24x128xf32>
    %218 = vector.broadcast %216 : vector<1x128xf32> to vector<24x128xf32>
    %219 = arith.mulf %218, %217 : vector<24x128xf32>
    %220 = arith.addf %215, %219 : vector<24x128xf32>
    %c214 = arith.constant 214 : index
    %c0_126 = arith.constant 0 : index
    %221 = vector.load %arg2[%c214, %c0_126] : memref<256x128xf32, #tpu.memory_space<vmem>>, vector<1x128xf32>
    %c72_127 = arith.constant 72 : index
    %c0_128 = arith.constant 0 : index
    %222 = vector.load %arg1[%c72_127, %c0_128] : memref<96x128xf32, #tpu.memory_space<vmem>>, vector<24x128xf32>
    %223 = vector.broadcast %221 : vector<1x128xf32> to vector<24x128xf32>
    %224 = arith.mulf %223, %222 : vector<24x128xf32>
    %225 = arith.addf %220, %224 : vector<24x128xf32>
    %c22_i32_129 = arith.constant 22 : i32
    %226 = tpu.dynamic_rotate %225 by %c22_i32_129 dim 0 : vector<24x128xf32>, i32 -> vector<24x128xf32>
    %227 = arith.addf %206, %226 : vector<24x128xf32>
    %c30 = arith.constant 30 : index
    %c0_130 = arith.constant 0 : index
    %228 = vector.load %arg2[%c30, %c0_130] : memref<256x128xf32, #tpu.memory_space<vmem>>, vector<1x128xf32>
    %c0_131 = arith.constant 0 : index
    %c0_132 = arith.constant 0 : index
    %229 = vector.load %arg1[%c0_131, %c0_132] : memref<96x128xf32, #tpu.memory_space<vmem>>, vector<24x128xf32>
    %230 = vector.broadcast %228 : vector<1x128xf32> to vector<24x128xf32>
    %231 = arith.mulf %230, %229 : vector<24x128xf32>
    %c94 = arith.constant 94 : index
    %c0_133 = arith.constant 0 : index
    %232 = vector.load %arg2[%c94, %c0_133] : memref<256x128xf32, #tpu.memory_space<vmem>>, vector<1x128xf32>
    %c24_134 = arith.constant 24 : index
    %c0_135 = arith.constant 0 : index
    %233 = vector.load %arg1[%c24_134, %c0_135] : memref<96x128xf32, #tpu.memory_space<vmem>>, vector<24x128xf32>
    %234 = vector.broadcast %232 : vector<1x128xf32> to vector<24x128xf32>
    %235 = arith.mulf %234, %233 : vector<24x128xf32>
    %236 = arith.addf %231, %235 : vector<24x128xf32>
    %c158 = arith.constant 158 : index
    %c0_136 = arith.constant 0 : index
    %237 = vector.load %arg2[%c158, %c0_136] : memref<256x128xf32, #tpu.memory_space<vmem>>, vector<1x128xf32>
    %c48_137 = arith.constant 48 : index
    %c0_138 = arith.constant 0 : index
    %238 = vector.load %arg1[%c48_137, %c0_138] : memref<96x128xf32, #tpu.memory_space<vmem>>, vector<24x128xf32>
    %239 = vector.broadcast %237 : vector<1x128xf32> to vector<24x128xf32>
    %240 = arith.mulf %239, %238 : vector<24x128xf32>
    %241 = arith.addf %236, %240 : vector<24x128xf32>
    %c222 = arith.constant 222 : index
    %c0_139 = arith.constant 0 : index
    %242 = vector.load %arg2[%c222, %c0_139] : memref<256x128xf32, #tpu.memory_space<vmem>>, vector<1x128xf32>
    %c72_140 = arith.constant 72 : index
    %c0_141 = arith.constant 0 : index
    %243 = vector.load %arg1[%c72_140, %c0_141] : memref<96x128xf32, #tpu.memory_space<vmem>>, vector<24x128xf32>
    %244 = vector.broadcast %242 : vector<1x128xf32> to vector<24x128xf32>
    %245 = arith.mulf %244, %243 : vector<24x128xf32>
    %246 = arith.addf %241, %245 : vector<24x128xf32>
    %c21_i32_142 = arith.constant 21 : i32
    %247 = tpu.dynamic_rotate %246 by %c21_i32_142 dim 0 : vector<24x128xf32>, i32 -> vector<24x128xf32>
    %248 = arith.addf %227, %247 : vector<24x128xf32>
    %c38 = arith.constant 38 : index
    %c0_143 = arith.constant 0 : index
    %249 = vector.load %arg2[%c38, %c0_143] : memref<256x128xf32, #tpu.memory_space<vmem>>, vector<1x128xf32>
    %c0_144 = arith.constant 0 : index
    %c0_145 = arith.constant 0 : index
    %250 = vector.load %arg1[%c0_144, %c0_145] : memref<96x128xf32, #tpu.memory_space<vmem>>, vector<24x128xf32>
    %251 = vector.broadcast %249 : vector<1x128xf32> to vector<24x128xf32>
    %252 = arith.mulf %251, %250 : vector<24x128xf32>
    %c102 = arith.constant 102 : index
    %c0_146 = arith.constant 0 : index
    %253 = vector.load %arg2[%c102, %c0_146] : memref<256x128xf32, #tpu.memory_space<vmem>>, vector<1x128xf32>
    %c24_147 = arith.constant 24 : index
    %c0_148 = arith.constant 0 : index
    %254 = vector.load %arg1[%c24_147, %c0_148] : memref<96x128xf32, #tpu.memory_space<vmem>>, vector<24x128xf32>
    %255 = vector.broadcast %253 : vector<1x128xf32> to vector<24x128xf32>
    %256 = arith.mulf %255, %254 : vector<24x128xf32>
    %257 = arith.addf %252, %256 : vector<24x128xf32>
    %c166 = arith.constant 166 : index
    %c0_149 = arith.constant 0 : index
    %258 = vector.load %arg2[%c166, %c0_149] : memref<256x128xf32, #tpu.memory_space<vmem>>, vector<1x128xf32>
    %c48_150 = arith.constant 48 : index
    %c0_151 = arith.constant 0 : index
    %259 = vector.load %arg1[%c48_150, %c0_151] : memref<96x128xf32, #tpu.memory_space<vmem>>, vector<24x128xf32>
    %260 = vector.broadcast %258 : vector<1x128xf32> to vector<24x128xf32>
    %261 = arith.mulf %260, %259 : vector<24x128xf32>
    %262 = arith.addf %257, %261 : vector<24x128xf32>
    %c230 = arith.constant 230 : index
    %c0_152 = arith.constant 0 : index
    %263 = vector.load %arg2[%c230, %c0_152] : memref<256x128xf32, #tpu.memory_space<vmem>>, vector<1x128xf32>
    %c72_153 = arith.constant 72 : index
    %c0_154 = arith.constant 0 : index
    %264 = vector.load %arg1[%c72_153, %c0_154] : memref<96x128xf32, #tpu.memory_space<vmem>>, vector<24x128xf32>
    %265 = vector.broadcast %263 : vector<1x128xf32> to vector<24x128xf32>
    %266 = arith.mulf %265, %264 : vector<24x128xf32>
    %267 = arith.addf %262, %266 : vector<24x128xf32>
    %c20_i32_155 = arith.constant 20 : i32
    %268 = tpu.dynamic_rotate %267 by %c20_i32_155 dim 0 : vector<24x128xf32>, i32 -> vector<24x128xf32>
    %269 = arith.addf %248, %268 : vector<24x128xf32>
    %c46 = arith.constant 46 : index
    %c0_156 = arith.constant 0 : index
    %270 = vector.load %arg2[%c46, %c0_156] : memref<256x128xf32, #tpu.memory_space<vmem>>, vector<1x128xf32>
    %c0_157 = arith.constant 0 : index
    %c0_158 = arith.constant 0 : index
    %271 = vector.load %arg1[%c0_157, %c0_158] : memref<96x128xf32, #tpu.memory_space<vmem>>, vector<24x128xf32>
    %272 = vector.broadcast %270 : vector<1x128xf32> to vector<24x128xf32>
    %273 = arith.mulf %272, %271 : vector<24x128xf32>
    %c110 = arith.constant 110 : index
    %c0_159 = arith.constant 0 : index
    %274 = vector.load %arg2[%c110, %c0_159] : memref<256x128xf32, #tpu.memory_space<vmem>>, vector<1x128xf32>
    %c24_160 = arith.constant 24 : index
    %c0_161 = arith.constant 0 : index
    %275 = vector.load %arg1[%c24_160, %c0_161] : memref<96x128xf32, #tpu.memory_space<vmem>>, vector<24x128xf32>
    %276 = vector.broadcast %274 : vector<1x128xf32> to vector<24x128xf32>
    %277 = arith.mulf %276, %275 : vector<24x128xf32>
    %278 = arith.addf %273, %277 : vector<24x128xf32>
    %c174 = arith.constant 174 : index
    %c0_162 = arith.constant 0 : index
    %279 = vector.load %arg2[%c174, %c0_162] : memref<256x128xf32, #tpu.memory_space<vmem>>, vector<1x128xf32>
    %c48_163 = arith.constant 48 : index
    %c0_164 = arith.constant 0 : index
    %280 = vector.load %arg1[%c48_163, %c0_164] : memref<96x128xf32, #tpu.memory_space<vmem>>, vector<24x128xf32>
    %281 = vector.broadcast %279 : vector<1x128xf32> to vector<24x128xf32>
    %282 = arith.mulf %281, %280 : vector<24x128xf32>
    %283 = arith.addf %278, %282 : vector<24x128xf32>
    %c238 = arith.constant 238 : index
    %c0_165 = arith.constant 0 : index
    %284 = vector.load %arg2[%c238, %c0_165] : memref<256x128xf32, #tpu.memory_space<vmem>>, vector<1x128xf32>
    %c72_166 = arith.constant 72 : index
    %c0_167 = arith.constant 0 : index
    %285 = vector.load %arg1[%c72_166, %c0_167] : memref<96x128xf32, #tpu.memory_space<vmem>>, vector<24x128xf32>
    %286 = vector.broadcast %284 : vector<1x128xf32> to vector<24x128xf32>
    %287 = arith.mulf %286, %285 : vector<24x128xf32>
    %288 = arith.addf %283, %287 : vector<24x128xf32>
    %c19_i32_168 = arith.constant 19 : i32
    %289 = tpu.dynamic_rotate %288 by %c19_i32_168 dim 0 : vector<24x128xf32>, i32 -> vector<24x128xf32>
    %290 = arith.addf %269, %289 : vector<24x128xf32>
    %c54 = arith.constant 54 : index
    %c0_169 = arith.constant 0 : index
    %291 = vector.load %arg2[%c54, %c0_169] : memref<256x128xf32, #tpu.memory_space<vmem>>, vector<1x128xf32>
    %c0_170 = arith.constant 0 : index
    %c0_171 = arith.constant 0 : index
    %292 = vector.load %arg1[%c0_170, %c0_171] : memref<96x128xf32, #tpu.memory_space<vmem>>, vector<24x128xf32>
    %293 = vector.broadcast %291 : vector<1x128xf32> to vector<24x128xf32>
    %294 = arith.mulf %293, %292 : vector<24x128xf32>
    %c118 = arith.constant 118 : index
    %c0_172 = arith.constant 0 : index
    %295 = vector.load %arg2[%c118, %c0_172] : memref<256x128xf32, #tpu.memory_space<vmem>>, vector<1x128xf32>
    %c24_173 = arith.constant 24 : index
    %c0_174 = arith.constant 0 : index
    %296 = vector.load %arg1[%c24_173, %c0_174] : memref<96x128xf32, #tpu.memory_space<vmem>>, vector<24x128xf32>
    %297 = vector.broadcast %295 : vector<1x128xf32> to vector<24x128xf32>
    %298 = arith.mulf %297, %296 : vector<24x128xf32>
    %299 = arith.addf %294, %298 : vector<24x128xf32>
    %c182 = arith.constant 182 : index
    %c0_175 = arith.constant 0 : index
    %300 = vector.load %arg2[%c182, %c0_175] : memref<256x128xf32, #tpu.memory_space<vmem>>, vector<1x128xf32>
    %c48_176 = arith.constant 48 : index
    %c0_177 = arith.constant 0 : index
    %301 = vector.load %arg1[%c48_176, %c0_177] : memref<96x128xf32, #tpu.memory_space<vmem>>, vector<24x128xf32>
    %302 = vector.broadcast %300 : vector<1x128xf32> to vector<24x128xf32>
    %303 = arith.mulf %302, %301 : vector<24x128xf32>
    %304 = arith.addf %299, %303 : vector<24x128xf32>
    %c246 = arith.constant 246 : index
    %c0_178 = arith.constant 0 : index
    %305 = vector.load %arg2[%c246, %c0_178] : memref<256x128xf32, #tpu.memory_space<vmem>>, vector<1x128xf32>
    %c72_179 = arith.constant 72 : index
    %c0_180 = arith.constant 0 : index
    %306 = vector.load %arg1[%c72_179, %c0_180] : memref<96x128xf32, #tpu.memory_space<vmem>>, vector<24x128xf32>
    %307 = vector.broadcast %305 : vector<1x128xf32> to vector<24x128xf32>
    %308 = arith.mulf %307, %306 : vector<24x128xf32>
    %309 = arith.addf %304, %308 : vector<24x128xf32>
    %c18_i32_181 = arith.constant 18 : i32
    %310 = tpu.dynamic_rotate %309 by %c18_i32_181 dim 0 : vector<24x128xf32>, i32 -> vector<24x128xf32>
    %311 = arith.addf %290, %310 : vector<24x128xf32>
    %c62 = arith.constant 62 : index
    %c0_182 = arith.constant 0 : index
    %312 = vector.load %arg2[%c62, %c0_182] : memref<256x128xf32, #tpu.memory_space<vmem>>, vector<1x128xf32>
    %c0_183 = arith.constant 0 : index
    %c0_184 = arith.constant 0 : index
    %313 = vector.load %arg1[%c0_183, %c0_184] : memref<96x128xf32, #tpu.memory_space<vmem>>, vector<24x128xf32>
    %314 = vector.broadcast %312 : vector<1x128xf32> to vector<24x128xf32>
    %315 = arith.mulf %314, %313 : vector<24x128xf32>
    %c126 = arith.constant 126 : index
    %c0_185 = arith.constant 0 : index
    %316 = vector.load %arg2[%c126, %c0_185] : memref<256x128xf32, #tpu.memory_space<vmem>>, vector<1x128xf32>
    %c24_186 = arith.constant 24 : index
    %c0_187 = arith.constant 0 : index
    %317 = vector.load %arg1[%c24_186, %c0_187] : memref<96x128xf32, #tpu.memory_space<vmem>>, vector<24x128xf32>
    %318 = vector.broadcast %316 : vector<1x128xf32> to vector<24x128xf32>
    %319 = arith.mulf %318, %317 : vector<24x128xf32>
    %320 = arith.addf %315, %319 : vector<24x128xf32>
    %c190 = arith.constant 190 : index
    %c0_188 = arith.constant 0 : index
    %321 = vector.load %arg2[%c190, %c0_188] : memref<256x128xf32, #tpu.memory_space<vmem>>, vector<1x128xf32>
    %c48_189 = arith.constant 48 : index
    %c0_190 = arith.constant 0 : index
    %322 = vector.load %arg1[%c48_189, %c0_190] : memref<96x128xf32, #tpu.memory_space<vmem>>, vector<24x128xf32>
    %323 = vector.broadcast %321 : vector<1x128xf32> to vector<24x128xf32>
    %324 = arith.mulf %323, %322 : vector<24x128xf32>
    %325 = arith.addf %320, %324 : vector<24x128xf32>
    %c254 = arith.constant 254 : index
    %c0_191 = arith.constant 0 : index
    %326 = vector.load %arg2[%c254, %c0_191] : memref<256x128xf32, #tpu.memory_space<vmem>>, vector<1x128xf32>
    %c72_192 = arith.constant 72 : index
    %c0_193 = arith.constant 0 : index
    %327 = vector.load %arg1[%c72_192, %c0_193] : memref<96x128xf32, #tpu.memory_space<vmem>>, vector<24x128xf32>
    %328 = vector.broadcast %326 : vector<1x128xf32> to vector<24x128xf32>
    %329 = arith.mulf %328, %327 : vector<24x128xf32>
    %330 = arith.addf %325, %329 : vector<24x128xf32>
    %c17_i32_194 = arith.constant 17 : i32
    %331 = tpu.dynamic_rotate %330 by %c17_i32_194 dim 0 : vector<24x128xf32>, i32 -> vector<24x128xf32>
    %332 = arith.addf %311, %331 : vector<24x128xf32>
    %333 = arith.addf %166, %332 : vector<24x128xf32>
    %c127_i32_195 = arith.constant 127 : i32
    %334 = tpu.dynamic_rotate %333 by %c127_i32_195 dim 1 : vector<24x128xf32>, i32 -> vector<24x128xf32>
    %c5 = arith.constant 5 : index
    %c0_196 = arith.constant 0 : index
    %335 = vector.load %arg2[%c5, %c0_196] : memref<256x128xf32, #tpu.memory_space<vmem>>, vector<1x128xf32>
    %c0_197 = arith.constant 0 : index
    %c0_198 = arith.constant 0 : index
    %336 = vector.load %arg1[%c0_197, %c0_198] : memref<96x128xf32, #tpu.memory_space<vmem>>, vector<24x128xf32>
    %337 = vector.broadcast %335 : vector<1x128xf32> to vector<24x128xf32>
    %338 = arith.mulf %337, %336 : vector<24x128xf32>
    %c69 = arith.constant 69 : index
    %c0_199 = arith.constant 0 : index
    %339 = vector.load %arg2[%c69, %c0_199] : memref<256x128xf32, #tpu.memory_space<vmem>>, vector<1x128xf32>
    %c24_200 = arith.constant 24 : index
    %c0_201 = arith.constant 0 : index
    %340 = vector.load %arg1[%c24_200, %c0_201] : memref<96x128xf32, #tpu.memory_space<vmem>>, vector<24x128xf32>
    %341 = vector.broadcast %339 : vector<1x128xf32> to vector<24x128xf32>
    %342 = arith.mulf %341, %340 : vector<24x128xf32>
    %343 = arith.addf %338, %342 : vector<24x128xf32>
    %c133 = arith.constant 133 : index
    %c0_202 = arith.constant 0 : index
    %344 = vector.load %arg2[%c133, %c0_202] : memref<256x128xf32, #tpu.memory_space<vmem>>, vector<1x128xf32>
    %c48_203 = arith.constant 48 : index
    %c0_204 = arith.constant 0 : index
    %345 = vector.load %arg1[%c48_203, %c0_204] : memref<96x128xf32, #tpu.memory_space<vmem>>, vector<24x128xf32>
    %346 = vector.broadcast %344 : vector<1x128xf32> to vector<24x128xf32>
    %347 = arith.mulf %346, %345 : vector<24x128xf32>
    %348 = arith.addf %343, %347 : vector<24x128xf32>
    %c197 = arith.constant 197 : index
    %c0_205 = arith.constant 0 : index
    %349 = vector.load %arg2[%c197, %c0_205] : memref<256x128xf32, #tpu.memory_space<vmem>>, vector<1x128xf32>
    %c72_206 = arith.constant 72 : index
    %c0_207 = arith.constant 0 : index
    %350 = vector.load %arg1[%c72_206, %c0_207] : memref<96x128xf32, #tpu.memory_space<vmem>>, vector<24x128xf32>
    %351 = vector.broadcast %349 : vector<1x128xf32> to vector<24x128xf32>
    %352 = arith.mulf %351, %350 : vector<24x128xf32>
    %353 = arith.addf %348, %352 : vector<24x128xf32>
    %c13 = arith.constant 13 : index
    %c0_208 = arith.constant 0 : index
    %354 = vector.load %arg2[%c13, %c0_208] : memref<256x128xf32, #tpu.memory_space<vmem>>, vector<1x128xf32>
    %c0_209 = arith.constant 0 : index
    %c0_210 = arith.constant 0 : index
    %355 = vector.load %arg1[%c0_209, %c0_210] : memref<96x128xf32, #tpu.memory_space<vmem>>, vector<24x128xf32>
    %356 = vector.broadcast %354 : vector<1x128xf32> to vector<24x128xf32>
    %357 = arith.mulf %356, %355 : vector<24x128xf32>
    %c77 = arith.constant 77 : index
    %c0_211 = arith.constant 0 : index
    %358 = vector.load %arg2[%c77, %c0_211] : memref<256x128xf32, #tpu.memory_space<vmem>>, vector<1x128xf32>
    %c24_212 = arith.constant 24 : index
    %c0_213 = arith.constant 0 : index
    %359 = vector.load %arg1[%c24_212, %c0_213] : memref<96x128xf32, #tpu.memory_space<vmem>>, vector<24x128xf32>
    %360 = vector.broadcast %358 : vector<1x128xf32> to vector<24x128xf32>
    %361 = arith.mulf %360, %359 : vector<24x128xf32>
    %362 = arith.addf %357, %361 : vector<24x128xf32>
    %c141 = arith.constant 141 : index
    %c0_214 = arith.constant 0 : index
    %363 = vector.load %arg2[%c141, %c0_214] : memref<256x128xf32, #tpu.memory_space<vmem>>, vector<1x128xf32>
    %c48_215 = arith.constant 48 : index
    %c0_216 = arith.constant 0 : index
    %364 = vector.load %arg1[%c48_215, %c0_216] : memref<96x128xf32, #tpu.memory_space<vmem>>, vector<24x128xf32>
    %365 = vector.broadcast %363 : vector<1x128xf32> to vector<24x128xf32>
    %366 = arith.mulf %365, %364 : vector<24x128xf32>
    %367 = arith.addf %362, %366 : vector<24x128xf32>
    %c205 = arith.constant 205 : index
    %c0_217 = arith.constant 0 : index
    %368 = vector.load %arg2[%c205, %c0_217] : memref<256x128xf32, #tpu.memory_space<vmem>>, vector<1x128xf32>
    %c72_218 = arith.constant 72 : index
    %c0_219 = arith.constant 0 : index
    %369 = vector.load %arg1[%c72_218, %c0_219] : memref<96x128xf32, #tpu.memory_space<vmem>>, vector<24x128xf32>
    %370 = vector.broadcast %368 : vector<1x128xf32> to vector<24x128xf32>
    %371 = arith.mulf %370, %369 : vector<24x128xf32>
    %372 = arith.addf %367, %371 : vector<24x128xf32>
    %c23_i32_220 = arith.constant 23 : i32
    %373 = tpu.dynamic_rotate %372 by %c23_i32_220 dim 0 : vector<24x128xf32>, i32 -> vector<24x128xf32>
    %374 = arith.addf %353, %373 : vector<24x128xf32>
    %c21 = arith.constant 21 : index
    %c0_221 = arith.constant 0 : index
    %375 = vector.load %arg2[%c21, %c0_221] : memref<256x128xf32, #tpu.memory_space<vmem>>, vector<1x128xf32>
    %c0_222 = arith.constant 0 : index
    %c0_223 = arith.constant 0 : index
    %376 = vector.load %arg1[%c0_222, %c0_223] : memref<96x128xf32, #tpu.memory_space<vmem>>, vector<24x128xf32>
    %377 = vector.broadcast %375 : vector<1x128xf32> to vector<24x128xf32>
    %378 = arith.mulf %377, %376 : vector<24x128xf32>
    %c85 = arith.constant 85 : index
    %c0_224 = arith.constant 0 : index
    %379 = vector.load %arg2[%c85, %c0_224] : memref<256x128xf32, #tpu.memory_space<vmem>>, vector<1x128xf32>
    %c24_225 = arith.constant 24 : index
    %c0_226 = arith.constant 0 : index
    %380 = vector.load %arg1[%c24_225, %c0_226] : memref<96x128xf32, #tpu.memory_space<vmem>>, vector<24x128xf32>
    %381 = vector.broadcast %379 : vector<1x128xf32> to vector<24x128xf32>
    %382 = arith.mulf %381, %380 : vector<24x128xf32>
    %383 = arith.addf %378, %382 : vector<24x128xf32>
    %c149 = arith.constant 149 : index
    %c0_227 = arith.constant 0 : index
    %384 = vector.load %arg2[%c149, %c0_227] : memref<256x128xf32, #tpu.memory_space<vmem>>, vector<1x128xf32>
    %c48_228 = arith.constant 48 : index
    %c0_229 = arith.constant 0 : index
    %385 = vector.load %arg1[%c48_228, %c0_229] : memref<96x128xf32, #tpu.memory_space<vmem>>, vector<24x128xf32>
    %386 = vector.broadcast %384 : vector<1x128xf32> to vector<24x128xf32>
    %387 = arith.mulf %386, %385 : vector<24x128xf32>
    %388 = arith.addf %383, %387 : vector<24x128xf32>
    %c213 = arith.constant 213 : index
    %c0_230 = arith.constant 0 : index
    %389 = vector.load %arg2[%c213, %c0_230] : memref<256x128xf32, #tpu.memory_space<vmem>>, vector<1x128xf32>
    %c72_231 = arith.constant 72 : index
    %c0_232 = arith.constant 0 : index
    %390 = vector.load %arg1[%c72_231, %c0_232] : memref<96x128xf32, #tpu.memory_space<vmem>>, vector<24x128xf32>
    %391 = vector.broadcast %389 : vector<1x128xf32> to vector<24x128xf32>
    %392 = arith.mulf %391, %390 : vector<24x128xf32>
    %393 = arith.addf %388, %392 : vector<24x128xf32>
    %c22_i32_233 = arith.constant 22 : i32
    %394 = tpu.dynamic_rotate %393 by %c22_i32_233 dim 0 : vector<24x128xf32>, i32 -> vector<24x128xf32>
    %395 = arith.addf %374, %394 : vector<24x128xf32>
    %c29 = arith.constant 29 : index
    %c0_234 = arith.constant 0 : index
    %396 = vector.load %arg2[%c29, %c0_234] : memref<256x128xf32, #tpu.memory_space<vmem>>, vector<1x128xf32>
    %c0_235 = arith.constant 0 : index
    %c0_236 = arith.constant 0 : index
    %397 = vector.load %arg1[%c0_235, %c0_236] : memref<96x128xf32, #tpu.memory_space<vmem>>, vector<24x128xf32>
    %398 = vector.broadcast %396 : vector<1x128xf32> to vector<24x128xf32>
    %399 = arith.mulf %398, %397 : vector<24x128xf32>
    %c93 = arith.constant 93 : index
    %c0_237 = arith.constant 0 : index
    %400 = vector.load %arg2[%c93, %c0_237] : memref<256x128xf32, #tpu.memory_space<vmem>>, vector<1x128xf32>
    %c24_238 = arith.constant 24 : index
    %c0_239 = arith.constant 0 : index
    %401 = vector.load %arg1[%c24_238, %c0_239] : memref<96x128xf32, #tpu.memory_space<vmem>>, vector<24x128xf32>
    %402 = vector.broadcast %400 : vector<1x128xf32> to vector<24x128xf32>
    %403 = arith.mulf %402, %401 : vector<24x128xf32>
    %404 = arith.addf %399, %403 : vector<24x128xf32>
    %c157 = arith.constant 157 : index
    %c0_240 = arith.constant 0 : index
    %405 = vector.load %arg2[%c157, %c0_240] : memref<256x128xf32, #tpu.memory_space<vmem>>, vector<1x128xf32>
    %c48_241 = arith.constant 48 : index
    %c0_242 = arith.constant 0 : index
    %406 = vector.load %arg1[%c48_241, %c0_242] : memref<96x128xf32, #tpu.memory_space<vmem>>, vector<24x128xf32>
    %407 = vector.broadcast %405 : vector<1x128xf32> to vector<24x128xf32>
    %408 = arith.mulf %407, %406 : vector<24x128xf32>
    %409 = arith.addf %404, %408 : vector<24x128xf32>
    %c221 = arith.constant 221 : index
    %c0_243 = arith.constant 0 : index
    %410 = vector.load %arg2[%c221, %c0_243] : memref<256x128xf32, #tpu.memory_space<vmem>>, vector<1x128xf32>
    %c72_244 = arith.constant 72 : index
    %c0_245 = arith.constant 0 : index
    %411 = vector.load %arg1[%c72_244, %c0_245] : memref<96x128xf32, #tpu.memory_space<vmem>>, vector<24x128xf32>
    %412 = vector.broadcast %410 : vector<1x128xf32> to vector<24x128xf32>
    %413 = arith.mulf %412, %411 : vector<24x128xf32>
    %414 = arith.addf %409, %413 : vector<24x128xf32>
    %c21_i32_246 = arith.constant 21 : i32
    %415 = tpu.dynamic_rotate %414 by %c21_i32_246 dim 0 : vector<24x128xf32>, i32 -> vector<24x128xf32>
    %416 = arith.addf %395, %415 : vector<24x128xf32>
    %c37 = arith.constant 37 : index
    %c0_247 = arith.constant 0 : index
    %417 = vector.load %arg2[%c37, %c0_247] : memref<256x128xf32, #tpu.memory_space<vmem>>, vector<1x128xf32>
    %c0_248 = arith.constant 0 : index
    %c0_249 = arith.constant 0 : index
    %418 = vector.load %arg1[%c0_248, %c0_249] : memref<96x128xf32, #tpu.memory_space<vmem>>, vector<24x128xf32>
    %419 = vector.broadcast %417 : vector<1x128xf32> to vector<24x128xf32>
    %420 = arith.mulf %419, %418 : vector<24x128xf32>
    %c101 = arith.constant 101 : index
    %c0_250 = arith.constant 0 : index
    %421 = vector.load %arg2[%c101, %c0_250] : memref<256x128xf32, #tpu.memory_space<vmem>>, vector<1x128xf32>
    %c24_251 = arith.constant 24 : index
    %c0_252 = arith.constant 0 : index
    %422 = vector.load %arg1[%c24_251, %c0_252] : memref<96x128xf32, #tpu.memory_space<vmem>>, vector<24x128xf32>
    %423 = vector.broadcast %421 : vector<1x128xf32> to vector<24x128xf32>
    %424 = arith.mulf %423, %422 : vector<24x128xf32>
    %425 = arith.addf %420, %424 : vector<24x128xf32>
    %c165 = arith.constant 165 : index
    %c0_253 = arith.constant 0 : index
    %426 = vector.load %arg2[%c165, %c0_253] : memref<256x128xf32, #tpu.memory_space<vmem>>, vector<1x128xf32>
    %c48_254 = arith.constant 48 : index
    %c0_255 = arith.constant 0 : index
    %427 = vector.load %arg1[%c48_254, %c0_255] : memref<96x128xf32, #tpu.memory_space<vmem>>, vector<24x128xf32>
    %428 = vector.broadcast %426 : vector<1x128xf32> to vector<24x128xf32>
    %429 = arith.mulf %428, %427 : vector<24x128xf32>
    %430 = arith.addf %425, %429 : vector<24x128xf32>
    %c229 = arith.constant 229 : index
    %c0_256 = arith.constant 0 : index
    %431 = vector.load %arg2[%c229, %c0_256] : memref<256x128xf32, #tpu.memory_space<vmem>>, vector<1x128xf32>
    %c72_257 = arith.constant 72 : index
    %c0_258 = arith.constant 0 : index
    %432 = vector.load %arg1[%c72_257, %c0_258] : memref<96x128xf32, #tpu.memory_space<vmem>>, vector<24x128xf32>
    %433 = vector.broadcast %431 : vector<1x128xf32> to vector<24x128xf32>
    %434 = arith.mulf %433, %432 : vector<24x128xf32>
    %435 = arith.addf %430, %434 : vector<24x128xf32>
    %c20_i32_259 = arith.constant 20 : i32
    %436 = tpu.dynamic_rotate %435 by %c20_i32_259 dim 0 : vector<24x128xf32>, i32 -> vector<24x128xf32>
    %437 = arith.addf %416, %436 : vector<24x128xf32>
    %c45 = arith.constant 45 : index
    %c0_260 = arith.constant 0 : index
    %438 = vector.load %arg2[%c45, %c0_260] : memref<256x128xf32, #tpu.memory_space<vmem>>, vector<1x128xf32>
    %c0_261 = arith.constant 0 : index
    %c0_262 = arith.constant 0 : index
    %439 = vector.load %arg1[%c0_261, %c0_262] : memref<96x128xf32, #tpu.memory_space<vmem>>, vector<24x128xf32>
    %440 = vector.broadcast %438 : vector<1x128xf32> to vector<24x128xf32>
    %441 = arith.mulf %440, %439 : vector<24x128xf32>
    %c109 = arith.constant 109 : index
    %c0_263 = arith.constant 0 : index
    %442 = vector.load %arg2[%c109, %c0_263] : memref<256x128xf32, #tpu.memory_space<vmem>>, vector<1x128xf32>
    %c24_264 = arith.constant 24 : index
    %c0_265 = arith.constant 0 : index
    %443 = vector.load %arg1[%c24_264, %c0_265] : memref<96x128xf32, #tpu.memory_space<vmem>>, vector<24x128xf32>
    %444 = vector.broadcast %442 : vector<1x128xf32> to vector<24x128xf32>
    %445 = arith.mulf %444, %443 : vector<24x128xf32>
    %446 = arith.addf %441, %445 : vector<24x128xf32>
    %c173 = arith.constant 173 : index
    %c0_266 = arith.constant 0 : index
    %447 = vector.load %arg2[%c173, %c0_266] : memref<256x128xf32, #tpu.memory_space<vmem>>, vector<1x128xf32>
    %c48_267 = arith.constant 48 : index
    %c0_268 = arith.constant 0 : index
    %448 = vector.load %arg1[%c48_267, %c0_268] : memref<96x128xf32, #tpu.memory_space<vmem>>, vector<24x128xf32>
    %449 = vector.broadcast %447 : vector<1x128xf32> to vector<24x128xf32>
    %450 = arith.mulf %449, %448 : vector<24x128xf32>
    %451 = arith.addf %446, %450 : vector<24x128xf32>
    %c237 = arith.constant 237 : index
    %c0_269 = arith.constant 0 : index
    %452 = vector.load %arg2[%c237, %c0_269] : memref<256x128xf32, #tpu.memory_space<vmem>>, vector<1x128xf32>
    %c72_270 = arith.constant 72 : index
    %c0_271 = arith.constant 0 : index
    %453 = vector.load %arg1[%c72_270, %c0_271] : memref<96x128xf32, #tpu.memory_space<vmem>>, vector<24x128xf32>
    %454 = vector.broadcast %452 : vector<1x128xf32> to vector<24x128xf32>
    %455 = arith.mulf %454, %453 : vector<24x128xf32>
    %456 = arith.addf %451, %455 : vector<24x128xf32>
    %c19_i32_272 = arith.constant 19 : i32
    %457 = tpu.dynamic_rotate %456 by %c19_i32_272 dim 0 : vector<24x128xf32>, i32 -> vector<24x128xf32>
    %458 = arith.addf %437, %457 : vector<24x128xf32>
    %c53 = arith.constant 53 : index
    %c0_273 = arith.constant 0 : index
    %459 = vector.load %arg2[%c53, %c0_273] : memref<256x128xf32, #tpu.memory_space<vmem>>, vector<1x128xf32>
    %c0_274 = arith.constant 0 : index
    %c0_275 = arith.constant 0 : index
    %460 = vector.load %arg1[%c0_274, %c0_275] : memref<96x128xf32, #tpu.memory_space<vmem>>, vector<24x128xf32>
    %461 = vector.broadcast %459 : vector<1x128xf32> to vector<24x128xf32>
    %462 = arith.mulf %461, %460 : vector<24x128xf32>
    %c117 = arith.constant 117 : index
    %c0_276 = arith.constant 0 : index
    %463 = vector.load %arg2[%c117, %c0_276] : memref<256x128xf32, #tpu.memory_space<vmem>>, vector<1x128xf32>
    %c24_277 = arith.constant 24 : index
    %c0_278 = arith.constant 0 : index
    %464 = vector.load %arg1[%c24_277, %c0_278] : memref<96x128xf32, #tpu.memory_space<vmem>>, vector<24x128xf32>
    %465 = vector.broadcast %463 : vector<1x128xf32> to vector<24x128xf32>
    %466 = arith.mulf %465, %464 : vector<24x128xf32>
    %467 = arith.addf %462, %466 : vector<24x128xf32>
    %c181 = arith.constant 181 : index
    %c0_279 = arith.constant 0 : index
    %468 = vector.load %arg2[%c181, %c0_279] : memref<256x128xf32, #tpu.memory_space<vmem>>, vector<1x128xf32>
    %c48_280 = arith.constant 48 : index
    %c0_281 = arith.constant 0 : index
    %469 = vector.load %arg1[%c48_280, %c0_281] : memref<96x128xf32, #tpu.memory_space<vmem>>, vector<24x128xf32>
    %470 = vector.broadcast %468 : vector<1x128xf32> to vector<24x128xf32>
    %471 = arith.mulf %470, %469 : vector<24x128xf32>
    %472 = arith.addf %467, %471 : vector<24x128xf32>
    %c245 = arith.constant 245 : index
    %c0_282 = arith.constant 0 : index
    %473 = vector.load %arg2[%c245, %c0_282] : memref<256x128xf32, #tpu.memory_space<vmem>>, vector<1x128xf32>
    %c72_283 = arith.constant 72 : index
    %c0_284 = arith.constant 0 : index
    %474 = vector.load %arg1[%c72_283, %c0_284] : memref<96x128xf32, #tpu.memory_space<vmem>>, vector<24x128xf32>
    %475 = vector.broadcast %473 : vector<1x128xf32> to vector<24x128xf32>
    %476 = arith.mulf %475, %474 : vector<24x128xf32>
    %477 = arith.addf %472, %476 : vector<24x128xf32>
    %c18_i32_285 = arith.constant 18 : i32
    %478 = tpu.dynamic_rotate %477 by %c18_i32_285 dim 0 : vector<24x128xf32>, i32 -> vector<24x128xf32>
    %479 = arith.addf %458, %478 : vector<24x128xf32>
    %c61 = arith.constant 61 : index
    %c0_286 = arith.constant 0 : index
    %480 = vector.load %arg2[%c61, %c0_286] : memref<256x128xf32, #tpu.memory_space<vmem>>, vector<1x128xf32>
    %c0_287 = arith.constant 0 : index
    %c0_288 = arith.constant 0 : index
    %481 = vector.load %arg1[%c0_287, %c0_288] : memref<96x128xf32, #tpu.memory_space<vmem>>, vector<24x128xf32>
    %482 = vector.broadcast %480 : vector<1x128xf32> to vector<24x128xf32>
    %483 = arith.mulf %482, %481 : vector<24x128xf32>
    %c125 = arith.constant 125 : index
    %c0_289 = arith.constant 0 : index
    %484 = vector.load %arg2[%c125, %c0_289] : memref<256x128xf32, #tpu.memory_space<vmem>>, vector<1x128xf32>
    %c24_290 = arith.constant 24 : index
    %c0_291 = arith.constant 0 : index
    %485 = vector.load %arg1[%c24_290, %c0_291] : memref<96x128xf32, #tpu.memory_space<vmem>>, vector<24x128xf32>
    %486 = vector.broadcast %484 : vector<1x128xf32> to vector<24x128xf32>
    %487 = arith.mulf %486, %485 : vector<24x128xf32>
    %488 = arith.addf %483, %487 : vector<24x128xf32>
    %c189 = arith.constant 189 : index
    %c0_292 = arith.constant 0 : index
    %489 = vector.load %arg2[%c189, %c0_292] : memref<256x128xf32, #tpu.memory_space<vmem>>, vector<1x128xf32>
    %c48_293 = arith.constant 48 : index
    %c0_294 = arith.constant 0 : index
    %490 = vector.load %arg1[%c48_293, %c0_294] : memref<96x128xf32, #tpu.memory_space<vmem>>, vector<24x128xf32>
    %491 = vector.broadcast %489 : vector<1x128xf32> to vector<24x128xf32>
    %492 = arith.mulf %491, %490 : vector<24x128xf32>
    %493 = arith.addf %488, %492 : vector<24x128xf32>
    %c253 = arith.constant 253 : index
    %c0_295 = arith.constant 0 : index
    %494 = vector.load %arg2[%c253, %c0_295] : memref<256x128xf32, #tpu.memory_space<vmem>>, vector<1x128xf32>
    %c72_296 = arith.constant 72 : index
    %c0_297 = arith.constant 0 : index
    %495 = vector.load %arg1[%c72_296, %c0_297] : memref<96x128xf32, #tpu.memory_space<vmem>>, vector<24x128xf32>
    %496 = vector.broadcast %494 : vector<1x128xf32> to vector<24x128xf32>
    %497 = arith.mulf %496, %495 : vector<24x128xf32>
    %498 = arith.addf %493, %497 : vector<24x128xf32>
    %c17_i32_298 = arith.constant 17 : i32
    %499 = tpu.dynamic_rotate %498 by %c17_i32_298 dim 0 : vector<24x128xf32>, i32 -> vector<24x128xf32>
    %500 = arith.addf %479, %499 : vector<24x128xf32>
    %501 = arith.addf %334, %500 : vector<24x128xf32>
    %c127_i32_299 = arith.constant 127 : i32
    %502 = tpu.dynamic_rotate %501 by %c127_i32_299 dim 1 : vector<24x128xf32>, i32 -> vector<24x128xf32>
    %c4 = arith.constant 4 : index
    %c0_300 = arith.constant 0 : index
    %503 = vector.load %arg2[%c4, %c0_300] : memref<256x128xf32, #tpu.memory_space<vmem>>, vector<1x128xf32>
    %c0_301 = arith.constant 0 : index
    %c0_302 = arith.constant 0 : index
    %504 = vector.load %arg1[%c0_301, %c0_302] : memref<96x128xf32, #tpu.memory_space<vmem>>, vector<24x128xf32>
    %505 = vector.broadcast %503 : vector<1x128xf32> to vector<24x128xf32>
    %506 = arith.mulf %505, %504 : vector<24x128xf32>
    %c68 = arith.constant 68 : index
    %c0_303 = arith.constant 0 : index
    %507 = vector.load %arg2[%c68, %c0_303] : memref<256x128xf32, #tpu.memory_space<vmem>>, vector<1x128xf32>
    %c24_304 = arith.constant 24 : index
    %c0_305 = arith.constant 0 : index
    %508 = vector.load %arg1[%c24_304, %c0_305] : memref<96x128xf32, #tpu.memory_space<vmem>>, vector<24x128xf32>
    %509 = vector.broadcast %507 : vector<1x128xf32> to vector<24x128xf32>
    %510 = arith.mulf %509, %508 : vector<24x128xf32>
    %511 = arith.addf %506, %510 : vector<24x128xf32>
    %c132 = arith.constant 132 : index
    %c0_306 = arith.constant 0 : index
    %512 = vector.load %arg2[%c132, %c0_306] : memref<256x128xf32, #tpu.memory_space<vmem>>, vector<1x128xf32>
    %c48_307 = arith.constant 48 : index
    %c0_308 = arith.constant 0 : index
    %513 = vector.load %arg1[%c48_307, %c0_308] : memref<96x128xf32, #tpu.memory_space<vmem>>, vector<24x128xf32>
    %514 = vector.broadcast %512 : vector<1x128xf32> to vector<24x128xf32>
    %515 = arith.mulf %514, %513 : vector<24x128xf32>
    %516 = arith.addf %511, %515 : vector<24x128xf32>
    %c196 = arith.constant 196 : index
    %c0_309 = arith.constant 0 : index
    %517 = vector.load %arg2[%c196, %c0_309] : memref<256x128xf32, #tpu.memory_space<vmem>>, vector<1x128xf32>
    %c72_310 = arith.constant 72 : index
    %c0_311 = arith.constant 0 : index
    %518 = vector.load %arg1[%c72_310, %c0_311] : memref<96x128xf32, #tpu.memory_space<vmem>>, vector<24x128xf32>
    %519 = vector.broadcast %517 : vector<1x128xf32> to vector<24x128xf32>
    %520 = arith.mulf %519, %518 : vector<24x128xf32>
    %521 = arith.addf %516, %520 : vector<24x128xf32>
    %c12 = arith.constant 12 : index
    %c0_312 = arith.constant 0 : index
    %522 = vector.load %arg2[%c12, %c0_312] : memref<256x128xf32, #tpu.memory_space<vmem>>, vector<1x128xf32>
    %c0_313 = arith.constant 0 : index
    %c0_314 = arith.constant 0 : index
    %523 = vector.load %arg1[%c0_313, %c0_314] : memref<96x128xf32, #tpu.memory_space<vmem>>, vector<24x128xf32>
    %524 = vector.broadcast %522 : vector<1x128xf32> to vector<24x128xf32>
    %525 = arith.mulf %524, %523 : vector<24x128xf32>
    %c76 = arith.constant 76 : index
    %c0_315 = arith.constant 0 : index
    %526 = vector.load %arg2[%c76, %c0_315] : memref<256x128xf32, #tpu.memory_space<vmem>>, vector<1x128xf32>
    %c24_316 = arith.constant 24 : index
    %c0_317 = arith.constant 0 : index
    %527 = vector.load %arg1[%c24_316, %c0_317] : memref<96x128xf32, #tpu.memory_space<vmem>>, vector<24x128xf32>
    %528 = vector.broadcast %526 : vector<1x128xf32> to vector<24x128xf32>
    %529 = arith.mulf %528, %527 : vector<24x128xf32>
    %530 = arith.addf %525, %529 : vector<24x128xf32>
    %c140 = arith.constant 140 : index
    %c0_318 = arith.constant 0 : index
    %531 = vector.load %arg2[%c140, %c0_318] : memref<256x128xf32, #tpu.memory_space<vmem>>, vector<1x128xf32>
    %c48_319 = arith.constant 48 : index
    %c0_320 = arith.constant 0 : index
    %532 = vector.load %arg1[%c48_319, %c0_320] : memref<96x128xf32, #tpu.memory_space<vmem>>, vector<24x128xf32>
    %533 = vector.broadcast %531 : vector<1x128xf32> to vector<24x128xf32>
    %534 = arith.mulf %533, %532 : vector<24x128xf32>
    %535 = arith.addf %530, %534 : vector<24x128xf32>
    %c204 = arith.constant 204 : index
    %c0_321 = arith.constant 0 : index
    %536 = vector.load %arg2[%c204, %c0_321] : memref<256x128xf32, #tpu.memory_space<vmem>>, vector<1x128xf32>
    %c72_322 = arith.constant 72 : index
    %c0_323 = arith.constant 0 : index
    %537 = vector.load %arg1[%c72_322, %c0_323] : memref<96x128xf32, #tpu.memory_space<vmem>>, vector<24x128xf32>
    %538 = vector.broadcast %536 : vector<1x128xf32> to vector<24x128xf32>
    %539 = arith.mulf %538, %537 : vector<24x128xf32>
    %540 = arith.addf %535, %539 : vector<24x128xf32>
    %c23_i32_324 = arith.constant 23 : i32
    %541 = tpu.dynamic_rotate %540 by %c23_i32_324 dim 0 : vector<24x128xf32>, i32 -> vector<24x128xf32>
    %542 = arith.addf %521, %541 : vector<24x128xf32>
    %c20 = arith.constant 20 : index
    %c0_325 = arith.constant 0 : index
    %543 = vector.load %arg2[%c20, %c0_325] : memref<256x128xf32, #tpu.memory_space<vmem>>, vector<1x128xf32>
    %c0_326 = arith.constant 0 : index
    %c0_327 = arith.constant 0 : index
    %544 = vector.load %arg1[%c0_326, %c0_327] : memref<96x128xf32, #tpu.memory_space<vmem>>, vector<24x128xf32>
    %545 = vector.broadcast %543 : vector<1x128xf32> to vector<24x128xf32>
    %546 = arith.mulf %545, %544 : vector<24x128xf32>
    %c84 = arith.constant 84 : index
    %c0_328 = arith.constant 0 : index
    %547 = vector.load %arg2[%c84, %c0_328] : memref<256x128xf32, #tpu.memory_space<vmem>>, vector<1x128xf32>
    %c24_329 = arith.constant 24 : index
    %c0_330 = arith.constant 0 : index
    %548 = vector.load %arg1[%c24_329, %c0_330] : memref<96x128xf32, #tpu.memory_space<vmem>>, vector<24x128xf32>
    %549 = vector.broadcast %547 : vector<1x128xf32> to vector<24x128xf32>
    %550 = arith.mulf %549, %548 : vector<24x128xf32>
    %551 = arith.addf %546, %550 : vector<24x128xf32>
    %c148 = arith.constant 148 : index
    %c0_331 = arith.constant 0 : index
    %552 = vector.load %arg2[%c148, %c0_331] : memref<256x128xf32, #tpu.memory_space<vmem>>, vector<1x128xf32>
    %c48_332 = arith.constant 48 : index
    %c0_333 = arith.constant 0 : index
    %553 = vector.load %arg1[%c48_332, %c0_333] : memref<96x128xf32, #tpu.memory_space<vmem>>, vector<24x128xf32>
    %554 = vector.broadcast %552 : vector<1x128xf32> to vector<24x128xf32>
    %555 = arith.mulf %554, %553 : vector<24x128xf32>
    %556 = arith.addf %551, %555 : vector<24x128xf32>
    %c212 = arith.constant 212 : index
    %c0_334 = arith.constant 0 : index
    %557 = vector.load %arg2[%c212, %c0_334] : memref<256x128xf32, #tpu.memory_space<vmem>>, vector<1x128xf32>
    %c72_335 = arith.constant 72 : index
    %c0_336 = arith.constant 0 : index
    %558 = vector.load %arg1[%c72_335, %c0_336] : memref<96x128xf32, #tpu.memory_space<vmem>>, vector<24x128xf32>
    %559 = vector.broadcast %557 : vector<1x128xf32> to vector<24x128xf32>
    %560 = arith.mulf %559, %558 : vector<24x128xf32>
    %561 = arith.addf %556, %560 : vector<24x128xf32>
    %c22_i32_337 = arith.constant 22 : i32
    %562 = tpu.dynamic_rotate %561 by %c22_i32_337 dim 0 : vector<24x128xf32>, i32 -> vector<24x128xf32>
    %563 = arith.addf %542, %562 : vector<24x128xf32>
    %c28 = arith.constant 28 : index
    %c0_338 = arith.constant 0 : index
    %564 = vector.load %arg2[%c28, %c0_338] : memref<256x128xf32, #tpu.memory_space<vmem>>, vector<1x128xf32>
    %c0_339 = arith.constant 0 : index
    %c0_340 = arith.constant 0 : index
    %565 = vector.load %arg1[%c0_339, %c0_340] : memref<96x128xf32, #tpu.memory_space<vmem>>, vector<24x128xf32>
    %566 = vector.broadcast %564 : vector<1x128xf32> to vector<24x128xf32>
    %567 = arith.mulf %566, %565 : vector<24x128xf32>
    %c92 = arith.constant 92 : index
    %c0_341 = arith.constant 0 : index
    %568 = vector.load %arg2[%c92, %c0_341] : memref<256x128xf32, #tpu.memory_space<vmem>>, vector<1x128xf32>
    %c24_342 = arith.constant 24 : index
    %c0_343 = arith.constant 0 : index
    %569 = vector.load %arg1[%c24_342, %c0_343] : memref<96x128xf32, #tpu.memory_space<vmem>>, vector<24x128xf32>
    %570 = vector.broadcast %568 : vector<1x128xf32> to vector<24x128xf32>
    %571 = arith.mulf %570, %569 : vector<24x128xf32>
    %572 = arith.addf %567, %571 : vector<24x128xf32>
    %c156 = arith.constant 156 : index
    %c0_344 = arith.constant 0 : index
    %573 = vector.load %arg2[%c156, %c0_344] : memref<256x128xf32, #tpu.memory_space<vmem>>, vector<1x128xf32>
    %c48_345 = arith.constant 48 : index
    %c0_346 = arith.constant 0 : index
    %574 = vector.load %arg1[%c48_345, %c0_346] : memref<96x128xf32, #tpu.memory_space<vmem>>, vector<24x128xf32>
    %575 = vector.broadcast %573 : vector<1x128xf32> to vector<24x128xf32>
    %576 = arith.mulf %575, %574 : vector<24x128xf32>
    %577 = arith.addf %572, %576 : vector<24x128xf32>
    %c220 = arith.constant 220 : index
    %c0_347 = arith.constant 0 : index
    %578 = vector.load %arg2[%c220, %c0_347] : memref<256x128xf32, #tpu.memory_space<vmem>>, vector<1x128xf32>
    %c72_348 = arith.constant 72 : index
    %c0_349 = arith.constant 0 : index
    %579 = vector.load %arg1[%c72_348, %c0_349] : memref<96x128xf32, #tpu.memory_space<vmem>>, vector<24x128xf32>
    %580 = vector.broadcast %578 : vector<1x128xf32> to vector<24x128xf32>
    %581 = arith.mulf %580, %579 : vector<24x128xf32>
    %582 = arith.addf %577, %581 : vector<24x128xf32>
    %c21_i32_350 = arith.constant 21 : i32
    %583 = tpu.dynamic_rotate %582 by %c21_i32_350 dim 0 : vector<24x128xf32>, i32 -> vector<24x128xf32>
    %584 = arith.addf %563, %583 : vector<24x128xf32>
    %c36 = arith.constant 36 : index
    %c0_351 = arith.constant 0 : index
    %585 = vector.load %arg2[%c36, %c0_351] : memref<256x128xf32, #tpu.memory_space<vmem>>, vector<1x128xf32>
    %c0_352 = arith.constant 0 : index
    %c0_353 = arith.constant 0 : index
    %586 = vector.load %arg1[%c0_352, %c0_353] : memref<96x128xf32, #tpu.memory_space<vmem>>, vector<24x128xf32>
    %587 = vector.broadcast %585 : vector<1x128xf32> to vector<24x128xf32>
    %588 = arith.mulf %587, %586 : vector<24x128xf32>
    %c100 = arith.constant 100 : index
    %c0_354 = arith.constant 0 : index
    %589 = vector.load %arg2[%c100, %c0_354] : memref<256x128xf32, #tpu.memory_space<vmem>>, vector<1x128xf32>
    %c24_355 = arith.constant 24 : index
    %c0_356 = arith.constant 0 : index
    %590 = vector.load %arg1[%c24_355, %c0_356] : memref<96x128xf32, #tpu.memory_space<vmem>>, vector<24x128xf32>
    %591 = vector.broadcast %589 : vector<1x128xf32> to vector<24x128xf32>
    %592 = arith.mulf %591, %590 : vector<24x128xf32>
    %593 = arith.addf %588, %592 : vector<24x128xf32>
    %c164 = arith.constant 164 : index
    %c0_357 = arith.constant 0 : index
    %594 = vector.load %arg2[%c164, %c0_357] : memref<256x128xf32, #tpu.memory_space<vmem>>, vector<1x128xf32>
    %c48_358 = arith.constant 48 : index
    %c0_359 = arith.constant 0 : index
    %595 = vector.load %arg1[%c48_358, %c0_359] : memref<96x128xf32, #tpu.memory_space<vmem>>, vector<24x128xf32>
    %596 = vector.broadcast %594 : vector<1x128xf32> to vector<24x128xf32>
    %597 = arith.mulf %596, %595 : vector<24x128xf32>
    %598 = arith.addf %593, %597 : vector<24x128xf32>
    %c228 = arith.constant 228 : index
    %c0_360 = arith.constant 0 : index
    %599 = vector.load %arg2[%c228, %c0_360] : memref<256x128xf32, #tpu.memory_space<vmem>>, vector<1x128xf32>
    %c72_361 = arith.constant 72 : index
    %c0_362 = arith.constant 0 : index
    %600 = vector.load %arg1[%c72_361, %c0_362] : memref<96x128xf32, #tpu.memory_space<vmem>>, vector<24x128xf32>
    %601 = vector.broadcast %599 : vector<1x128xf32> to vector<24x128xf32>
    %602 = arith.mulf %601, %600 : vector<24x128xf32>
    %603 = arith.addf %598, %602 : vector<24x128xf32>
    %c20_i32_363 = arith.constant 20 : i32
    %604 = tpu.dynamic_rotate %603 by %c20_i32_363 dim 0 : vector<24x128xf32>, i32 -> vector<24x128xf32>
    %605 = arith.addf %584, %604 : vector<24x128xf32>
    %c44 = arith.constant 44 : index
    %c0_364 = arith.constant 0 : index
    %606 = vector.load %arg2[%c44, %c0_364] : memref<256x128xf32, #tpu.memory_space<vmem>>, vector<1x128xf32>
    %c0_365 = arith.constant 0 : index
    %c0_366 = arith.constant 0 : index
    %607 = vector.load %arg1[%c0_365, %c0_366] : memref<96x128xf32, #tpu.memory_space<vmem>>, vector<24x128xf32>
    %608 = vector.broadcast %606 : vector<1x128xf32> to vector<24x128xf32>
    %609 = arith.mulf %608, %607 : vector<24x128xf32>
    %c108 = arith.constant 108 : index
    %c0_367 = arith.constant 0 : index
    %610 = vector.load %arg2[%c108, %c0_367] : memref<256x128xf32, #tpu.memory_space<vmem>>, vector<1x128xf32>
    %c24_368 = arith.constant 24 : index
    %c0_369 = arith.constant 0 : index
    %611 = vector.load %arg1[%c24_368, %c0_369] : memref<96x128xf32, #tpu.memory_space<vmem>>, vector<24x128xf32>
    %612 = vector.broadcast %610 : vector<1x128xf32> to vector<24x128xf32>
    %613 = arith.mulf %612, %611 : vector<24x128xf32>
    %614 = arith.addf %609, %613 : vector<24x128xf32>
    %c172 = arith.constant 172 : index
    %c0_370 = arith.constant 0 : index
    %615 = vector.load %arg2[%c172, %c0_370] : memref<256x128xf32, #tpu.memory_space<vmem>>, vector<1x128xf32>
    %c48_371 = arith.constant 48 : index
    %c0_372 = arith.constant 0 : index
    %616 = vector.load %arg1[%c48_371, %c0_372] : memref<96x128xf32, #tpu.memory_space<vmem>>, vector<24x128xf32>
    %617 = vector.broadcast %615 : vector<1x128xf32> to vector<24x128xf32>
    %618 = arith.mulf %617, %616 : vector<24x128xf32>
    %619 = arith.addf %614, %618 : vector<24x128xf32>
    %c236 = arith.constant 236 : index
    %c0_373 = arith.constant 0 : index
    %620 = vector.load %arg2[%c236, %c0_373] : memref<256x128xf32, #tpu.memory_space<vmem>>, vector<1x128xf32>
    %c72_374 = arith.constant 72 : index
    %c0_375 = arith.constant 0 : index
    %621 = vector.load %arg1[%c72_374, %c0_375] : memref<96x128xf32, #tpu.memory_space<vmem>>, vector<24x128xf32>
    %622 = vector.broadcast %620 : vector<1x128xf32> to vector<24x128xf32>
    %623 = arith.mulf %622, %621 : vector<24x128xf32>
    %624 = arith.addf %619, %623 : vector<24x128xf32>
    %c19_i32_376 = arith.constant 19 : i32
    %625 = tpu.dynamic_rotate %624 by %c19_i32_376 dim 0 : vector<24x128xf32>, i32 -> vector<24x128xf32>
    %626 = arith.addf %605, %625 : vector<24x128xf32>
    %c52 = arith.constant 52 : index
    %c0_377 = arith.constant 0 : index
    %627 = vector.load %arg2[%c52, %c0_377] : memref<256x128xf32, #tpu.memory_space<vmem>>, vector<1x128xf32>
    %c0_378 = arith.constant 0 : index
    %c0_379 = arith.constant 0 : index
    %628 = vector.load %arg1[%c0_378, %c0_379] : memref<96x128xf32, #tpu.memory_space<vmem>>, vector<24x128xf32>
    %629 = vector.broadcast %627 : vector<1x128xf32> to vector<24x128xf32>
    %630 = arith.mulf %629, %628 : vector<24x128xf32>
    %c116 = arith.constant 116 : index
    %c0_380 = arith.constant 0 : index
    %631 = vector.load %arg2[%c116, %c0_380] : memref<256x128xf32, #tpu.memory_space<vmem>>, vector<1x128xf32>
    %c24_381 = arith.constant 24 : index
    %c0_382 = arith.constant 0 : index
    %632 = vector.load %arg1[%c24_381, %c0_382] : memref<96x128xf32, #tpu.memory_space<vmem>>, vector<24x128xf32>
    %633 = vector.broadcast %631 : vector<1x128xf32> to vector<24x128xf32>
    %634 = arith.mulf %633, %632 : vector<24x128xf32>
    %635 = arith.addf %630, %634 : vector<24x128xf32>
    %c180 = arith.constant 180 : index
    %c0_383 = arith.constant 0 : index
    %636 = vector.load %arg2[%c180, %c0_383] : memref<256x128xf32, #tpu.memory_space<vmem>>, vector<1x128xf32>
    %c48_384 = arith.constant 48 : index
    %c0_385 = arith.constant 0 : index
    %637 = vector.load %arg1[%c48_384, %c0_385] : memref<96x128xf32, #tpu.memory_space<vmem>>, vector<24x128xf32>
    %638 = vector.broadcast %636 : vector<1x128xf32> to vector<24x128xf32>
    %639 = arith.mulf %638, %637 : vector<24x128xf32>
    %640 = arith.addf %635, %639 : vector<24x128xf32>
    %c244 = arith.constant 244 : index
    %c0_386 = arith.constant 0 : index
    %641 = vector.load %arg2[%c244, %c0_386] : memref<256x128xf32, #tpu.memory_space<vmem>>, vector<1x128xf32>
    %c72_387 = arith.constant 72 : index
    %c0_388 = arith.constant 0 : index
    %642 = vector.load %arg1[%c72_387, %c0_388] : memref<96x128xf32, #tpu.memory_space<vmem>>, vector<24x128xf32>
    %643 = vector.broadcast %641 : vector<1x128xf32> to vector<24x128xf32>
    %644 = arith.mulf %643, %642 : vector<24x128xf32>
    %645 = arith.addf %640, %644 : vector<24x128xf32>
    %c18_i32_389 = arith.constant 18 : i32
    %646 = tpu.dynamic_rotate %645 by %c18_i32_389 dim 0 : vector<24x128xf32>, i32 -> vector<24x128xf32>
    %647 = arith.addf %626, %646 : vector<24x128xf32>
    %c60 = arith.constant 60 : index
    %c0_390 = arith.constant 0 : index
    %648 = vector.load %arg2[%c60, %c0_390] : memref<256x128xf32, #tpu.memory_space<vmem>>, vector<1x128xf32>
    %c0_391 = arith.constant 0 : index
    %c0_392 = arith.constant 0 : index
    %649 = vector.load %arg1[%c0_391, %c0_392] : memref<96x128xf32, #tpu.memory_space<vmem>>, vector<24x128xf32>
    %650 = vector.broadcast %648 : vector<1x128xf32> to vector<24x128xf32>
    %651 = arith.mulf %650, %649 : vector<24x128xf32>
    %c124 = arith.constant 124 : index
    %c0_393 = arith.constant 0 : index
    %652 = vector.load %arg2[%c124, %c0_393] : memref<256x128xf32, #tpu.memory_space<vmem>>, vector<1x128xf32>
    %c24_394 = arith.constant 24 : index
    %c0_395 = arith.constant 0 : index
    %653 = vector.load %arg1[%c24_394, %c0_395] : memref<96x128xf32, #tpu.memory_space<vmem>>, vector<24x128xf32>
    %654 = vector.broadcast %652 : vector<1x128xf32> to vector<24x128xf32>
    %655 = arith.mulf %654, %653 : vector<24x128xf32>
    %656 = arith.addf %651, %655 : vector<24x128xf32>
    %c188 = arith.constant 188 : index
    %c0_396 = arith.constant 0 : index
    %657 = vector.load %arg2[%c188, %c0_396] : memref<256x128xf32, #tpu.memory_space<vmem>>, vector<1x128xf32>
    %c48_397 = arith.constant 48 : index
    %c0_398 = arith.constant 0 : index
    %658 = vector.load %arg1[%c48_397, %c0_398] : memref<96x128xf32, #tpu.memory_space<vmem>>, vector<24x128xf32>
    %659 = vector.broadcast %657 : vector<1x128xf32> to vector<24x128xf32>
    %660 = arith.mulf %659, %658 : vector<24x128xf32>
    %661 = arith.addf %656, %660 : vector<24x128xf32>
    %c252 = arith.constant 252 : index
    %c0_399 = arith.constant 0 : index
    %662 = vector.load %arg2[%c252, %c0_399] : memref<256x128xf32, #tpu.memory_space<vmem>>, vector<1x128xf32>
    %c72_400 = arith.constant 72 : index
    %c0_401 = arith.constant 0 : index
    %663 = vector.load %arg1[%c72_400, %c0_401] : memref<96x128xf32, #tpu.memory_space<vmem>>, vector<24x128xf32>
    %664 = vector.broadcast %662 : vector<1x128xf32> to vector<24x128xf32>
    %665 = arith.mulf %664, %663 : vector<24x128xf32>
    %666 = arith.addf %661, %665 : vector<24x128xf32>
    %c17_i32_402 = arith.constant 17 : i32
    %667 = tpu.dynamic_rotate %666 by %c17_i32_402 dim 0 : vector<24x128xf32>, i32 -> vector<24x128xf32>
    %668 = arith.addf %647, %667 : vector<24x128xf32>
    %669 = arith.addf %502, %668 : vector<24x128xf32>
    %c127_i32_403 = arith.constant 127 : i32
    %670 = tpu.dynamic_rotate %669 by %c127_i32_403 dim 1 : vector<24x128xf32>, i32 -> vector<24x128xf32>
    %c3 = arith.constant 3 : index
    %c0_404 = arith.constant 0 : index
    %671 = vector.load %arg2[%c3, %c0_404] : memref<256x128xf32, #tpu.memory_space<vmem>>, vector<1x128xf32>
    %c0_405 = arith.constant 0 : index
    %c0_406 = arith.constant 0 : index
    %672 = vector.load %arg1[%c0_405, %c0_406] : memref<96x128xf32, #tpu.memory_space<vmem>>, vector<24x128xf32>
    %673 = vector.broadcast %671 : vector<1x128xf32> to vector<24x128xf32>
    %674 = arith.mulf %673, %672 : vector<24x128xf32>
    %c67 = arith.constant 67 : index
    %c0_407 = arith.constant 0 : index
    %675 = vector.load %arg2[%c67, %c0_407] : memref<256x128xf32, #tpu.memory_space<vmem>>, vector<1x128xf32>
    %c24_408 = arith.constant 24 : index
    %c0_409 = arith.constant 0 : index
    %676 = vector.load %arg1[%c24_408, %c0_409] : memref<96x128xf32, #tpu.memory_space<vmem>>, vector<24x128xf32>
    %677 = vector.broadcast %675 : vector<1x128xf32> to vector<24x128xf32>
    %678 = arith.mulf %677, %676 : vector<24x128xf32>
    %679 = arith.addf %674, %678 : vector<24x128xf32>
    %c131 = arith.constant 131 : index
    %c0_410 = arith.constant 0 : index
    %680 = vector.load %arg2[%c131, %c0_410] : memref<256x128xf32, #tpu.memory_space<vmem>>, vector<1x128xf32>
    %c48_411 = arith.constant 48 : index
    %c0_412 = arith.constant 0 : index
    %681 = vector.load %arg1[%c48_411, %c0_412] : memref<96x128xf32, #tpu.memory_space<vmem>>, vector<24x128xf32>
    %682 = vector.broadcast %680 : vector<1x128xf32> to vector<24x128xf32>
    %683 = arith.mulf %682, %681 : vector<24x128xf32>
    %684 = arith.addf %679, %683 : vector<24x128xf32>
    %c195 = arith.constant 195 : index
    %c0_413 = arith.constant 0 : index
    %685 = vector.load %arg2[%c195, %c0_413] : memref<256x128xf32, #tpu.memory_space<vmem>>, vector<1x128xf32>
    %c72_414 = arith.constant 72 : index
    %c0_415 = arith.constant 0 : index
    %686 = vector.load %arg1[%c72_414, %c0_415] : memref<96x128xf32, #tpu.memory_space<vmem>>, vector<24x128xf32>
    %687 = vector.broadcast %685 : vector<1x128xf32> to vector<24x128xf32>
    %688 = arith.mulf %687, %686 : vector<24x128xf32>
    %689 = arith.addf %684, %688 : vector<24x128xf32>
    %c11 = arith.constant 11 : index
    %c0_416 = arith.constant 0 : index
    %690 = vector.load %arg2[%c11, %c0_416] : memref<256x128xf32, #tpu.memory_space<vmem>>, vector<1x128xf32>
    %c0_417 = arith.constant 0 : index
    %c0_418 = arith.constant 0 : index
    %691 = vector.load %arg1[%c0_417, %c0_418] : memref<96x128xf32, #tpu.memory_space<vmem>>, vector<24x128xf32>
    %692 = vector.broadcast %690 : vector<1x128xf32> to vector<24x128xf32>
    %693 = arith.mulf %692, %691 : vector<24x128xf32>
    %c75 = arith.constant 75 : index
    %c0_419 = arith.constant 0 : index
    %694 = vector.load %arg2[%c75, %c0_419] : memref<256x128xf32, #tpu.memory_space<vmem>>, vector<1x128xf32>
    %c24_420 = arith.constant 24 : index
    %c0_421 = arith.constant 0 : index
    %695 = vector.load %arg1[%c24_420, %c0_421] : memref<96x128xf32, #tpu.memory_space<vmem>>, vector<24x128xf32>
    %696 = vector.broadcast %694 : vector<1x128xf32> to vector<24x128xf32>
    %697 = arith.mulf %696, %695 : vector<24x128xf32>
    %698 = arith.addf %693, %697 : vector<24x128xf32>
    %c139 = arith.constant 139 : index
    %c0_422 = arith.constant 0 : index
    %699 = vector.load %arg2[%c139, %c0_422] : memref<256x128xf32, #tpu.memory_space<vmem>>, vector<1x128xf32>
    %c48_423 = arith.constant 48 : index
    %c0_424 = arith.constant 0 : index
    %700 = vector.load %arg1[%c48_423, %c0_424] : memref<96x128xf32, #tpu.memory_space<vmem>>, vector<24x128xf32>
    %701 = vector.broadcast %699 : vector<1x128xf32> to vector<24x128xf32>
    %702 = arith.mulf %701, %700 : vector<24x128xf32>
    %703 = arith.addf %698, %702 : vector<24x128xf32>
    %c203 = arith.constant 203 : index
    %c0_425 = arith.constant 0 : index
    %704 = vector.load %arg2[%c203, %c0_425] : memref<256x128xf32, #tpu.memory_space<vmem>>, vector<1x128xf32>
    %c72_426 = arith.constant 72 : index
    %c0_427 = arith.constant 0 : index
    %705 = vector.load %arg1[%c72_426, %c0_427] : memref<96x128xf32, #tpu.memory_space<vmem>>, vector<24x128xf32>
    %706 = vector.broadcast %704 : vector<1x128xf32> to vector<24x128xf32>
    %707 = arith.mulf %706, %705 : vector<24x128xf32>
    %708 = arith.addf %703, %707 : vector<24x128xf32>
    %c23_i32_428 = arith.constant 23 : i32
    %709 = tpu.dynamic_rotate %708 by %c23_i32_428 dim 0 : vector<24x128xf32>, i32 -> vector<24x128xf32>
    %710 = arith.addf %689, %709 : vector<24x128xf32>
    %c19 = arith.constant 19 : index
    %c0_429 = arith.constant 0 : index
    %711 = vector.load %arg2[%c19, %c0_429] : memref<256x128xf32, #tpu.memory_space<vmem>>, vector<1x128xf32>
    %c0_430 = arith.constant 0 : index
    %c0_431 = arith.constant 0 : index
    %712 = vector.load %arg1[%c0_430, %c0_431] : memref<96x128xf32, #tpu.memory_space<vmem>>, vector<24x128xf32>
    %713 = vector.broadcast %711 : vector<1x128xf32> to vector<24x128xf32>
    %714 = arith.mulf %713, %712 : vector<24x128xf32>
    %c83 = arith.constant 83 : index
    %c0_432 = arith.constant 0 : index
    %715 = vector.load %arg2[%c83, %c0_432] : memref<256x128xf32, #tpu.memory_space<vmem>>, vector<1x128xf32>
    %c24_433 = arith.constant 24 : index
    %c0_434 = arith.constant 0 : index
    %716 = vector.load %arg1[%c24_433, %c0_434] : memref<96x128xf32, #tpu.memory_space<vmem>>, vector<24x128xf32>
    %717 = vector.broadcast %715 : vector<1x128xf32> to vector<24x128xf32>
    %718 = arith.mulf %717, %716 : vector<24x128xf32>
    %719 = arith.addf %714, %718 : vector<24x128xf32>
    %c147 = arith.constant 147 : index
    %c0_435 = arith.constant 0 : index
    %720 = vector.load %arg2[%c147, %c0_435] : memref<256x128xf32, #tpu.memory_space<vmem>>, vector<1x128xf32>
    %c48_436 = arith.constant 48 : index
    %c0_437 = arith.constant 0 : index
    %721 = vector.load %arg1[%c48_436, %c0_437] : memref<96x128xf32, #tpu.memory_space<vmem>>, vector<24x128xf32>
    %722 = vector.broadcast %720 : vector<1x128xf32> to vector<24x128xf32>
    %723 = arith.mulf %722, %721 : vector<24x128xf32>
    %724 = arith.addf %719, %723 : vector<24x128xf32>
    %c211 = arith.constant 211 : index
    %c0_438 = arith.constant 0 : index
    %725 = vector.load %arg2[%c211, %c0_438] : memref<256x128xf32, #tpu.memory_space<vmem>>, vector<1x128xf32>
    %c72_439 = arith.constant 72 : index
    %c0_440 = arith.constant 0 : index
    %726 = vector.load %arg1[%c72_439, %c0_440] : memref<96x128xf32, #tpu.memory_space<vmem>>, vector<24x128xf32>
    %727 = vector.broadcast %725 : vector<1x128xf32> to vector<24x128xf32>
    %728 = arith.mulf %727, %726 : vector<24x128xf32>
    %729 = arith.addf %724, %728 : vector<24x128xf32>
    %c22_i32_441 = arith.constant 22 : i32
    %730 = tpu.dynamic_rotate %729 by %c22_i32_441 dim 0 : vector<24x128xf32>, i32 -> vector<24x128xf32>
    %731 = arith.addf %710, %730 : vector<24x128xf32>
    %c27 = arith.constant 27 : index
    %c0_442 = arith.constant 0 : index
    %732 = vector.load %arg2[%c27, %c0_442] : memref<256x128xf32, #tpu.memory_space<vmem>>, vector<1x128xf32>
    %c0_443 = arith.constant 0 : index
    %c0_444 = arith.constant 0 : index
    %733 = vector.load %arg1[%c0_443, %c0_444] : memref<96x128xf32, #tpu.memory_space<vmem>>, vector<24x128xf32>
    %734 = vector.broadcast %732 : vector<1x128xf32> to vector<24x128xf32>
    %735 = arith.mulf %734, %733 : vector<24x128xf32>
    %c91 = arith.constant 91 : index
    %c0_445 = arith.constant 0 : index
    %736 = vector.load %arg2[%c91, %c0_445] : memref<256x128xf32, #tpu.memory_space<vmem>>, vector<1x128xf32>
    %c24_446 = arith.constant 24 : index
    %c0_447 = arith.constant 0 : index
    %737 = vector.load %arg1[%c24_446, %c0_447] : memref<96x128xf32, #tpu.memory_space<vmem>>, vector<24x128xf32>
    %738 = vector.broadcast %736 : vector<1x128xf32> to vector<24x128xf32>
    %739 = arith.mulf %738, %737 : vector<24x128xf32>
    %740 = arith.addf %735, %739 : vector<24x128xf32>
    %c155 = arith.constant 155 : index
    %c0_448 = arith.constant 0 : index
    %741 = vector.load %arg2[%c155, %c0_448] : memref<256x128xf32, #tpu.memory_space<vmem>>, vector<1x128xf32>
    %c48_449 = arith.constant 48 : index
    %c0_450 = arith.constant 0 : index
    %742 = vector.load %arg1[%c48_449, %c0_450] : memref<96x128xf32, #tpu.memory_space<vmem>>, vector<24x128xf32>
    %743 = vector.broadcast %741 : vector<1x128xf32> to vector<24x128xf32>
    %744 = arith.mulf %743, %742 : vector<24x128xf32>
    %745 = arith.addf %740, %744 : vector<24x128xf32>
    %c219 = arith.constant 219 : index
    %c0_451 = arith.constant 0 : index
    %746 = vector.load %arg2[%c219, %c0_451] : memref<256x128xf32, #tpu.memory_space<vmem>>, vector<1x128xf32>
    %c72_452 = arith.constant 72 : index
    %c0_453 = arith.constant 0 : index
    %747 = vector.load %arg1[%c72_452, %c0_453] : memref<96x128xf32, #tpu.memory_space<vmem>>, vector<24x128xf32>
    %748 = vector.broadcast %746 : vector<1x128xf32> to vector<24x128xf32>
    %749 = arith.mulf %748, %747 : vector<24x128xf32>
    %750 = arith.addf %745, %749 : vector<24x128xf32>
    %c21_i32_454 = arith.constant 21 : i32
    %751 = tpu.dynamic_rotate %750 by %c21_i32_454 dim 0 : vector<24x128xf32>, i32 -> vector<24x128xf32>
    %752 = arith.addf %731, %751 : vector<24x128xf32>
    %c35 = arith.constant 35 : index
    %c0_455 = arith.constant 0 : index
    %753 = vector.load %arg2[%c35, %c0_455] : memref<256x128xf32, #tpu.memory_space<vmem>>, vector<1x128xf32>
    %c0_456 = arith.constant 0 : index
    %c0_457 = arith.constant 0 : index
    %754 = vector.load %arg1[%c0_456, %c0_457] : memref<96x128xf32, #tpu.memory_space<vmem>>, vector<24x128xf32>
    %755 = vector.broadcast %753 : vector<1x128xf32> to vector<24x128xf32>
    %756 = arith.mulf %755, %754 : vector<24x128xf32>
    %c99 = arith.constant 99 : index
    %c0_458 = arith.constant 0 : index
    %757 = vector.load %arg2[%c99, %c0_458] : memref<256x128xf32, #tpu.memory_space<vmem>>, vector<1x128xf32>
    %c24_459 = arith.constant 24 : index
    %c0_460 = arith.constant 0 : index
    %758 = vector.load %arg1[%c24_459, %c0_460] : memref<96x128xf32, #tpu.memory_space<vmem>>, vector<24x128xf32>
    %759 = vector.broadcast %757 : vector<1x128xf32> to vector<24x128xf32>
    %760 = arith.mulf %759, %758 : vector<24x128xf32>
    %761 = arith.addf %756, %760 : vector<24x128xf32>
    %c163 = arith.constant 163 : index
    %c0_461 = arith.constant 0 : index
    %762 = vector.load %arg2[%c163, %c0_461] : memref<256x128xf32, #tpu.memory_space<vmem>>, vector<1x128xf32>
    %c48_462 = arith.constant 48 : index
    %c0_463 = arith.constant 0 : index
    %763 = vector.load %arg1[%c48_462, %c0_463] : memref<96x128xf32, #tpu.memory_space<vmem>>, vector<24x128xf32>
    %764 = vector.broadcast %762 : vector<1x128xf32> to vector<24x128xf32>
    %765 = arith.mulf %764, %763 : vector<24x128xf32>
    %766 = arith.addf %761, %765 : vector<24x128xf32>
    %c227 = arith.constant 227 : index
    %c0_464 = arith.constant 0 : index
    %767 = vector.load %arg2[%c227, %c0_464] : memref<256x128xf32, #tpu.memory_space<vmem>>, vector<1x128xf32>
    %c72_465 = arith.constant 72 : index
    %c0_466 = arith.constant 0 : index
    %768 = vector.load %arg1[%c72_465, %c0_466] : memref<96x128xf32, #tpu.memory_space<vmem>>, vector<24x128xf32>
    %769 = vector.broadcast %767 : vector<1x128xf32> to vector<24x128xf32>
    %770 = arith.mulf %769, %768 : vector<24x128xf32>
    %771 = arith.addf %766, %770 : vector<24x128xf32>
    %c20_i32_467 = arith.constant 20 : i32
    %772 = tpu.dynamic_rotate %771 by %c20_i32_467 dim 0 : vector<24x128xf32>, i32 -> vector<24x128xf32>
    %773 = arith.addf %752, %772 : vector<24x128xf32>
    %c43 = arith.constant 43 : index
    %c0_468 = arith.constant 0 : index
    %774 = vector.load %arg2[%c43, %c0_468] : memref<256x128xf32, #tpu.memory_space<vmem>>, vector<1x128xf32>
    %c0_469 = arith.constant 0 : index
    %c0_470 = arith.constant 0 : index
    %775 = vector.load %arg1[%c0_469, %c0_470] : memref<96x128xf32, #tpu.memory_space<vmem>>, vector<24x128xf32>
    %776 = vector.broadcast %774 : vector<1x128xf32> to vector<24x128xf32>
    %777 = arith.mulf %776, %775 : vector<24x128xf32>
    %c107 = arith.constant 107 : index
    %c0_471 = arith.constant 0 : index
    %778 = vector.load %arg2[%c107, %c0_471] : memref<256x128xf32, #tpu.memory_space<vmem>>, vector<1x128xf32>
    %c24_472 = arith.constant 24 : index
    %c0_473 = arith.constant 0 : index
    %779 = vector.load %arg1[%c24_472, %c0_473] : memref<96x128xf32, #tpu.memory_space<vmem>>, vector<24x128xf32>
    %780 = vector.broadcast %778 : vector<1x128xf32> to vector<24x128xf32>
    %781 = arith.mulf %780, %779 : vector<24x128xf32>
    %782 = arith.addf %777, %781 : vector<24x128xf32>
    %c171 = arith.constant 171 : index
    %c0_474 = arith.constant 0 : index
    %783 = vector.load %arg2[%c171, %c0_474] : memref<256x128xf32, #tpu.memory_space<vmem>>, vector<1x128xf32>
    %c48_475 = arith.constant 48 : index
    %c0_476 = arith.constant 0 : index
    %784 = vector.load %arg1[%c48_475, %c0_476] : memref<96x128xf32, #tpu.memory_space<vmem>>, vector<24x128xf32>
    %785 = vector.broadcast %783 : vector<1x128xf32> to vector<24x128xf32>
    %786 = arith.mulf %785, %784 : vector<24x128xf32>
    %787 = arith.addf %782, %786 : vector<24x128xf32>
    %c235 = arith.constant 235 : index
    %c0_477 = arith.constant 0 : index
    %788 = vector.load %arg2[%c235, %c0_477] : memref<256x128xf32, #tpu.memory_space<vmem>>, vector<1x128xf32>
    %c72_478 = arith.constant 72 : index
    %c0_479 = arith.constant 0 : index
    %789 = vector.load %arg1[%c72_478, %c0_479] : memref<96x128xf32, #tpu.memory_space<vmem>>, vector<24x128xf32>
    %790 = vector.broadcast %788 : vector<1x128xf32> to vector<24x128xf32>
    %791 = arith.mulf %790, %789 : vector<24x128xf32>
    %792 = arith.addf %787, %791 : vector<24x128xf32>
    %c19_i32_480 = arith.constant 19 : i32
    %793 = tpu.dynamic_rotate %792 by %c19_i32_480 dim 0 : vector<24x128xf32>, i32 -> vector<24x128xf32>
    %794 = arith.addf %773, %793 : vector<24x128xf32>
    %c51 = arith.constant 51 : index
    %c0_481 = arith.constant 0 : index
    %795 = vector.load %arg2[%c51, %c0_481] : memref<256x128xf32, #tpu.memory_space<vmem>>, vector<1x128xf32>
    %c0_482 = arith.constant 0 : index
    %c0_483 = arith.constant 0 : index
    %796 = vector.load %arg1[%c0_482, %c0_483] : memref<96x128xf32, #tpu.memory_space<vmem>>, vector<24x128xf32>
    %797 = vector.broadcast %795 : vector<1x128xf32> to vector<24x128xf32>
    %798 = arith.mulf %797, %796 : vector<24x128xf32>
    %c115 = arith.constant 115 : index
    %c0_484 = arith.constant 0 : index
    %799 = vector.load %arg2[%c115, %c0_484] : memref<256x128xf32, #tpu.memory_space<vmem>>, vector<1x128xf32>
    %c24_485 = arith.constant 24 : index
    %c0_486 = arith.constant 0 : index
    %800 = vector.load %arg1[%c24_485, %c0_486] : memref<96x128xf32, #tpu.memory_space<vmem>>, vector<24x128xf32>
    %801 = vector.broadcast %799 : vector<1x128xf32> to vector<24x128xf32>
    %802 = arith.mulf %801, %800 : vector<24x128xf32>
    %803 = arith.addf %798, %802 : vector<24x128xf32>
    %c179 = arith.constant 179 : index
    %c0_487 = arith.constant 0 : index
    %804 = vector.load %arg2[%c179, %c0_487] : memref<256x128xf32, #tpu.memory_space<vmem>>, vector<1x128xf32>
    %c48_488 = arith.constant 48 : index
    %c0_489 = arith.constant 0 : index
    %805 = vector.load %arg1[%c48_488, %c0_489] : memref<96x128xf32, #tpu.memory_space<vmem>>, vector<24x128xf32>
    %806 = vector.broadcast %804 : vector<1x128xf32> to vector<24x128xf32>
    %807 = arith.mulf %806, %805 : vector<24x128xf32>
    %808 = arith.addf %803, %807 : vector<24x128xf32>
    %c243 = arith.constant 243 : index
    %c0_490 = arith.constant 0 : index
    %809 = vector.load %arg2[%c243, %c0_490] : memref<256x128xf32, #tpu.memory_space<vmem>>, vector<1x128xf32>
    %c72_491 = arith.constant 72 : index
    %c0_492 = arith.constant 0 : index
    %810 = vector.load %arg1[%c72_491, %c0_492] : memref<96x128xf32, #tpu.memory_space<vmem>>, vector<24x128xf32>
    %811 = vector.broadcast %809 : vector<1x128xf32> to vector<24x128xf32>
    %812 = arith.mulf %811, %810 : vector<24x128xf32>
    %813 = arith.addf %808, %812 : vector<24x128xf32>
    %c18_i32_493 = arith.constant 18 : i32
    %814 = tpu.dynamic_rotate %813 by %c18_i32_493 dim 0 : vector<24x128xf32>, i32 -> vector<24x128xf32>
    %815 = arith.addf %794, %814 : vector<24x128xf32>
    %c59 = arith.constant 59 : index
    %c0_494 = arith.constant 0 : index
    %816 = vector.load %arg2[%c59, %c0_494] : memref<256x128xf32, #tpu.memory_space<vmem>>, vector<1x128xf32>
    %c0_495 = arith.constant 0 : index
    %c0_496 = arith.constant 0 : index
    %817 = vector.load %arg1[%c0_495, %c0_496] : memref<96x128xf32, #tpu.memory_space<vmem>>, vector<24x128xf32>
    %818 = vector.broadcast %816 : vector<1x128xf32> to vector<24x128xf32>
    %819 = arith.mulf %818, %817 : vector<24x128xf32>
    %c123 = arith.constant 123 : index
    %c0_497 = arith.constant 0 : index
    %820 = vector.load %arg2[%c123, %c0_497] : memref<256x128xf32, #tpu.memory_space<vmem>>, vector<1x128xf32>
    %c24_498 = arith.constant 24 : index
    %c0_499 = arith.constant 0 : index
    %821 = vector.load %arg1[%c24_498, %c0_499] : memref<96x128xf32, #tpu.memory_space<vmem>>, vector<24x128xf32>
    %822 = vector.broadcast %820 : vector<1x128xf32> to vector<24x128xf32>
    %823 = arith.mulf %822, %821 : vector<24x128xf32>
    %824 = arith.addf %819, %823 : vector<24x128xf32>
    %c187 = arith.constant 187 : index
    %c0_500 = arith.constant 0 : index
    %825 = vector.load %arg2[%c187, %c0_500] : memref<256x128xf32, #tpu.memory_space<vmem>>, vector<1x128xf32>
    %c48_501 = arith.constant 48 : index
    %c0_502 = arith.constant 0 : index
    %826 = vector.load %arg1[%c48_501, %c0_502] : memref<96x128xf32, #tpu.memory_space<vmem>>, vector<24x128xf32>
    %827 = vector.broadcast %825 : vector<1x128xf32> to vector<24x128xf32>
    %828 = arith.mulf %827, %826 : vector<24x128xf32>
    %829 = arith.addf %824, %828 : vector<24x128xf32>
    %c251 = arith.constant 251 : index
    %c0_503 = arith.constant 0 : index
    %830 = vector.load %arg2[%c251, %c0_503] : memref<256x128xf32, #tpu.memory_space<vmem>>, vector<1x128xf32>
    %c72_504 = arith.constant 72 : index
    %c0_505 = arith.constant 0 : index
    %831 = vector.load %arg1[%c72_504, %c0_505] : memref<96x128xf32, #tpu.memory_space<vmem>>, vector<24x128xf32>
    %832 = vector.broadcast %830 : vector<1x128xf32> to vector<24x128xf32>
    %833 = arith.mulf %832, %831 : vector<24x128xf32>
    %834 = arith.addf %829, %833 : vector<24x128xf32>
    %c17_i32_506 = arith.constant 17 : i32
    %835 = tpu.dynamic_rotate %834 by %c17_i32_506 dim 0 : vector<24x128xf32>, i32 -> vector<24x128xf32>
    %836 = arith.addf %815, %835 : vector<24x128xf32>
    %837 = arith.addf %670, %836 : vector<24x128xf32>
    %c127_i32_507 = arith.constant 127 : i32
    %838 = tpu.dynamic_rotate %837 by %c127_i32_507 dim 1 : vector<24x128xf32>, i32 -> vector<24x128xf32>
    %c2 = arith.constant 2 : index
    %c0_508 = arith.constant 0 : index
    %839 = vector.load %arg2[%c2, %c0_508] : memref<256x128xf32, #tpu.memory_space<vmem>>, vector<1x128xf32>
    %c0_509 = arith.constant 0 : index
    %c0_510 = arith.constant 0 : index
    %840 = vector.load %arg1[%c0_509, %c0_510] : memref<96x128xf32, #tpu.memory_space<vmem>>, vector<24x128xf32>
    %841 = vector.broadcast %839 : vector<1x128xf32> to vector<24x128xf32>
    %842 = arith.mulf %841, %840 : vector<24x128xf32>
    %c66 = arith.constant 66 : index
    %c0_511 = arith.constant 0 : index
    %843 = vector.load %arg2[%c66, %c0_511] : memref<256x128xf32, #tpu.memory_space<vmem>>, vector<1x128xf32>
    %c24_512 = arith.constant 24 : index
    %c0_513 = arith.constant 0 : index
    %844 = vector.load %arg1[%c24_512, %c0_513] : memref<96x128xf32, #tpu.memory_space<vmem>>, vector<24x128xf32>
    %845 = vector.broadcast %843 : vector<1x128xf32> to vector<24x128xf32>
    %846 = arith.mulf %845, %844 : vector<24x128xf32>
    %847 = arith.addf %842, %846 : vector<24x128xf32>
    %c130 = arith.constant 130 : index
    %c0_514 = arith.constant 0 : index
    %848 = vector.load %arg2[%c130, %c0_514] : memref<256x128xf32, #tpu.memory_space<vmem>>, vector<1x128xf32>
    %c48_515 = arith.constant 48 : index
    %c0_516 = arith.constant 0 : index
    %849 = vector.load %arg1[%c48_515, %c0_516] : memref<96x128xf32, #tpu.memory_space<vmem>>, vector<24x128xf32>
    %850 = vector.broadcast %848 : vector<1x128xf32> to vector<24x128xf32>
    %851 = arith.mulf %850, %849 : vector<24x128xf32>
    %852 = arith.addf %847, %851 : vector<24x128xf32>
    %c194 = arith.constant 194 : index
    %c0_517 = arith.constant 0 : index
    %853 = vector.load %arg2[%c194, %c0_517] : memref<256x128xf32, #tpu.memory_space<vmem>>, vector<1x128xf32>
    %c72_518 = arith.constant 72 : index
    %c0_519 = arith.constant 0 : index
    %854 = vector.load %arg1[%c72_518, %c0_519] : memref<96x128xf32, #tpu.memory_space<vmem>>, vector<24x128xf32>
    %855 = vector.broadcast %853 : vector<1x128xf32> to vector<24x128xf32>
    %856 = arith.mulf %855, %854 : vector<24x128xf32>
    %857 = arith.addf %852, %856 : vector<24x128xf32>
    %c10 = arith.constant 10 : index
    %c0_520 = arith.constant 0 : index
    %858 = vector.load %arg2[%c10, %c0_520] : memref<256x128xf32, #tpu.memory_space<vmem>>, vector<1x128xf32>
    %c0_521 = arith.constant 0 : index
    %c0_522 = arith.constant 0 : index
    %859 = vector.load %arg1[%c0_521, %c0_522] : memref<96x128xf32, #tpu.memory_space<vmem>>, vector<24x128xf32>
    %860 = vector.broadcast %858 : vector<1x128xf32> to vector<24x128xf32>
    %861 = arith.mulf %860, %859 : vector<24x128xf32>
    %c74 = arith.constant 74 : index
    %c0_523 = arith.constant 0 : index
    %862 = vector.load %arg2[%c74, %c0_523] : memref<256x128xf32, #tpu.memory_space<vmem>>, vector<1x128xf32>
    %c24_524 = arith.constant 24 : index
    %c0_525 = arith.constant 0 : index
    %863 = vector.load %arg1[%c24_524, %c0_525] : memref<96x128xf32, #tpu.memory_space<vmem>>, vector<24x128xf32>
    %864 = vector.broadcast %862 : vector<1x128xf32> to vector<24x128xf32>
    %865 = arith.mulf %864, %863 : vector<24x128xf32>
    %866 = arith.addf %861, %865 : vector<24x128xf32>
    %c138 = arith.constant 138 : index
    %c0_526 = arith.constant 0 : index
    %867 = vector.load %arg2[%c138, %c0_526] : memref<256x128xf32, #tpu.memory_space<vmem>>, vector<1x128xf32>
    %c48_527 = arith.constant 48 : index
    %c0_528 = arith.constant 0 : index
    %868 = vector.load %arg1[%c48_527, %c0_528] : memref<96x128xf32, #tpu.memory_space<vmem>>, vector<24x128xf32>
    %869 = vector.broadcast %867 : vector<1x128xf32> to vector<24x128xf32>
    %870 = arith.mulf %869, %868 : vector<24x128xf32>
    %871 = arith.addf %866, %870 : vector<24x128xf32>
    %c202 = arith.constant 202 : index
    %c0_529 = arith.constant 0 : index
    %872 = vector.load %arg2[%c202, %c0_529] : memref<256x128xf32, #tpu.memory_space<vmem>>, vector<1x128xf32>
    %c72_530 = arith.constant 72 : index
    %c0_531 = arith.constant 0 : index
    %873 = vector.load %arg1[%c72_530, %c0_531] : memref<96x128xf32, #tpu.memory_space<vmem>>, vector<24x128xf32>
    %874 = vector.broadcast %872 : vector<1x128xf32> to vector<24x128xf32>
    %875 = arith.mulf %874, %873 : vector<24x128xf32>
    %876 = arith.addf %871, %875 : vector<24x128xf32>
    %c23_i32_532 = arith.constant 23 : i32
    %877 = tpu.dynamic_rotate %876 by %c23_i32_532 dim 0 : vector<24x128xf32>, i32 -> vector<24x128xf32>
    %878 = arith.addf %857, %877 : vector<24x128xf32>
    %c18 = arith.constant 18 : index
    %c0_533 = arith.constant 0 : index
    %879 = vector.load %arg2[%c18, %c0_533] : memref<256x128xf32, #tpu.memory_space<vmem>>, vector<1x128xf32>
    %c0_534 = arith.constant 0 : index
    %c0_535 = arith.constant 0 : index
    %880 = vector.load %arg1[%c0_534, %c0_535] : memref<96x128xf32, #tpu.memory_space<vmem>>, vector<24x128xf32>
    %881 = vector.broadcast %879 : vector<1x128xf32> to vector<24x128xf32>
    %882 = arith.mulf %881, %880 : vector<24x128xf32>
    %c82 = arith.constant 82 : index
    %c0_536 = arith.constant 0 : index
    %883 = vector.load %arg2[%c82, %c0_536] : memref<256x128xf32, #tpu.memory_space<vmem>>, vector<1x128xf32>
    %c24_537 = arith.constant 24 : index
    %c0_538 = arith.constant 0 : index
    %884 = vector.load %arg1[%c24_537, %c0_538] : memref<96x128xf32, #tpu.memory_space<vmem>>, vector<24x128xf32>
    %885 = vector.broadcast %883 : vector<1x128xf32> to vector<24x128xf32>
    %886 = arith.mulf %885, %884 : vector<24x128xf32>
    %887 = arith.addf %882, %886 : vector<24x128xf32>
    %c146 = arith.constant 146 : index
    %c0_539 = arith.constant 0 : index
    %888 = vector.load %arg2[%c146, %c0_539] : memref<256x128xf32, #tpu.memory_space<vmem>>, vector<1x128xf32>
    %c48_540 = arith.constant 48 : index
    %c0_541 = arith.constant 0 : index
    %889 = vector.load %arg1[%c48_540, %c0_541] : memref<96x128xf32, #tpu.memory_space<vmem>>, vector<24x128xf32>
    %890 = vector.broadcast %888 : vector<1x128xf32> to vector<24x128xf32>
    %891 = arith.mulf %890, %889 : vector<24x128xf32>
    %892 = arith.addf %887, %891 : vector<24x128xf32>
    %c210 = arith.constant 210 : index
    %c0_542 = arith.constant 0 : index
    %893 = vector.load %arg2[%c210, %c0_542] : memref<256x128xf32, #tpu.memory_space<vmem>>, vector<1x128xf32>
    %c72_543 = arith.constant 72 : index
    %c0_544 = arith.constant 0 : index
    %894 = vector.load %arg1[%c72_543, %c0_544] : memref<96x128xf32, #tpu.memory_space<vmem>>, vector<24x128xf32>
    %895 = vector.broadcast %893 : vector<1x128xf32> to vector<24x128xf32>
    %896 = arith.mulf %895, %894 : vector<24x128xf32>
    %897 = arith.addf %892, %896 : vector<24x128xf32>
    %c22_i32_545 = arith.constant 22 : i32
    %898 = tpu.dynamic_rotate %897 by %c22_i32_545 dim 0 : vector<24x128xf32>, i32 -> vector<24x128xf32>
    %899 = arith.addf %878, %898 : vector<24x128xf32>
    %c26 = arith.constant 26 : index
    %c0_546 = arith.constant 0 : index
    %900 = vector.load %arg2[%c26, %c0_546] : memref<256x128xf32, #tpu.memory_space<vmem>>, vector<1x128xf32>
    %c0_547 = arith.constant 0 : index
    %c0_548 = arith.constant 0 : index
    %901 = vector.load %arg1[%c0_547, %c0_548] : memref<96x128xf32, #tpu.memory_space<vmem>>, vector<24x128xf32>
    %902 = vector.broadcast %900 : vector<1x128xf32> to vector<24x128xf32>
    %903 = arith.mulf %902, %901 : vector<24x128xf32>
    %c90 = arith.constant 90 : index
    %c0_549 = arith.constant 0 : index
    %904 = vector.load %arg2[%c90, %c0_549] : memref<256x128xf32, #tpu.memory_space<vmem>>, vector<1x128xf32>
    %c24_550 = arith.constant 24 : index
    %c0_551 = arith.constant 0 : index
    %905 = vector.load %arg1[%c24_550, %c0_551] : memref<96x128xf32, #tpu.memory_space<vmem>>, vector<24x128xf32>
    %906 = vector.broadcast %904 : vector<1x128xf32> to vector<24x128xf32>
    %907 = arith.mulf %906, %905 : vector<24x128xf32>
    %908 = arith.addf %903, %907 : vector<24x128xf32>
    %c154 = arith.constant 154 : index
    %c0_552 = arith.constant 0 : index
    %909 = vector.load %arg2[%c154, %c0_552] : memref<256x128xf32, #tpu.memory_space<vmem>>, vector<1x128xf32>
    %c48_553 = arith.constant 48 : index
    %c0_554 = arith.constant 0 : index
    %910 = vector.load %arg1[%c48_553, %c0_554] : memref<96x128xf32, #tpu.memory_space<vmem>>, vector<24x128xf32>
    %911 = vector.broadcast %909 : vector<1x128xf32> to vector<24x128xf32>
    %912 = arith.mulf %911, %910 : vector<24x128xf32>
    %913 = arith.addf %908, %912 : vector<24x128xf32>
    %c218 = arith.constant 218 : index
    %c0_555 = arith.constant 0 : index
    %914 = vector.load %arg2[%c218, %c0_555] : memref<256x128xf32, #tpu.memory_space<vmem>>, vector<1x128xf32>
    %c72_556 = arith.constant 72 : index
    %c0_557 = arith.constant 0 : index
    %915 = vector.load %arg1[%c72_556, %c0_557] : memref<96x128xf32, #tpu.memory_space<vmem>>, vector<24x128xf32>
    %916 = vector.broadcast %914 : vector<1x128xf32> to vector<24x128xf32>
    %917 = arith.mulf %916, %915 : vector<24x128xf32>
    %918 = arith.addf %913, %917 : vector<24x128xf32>
    %c21_i32_558 = arith.constant 21 : i32
    %919 = tpu.dynamic_rotate %918 by %c21_i32_558 dim 0 : vector<24x128xf32>, i32 -> vector<24x128xf32>
    %920 = arith.addf %899, %919 : vector<24x128xf32>
    %c34 = arith.constant 34 : index
    %c0_559 = arith.constant 0 : index
    %921 = vector.load %arg2[%c34, %c0_559] : memref<256x128xf32, #tpu.memory_space<vmem>>, vector<1x128xf32>
    %c0_560 = arith.constant 0 : index
    %c0_561 = arith.constant 0 : index
    %922 = vector.load %arg1[%c0_560, %c0_561] : memref<96x128xf32, #tpu.memory_space<vmem>>, vector<24x128xf32>
    %923 = vector.broadcast %921 : vector<1x128xf32> to vector<24x128xf32>
    %924 = arith.mulf %923, %922 : vector<24x128xf32>
    %c98 = arith.constant 98 : index
    %c0_562 = arith.constant 0 : index
    %925 = vector.load %arg2[%c98, %c0_562] : memref<256x128xf32, #tpu.memory_space<vmem>>, vector<1x128xf32>
    %c24_563 = arith.constant 24 : index
    %c0_564 = arith.constant 0 : index
    %926 = vector.load %arg1[%c24_563, %c0_564] : memref<96x128xf32, #tpu.memory_space<vmem>>, vector<24x128xf32>
    %927 = vector.broadcast %925 : vector<1x128xf32> to vector<24x128xf32>
    %928 = arith.mulf %927, %926 : vector<24x128xf32>
    %929 = arith.addf %924, %928 : vector<24x128xf32>
    %c162 = arith.constant 162 : index
    %c0_565 = arith.constant 0 : index
    %930 = vector.load %arg2[%c162, %c0_565] : memref<256x128xf32, #tpu.memory_space<vmem>>, vector<1x128xf32>
    %c48_566 = arith.constant 48 : index
    %c0_567 = arith.constant 0 : index
    %931 = vector.load %arg1[%c48_566, %c0_567] : memref<96x128xf32, #tpu.memory_space<vmem>>, vector<24x128xf32>
    %932 = vector.broadcast %930 : vector<1x128xf32> to vector<24x128xf32>
    %933 = arith.mulf %932, %931 : vector<24x128xf32>
    %934 = arith.addf %929, %933 : vector<24x128xf32>
    %c226 = arith.constant 226 : index
    %c0_568 = arith.constant 0 : index
    %935 = vector.load %arg2[%c226, %c0_568] : memref<256x128xf32, #tpu.memory_space<vmem>>, vector<1x128xf32>
    %c72_569 = arith.constant 72 : index
    %c0_570 = arith.constant 0 : index
    %936 = vector.load %arg1[%c72_569, %c0_570] : memref<96x128xf32, #tpu.memory_space<vmem>>, vector<24x128xf32>
    %937 = vector.broadcast %935 : vector<1x128xf32> to vector<24x128xf32>
    %938 = arith.mulf %937, %936 : vector<24x128xf32>
    %939 = arith.addf %934, %938 : vector<24x128xf32>
    %c20_i32_571 = arith.constant 20 : i32
    %940 = tpu.dynamic_rotate %939 by %c20_i32_571 dim 0 : vector<24x128xf32>, i32 -> vector<24x128xf32>
    %941 = arith.addf %920, %940 : vector<24x128xf32>
    %c42 = arith.constant 42 : index
    %c0_572 = arith.constant 0 : index
    %942 = vector.load %arg2[%c42, %c0_572] : memref<256x128xf32, #tpu.memory_space<vmem>>, vector<1x128xf32>
    %c0_573 = arith.constant 0 : index
    %c0_574 = arith.constant 0 : index
    %943 = vector.load %arg1[%c0_573, %c0_574] : memref<96x128xf32, #tpu.memory_space<vmem>>, vector<24x128xf32>
    %944 = vector.broadcast %942 : vector<1x128xf32> to vector<24x128xf32>
    %945 = arith.mulf %944, %943 : vector<24x128xf32>
    %c106 = arith.constant 106 : index
    %c0_575 = arith.constant 0 : index
    %946 = vector.load %arg2[%c106, %c0_575] : memref<256x128xf32, #tpu.memory_space<vmem>>, vector<1x128xf32>
    %c24_576 = arith.constant 24 : index
    %c0_577 = arith.constant 0 : index
    %947 = vector.load %arg1[%c24_576, %c0_577] : memref<96x128xf32, #tpu.memory_space<vmem>>, vector<24x128xf32>
    %948 = vector.broadcast %946 : vector<1x128xf32> to vector<24x128xf32>
    %949 = arith.mulf %948, %947 : vector<24x128xf32>
    %950 = arith.addf %945, %949 : vector<24x128xf32>
    %c170 = arith.constant 170 : index
    %c0_578 = arith.constant 0 : index
    %951 = vector.load %arg2[%c170, %c0_578] : memref<256x128xf32, #tpu.memory_space<vmem>>, vector<1x128xf32>
    %c48_579 = arith.constant 48 : index
    %c0_580 = arith.constant 0 : index
    %952 = vector.load %arg1[%c48_579, %c0_580] : memref<96x128xf32, #tpu.memory_space<vmem>>, vector<24x128xf32>
    %953 = vector.broadcast %951 : vector<1x128xf32> to vector<24x128xf32>
    %954 = arith.mulf %953, %952 : vector<24x128xf32>
    %955 = arith.addf %950, %954 : vector<24x128xf32>
    %c234 = arith.constant 234 : index
    %c0_581 = arith.constant 0 : index
    %956 = vector.load %arg2[%c234, %c0_581] : memref<256x128xf32, #tpu.memory_space<vmem>>, vector<1x128xf32>
    %c72_582 = arith.constant 72 : index
    %c0_583 = arith.constant 0 : index
    %957 = vector.load %arg1[%c72_582, %c0_583] : memref<96x128xf32, #tpu.memory_space<vmem>>, vector<24x128xf32>
    %958 = vector.broadcast %956 : vector<1x128xf32> to vector<24x128xf32>
    %959 = arith.mulf %958, %957 : vector<24x128xf32>
    %960 = arith.addf %955, %959 : vector<24x128xf32>
    %c19_i32_584 = arith.constant 19 : i32
    %961 = tpu.dynamic_rotate %960 by %c19_i32_584 dim 0 : vector<24x128xf32>, i32 -> vector<24x128xf32>
    %962 = arith.addf %941, %961 : vector<24x128xf32>
    %c50 = arith.constant 50 : index
    %c0_585 = arith.constant 0 : index
    %963 = vector.load %arg2[%c50, %c0_585] : memref<256x128xf32, #tpu.memory_space<vmem>>, vector<1x128xf32>
    %c0_586 = arith.constant 0 : index
    %c0_587 = arith.constant 0 : index
    %964 = vector.load %arg1[%c0_586, %c0_587] : memref<96x128xf32, #tpu.memory_space<vmem>>, vector<24x128xf32>
    %965 = vector.broadcast %963 : vector<1x128xf32> to vector<24x128xf32>
    %966 = arith.mulf %965, %964 : vector<24x128xf32>
    %c114 = arith.constant 114 : index
    %c0_588 = arith.constant 0 : index
    %967 = vector.load %arg2[%c114, %c0_588] : memref<256x128xf32, #tpu.memory_space<vmem>>, vector<1x128xf32>
    %c24_589 = arith.constant 24 : index
    %c0_590 = arith.constant 0 : index
    %968 = vector.load %arg1[%c24_589, %c0_590] : memref<96x128xf32, #tpu.memory_space<vmem>>, vector<24x128xf32>
    %969 = vector.broadcast %967 : vector<1x128xf32> to vector<24x128xf32>
    %970 = arith.mulf %969, %968 : vector<24x128xf32>
    %971 = arith.addf %966, %970 : vector<24x128xf32>
    %c178 = arith.constant 178 : index
    %c0_591 = arith.constant 0 : index
    %972 = vector.load %arg2[%c178, %c0_591] : memref<256x128xf32, #tpu.memory_space<vmem>>, vector<1x128xf32>
    %c48_592 = arith.constant 48 : index
    %c0_593 = arith.constant 0 : index
    %973 = vector.load %arg1[%c48_592, %c0_593] : memref<96x128xf32, #tpu.memory_space<vmem>>, vector<24x128xf32>
    %974 = vector.broadcast %972 : vector<1x128xf32> to vector<24x128xf32>
    %975 = arith.mulf %974, %973 : vector<24x128xf32>
    %976 = arith.addf %971, %975 : vector<24x128xf32>
    %c242 = arith.constant 242 : index
    %c0_594 = arith.constant 0 : index
    %977 = vector.load %arg2[%c242, %c0_594] : memref<256x128xf32, #tpu.memory_space<vmem>>, vector<1x128xf32>
    %c72_595 = arith.constant 72 : index
    %c0_596 = arith.constant 0 : index
    %978 = vector.load %arg1[%c72_595, %c0_596] : memref<96x128xf32, #tpu.memory_space<vmem>>, vector<24x128xf32>
    %979 = vector.broadcast %977 : vector<1x128xf32> to vector<24x128xf32>
    %980 = arith.mulf %979, %978 : vector<24x128xf32>
    %981 = arith.addf %976, %980 : vector<24x128xf32>
    %c18_i32_597 = arith.constant 18 : i32
    %982 = tpu.dynamic_rotate %981 by %c18_i32_597 dim 0 : vector<24x128xf32>, i32 -> vector<24x128xf32>
    %983 = arith.addf %962, %982 : vector<24x128xf32>
    %c58 = arith.constant 58 : index
    %c0_598 = arith.constant 0 : index
    %984 = vector.load %arg2[%c58, %c0_598] : memref<256x128xf32, #tpu.memory_space<vmem>>, vector<1x128xf32>
    %c0_599 = arith.constant 0 : index
    %c0_600 = arith.constant 0 : index
    %985 = vector.load %arg1[%c0_599, %c0_600] : memref<96x128xf32, #tpu.memory_space<vmem>>, vector<24x128xf32>
    %986 = vector.broadcast %984 : vector<1x128xf32> to vector<24x128xf32>
    %987 = arith.mulf %986, %985 : vector<24x128xf32>
    %c122 = arith.constant 122 : index
    %c0_601 = arith.constant 0 : index
    %988 = vector.load %arg2[%c122, %c0_601] : memref<256x128xf32, #tpu.memory_space<vmem>>, vector<1x128xf32>
    %c24_602 = arith.constant 24 : index
    %c0_603 = arith.constant 0 : index
    %989 = vector.load %arg1[%c24_602, %c0_603] : memref<96x128xf32, #tpu.memory_space<vmem>>, vector<24x128xf32>
    %990 = vector.broadcast %988 : vector<1x128xf32> to vector<24x128xf32>
    %991 = arith.mulf %990, %989 : vector<24x128xf32>
    %992 = arith.addf %987, %991 : vector<24x128xf32>
    %c186 = arith.constant 186 : index
    %c0_604 = arith.constant 0 : index
    %993 = vector.load %arg2[%c186, %c0_604] : memref<256x128xf32, #tpu.memory_space<vmem>>, vector<1x128xf32>
    %c48_605 = arith.constant 48 : index
    %c0_606 = arith.constant 0 : index
    %994 = vector.load %arg1[%c48_605, %c0_606] : memref<96x128xf32, #tpu.memory_space<vmem>>, vector<24x128xf32>
    %995 = vector.broadcast %993 : vector<1x128xf32> to vector<24x128xf32>
    %996 = arith.mulf %995, %994 : vector<24x128xf32>
    %997 = arith.addf %992, %996 : vector<24x128xf32>
    %c250 = arith.constant 250 : index
    %c0_607 = arith.constant 0 : index
    %998 = vector.load %arg2[%c250, %c0_607] : memref<256x128xf32, #tpu.memory_space<vmem>>, vector<1x128xf32>
    %c72_608 = arith.constant 72 : index
    %c0_609 = arith.constant 0 : index
    %999 = vector.load %arg1[%c72_608, %c0_609] : memref<96x128xf32, #tpu.memory_space<vmem>>, vector<24x128xf32>
    %1000 = vector.broadcast %998 : vector<1x128xf32> to vector<24x128xf32>
    %1001 = arith.mulf %1000, %999 : vector<24x128xf32>
    %1002 = arith.addf %997, %1001 : vector<24x128xf32>
    %c17_i32_610 = arith.constant 17 : i32
    %1003 = tpu.dynamic_rotate %1002 by %c17_i32_610 dim 0 : vector<24x128xf32>, i32 -> vector<24x128xf32>
    %1004 = arith.addf %983, %1003 : vector<24x128xf32>
    %1005 = arith.addf %838, %1004 : vector<24x128xf32>
    %c127_i32_611 = arith.constant 127 : i32
    %1006 = tpu.dynamic_rotate %1005 by %c127_i32_611 dim 1 : vector<24x128xf32>, i32 -> vector<24x128xf32>
    %c1 = arith.constant 1 : index
    %c0_612 = arith.constant 0 : index
    %1007 = vector.load %arg2[%c1, %c0_612] : memref<256x128xf32, #tpu.memory_space<vmem>>, vector<1x128xf32>
    %c0_613 = arith.constant 0 : index
    %c0_614 = arith.constant 0 : index
    %1008 = vector.load %arg1[%c0_613, %c0_614] : memref<96x128xf32, #tpu.memory_space<vmem>>, vector<24x128xf32>
    %1009 = vector.broadcast %1007 : vector<1x128xf32> to vector<24x128xf32>
    %1010 = arith.mulf %1009, %1008 : vector<24x128xf32>
    %c65 = arith.constant 65 : index
    %c0_615 = arith.constant 0 : index
    %1011 = vector.load %arg2[%c65, %c0_615] : memref<256x128xf32, #tpu.memory_space<vmem>>, vector<1x128xf32>
    %c24_616 = arith.constant 24 : index
    %c0_617 = arith.constant 0 : index
    %1012 = vector.load %arg1[%c24_616, %c0_617] : memref<96x128xf32, #tpu.memory_space<vmem>>, vector<24x128xf32>
    %1013 = vector.broadcast %1011 : vector<1x128xf32> to vector<24x128xf32>
    %1014 = arith.mulf %1013, %1012 : vector<24x128xf32>
    %1015 = arith.addf %1010, %1014 : vector<24x128xf32>
    %c129 = arith.constant 129 : index
    %c0_618 = arith.constant 0 : index
    %1016 = vector.load %arg2[%c129, %c0_618] : memref<256x128xf32, #tpu.memory_space<vmem>>, vector<1x128xf32>
    %c48_619 = arith.constant 48 : index
    %c0_620 = arith.constant 0 : index
    %1017 = vector.load %arg1[%c48_619, %c0_620] : memref<96x128xf32, #tpu.memory_space<vmem>>, vector<24x128xf32>
    %1018 = vector.broadcast %1016 : vector<1x128xf32> to vector<24x128xf32>
    %1019 = arith.mulf %1018, %1017 : vector<24x128xf32>
    %1020 = arith.addf %1015, %1019 : vector<24x128xf32>
    %c193 = arith.constant 193 : index
    %c0_621 = arith.constant 0 : index
    %1021 = vector.load %arg2[%c193, %c0_621] : memref<256x128xf32, #tpu.memory_space<vmem>>, vector<1x128xf32>
    %c72_622 = arith.constant 72 : index
    %c0_623 = arith.constant 0 : index
    %1022 = vector.load %arg1[%c72_622, %c0_623] : memref<96x128xf32, #tpu.memory_space<vmem>>, vector<24x128xf32>
    %1023 = vector.broadcast %1021 : vector<1x128xf32> to vector<24x128xf32>
    %1024 = arith.mulf %1023, %1022 : vector<24x128xf32>
    %1025 = arith.addf %1020, %1024 : vector<24x128xf32>
    %c9 = arith.constant 9 : index
    %c0_624 = arith.constant 0 : index
    %1026 = vector.load %arg2[%c9, %c0_624] : memref<256x128xf32, #tpu.memory_space<vmem>>, vector<1x128xf32>
    %c0_625 = arith.constant 0 : index
    %c0_626 = arith.constant 0 : index
    %1027 = vector.load %arg1[%c0_625, %c0_626] : memref<96x128xf32, #tpu.memory_space<vmem>>, vector<24x128xf32>
    %1028 = vector.broadcast %1026 : vector<1x128xf32> to vector<24x128xf32>
    %1029 = arith.mulf %1028, %1027 : vector<24x128xf32>
    %c73 = arith.constant 73 : index
    %c0_627 = arith.constant 0 : index
    %1030 = vector.load %arg2[%c73, %c0_627] : memref<256x128xf32, #tpu.memory_space<vmem>>, vector<1x128xf32>
    %c24_628 = arith.constant 24 : index
    %c0_629 = arith.constant 0 : index
    %1031 = vector.load %arg1[%c24_628, %c0_629] : memref<96x128xf32, #tpu.memory_space<vmem>>, vector<24x128xf32>
    %1032 = vector.broadcast %1030 : vector<1x128xf32> to vector<24x128xf32>
    %1033 = arith.mulf %1032, %1031 : vector<24x128xf32>
    %1034 = arith.addf %1029, %1033 : vector<24x128xf32>
    %c137 = arith.constant 137 : index
    %c0_630 = arith.constant 0 : index
    %1035 = vector.load %arg2[%c137, %c0_630] : memref<256x128xf32, #tpu.memory_space<vmem>>, vector<1x128xf32>
    %c48_631 = arith.constant 48 : index
    %c0_632 = arith.constant 0 : index
    %1036 = vector.load %arg1[%c48_631, %c0_632] : memref<96x128xf32, #tpu.memory_space<vmem>>, vector<24x128xf32>
    %1037 = vector.broadcast %1035 : vector<1x128xf32> to vector<24x128xf32>
    %1038 = arith.mulf %1037, %1036 : vector<24x128xf32>
    %1039 = arith.addf %1034, %1038 : vector<24x128xf32>
    %c201 = arith.constant 201 : index
    %c0_633 = arith.constant 0 : index
    %1040 = vector.load %arg2[%c201, %c0_633] : memref<256x128xf32, #tpu.memory_space<vmem>>, vector<1x128xf32>
    %c72_634 = arith.constant 72 : index
    %c0_635 = arith.constant 0 : index
    %1041 = vector.load %arg1[%c72_634, %c0_635] : memref<96x128xf32, #tpu.memory_space<vmem>>, vector<24x128xf32>
    %1042 = vector.broadcast %1040 : vector<1x128xf32> to vector<24x128xf32>
    %1043 = arith.mulf %1042, %1041 : vector<24x128xf32>
    %1044 = arith.addf %1039, %1043 : vector<24x128xf32>
    %c23_i32_636 = arith.constant 23 : i32
    %1045 = tpu.dynamic_rotate %1044 by %c23_i32_636 dim 0 : vector<24x128xf32>, i32 -> vector<24x128xf32>
    %1046 = arith.addf %1025, %1045 : vector<24x128xf32>
    %c17 = arith.constant 17 : index
    %c0_637 = arith.constant 0 : index
    %1047 = vector.load %arg2[%c17, %c0_637] : memref<256x128xf32, #tpu.memory_space<vmem>>, vector<1x128xf32>
    %c0_638 = arith.constant 0 : index
    %c0_639 = arith.constant 0 : index
    %1048 = vector.load %arg1[%c0_638, %c0_639] : memref<96x128xf32, #tpu.memory_space<vmem>>, vector<24x128xf32>
    %1049 = vector.broadcast %1047 : vector<1x128xf32> to vector<24x128xf32>
    %1050 = arith.mulf %1049, %1048 : vector<24x128xf32>
    %c81 = arith.constant 81 : index
    %c0_640 = arith.constant 0 : index
    %1051 = vector.load %arg2[%c81, %c0_640] : memref<256x128xf32, #tpu.memory_space<vmem>>, vector<1x128xf32>
    %c24_641 = arith.constant 24 : index
    %c0_642 = arith.constant 0 : index
    %1052 = vector.load %arg1[%c24_641, %c0_642] : memref<96x128xf32, #tpu.memory_space<vmem>>, vector<24x128xf32>
    %1053 = vector.broadcast %1051 : vector<1x128xf32> to vector<24x128xf32>
    %1054 = arith.mulf %1053, %1052 : vector<24x128xf32>
    %1055 = arith.addf %1050, %1054 : vector<24x128xf32>
    %c145 = arith.constant 145 : index
    %c0_643 = arith.constant 0 : index
    %1056 = vector.load %arg2[%c145, %c0_643] : memref<256x128xf32, #tpu.memory_space<vmem>>, vector<1x128xf32>
    %c48_644 = arith.constant 48 : index
    %c0_645 = arith.constant 0 : index
    %1057 = vector.load %arg1[%c48_644, %c0_645] : memref<96x128xf32, #tpu.memory_space<vmem>>, vector<24x128xf32>
    %1058 = vector.broadcast %1056 : vector<1x128xf32> to vector<24x128xf32>
    %1059 = arith.mulf %1058, %1057 : vector<24x128xf32>
    %1060 = arith.addf %1055, %1059 : vector<24x128xf32>
    %c209 = arith.constant 209 : index
    %c0_646 = arith.constant 0 : index
    %1061 = vector.load %arg2[%c209, %c0_646] : memref<256x128xf32, #tpu.memory_space<vmem>>, vector<1x128xf32>
    %c72_647 = arith.constant 72 : index
    %c0_648 = arith.constant 0 : index
    %1062 = vector.load %arg1[%c72_647, %c0_648] : memref<96x128xf32, #tpu.memory_space<vmem>>, vector<24x128xf32>
    %1063 = vector.broadcast %1061 : vector<1x128xf32> to vector<24x128xf32>
    %1064 = arith.mulf %1063, %1062 : vector<24x128xf32>
    %1065 = arith.addf %1060, %1064 : vector<24x128xf32>
    %c22_i32_649 = arith.constant 22 : i32
    %1066 = tpu.dynamic_rotate %1065 by %c22_i32_649 dim 0 : vector<24x128xf32>, i32 -> vector<24x128xf32>
    %1067 = arith.addf %1046, %1066 : vector<24x128xf32>
    %c25 = arith.constant 25 : index
    %c0_650 = arith.constant 0 : index
    %1068 = vector.load %arg2[%c25, %c0_650] : memref<256x128xf32, #tpu.memory_space<vmem>>, vector<1x128xf32>
    %c0_651 = arith.constant 0 : index
    %c0_652 = arith.constant 0 : index
    %1069 = vector.load %arg1[%c0_651, %c0_652] : memref<96x128xf32, #tpu.memory_space<vmem>>, vector<24x128xf32>
    %1070 = vector.broadcast %1068 : vector<1x128xf32> to vector<24x128xf32>
    %1071 = arith.mulf %1070, %1069 : vector<24x128xf32>
    %c89 = arith.constant 89 : index
    %c0_653 = arith.constant 0 : index
    %1072 = vector.load %arg2[%c89, %c0_653] : memref<256x128xf32, #tpu.memory_space<vmem>>, vector<1x128xf32>
    %c24_654 = arith.constant 24 : index
    %c0_655 = arith.constant 0 : index
    %1073 = vector.load %arg1[%c24_654, %c0_655] : memref<96x128xf32, #tpu.memory_space<vmem>>, vector<24x128xf32>
    %1074 = vector.broadcast %1072 : vector<1x128xf32> to vector<24x128xf32>
    %1075 = arith.mulf %1074, %1073 : vector<24x128xf32>
    %1076 = arith.addf %1071, %1075 : vector<24x128xf32>
    %c153 = arith.constant 153 : index
    %c0_656 = arith.constant 0 : index
    %1077 = vector.load %arg2[%c153, %c0_656] : memref<256x128xf32, #tpu.memory_space<vmem>>, vector<1x128xf32>
    %c48_657 = arith.constant 48 : index
    %c0_658 = arith.constant 0 : index
    %1078 = vector.load %arg1[%c48_657, %c0_658] : memref<96x128xf32, #tpu.memory_space<vmem>>, vector<24x128xf32>
    %1079 = vector.broadcast %1077 : vector<1x128xf32> to vector<24x128xf32>
    %1080 = arith.mulf %1079, %1078 : vector<24x128xf32>
    %1081 = arith.addf %1076, %1080 : vector<24x128xf32>
    %c217 = arith.constant 217 : index
    %c0_659 = arith.constant 0 : index
    %1082 = vector.load %arg2[%c217, %c0_659] : memref<256x128xf32, #tpu.memory_space<vmem>>, vector<1x128xf32>
    %c72_660 = arith.constant 72 : index
    %c0_661 = arith.constant 0 : index
    %1083 = vector.load %arg1[%c72_660, %c0_661] : memref<96x128xf32, #tpu.memory_space<vmem>>, vector<24x128xf32>
    %1084 = vector.broadcast %1082 : vector<1x128xf32> to vector<24x128xf32>
    %1085 = arith.mulf %1084, %1083 : vector<24x128xf32>
    %1086 = arith.addf %1081, %1085 : vector<24x128xf32>
    %c21_i32_662 = arith.constant 21 : i32
    %1087 = tpu.dynamic_rotate %1086 by %c21_i32_662 dim 0 : vector<24x128xf32>, i32 -> vector<24x128xf32>
    %1088 = arith.addf %1067, %1087 : vector<24x128xf32>
    %c33 = arith.constant 33 : index
    %c0_663 = arith.constant 0 : index
    %1089 = vector.load %arg2[%c33, %c0_663] : memref<256x128xf32, #tpu.memory_space<vmem>>, vector<1x128xf32>
    %c0_664 = arith.constant 0 : index
    %c0_665 = arith.constant 0 : index
    %1090 = vector.load %arg1[%c0_664, %c0_665] : memref<96x128xf32, #tpu.memory_space<vmem>>, vector<24x128xf32>
    %1091 = vector.broadcast %1089 : vector<1x128xf32> to vector<24x128xf32>
    %1092 = arith.mulf %1091, %1090 : vector<24x128xf32>
    %c97 = arith.constant 97 : index
    %c0_666 = arith.constant 0 : index
    %1093 = vector.load %arg2[%c97, %c0_666] : memref<256x128xf32, #tpu.memory_space<vmem>>, vector<1x128xf32>
    %c24_667 = arith.constant 24 : index
    %c0_668 = arith.constant 0 : index
    %1094 = vector.load %arg1[%c24_667, %c0_668] : memref<96x128xf32, #tpu.memory_space<vmem>>, vector<24x128xf32>
    %1095 = vector.broadcast %1093 : vector<1x128xf32> to vector<24x128xf32>
    %1096 = arith.mulf %1095, %1094 : vector<24x128xf32>
    %1097 = arith.addf %1092, %1096 : vector<24x128xf32>
    %c161 = arith.constant 161 : index
    %c0_669 = arith.constant 0 : index
    %1098 = vector.load %arg2[%c161, %c0_669] : memref<256x128xf32, #tpu.memory_space<vmem>>, vector<1x128xf32>
    %c48_670 = arith.constant 48 : index
    %c0_671 = arith.constant 0 : index
    %1099 = vector.load %arg1[%c48_670, %c0_671] : memref<96x128xf32, #tpu.memory_space<vmem>>, vector<24x128xf32>
    %1100 = vector.broadcast %1098 : vector<1x128xf32> to vector<24x128xf32>
    %1101 = arith.mulf %1100, %1099 : vector<24x128xf32>
    %1102 = arith.addf %1097, %1101 : vector<24x128xf32>
    %c225 = arith.constant 225 : index
    %c0_672 = arith.constant 0 : index
    %1103 = vector.load %arg2[%c225, %c0_672] : memref<256x128xf32, #tpu.memory_space<vmem>>, vector<1x128xf32>
    %c72_673 = arith.constant 72 : index
    %c0_674 = arith.constant 0 : index
    %1104 = vector.load %arg1[%c72_673, %c0_674] : memref<96x128xf32, #tpu.memory_space<vmem>>, vector<24x128xf32>
    %1105 = vector.broadcast %1103 : vector<1x128xf32> to vector<24x128xf32>
    %1106 = arith.mulf %1105, %1104 : vector<24x128xf32>
    %1107 = arith.addf %1102, %1106 : vector<24x128xf32>
    %c20_i32_675 = arith.constant 20 : i32
    %1108 = tpu.dynamic_rotate %1107 by %c20_i32_675 dim 0 : vector<24x128xf32>, i32 -> vector<24x128xf32>
    %1109 = arith.addf %1088, %1108 : vector<24x128xf32>
    %c41 = arith.constant 41 : index
    %c0_676 = arith.constant 0 : index
    %1110 = vector.load %arg2[%c41, %c0_676] : memref<256x128xf32, #tpu.memory_space<vmem>>, vector<1x128xf32>
    %c0_677 = arith.constant 0 : index
    %c0_678 = arith.constant 0 : index
    %1111 = vector.load %arg1[%c0_677, %c0_678] : memref<96x128xf32, #tpu.memory_space<vmem>>, vector<24x128xf32>
    %1112 = vector.broadcast %1110 : vector<1x128xf32> to vector<24x128xf32>
    %1113 = arith.mulf %1112, %1111 : vector<24x128xf32>
    %c105 = arith.constant 105 : index
    %c0_679 = arith.constant 0 : index
    %1114 = vector.load %arg2[%c105, %c0_679] : memref<256x128xf32, #tpu.memory_space<vmem>>, vector<1x128xf32>
    %c24_680 = arith.constant 24 : index
    %c0_681 = arith.constant 0 : index
    %1115 = vector.load %arg1[%c24_680, %c0_681] : memref<96x128xf32, #tpu.memory_space<vmem>>, vector<24x128xf32>
    %1116 = vector.broadcast %1114 : vector<1x128xf32> to vector<24x128xf32>
    %1117 = arith.mulf %1116, %1115 : vector<24x128xf32>
    %1118 = arith.addf %1113, %1117 : vector<24x128xf32>
    %c169 = arith.constant 169 : index
    %c0_682 = arith.constant 0 : index
    %1119 = vector.load %arg2[%c169, %c0_682] : memref<256x128xf32, #tpu.memory_space<vmem>>, vector<1x128xf32>
    %c48_683 = arith.constant 48 : index
    %c0_684 = arith.constant 0 : index
    %1120 = vector.load %arg1[%c48_683, %c0_684] : memref<96x128xf32, #tpu.memory_space<vmem>>, vector<24x128xf32>
    %1121 = vector.broadcast %1119 : vector<1x128xf32> to vector<24x128xf32>
    %1122 = arith.mulf %1121, %1120 : vector<24x128xf32>
    %1123 = arith.addf %1118, %1122 : vector<24x128xf32>
    %c233 = arith.constant 233 : index
    %c0_685 = arith.constant 0 : index
    %1124 = vector.load %arg2[%c233, %c0_685] : memref<256x128xf32, #tpu.memory_space<vmem>>, vector<1x128xf32>
    %c72_686 = arith.constant 72 : index
    %c0_687 = arith.constant 0 : index
    %1125 = vector.load %arg1[%c72_686, %c0_687] : memref<96x128xf32, #tpu.memory_space<vmem>>, vector<24x128xf32>
    %1126 = vector.broadcast %1124 : vector<1x128xf32> to vector<24x128xf32>
    %1127 = arith.mulf %1126, %1125 : vector<24x128xf32>
    %1128 = arith.addf %1123, %1127 : vector<24x128xf32>
    %c19_i32_688 = arith.constant 19 : i32
    %1129 = tpu.dynamic_rotate %1128 by %c19_i32_688 dim 0 : vector<24x128xf32>, i32 -> vector<24x128xf32>
    %1130 = arith.addf %1109, %1129 : vector<24x128xf32>
    %c49 = arith.constant 49 : index
    %c0_689 = arith.constant 0 : index
    %1131 = vector.load %arg2[%c49, %c0_689] : memref<256x128xf32, #tpu.memory_space<vmem>>, vector<1x128xf32>
    %c0_690 = arith.constant 0 : index
    %c0_691 = arith.constant 0 : index
    %1132 = vector.load %arg1[%c0_690, %c0_691] : memref<96x128xf32, #tpu.memory_space<vmem>>, vector<24x128xf32>
    %1133 = vector.broadcast %1131 : vector<1x128xf32> to vector<24x128xf32>
    %1134 = arith.mulf %1133, %1132 : vector<24x128xf32>
    %c113 = arith.constant 113 : index
    %c0_692 = arith.constant 0 : index
    %1135 = vector.load %arg2[%c113, %c0_692] : memref<256x128xf32, #tpu.memory_space<vmem>>, vector<1x128xf32>
    %c24_693 = arith.constant 24 : index
    %c0_694 = arith.constant 0 : index
    %1136 = vector.load %arg1[%c24_693, %c0_694] : memref<96x128xf32, #tpu.memory_space<vmem>>, vector<24x128xf32>
    %1137 = vector.broadcast %1135 : vector<1x128xf32> to vector<24x128xf32>
    %1138 = arith.mulf %1137, %1136 : vector<24x128xf32>
    %1139 = arith.addf %1134, %1138 : vector<24x128xf32>
    %c177 = arith.constant 177 : index
    %c0_695 = arith.constant 0 : index
    %1140 = vector.load %arg2[%c177, %c0_695] : memref<256x128xf32, #tpu.memory_space<vmem>>, vector<1x128xf32>
    %c48_696 = arith.constant 48 : index
    %c0_697 = arith.constant 0 : index
    %1141 = vector.load %arg1[%c48_696, %c0_697] : memref<96x128xf32, #tpu.memory_space<vmem>>, vector<24x128xf32>
    %1142 = vector.broadcast %1140 : vector<1x128xf32> to vector<24x128xf32>
    %1143 = arith.mulf %1142, %1141 : vector<24x128xf32>
    %1144 = arith.addf %1139, %1143 : vector<24x128xf32>
    %c241 = arith.constant 241 : index
    %c0_698 = arith.constant 0 : index
    %1145 = vector.load %arg2[%c241, %c0_698] : memref<256x128xf32, #tpu.memory_space<vmem>>, vector<1x128xf32>
    %c72_699 = arith.constant 72 : index
    %c0_700 = arith.constant 0 : index
    %1146 = vector.load %arg1[%c72_699, %c0_700] : memref<96x128xf32, #tpu.memory_space<vmem>>, vector<24x128xf32>
    %1147 = vector.broadcast %1145 : vector<1x128xf32> to vector<24x128xf32>
    %1148 = arith.mulf %1147, %1146 : vector<24x128xf32>
    %1149 = arith.addf %1144, %1148 : vector<24x128xf32>
    %c18_i32_701 = arith.constant 18 : i32
    %1150 = tpu.dynamic_rotate %1149 by %c18_i32_701 dim 0 : vector<24x128xf32>, i32 -> vector<24x128xf32>
    %1151 = arith.addf %1130, %1150 : vector<24x128xf32>
    %c57 = arith.constant 57 : index
    %c0_702 = arith.constant 0 : index
    %1152 = vector.load %arg2[%c57, %c0_702] : memref<256x128xf32, #tpu.memory_space<vmem>>, vector<1x128xf32>
    %c0_703 = arith.constant 0 : index
    %c0_704 = arith.constant 0 : index
    %1153 = vector.load %arg1[%c0_703, %c0_704] : memref<96x128xf32, #tpu.memory_space<vmem>>, vector<24x128xf32>
    %1154 = vector.broadcast %1152 : vector<1x128xf32> to vector<24x128xf32>
    %1155 = arith.mulf %1154, %1153 : vector<24x128xf32>
    %c121 = arith.constant 121 : index
    %c0_705 = arith.constant 0 : index
    %1156 = vector.load %arg2[%c121, %c0_705] : memref<256x128xf32, #tpu.memory_space<vmem>>, vector<1x128xf32>
    %c24_706 = arith.constant 24 : index
    %c0_707 = arith.constant 0 : index
    %1157 = vector.load %arg1[%c24_706, %c0_707] : memref<96x128xf32, #tpu.memory_space<vmem>>, vector<24x128xf32>
    %1158 = vector.broadcast %1156 : vector<1x128xf32> to vector<24x128xf32>
    %1159 = arith.mulf %1158, %1157 : vector<24x128xf32>
    %1160 = arith.addf %1155, %1159 : vector<24x128xf32>
    %c185 = arith.constant 185 : index
    %c0_708 = arith.constant 0 : index
    %1161 = vector.load %arg2[%c185, %c0_708] : memref<256x128xf32, #tpu.memory_space<vmem>>, vector<1x128xf32>
    %c48_709 = arith.constant 48 : index
    %c0_710 = arith.constant 0 : index
    %1162 = vector.load %arg1[%c48_709, %c0_710] : memref<96x128xf32, #tpu.memory_space<vmem>>, vector<24x128xf32>
    %1163 = vector.broadcast %1161 : vector<1x128xf32> to vector<24x128xf32>
    %1164 = arith.mulf %1163, %1162 : vector<24x128xf32>
    %1165 = arith.addf %1160, %1164 : vector<24x128xf32>
    %c249 = arith.constant 249 : index
    %c0_711 = arith.constant 0 : index
    %1166 = vector.load %arg2[%c249, %c0_711] : memref<256x128xf32, #tpu.memory_space<vmem>>, vector<1x128xf32>
    %c72_712 = arith.constant 72 : index
    %c0_713 = arith.constant 0 : index
    %1167 = vector.load %arg1[%c72_712, %c0_713] : memref<96x128xf32, #tpu.memory_space<vmem>>, vector<24x128xf32>
    %1168 = vector.broadcast %1166 : vector<1x128xf32> to vector<24x128xf32>
    %1169 = arith.mulf %1168, %1167 : vector<24x128xf32>
    %1170 = arith.addf %1165, %1169 : vector<24x128xf32>
    %c17_i32_714 = arith.constant 17 : i32
    %1171 = tpu.dynamic_rotate %1170 by %c17_i32_714 dim 0 : vector<24x128xf32>, i32 -> vector<24x128xf32>
    %1172 = arith.addf %1151, %1171 : vector<24x128xf32>
    %1173 = arith.addf %1006, %1172 : vector<24x128xf32>
    %c127_i32_715 = arith.constant 127 : i32
    %1174 = tpu.dynamic_rotate %1173 by %c127_i32_715 dim 1 : vector<24x128xf32>, i32 -> vector<24x128xf32>
    %c0_716 = arith.constant 0 : index
    %c0_717 = arith.constant 0 : index
    %1175 = vector.load %arg2[%c0_716, %c0_717] : memref<256x128xf32, #tpu.memory_space<vmem>>, vector<1x128xf32>
    %c0_718 = arith.constant 0 : index
    %c0_719 = arith.constant 0 : index
    %1176 = vector.load %arg1[%c0_718, %c0_719] : memref<96x128xf32, #tpu.memory_space<vmem>>, vector<24x128xf32>
    %1177 = vector.broadcast %1175 : vector<1x128xf32> to vector<24x128xf32>
    %1178 = arith.mulf %1177, %1176 : vector<24x128xf32>
    %c64 = arith.constant 64 : index
    %c0_720 = arith.constant 0 : index
    %1179 = vector.load %arg2[%c64, %c0_720] : memref<256x128xf32, #tpu.memory_space<vmem>>, vector<1x128xf32>
    %c24_721 = arith.constant 24 : index
    %c0_722 = arith.constant 0 : index
    %1180 = vector.load %arg1[%c24_721, %c0_722] : memref<96x128xf32, #tpu.memory_space<vmem>>, vector<24x128xf32>
    %1181 = vector.broadcast %1179 : vector<1x128xf32> to vector<24x128xf32>
    %1182 = arith.mulf %1181, %1180 : vector<24x128xf32>
    %1183 = arith.addf %1178, %1182 : vector<24x128xf32>
    %c128 = arith.constant 128 : index
    %c0_723 = arith.constant 0 : index
    %1184 = vector.load %arg2[%c128, %c0_723] : memref<256x128xf32, #tpu.memory_space<vmem>>, vector<1x128xf32>
    %c48_724 = arith.constant 48 : index
    %c0_725 = arith.constant 0 : index
    %1185 = vector.load %arg1[%c48_724, %c0_725] : memref<96x128xf32, #tpu.memory_space<vmem>>, vector<24x128xf32>
    %1186 = vector.broadcast %1184 : vector<1x128xf32> to vector<24x128xf32>
    %1187 = arith.mulf %1186, %1185 : vector<24x128xf32>
    %1188 = arith.addf %1183, %1187 : vector<24x128xf32>
    %c192 = arith.constant 192 : index
    %c0_726 = arith.constant 0 : index
    %1189 = vector.load %arg2[%c192, %c0_726] : memref<256x128xf32, #tpu.memory_space<vmem>>, vector<1x128xf32>
    %c72_727 = arith.constant 72 : index
    %c0_728 = arith.constant 0 : index
    %1190 = vector.load %arg1[%c72_727, %c0_728] : memref<96x128xf32, #tpu.memory_space<vmem>>, vector<24x128xf32>
    %1191 = vector.broadcast %1189 : vector<1x128xf32> to vector<24x128xf32>
    %1192 = arith.mulf %1191, %1190 : vector<24x128xf32>
    %1193 = arith.addf %1188, %1192 : vector<24x128xf32>
    %c8 = arith.constant 8 : index
    %c0_729 = arith.constant 0 : index
    %1194 = vector.load %arg2[%c8, %c0_729] : memref<256x128xf32, #tpu.memory_space<vmem>>, vector<1x128xf32>
    %c0_730 = arith.constant 0 : index
    %c0_731 = arith.constant 0 : index
    %1195 = vector.load %arg1[%c0_730, %c0_731] : memref<96x128xf32, #tpu.memory_space<vmem>>, vector<24x128xf32>
    %1196 = vector.broadcast %1194 : vector<1x128xf32> to vector<24x128xf32>
    %1197 = arith.mulf %1196, %1195 : vector<24x128xf32>
    %c72_732 = arith.constant 72 : index
    %c0_733 = arith.constant 0 : index
    %1198 = vector.load %arg2[%c72_732, %c0_733] : memref<256x128xf32, #tpu.memory_space<vmem>>, vector<1x128xf32>
    %c24_734 = arith.constant 24 : index
    %c0_735 = arith.constant 0 : index
    %1199 = vector.load %arg1[%c24_734, %c0_735] : memref<96x128xf32, #tpu.memory_space<vmem>>, vector<24x128xf32>
    %1200 = vector.broadcast %1198 : vector<1x128xf32> to vector<24x128xf32>
    %1201 = arith.mulf %1200, %1199 : vector<24x128xf32>
    %1202 = arith.addf %1197, %1201 : vector<24x128xf32>
    %c136 = arith.constant 136 : index
    %c0_736 = arith.constant 0 : index
    %1203 = vector.load %arg2[%c136, %c0_736] : memref<256x128xf32, #tpu.memory_space<vmem>>, vector<1x128xf32>
    %c48_737 = arith.constant 48 : index
    %c0_738 = arith.constant 0 : index
    %1204 = vector.load %arg1[%c48_737, %c0_738] : memref<96x128xf32, #tpu.memory_space<vmem>>, vector<24x128xf32>
    %1205 = vector.broadcast %1203 : vector<1x128xf32> to vector<24x128xf32>
    %1206 = arith.mulf %1205, %1204 : vector<24x128xf32>
    %1207 = arith.addf %1202, %1206 : vector<24x128xf32>
    %c200 = arith.constant 200 : index
    %c0_739 = arith.constant 0 : index
    %1208 = vector.load %arg2[%c200, %c0_739] : memref<256x128xf32, #tpu.memory_space<vmem>>, vector<1x128xf32>
    %c72_740 = arith.constant 72 : index
    %c0_741 = arith.constant 0 : index
    %1209 = vector.load %arg1[%c72_740, %c0_741] : memref<96x128xf32, #tpu.memory_space<vmem>>, vector<24x128xf32>
    %1210 = vector.broadcast %1208 : vector<1x128xf32> to vector<24x128xf32>
    %1211 = arith.mulf %1210, %1209 : vector<24x128xf32>
    %1212 = arith.addf %1207, %1211 : vector<24x128xf32>
    %c23_i32_742 = arith.constant 23 : i32
    %1213 = tpu.dynamic_rotate %1212 by %c23_i32_742 dim 0 : vector<24x128xf32>, i32 -> vector<24x128xf32>
    %1214 = arith.addf %1193, %1213 : vector<24x128xf32>
    %c16 = arith.constant 16 : index
    %c0_743 = arith.constant 0 : index
    %1215 = vector.load %arg2[%c16, %c0_743] : memref<256x128xf32, #tpu.memory_space<vmem>>, vector<1x128xf32>
    %c0_744 = arith.constant 0 : index
    %c0_745 = arith.constant 0 : index
    %1216 = vector.load %arg1[%c0_744, %c0_745] : memref<96x128xf32, #tpu.memory_space<vmem>>, vector<24x128xf32>
    %1217 = vector.broadcast %1215 : vector<1x128xf32> to vector<24x128xf32>
    %1218 = arith.mulf %1217, %1216 : vector<24x128xf32>
    %c80 = arith.constant 80 : index
    %c0_746 = arith.constant 0 : index
    %1219 = vector.load %arg2[%c80, %c0_746] : memref<256x128xf32, #tpu.memory_space<vmem>>, vector<1x128xf32>
    %c24_747 = arith.constant 24 : index
    %c0_748 = arith.constant 0 : index
    %1220 = vector.load %arg1[%c24_747, %c0_748] : memref<96x128xf32, #tpu.memory_space<vmem>>, vector<24x128xf32>
    %1221 = vector.broadcast %1219 : vector<1x128xf32> to vector<24x128xf32>
    %1222 = arith.mulf %1221, %1220 : vector<24x128xf32>
    %1223 = arith.addf %1218, %1222 : vector<24x128xf32>
    %c144 = arith.constant 144 : index
    %c0_749 = arith.constant 0 : index
    %1224 = vector.load %arg2[%c144, %c0_749] : memref<256x128xf32, #tpu.memory_space<vmem>>, vector<1x128xf32>
    %c48_750 = arith.constant 48 : index
    %c0_751 = arith.constant 0 : index
    %1225 = vector.load %arg1[%c48_750, %c0_751] : memref<96x128xf32, #tpu.memory_space<vmem>>, vector<24x128xf32>
    %1226 = vector.broadcast %1224 : vector<1x128xf32> to vector<24x128xf32>
    %1227 = arith.mulf %1226, %1225 : vector<24x128xf32>
    %1228 = arith.addf %1223, %1227 : vector<24x128xf32>
    %c208 = arith.constant 208 : index
    %c0_752 = arith.constant 0 : index
    %1229 = vector.load %arg2[%c208, %c0_752] : memref<256x128xf32, #tpu.memory_space<vmem>>, vector<1x128xf32>
    %c72_753 = arith.constant 72 : index
    %c0_754 = arith.constant 0 : index
    %1230 = vector.load %arg1[%c72_753, %c0_754] : memref<96x128xf32, #tpu.memory_space<vmem>>, vector<24x128xf32>
    %1231 = vector.broadcast %1229 : vector<1x128xf32> to vector<24x128xf32>
    %1232 = arith.mulf %1231, %1230 : vector<24x128xf32>
    %1233 = arith.addf %1228, %1232 : vector<24x128xf32>
    %c22_i32_755 = arith.constant 22 : i32
    %1234 = tpu.dynamic_rotate %1233 by %c22_i32_755 dim 0 : vector<24x128xf32>, i32 -> vector<24x128xf32>
    %1235 = arith.addf %1214, %1234 : vector<24x128xf32>
    %c24_756 = arith.constant 24 : index
    %c0_757 = arith.constant 0 : index
    %1236 = vector.load %arg2[%c24_756, %c0_757] : memref<256x128xf32, #tpu.memory_space<vmem>>, vector<1x128xf32>
    %c0_758 = arith.constant 0 : index
    %c0_759 = arith.constant 0 : index
    %1237 = vector.load %arg1[%c0_758, %c0_759] : memref<96x128xf32, #tpu.memory_space<vmem>>, vector<24x128xf32>
    %1238 = vector.broadcast %1236 : vector<1x128xf32> to vector<24x128xf32>
    %1239 = arith.mulf %1238, %1237 : vector<24x128xf32>
    %c88 = arith.constant 88 : index
    %c0_760 = arith.constant 0 : index
    %1240 = vector.load %arg2[%c88, %c0_760] : memref<256x128xf32, #tpu.memory_space<vmem>>, vector<1x128xf32>
    %c24_761 = arith.constant 24 : index
    %c0_762 = arith.constant 0 : index
    %1241 = vector.load %arg1[%c24_761, %c0_762] : memref<96x128xf32, #tpu.memory_space<vmem>>, vector<24x128xf32>
    %1242 = vector.broadcast %1240 : vector<1x128xf32> to vector<24x128xf32>
    %1243 = arith.mulf %1242, %1241 : vector<24x128xf32>
    %1244 = arith.addf %1239, %1243 : vector<24x128xf32>
    %c152 = arith.constant 152 : index
    %c0_763 = arith.constant 0 : index
    %1245 = vector.load %arg2[%c152, %c0_763] : memref<256x128xf32, #tpu.memory_space<vmem>>, vector<1x128xf32>
    %c48_764 = arith.constant 48 : index
    %c0_765 = arith.constant 0 : index
    %1246 = vector.load %arg1[%c48_764, %c0_765] : memref<96x128xf32, #tpu.memory_space<vmem>>, vector<24x128xf32>
    %1247 = vector.broadcast %1245 : vector<1x128xf32> to vector<24x128xf32>
    %1248 = arith.mulf %1247, %1246 : vector<24x128xf32>
    %1249 = arith.addf %1244, %1248 : vector<24x128xf32>
    %c216 = arith.constant 216 : index
    %c0_766 = arith.constant 0 : index
    %1250 = vector.load %arg2[%c216, %c0_766] : memref<256x128xf32, #tpu.memory_space<vmem>>, vector<1x128xf32>
    %c72_767 = arith.constant 72 : index
    %c0_768 = arith.constant 0 : index
    %1251 = vector.load %arg1[%c72_767, %c0_768] : memref<96x128xf32, #tpu.memory_space<vmem>>, vector<24x128xf32>
    %1252 = vector.broadcast %1250 : vector<1x128xf32> to vector<24x128xf32>
    %1253 = arith.mulf %1252, %1251 : vector<24x128xf32>
    %1254 = arith.addf %1249, %1253 : vector<24x128xf32>
    %c21_i32_769 = arith.constant 21 : i32
    %1255 = tpu.dynamic_rotate %1254 by %c21_i32_769 dim 0 : vector<24x128xf32>, i32 -> vector<24x128xf32>
    %1256 = arith.addf %1235, %1255 : vector<24x128xf32>
    %c32 = arith.constant 32 : index
    %c0_770 = arith.constant 0 : index
    %1257 = vector.load %arg2[%c32, %c0_770] : memref<256x128xf32, #tpu.memory_space<vmem>>, vector<1x128xf32>
    %c0_771 = arith.constant 0 : index
    %c0_772 = arith.constant 0 : index
    %1258 = vector.load %arg1[%c0_771, %c0_772] : memref<96x128xf32, #tpu.memory_space<vmem>>, vector<24x128xf32>
    %1259 = vector.broadcast %1257 : vector<1x128xf32> to vector<24x128xf32>
    %1260 = arith.mulf %1259, %1258 : vector<24x128xf32>
    %c96 = arith.constant 96 : index
    %c0_773 = arith.constant 0 : index
    %1261 = vector.load %arg2[%c96, %c0_773] : memref<256x128xf32, #tpu.memory_space<vmem>>, vector<1x128xf32>
    %c24_774 = arith.constant 24 : index
    %c0_775 = arith.constant 0 : index
    %1262 = vector.load %arg1[%c24_774, %c0_775] : memref<96x128xf32, #tpu.memory_space<vmem>>, vector<24x128xf32>
    %1263 = vector.broadcast %1261 : vector<1x128xf32> to vector<24x128xf32>
    %1264 = arith.mulf %1263, %1262 : vector<24x128xf32>
    %1265 = arith.addf %1260, %1264 : vector<24x128xf32>
    %c160 = arith.constant 160 : index
    %c0_776 = arith.constant 0 : index
    %1266 = vector.load %arg2[%c160, %c0_776] : memref<256x128xf32, #tpu.memory_space<vmem>>, vector<1x128xf32>
    %c48_777 = arith.constant 48 : index
    %c0_778 = arith.constant 0 : index
    %1267 = vector.load %arg1[%c48_777, %c0_778] : memref<96x128xf32, #tpu.memory_space<vmem>>, vector<24x128xf32>
    %1268 = vector.broadcast %1266 : vector<1x128xf32> to vector<24x128xf32>
    %1269 = arith.mulf %1268, %1267 : vector<24x128xf32>
    %1270 = arith.addf %1265, %1269 : vector<24x128xf32>
    %c224 = arith.constant 224 : index
    %c0_779 = arith.constant 0 : index
    %1271 = vector.load %arg2[%c224, %c0_779] : memref<256x128xf32, #tpu.memory_space<vmem>>, vector<1x128xf32>
    %c72_780 = arith.constant 72 : index
    %c0_781 = arith.constant 0 : index
    %1272 = vector.load %arg1[%c72_780, %c0_781] : memref<96x128xf32, #tpu.memory_space<vmem>>, vector<24x128xf32>
    %1273 = vector.broadcast %1271 : vector<1x128xf32> to vector<24x128xf32>
    %1274 = arith.mulf %1273, %1272 : vector<24x128xf32>
    %1275 = arith.addf %1270, %1274 : vector<24x128xf32>
    %c20_i32_782 = arith.constant 20 : i32
    %1276 = tpu.dynamic_rotate %1275 by %c20_i32_782 dim 0 : vector<24x128xf32>, i32 -> vector<24x128xf32>
    %1277 = arith.addf %1256, %1276 : vector<24x128xf32>
    %c40 = arith.constant 40 : index
    %c0_783 = arith.constant 0 : index
    %1278 = vector.load %arg2[%c40, %c0_783] : memref<256x128xf32, #tpu.memory_space<vmem>>, vector<1x128xf32>
    %c0_784 = arith.constant 0 : index
    %c0_785 = arith.constant 0 : index
    %1279 = vector.load %arg1[%c0_784, %c0_785] : memref<96x128xf32, #tpu.memory_space<vmem>>, vector<24x128xf32>
    %1280 = vector.broadcast %1278 : vector<1x128xf32> to vector<24x128xf32>
    %1281 = arith.mulf %1280, %1279 : vector<24x128xf32>
    %c104 = arith.constant 104 : index
    %c0_786 = arith.constant 0 : index
    %1282 = vector.load %arg2[%c104, %c0_786] : memref<256x128xf32, #tpu.memory_space<vmem>>, vector<1x128xf32>
    %c24_787 = arith.constant 24 : index
    %c0_788 = arith.constant 0 : index
    %1283 = vector.load %arg1[%c24_787, %c0_788] : memref<96x128xf32, #tpu.memory_space<vmem>>, vector<24x128xf32>
    %1284 = vector.broadcast %1282 : vector<1x128xf32> to vector<24x128xf32>
    %1285 = arith.mulf %1284, %1283 : vector<24x128xf32>
    %1286 = arith.addf %1281, %1285 : vector<24x128xf32>
    %c168 = arith.constant 168 : index
    %c0_789 = arith.constant 0 : index
    %1287 = vector.load %arg2[%c168, %c0_789] : memref<256x128xf32, #tpu.memory_space<vmem>>, vector<1x128xf32>
    %c48_790 = arith.constant 48 : index
    %c0_791 = arith.constant 0 : index
    %1288 = vector.load %arg1[%c48_790, %c0_791] : memref<96x128xf32, #tpu.memory_space<vmem>>, vector<24x128xf32>
    %1289 = vector.broadcast %1287 : vector<1x128xf32> to vector<24x128xf32>
    %1290 = arith.mulf %1289, %1288 : vector<24x128xf32>
    %1291 = arith.addf %1286, %1290 : vector<24x128xf32>
    %c232 = arith.constant 232 : index
    %c0_792 = arith.constant 0 : index
    %1292 = vector.load %arg2[%c232, %c0_792] : memref<256x128xf32, #tpu.memory_space<vmem>>, vector<1x128xf32>
    %c72_793 = arith.constant 72 : index
    %c0_794 = arith.constant 0 : index
    %1293 = vector.load %arg1[%c72_793, %c0_794] : memref<96x128xf32, #tpu.memory_space<vmem>>, vector<24x128xf32>
    %1294 = vector.broadcast %1292 : vector<1x128xf32> to vector<24x128xf32>
    %1295 = arith.mulf %1294, %1293 : vector<24x128xf32>
    %1296 = arith.addf %1291, %1295 : vector<24x128xf32>
    %c19_i32_795 = arith.constant 19 : i32
    %1297 = tpu.dynamic_rotate %1296 by %c19_i32_795 dim 0 : vector<24x128xf32>, i32 -> vector<24x128xf32>
    %1298 = arith.addf %1277, %1297 : vector<24x128xf32>
    %c48_796 = arith.constant 48 : index
    %c0_797 = arith.constant 0 : index
    %1299 = vector.load %arg2[%c48_796, %c0_797] : memref<256x128xf32, #tpu.memory_space<vmem>>, vector<1x128xf32>
    %c0_798 = arith.constant 0 : index
    %c0_799 = arith.constant 0 : index
    %1300 = vector.load %arg1[%c0_798, %c0_799] : memref<96x128xf32, #tpu.memory_space<vmem>>, vector<24x128xf32>
    %1301 = vector.broadcast %1299 : vector<1x128xf32> to vector<24x128xf32>
    %1302 = arith.mulf %1301, %1300 : vector<24x128xf32>
    %c112 = arith.constant 112 : index
    %c0_800 = arith.constant 0 : index
    %1303 = vector.load %arg2[%c112, %c0_800] : memref<256x128xf32, #tpu.memory_space<vmem>>, vector<1x128xf32>
    %c24_801 = arith.constant 24 : index
    %c0_802 = arith.constant 0 : index
    %1304 = vector.load %arg1[%c24_801, %c0_802] : memref<96x128xf32, #tpu.memory_space<vmem>>, vector<24x128xf32>
    %1305 = vector.broadcast %1303 : vector<1x128xf32> to vector<24x128xf32>
    %1306 = arith.mulf %1305, %1304 : vector<24x128xf32>
    %1307 = arith.addf %1302, %1306 : vector<24x128xf32>
    %c176 = arith.constant 176 : index
    %c0_803 = arith.constant 0 : index
    %1308 = vector.load %arg2[%c176, %c0_803] : memref<256x128xf32, #tpu.memory_space<vmem>>, vector<1x128xf32>
    %c48_804 = arith.constant 48 : index
    %c0_805 = arith.constant 0 : index
    %1309 = vector.load %arg1[%c48_804, %c0_805] : memref<96x128xf32, #tpu.memory_space<vmem>>, vector<24x128xf32>
    %1310 = vector.broadcast %1308 : vector<1x128xf32> to vector<24x128xf32>
    %1311 = arith.mulf %1310, %1309 : vector<24x128xf32>
    %1312 = arith.addf %1307, %1311 : vector<24x128xf32>
    %c240 = arith.constant 240 : index
    %c0_806 = arith.constant 0 : index
    %1313 = vector.load %arg2[%c240, %c0_806] : memref<256x128xf32, #tpu.memory_space<vmem>>, vector<1x128xf32>
    %c72_807 = arith.constant 72 : index
    %c0_808 = arith.constant 0 : index
    %1314 = vector.load %arg1[%c72_807, %c0_808] : memref<96x128xf32, #tpu.memory_space<vmem>>, vector<24x128xf32>
    %1315 = vector.broadcast %1313 : vector<1x128xf32> to vector<24x128xf32>
    %1316 = arith.mulf %1315, %1314 : vector<24x128xf32>
    %1317 = arith.addf %1312, %1316 : vector<24x128xf32>
    %c18_i32_809 = arith.constant 18 : i32
    %1318 = tpu.dynamic_rotate %1317 by %c18_i32_809 dim 0 : vector<24x128xf32>, i32 -> vector<24x128xf32>
    %1319 = arith.addf %1298, %1318 : vector<24x128xf32>
    %c56 = arith.constant 56 : index
    %c0_810 = arith.constant 0 : index
    %1320 = vector.load %arg2[%c56, %c0_810] : memref<256x128xf32, #tpu.memory_space<vmem>>, vector<1x128xf32>
    %c0_811 = arith.constant 0 : index
    %c0_812 = arith.constant 0 : index
    %1321 = vector.load %arg1[%c0_811, %c0_812] : memref<96x128xf32, #tpu.memory_space<vmem>>, vector<24x128xf32>
    %1322 = vector.broadcast %1320 : vector<1x128xf32> to vector<24x128xf32>
    %1323 = arith.mulf %1322, %1321 : vector<24x128xf32>
    %c120 = arith.constant 120 : index
    %c0_813 = arith.constant 0 : index
    %1324 = vector.load %arg2[%c120, %c0_813] : memref<256x128xf32, #tpu.memory_space<vmem>>, vector<1x128xf32>
    %c24_814 = arith.constant 24 : index
    %c0_815 = arith.constant 0 : index
    %1325 = vector.load %arg1[%c24_814, %c0_815] : memref<96x128xf32, #tpu.memory_space<vmem>>, vector<24x128xf32>
    %1326 = vector.broadcast %1324 : vector<1x128xf32> to vector<24x128xf32>
    %1327 = arith.mulf %1326, %1325 : vector<24x128xf32>
    %1328 = arith.addf %1323, %1327 : vector<24x128xf32>
    %c184 = arith.constant 184 : index
    %c0_816 = arith.constant 0 : index
    %1329 = vector.load %arg2[%c184, %c0_816] : memref<256x128xf32, #tpu.memory_space<vmem>>, vector<1x128xf32>
    %c48_817 = arith.constant 48 : index
    %c0_818 = arith.constant 0 : index
    %1330 = vector.load %arg1[%c48_817, %c0_818] : memref<96x128xf32, #tpu.memory_space<vmem>>, vector<24x128xf32>
    %1331 = vector.broadcast %1329 : vector<1x128xf32> to vector<24x128xf32>
    %1332 = arith.mulf %1331, %1330 : vector<24x128xf32>
    %1333 = arith.addf %1328, %1332 : vector<24x128xf32>
    %c248 = arith.constant 248 : index
    %c0_819 = arith.constant 0 : index
    %1334 = vector.load %arg2[%c248, %c0_819] : memref<256x128xf32, #tpu.memory_space<vmem>>, vector<1x128xf32>
    %c72_820 = arith.constant 72 : index
    %c0_821 = arith.constant 0 : index
    %1335 = vector.load %arg1[%c72_820, %c0_821] : memref<96x128xf32, #tpu.memory_space<vmem>>, vector<24x128xf32>
    %1336 = vector.broadcast %1334 : vector<1x128xf32> to vector<24x128xf32>
    %1337 = arith.mulf %1336, %1335 : vector<24x128xf32>
    %1338 = arith.addf %1333, %1337 : vector<24x128xf32>
    %c17_i32_822 = arith.constant 17 : i32
    %1339 = tpu.dynamic_rotate %1338 by %c17_i32_822 dim 0 : vector<24x128xf32>, i32 -> vector<24x128xf32>
    %1340 = arith.addf %1319, %1339 : vector<24x128xf32>
    %1341 = arith.addf %1174, %1340 : vector<24x128xf32>
    %c0_823 = arith.constant 0 : index
    %c0_824 = arith.constant 0 : index
    %1342 = vector.load %arg6[%c0_823, %c0_824] : memref<24x128xf32, #tpu.memory_space<vmem>>, vector<24x128xf32>
    tpu.vector_store %arg6[%c0_823, %c0_824], %1341 {strides = array<i32>} : memref<24x128xf32, #tpu.memory_space<vmem>>, vector<24x128xf32>,
    %c0_825 = arith.constant 0 : index
    %c0_826 = arith.constant 0 : index
    %1343 = vector.load %arg3[%c0_825, %c0_826] : memref<24x128xf32, #tpu.memory_space<vmem>>, vector<24x128xf32>
    %1344 = arith.mulf %1341, %1343 : vector<24x128xf32>
    %1345 = vector.shape_cast %1344 : vector<24x128xf32> to vector<1x24x128xf32>
    %cst = arith.constant dense<0.000000e+00> : vector<1xf32>
    %1346 = vector.multi_reduction <add>, %1345, %cst [1, 2] : vector<1x24x128xf32> to vector<1xf32>
    %1347 = vector.shape_cast %1346 : vector<1xf32> to vector<1x1x1xf32>
    %1348 = vector.extract %1347[0, 0, 0] : f32 from vector<1x1x1xf32>
    %cst_827 = arith.constant 0.000000e+00 : f32
    %1349 = arith.addf %cst_827, %1348 : f32
    %1350 = arith.mulf %1344, %1344 : vector<24x128xf32>
    %1351 = vector.shape_cast %1350 : vector<24x128xf32> to vector<1x24x128xf32>
    %cst_828 = arith.constant dense<0.000000e+00> : vector<1xf32>
    %1352 = vector.multi_reduction <add>, %1351, %cst_828 [1, 2] : vector<1x24x128xf32> to vector<1xf32>
    %1353 = vector.shape_cast %1352 : vector<1xf32> to vector<1x1x1xf32>
    %1354 = vector.extract %1353[0, 0, 0] : f32 from vector<1x1x1xf32>
    %cst_829 = arith.constant 0.000000e+00 : f32
    %1355 = arith.addf %cst_829, %1354 : f32
    %cst_830 = arith.constant 5.780000e+02 : f32
    %1356 = arith.divf %1349, %cst_830 : f32
    %cst_831 = arith.constant 5.780000e+02 : f32
    %1357 = arith.divf %1355, %cst_831 : f32
    %1358 = arith.mulf %1356, %1356 : f32
    %1359 = arith.subf %1357, %1358 : f32
    %cst_832 = arith.constant 9.99999974E-6 : f32
    %1360 = arith.addf %1359, %cst_832 : f32
    %1361 = math.rsqrt %1360 : f32
    %c0_833 = arith.constant 0 : index
    %1362 = memref.load %arg4[%c0_833] : memref<1xf32, #tpu.memory_space<smem>>
    %1363 = arith.mulf %1361, %1362 : f32
    %c0_834 = arith.constant 0 : index
    %1364 = memref.load %arg5[%c0_834] : memref<1xf32, #tpu.memory_space<smem>>
    %1365 = arith.mulf %1356, %1363 : f32
    %1366 = arith.subf %1364, %1365 : f32
    %c0_835 = arith.constant 0 : index
    %c0_836 = arith.constant 0 : index
    %1367 = vector.load %arg6[%c0_835, %c0_836] : memref<24x128xf32, #tpu.memory_space<vmem>>, vector<24x128xf32>
    %1368 = vector.broadcast %1363 : f32 to vector<24x128xf32>
    %1369 = arith.mulf %1367, %1368 : vector<24x128xf32>
    %1370 = vector.broadcast %1366 : f32 to vector<24x128xf32>
    %1371 = arith.addf %1369, %1370 : vector<24x128xf32>
    %c0_837 = arith.constant 0 : index
    %c0_838 = arith.constant 0 : index
    %1372 = vector.load %arg6[%c0_837, %c0_838] : memref<24x128xf32, #tpu.memory_space<vmem>>, vector<24x128xf32>
    tpu.vector_store %arg6[%c0_837, %c0_838], %1371 {strides = array<i32>} : memref<24x128xf32, #tpu.memory_space<vmem>>, vector<24x128xf32>,
    return
  }
  func.func @transform_0(%arg0: i32) -> (i32, i32) {
    %c0_i32 = arith.constant 0 : i32
    %c0_i32_0 = arith.constant 0 : i32
    %c0_i32_1 = arith.constant 0 : i32
    return %c0_i32, %c0_i32_0 : i32, i32
  }
  func.func @transform_1(%arg0: i32) -> (i32, i32) {
    %c0_i32 = arith.constant 0 : i32
    %c0_i32_0 = arith.constant 0 : i32
    %c0_i32_1 = arith.constant 0 : i32
    return %c0_i32, %c0_i32_0 : i32, i32
  }
  func.func @transform_2(%arg0: i32) -> (i32, i32) {
    %c0_i32 = arith.constant 0 : i32
    %c0_i32_0 = arith.constant 0 : i32
    %c0_i32_1 = arith.constant 0 : i32
    return %c0_i32, %c0_i32_0 : i32, i32
  }
  func.func @transform_3(%arg0: i32) -> i32 {
    %c0_i32 = arith.constant 0 : i32
    %c0_i32_0 = arith.constant 0 : i32
    return %c0_i32 : i32
  }
  func.func @transform_4(%arg0: i32) -> i32 {
    %c0_i32 = arith.constant 0 : i32
    %c0_i32_0 = arith.constant 0 : i32
    return %c0_i32 : i32
  }
  func.func @transform_5(%arg0: i32) -> (i32, i32) {
    %c0_i32 = arith.constant 0 : i32
    %c0_i32_0 = arith.constant 0 : i32
    %c0_i32_1 = arith.constant 0 : i32
    return %c0_i32, %c0_i32_0 : i32, i32
  }
}

</mosaic_0001>

<bundles_post_ra>
// kernel: tpu_custom_call.1
= control target key start
LH: loop header
LB: loop body
LE: loop exit
PB: predicated region body
PF: predicated region fallthrough
CT: control target
= control target key end

     0   :  { %12 = vsyncpa [#allocation5], 0  ;;  %s7161_s0 = inlined_call_operand.hbm [shape: f32[96,128], index: 0, kind: input, shape index: {}]   ;;  %s7162_s1 = inlined_call_operand.hbm [shape: f32[256,128], index: 1, kind: input, shape index: {}]   ;;  %s7163_s2 = inlined_call_operand.hbm [shape: f32[24,128], index: 2, kind: input, shape index: {}]   ;;  %s7164_s3 = inlined_call_operand.<no memory space> [shape: f32[1], index: 3, kind: input, shape index: {}]   ;;  %s7165_s4 = inlined_call_operand.<no memory space> [shape: f32[1], index: 4, kind: input, shape index: {}]   ;;  %s7166_s5 = inlined_call_operand.hbm [shape: f32[24,128], index: 5, kind: output, shape index: {}]  }
   0x1   :  { %13 = vsyncpa [#allocation8], 0 }
   0x2   :  { %14 = vsyncpa [#allocation6], 0  ;;  %s3762_s18 = smov [#allocation7]   ;;  %s3763_s20 = smov [#allocation4]  }
   0x3   :  { %s32_s19 = sshll.u32 %s3762_s18, 4  ;;  %s20_s21 = sshll.u32 %s3763_s20, 4  ;;  %s33_s19 = int_to_ptr.vmem [resolvable:$true] %s32_s19  ;;  %s3799_s21 = int_to_ptr.vmem [resolvable:$true] %s20_s21 }
   0x4   :  { %s3668_s24 = scalar_lea.hbm %s7162_s1, 4096 }
   0x5   :  { %p3669_p0 = scmp.ne.s32.totalorder %s7162_s1, %s3668_s24  ;;  %p3672_p1 = scmp.lt.u32.totalorder %s3668_s24, %s7162_s1 }
   0x7   :  { %p3674_p2 = pnand %p3672_p1, %p3669_p0 }
   0x9   :  { %3677 = shalt.err (!%p3674_p2)
}
   0xa   :  { %s3678_s29 = scalar_lea.vmem %s33_s19, 4096  ;;  %p3683_p4 = scmp.lt.s32.totalorder %s33_s19, %s33_s19 }
   0xb   :  { %p3679_p3 = scmp.ne.s32.totalorder %s33_s19, %s3678_s29  ;;  %p3684_p5 = scmp.lt.s32.totalorder %s3678_s29, %s3678_s29 }
   0xd   :  { %p3685_p6 = por %p3684_p5, %p3683_p4 }
   0xf   :  { %p3686_p7 = pnand %p3685_p6, %p3679_p3 }
  0x11   :  { %3689 = shalt.err (!%p3686_p7)
}
  0x12   :  { %s3764_s30 = smov 128   ;;  %s3765_s6 = smov 8  }
  0x13   :  { %38 = dma.hbm_to_vmem [thread:$0]  %s7162_s1, 4096, %s33_s19, [#allocation8], %s3764_s30, %s3764_s30, %s3765_s6  }
  0x14   :  { %s3690_s11 = scalar_lea.hbm %s7161_s0, 1536 }
  0x15   :  { %p3691_p8 = scmp.ne.s32.totalorder %s7161_s0, %s3690_s11  ;;  %p3694_p9 = scmp.lt.u32.totalorder %s3690_s11, %s7161_s0 }
  0x17   :  { %p3696_p10 = pnand %p3694_p9, %p3691_p8 }
  0x19   :  { %3699 = shalt.err (!%p3696_p10)
}
  0x1a   :  { %s3700_s16 = scalar_lea.vmem %s3799_s21, 1536  ;;  %p3705_p12 = scmp.lt.s32.totalorder %s3799_s21, %s3799_s21 }
  0x1b   :  { %p3701_p11 = scmp.ne.s32.totalorder %s3799_s21, %s3700_s16  ;;  %p3706_p13 = scmp.lt.s32.totalorder %s3700_s16, %s3700_s16 }
  0x1d   :  { %p3707_p0 = por %p3706_p13, %p3705_p12 }
  0x1f   :  { %p3708_p1 = pnand %p3707_p0, %p3701_p11 }
  0x21   :  { %3711 = shalt.err (!%p3708_p1)
}
  0x22   :  { %26 = dma.hbm_to_vmem [thread:$0]  %s7161_s0, 1536, %s3799_s21, [#allocation5], %s3764_s30, %s3764_s30, %s3765_s6  }
  0x23   :  { %s3766_s18 = smov [#allocation9]   ;;  %s3712_s23 = scalar_lea.hbm %s7163_s2, 384 }
  0x24   :  { %s44_s19 = sshll.u32 %s3766_s18, 4  ;;  %p3713_p2 = scmp.ne.s32.totalorder %s7163_s2, %s3712_s23  ;;  %s45_s19 = int_to_ptr.vmem [resolvable:$true] %s44_s19 }
  0x25   :  { %p3716_p3 = scmp.lt.u32.totalorder %s3712_s23, %s7163_s2 }
  0x27   :  { %p3718_p4 = pnand %p3716_p3, %p3713_p2 }
  0x29   :  { %3721 = shalt.err (!%p3718_p4)
}
  0x2a   :  { %s3722_s28 = scalar_lea.vmem %s45_s19, 384  ;;  %p3727_p6 = scmp.lt.s32.totalorder %s45_s19, %s45_s19 }
  0x2b   :  { %p3723_p5 = scmp.ne.s32.totalorder %s45_s19, %s3722_s28  ;;  %p3728_p7 = scmp.lt.s32.totalorder %s3722_s28, %s3722_s28 }
  0x2d   :  { %p3729_p8 = por %p3728_p7, %p3727_p6 }
  0x2f   :  { %p3730_p9 = pnand %p3729_p8, %p3723_p5 }
  0x31   :  { %3733 = shalt.err (!%p3730_p9)
}
  0x32   :  { %50 = dma.hbm_to_vmem [thread:$0]  %s7163_s2, 384, %s45_s19, [#allocation8], %s3764_s30, %s3764_s30, %s3765_s6  }
  0x33   :  { %3756 = dma.done.wait [#allocation5], 1536  }
  0x34   :  { %3757 = vsyncadd [#allocation5], 4294965760 }
  0x35   :  { %3758 = dma.done.wait [#allocation8], 4480  }
  0x36   :  { %3759 = vsyncadd [#allocation8], 4294962816  ;;  %v161_v0 = vlaneseq  ;;  %v3851_v1 = vld [vmem:[#allocation7 + $0x7] ss:$0 sm:$0xff]  ;;  %v3855_v3 = vld [vmem:[#allocation4 + $0x8] sm:$0xff]  ;;  %s3767_s2 = smov 127  }
  0x37   :  { %7325 = vst [vmem:[#allocation14_spill] sm:$0xff] %v3851_v1  ;;  %v3853_v2 = vld [vmem:[#allocation4] sm:$0xff]  ;;  %7327 = vst [vmem:[#allocation16_spill] sm:$0xff] %v3855_v3  ;;  %v3863_v7 = vld [vmem:[#allocation4 + $0x18] sm:$0xff]  ;;  %v73_v9 = vmul.f32 %v3851_v1, %v3855_v3  ;;  %s3768_s20 = smov [#allocation10]  }
  0x38   :  { %7326 = vst [vmem:[#allocation15_spill] sm:$0xff] %v3853_v2  ;;  %v3857_v4 = vshrl.u32 %v161_v0, 7  ;;  %v72_v5 = vmul.f32 %v3851_v1, %v3853_v2  ;;  %v3861_v6 = vld [vmem:[#allocation7 + $0x47] ss:$0 sm:$0xff]  ;;  %7329 = vst [vmem:[#allocation18_spill] sm:$0xff] %v3863_v7  ;;  %v3873_v12 = vld [vmem:[#allocation4 + $0x30] sm:$0xff] }
  0x39   :  { %7328 = vst [vmem:[#allocation17_spill] sm:$0xff] %v3861_v6  ;;  %v3865_v8 = vld [vmem:[#allocation4 + $0x20] sm:$0xff]  ;;  %v83_v10 = vmul.f32 %v3861_v6, %v3863_v7  ;;  %7332 = vst [vmem:[#allocation21_spill] sm:$0xff] %v3873_v12  ;;  %v3875_v13 = vld [vmem:[#allocation4 + $0x38] sm:$0xff]  ;;  %s3348_s22 = sshll.u32 %s3768_s20, 4  ;;  %s3349_s22 = int_to_ptr.vmem [resolvable:$true] %s3348_s22 }
  0x3a   :  { %7330 = vst [vmem:[#allocation19_spill] sm:$0xff] %v3865_v8  ;;  %v3871_v11 = vld [vmem:[#allocation7 + $0x87] ss:$0 sm:$0xff]  ;;  %7333 = vst [vmem:[#allocation22_spill] sm:$0xff] %v3875_v13  ;;  %v84_v14 = vmul.f32 %v3861_v6, %v3865_v8  ;;  %v3883_v17 = vld [vmem:[#allocation4 + $0x48] sm:$0xff]  ;;  %vm163_vm0 = vcmp.lt.s32.totalorder %v3857_v4, 7  ;;  %p3739_p11 = scmp.lt.s32.totalorder %s3349_s22, %s3349_s22 }
  0x3b   :  { %7331 = vst [vmem:[#allocation20_spill] sm:$0xff] %v3871_v11  ;;  %v97_v15 = vmul.f32 %v3871_v11, %v3873_v12  ;;  %v3881_v16 = vld [vmem:[#allocation7 + $0xc7] ss:$0 sm:$0xff]  ;;  %v3885_v18 = vld [vmem:[#allocation4 + $0x50] sm:$0xff]  ;;  %v3889_v19 = vmul.f32 %v3871_v11, %v3875_v13  ;;  %v86_v20 = vadd.f32 %v83_v10, %v72_v5  ;;  %v3893_v22 = vld [vmem:[#allocation7 + $0xf] ss:$0 sm:$0xff] }
  0x3c   :  { %7334 = vst [vmem:[#allocation23_spill] sm:$0xff] %v3881_v16  ;;  %v111_v21 = vmul.f32 %v3881_v16, %v3883_v17  ;;  %v3895_v23 = vld [vmem:[#allocation7 + $0x4f] ss:$0 sm:$0xff]  ;;  %v3900_v25 = vadd.f32 %v84_v14, %v73_v9  ;;  %v3904_v26 = vmul.f32 %v3881_v16, %v3885_v18  ;;  %v122_v27 = vmul.f32 %v3893_v22, %v3853_v2  ;;  %v3916_v32 = vld [vmem:[#allocation7 + $0x17] ss:$0 sm:$0xff] }
  0x3d   :  { %v3897_v24 = vld [vmem:[#allocation7 + $0x8f] ss:$0 sm:$0xff]  ;;  %v123_v28 = vmul.f32 %v3893_v22, %v3855_v3  ;;  %v130_v29 = vmul.f32 %v3895_v23, %v3863_v7  ;;  %v131_v30 = vmul.f32 %v3895_v23, %v3865_v8  ;;  %v3918_v33 = vld [vmem:[#allocation7 + $0x57] ss:$0 sm:$0xff]  ;;  %v100_v34 = vadd.f32 %v97_v15, %v86_v20  ;;  %v3941_v48 = vld [vmem:[#allocation7 + $0x1f] ss:$0 sm:$0xff] }
  0x3e   :  { %v3914_v31 = vld [vmem:[#allocation7 + $0xcf] ss:$0 sm:$0xff]  ;;  %v141_v35 = vmul.f32 %v3897_v24, %v3873_v12  ;;  %v142_v36 = vmul.f32 %v3897_v24, %v3875_v13  ;;  %v3926_v38 = vld [vmem:[#allocation7 + $0x97] ss:$0 sm:$0xff]  ;;  %v175_v42 = vmul.f32 %v3916_v32, %v3853_v2  ;;  %vm214_vm1 = vcmp.lt.s32.totalorder %v3857_v4, 6 }
  0x3f   :  { %v152_v37 = vmul.f32 %v3914_v31, %v3883_v17  ;;  %v133_v39 = vadd.f32 %v130_v29, %v122_v27  ;;  %v134_v40 = vadd.f32 %v131_v30, %v123_v28  ;;  %v153_v41 = vmul.f32 %v3914_v31, %v3885_v18  ;;  %v3932_v43 = vld [vmem:[#allocation7 + $0xd7] ss:$0 sm:$0xff]  ;;  %v3947_v53 = vld [vmem:[#allocation7 + $0x5f] ss:$0 sm:$0xff]  ;;  %v3970_v14 = vld [vmem:[#allocation7 + $0x27] ss:$0 sm:$0xff] }
  0x40   :  { %v114_v44 = vadd.f32 %v111_v21, %v100_v34  ;;  %v176_v45 = vmul.f32 %v3916_v32, %v3855_v3  ;;  %v183_v46 = vmul.f32 %v3918_v33, %v3863_v7  ;;  %v184_v47 = vmul.f32 %v3918_v33, %v3865_v8  ;;  %v3953_v58 = vld [vmem:[#allocation7 + $0x9f] ss:$0 sm:$0xff] }
  0x41   :  { %v144_v49 = vadd.f32 %v141_v35, %v133_v39  ;;  %v145_v50 = vadd.f32 %v142_v36, %v134_v40  ;;  %v194_v51 = vmul.f32 %v3926_v38, %v3873_v12  ;;  %v195_v52 = vmul.f32 %v3926_v38, %v3875_v13  ;;  %v3967_v10 = vld [vmem:[#allocation7 + $0xdf] ss:$0 sm:$0xff]  ;;  %v3982_v35 = vld [vmem:[#allocation7 + $0x67] ss:$0 sm:$0xff] }
  0x42   :  { %v186_v54 = vadd.f32 %v183_v46, %v175_v42  ;;  %v187_v55 = vadd.f32 %v184_v47, %v176_v45  ;;  %v205_v56 = vmul.f32 %v3932_v43, %v3883_v17  ;;  %v206_v57 = vmul.f32 %v3932_v43, %v3885_v18  ;;  %v4103_v11 = vld [vmem:[#allocation7 + $0xbf] ss:$0 sm:$0xff] }
  0x43   :  { %v3955_v59 = vadd.f32 %v152_v37, %v144_v49  ;;  %v3957_v60 = vadd.f32 %v153_v41, %v145_v50  ;;  %v226_v61 = vmul.f32 %v3941_v48, %v3853_v2  ;;  %v227_v62 = vmul.f32 %v3941_v48, %v3855_v3  ;;  %v3996_v41 = vld [vmem:[#allocation7 + $0xa7] ss:$0 sm:$0xff] }
  0x44   :  { %v197_v63 = vadd.f32 %v194_v51, %v186_v54  ;;  %v198_v0 = vadd.f32 %v195_v52, %v187_v55  ;;  %v234_v5 = vmul.f32 %v3947_v53, %v3863_v7  ;;  %v235_v9 = vmul.f32 %v3947_v53, %v3865_v8  ;;  %v4007_v54 = vld [vmem:[#allocation7 + $0xe7] ss:$0 sm:$0xff] }
  0x45   :  { %7335 = vst [vmem:[#allocation24_spill] sm:$0xff] %v3955_v59  ;;  %vm265_vm2 = vcmp.lt.s32.totalorder %v3857_v4, 5  ;;  %v7168_v15 = vrot.slane %v3955_v59, 1  ;;  %v7170_v20 = vrot.slane %v3957_v60, 1  ;;  %v245_v21 = vmul.f32 %v3953_v58, %v3873_v12  ;;  %v4068_v59 = vld [vmem:[#allocation7 + $0xb7] ss:$0 sm:$0xff] }
  0x46   :  { %v246_v27 = vmul.f32 %v3953_v58, %v3875_v13  ;;  %v3978_v28 = vadd.f32 %v205_v56, %v197_v63  ;;  %v3980_v29 = vadd.f32 %v206_v57, %v198_v0  ;;  %v237_v30 = vadd.f32 %v234_v5, %v226_v61 }
  0x47   :  { %v238_v34 = vadd.f32 %v235_v9, %v227_v62  ;;  %v165_v36 = vsel %vm163_vm0, %v7168_v15, %v7170_v20  ;;  %v256_v37 = vmul.f32 %v3967_v10, %v3883_v17  ;;  %v257_v39 = vmul.f32 %v3967_v10, %v3885_v18  ;;  %v4025_v9 = vld [vmem:[#allocation7 + $0x6f] ss:$0 sm:$0xff] }
  0x48   :  { %7336 = vst [vmem:[#allocation25_spill] sm:$0xff] %v3978_v28  ;;  %v277_v40 = vmul.f32 %v3970_v14, %v3853_v2  ;;  %v167_v42 = vadd.f32 %v165_v36, %v114_v44  ;;  %v7167_v45 = vrot.slane %v3978_v28, 2  ;;  %v7169_v46 = vrot.slane %v3980_v29, 2  ;;  %v4009_v44 = vld [vmem:[#allocation7 + $0x2f] ss:$0 sm:$0xff] }
  0x49   :  { %v248_v47 = vadd.f32 %v245_v21, %v237_v30  ;;  %vm316_vm3 = vcmp.lt.s32.totalorder %v3857_v4, 4  ;;  %v249_v49 = vadd.f32 %v246_v27, %v238_v34  ;;  %v278_v50 = vmul.f32 %v3970_v14, %v3855_v3  ;;  %v4027_v21 = vld [vmem:[#allocation7 + $0xaf] ss:$0 sm:$0xff] }
  0x4a   :  { %v285_v51 = vmul.f32 %v3982_v35, %v3863_v7  ;;  %v286_v52 = vmul.f32 %v3982_v35, %v3865_v8  ;;  %v216_v55 = vsel %vm214_vm1, %v7167_v45, %v7169_v46  ;;  %v296_v57 = vmul.f32 %v3996_v41, %v3873_v12  ;;  %v4064_v45 = vld [vmem:[#allocation7 + $0x77] ss:$0 sm:$0xff] }
  0x4b   :  { %v4017_v56 = vadd.f32 %v256_v37, %v248_v47  ;;  %v297_v61 = vmul.f32 %v3996_v41, %v3875_v13  ;;  %v218_v62 = vadd.f32 %v216_v55, %v167_v42  ;;  %v4023_v63 = vadd.f32 %v257_v39, %v249_v49  ;;  %v4036_v37 = vld [vmem:[#allocation7 + $0xef] ss:$0 sm:$0xff]  ;;  %v4050_v55 = vld [vmem:[#allocation7 + $0x37] ss:$0 sm:$0xff] }
  0x4c   :  { %v288_v0 = vadd.f32 %v285_v51, %v277_v40  ;;  %v289_v5 = vadd.f32 %v286_v52, %v278_v50  ;;  %v307_v30 = vmul.f32 %v4007_v54, %v3883_v17  ;;  %v308_v34 = vmul.f32 %v4007_v54, %v3885_v18 }
  0x4d   :  { %7337 = vst [vmem:[#allocation26_spill] sm:$0xff] %v4017_v56  ;;  %v7174_v27 = vrot.slane %v4017_v56, 3  ;;  %v328_v36 = vmul.f32 %v4009_v44, %v3853_v2  ;;  %v7175_v39 = vrot.slane %v4023_v63, 3  ;;  %v329_v47 = vmul.f32 %v4009_v44, %v3855_v3  ;;  %v4070_v56 = vld [vmem:[#allocation7 + $0xf7] ss:$0 sm:$0xff] }
  0x4e   :  { %v299_v40 = vadd.f32 %v296_v57, %v288_v0  ;;  %v300_v42 = vadd.f32 %v297_v61, %v289_v5  ;;  %vm367_vm4 = vcmp.lt.s32.totalorder %v3857_v4, 3  ;;  %v336_v49 = vmul.f32 %v4025_v9, %v3863_v7 }
  0x4f   :  { %v337_v50 = vmul.f32 %v4025_v9, %v3865_v8  ;;  %v347_v51 = vmul.f32 %v4027_v21, %v3873_v12  ;;  %v348_v52 = vmul.f32 %v4027_v21, %v3875_v13  ;;  %v267_v57 = vsel %vm265_vm2, %v7174_v27, %v7175_v39 }
  0x50   :  { %v4058_v61 = vadd.f32 %v307_v30, %v299_v40  ;;  %v4060_v0 = vadd.f32 %v308_v34, %v300_v42  ;;  %v358_v5 = vmul.f32 %v4036_v37, %v3883_v17  ;;  %v269_v15 = vadd.f32 %v267_v57, %v218_v62 }
  0x51   :  { %v339_v46 = vadd.f32 %v336_v49, %v328_v36  ;;  %v340_v20 = vadd.f32 %v337_v50, %v329_v47  ;;  %v359_v28 = vmul.f32 %v4036_v37, %v3885_v18  ;;  %v379_v40 = vmul.f32 %v4050_v55, %v3853_v2  ;;  %v4083_v50 = vld [vmem:[#allocation7 + $0x3f] ss:$0 sm:$0xff] }
  0x52   :  { %7338 = vst [vmem:[#allocation27_spill] sm:$0xff] %v4058_v61  ;;  %7339 = vst [vmem:[#allocation28_spill] sm:$0xff] %v4060_v0  ;;  %v7179_v30 = vrot.slane %v4058_v61, 4  ;;  %v7180_v34 = vrot.slane %v4060_v0, 4  ;;  %v380_v42 = vmul.f32 %v4050_v55, %v3855_v3  ;;  %v387_v47 = vmul.f32 %v4064_v45, %v3863_v7  ;;  %v4111_v0 = vld [vmem:[#allocation7 + $0xff] ss:$0 sm:$0xff] }
  0x53   :  { %v350_v62 = vadd.f32 %v347_v51, %v339_v46  ;;  %v351_v36 = vadd.f32 %v348_v52, %v340_v20  ;;  %v388_v49 = vmul.f32 %v4064_v45, %v3865_v8  ;;  %vm418_vm5 = vcmp.lt.s32.totalorder %v3857_v4, 2  ;;  %v4097_v52 = vld [vmem:[#allocation7 + $0x7f] ss:$0 sm:$0xff] }
  0x54   :  { %v318_v57 = vsel %vm316_vm3, %v7179_v30, %v7180_v34  ;;  %v398_v20 = vmul.f32 %v4068_v59, %v3873_v12  ;;  %v399_v46 = vmul.f32 %v4068_v59, %v3875_v13  ;;  %v409_v51 = vmul.f32 %v4070_v56, %v3883_v17 }
  0x55   :  { %v320_v27 = vadd.f32 %v318_v57, %v269_v15  ;;  %v4099_v39 = vadd.f32 %v358_v5, %v350_v62  ;;  %v4101_v16 = vadd.f32 %v359_v28, %v351_v36  ;;  %v390_v61 = vadd.f32 %v387_v47, %v379_v40 }
  0x56   :  { %v391_v30 = vadd.f32 %v388_v49, %v380_v42  ;;  %v410_v34 = vmul.f32 %v4070_v56, %v3885_v18  ;;  %v430_v6 = vmul.f32 %v4083_v50, %v3853_v2  ;;  %v431_v1 = vmul.f32 %v4083_v50, %v3855_v3  ;;  %v4124_v49 = vld [vmem:[#allocation4 + $0x10] sm:$0xff]  ;;  %v4144_v2 = vld [vmem:[#allocation4 + $0x58] sm:$0xff] }
  0x57   :  { %v7196_v15 = vrot.slane %v4099_v39, 5  ;;  %v365_v28 = vrot.slane %v4101_v16, 5  ;;  %v401_v5 = vadd.f32 %v398_v20, %v390_v61  ;;  %v438_v40 = vmul.f32 %v4097_v52, %v3863_v7 }
  0x58   :  { %vm469_vm6 = vcmp.lt.s32.totalorder %v3857_v4, 1  ;;  %v402_v42 = vadd.f32 %v399_v46, %v391_v30  ;;  %v439_v62 = vmul.f32 %v4097_v52, %v3865_v8  ;;  %v449_v36 = vmul.f32 %v4103_v11, %v3873_v12  ;;  %v4136_v46 = vld [vmem:[#allocation4 + $0x28] sm:$0xff]  ;;  %v4138_v12 = vld [vmem:[#allocation4 + $0x40] sm:$0xff] }
  0x59   :  { %v450_v47 = vmul.f32 %v4103_v11, %v3875_v13  ;;  %v369_v61 = vsel %vm367_vm4, %v7196_v15, %v365_v28  ;;  %v4132_v57 = vadd.f32 %v409_v51, %v401_v5  ;;  %v441_v30 = vadd.f32 %v438_v40, %v430_v6 }
  0x5a   :  { %v460_v20 = vmul.f32 %v4111_v0, %v3883_v17  ;;  %v371_v13 = vadd.f32 %v369_v61, %v320_v27  ;;  %v4140_v8 = vadd.f32 %v410_v34, %v402_v42  ;;  %v442_v7 = vadd.f32 %v439_v62, %v431_v1 }
  0x5b   :  { %v461_v3 = vmul.f32 %v4111_v0, %v3885_v18  ;;  %v415_v51 = vrot.slane %v4132_v57, 6  ;;  %v452_v5 = vadd.f32 %v449_v36, %v441_v30  ;;  %v101_v6 = vadd.f32 %v3889_v19, %v3900_v25 }
  0x5c   :  { %v124_v40 = vmul.f32 %v3893_v22, %v4124_v49  ;;  %v416_v15 = vrot.slane %v4140_v8, 6  ;;  %v453_v27 = vadd.f32 %v450_v47, %v442_v7  ;;  %v132_v1 = vmul.f32 %v3895_v23, %v4136_v46 }
  0x5d   :  { %v143_v34 = vmul.f32 %v3897_v24, %v4138_v12  ;;  %v4156_v42 = vadd.f32 %v460_v20, %v452_v5  ;;  %v115_v62 = vadd.f32 %v3904_v26, %v101_v6  ;;  %v154_v36 = vmul.f32 %v3914_v31, %v4144_v2 }
  0x5e   :  { %v177_v19 = vmul.f32 %v3916_v32, %v4124_v49  ;;  %v420_v7 = vsel %vm418_vm5, %v415_v51, %v416_v15  ;;  %v4169_v22 = vadd.f32 %v461_v3, %v453_v27  ;;  %v135_v23 = vadd.f32 %v132_v1, %v124_v40 }
  0x5f   :  { %v185_v24 = vmul.f32 %v3918_v33, %v4136_v46  ;;  %v422_v25 = vadd.f32 %v420_v7, %v371_v13  ;;  %v466_v26 = vrot.slane %v4156_v42, 7  ;;  %v196_v31 = vmul.f32 %v3926_v38, %v4138_v12 }
  0x60   :  { %v207_v32 = vmul.f32 %v3932_v43, %v4144_v2  ;;  %v467_v47 = vrot.slane %v4169_v22, 7  ;;  %v146_v61 = vadd.f32 %v143_v34, %v135_v23  ;;  %v228_v3 = vmul.f32 %v3941_v48, %v4124_v49 }
  0x61   :  { %v188_v30 = vadd.f32 %v185_v24, %v177_v19  ;;  %v236_v20 = vmul.f32 %v3947_v53, %v4136_v46  ;;  %v247_v13 = vmul.f32 %v3953_v58, %v4138_v12  ;;  %v258_v33 = vmul.f32 %v3967_v10, %v4144_v2 }
  0x62   :  { %v279_v38 = vmul.f32 %v3970_v14, %v4124_v49  ;;  %v471_v43 = vsel %vm469_vm6, %v466_v26, %v467_v47  ;;  %v4195_v48 = vadd.f32 %v154_v36, %v146_v61  ;;  %v287_v53 = vmul.f32 %v3982_v35, %v4136_v46 }
  0x63   :  { %v199_v5 = vadd.f32 %v196_v31, %v188_v30  ;;  %v473_v58 = vadd.f32 %v471_v43, %v422_v25  ;;  %v239_v6 = vadd.f32 %v236_v20, %v228_v3  ;;  %v298_v10 = vmul.f32 %v3996_v41, %v4138_v12 }
  0x64   :  { %v309_v14 = vmul.f32 %v4007_v54, %v4144_v2  ;;  %v160_v40 = vrot.slane %v4195_v48, 1  ;;  %v290_v1 = vadd.f32 %v287_v53, %v279_v38  ;;  %v330_v34 = vmul.f32 %v4009_v44, %v4124_v49  ;;  %v7343_v53 = vld [vmem:[#allocation28_spill] sm:$0xff] }
  0x65   :  { %v210_v27 = vadd.f32 %v207_v32, %v199_v5  ;;  %476 = vrot.lane.b32.xlu0 %v473_v58, %s3767_s2  ;;  %v250_v36 = vadd.f32 %v247_v13, %v239_v6  ;;  %v338_v35 = vmul.f32 %v4025_v9, %v4136_v46  ;;  %v349_v41 = vmul.f32 %v4027_v21, %v4138_v12  ;;  %v7345_v6 = vld [vmem:[#allocation14_spill] sm:$0xff] }
  0x66   :  { %v360_v54 = vmul.f32 %v4036_v37, %v4144_v2  ;;  %v7340_v19 = vrot.slane %v3957_v60, 1  ;;  %v301_v44 = vadd.f32 %v298_v10, %v290_v1  ;;  %v381_v24 = vmul.f32 %v4050_v55, %v4124_v49  ;;  %v7347_v1 = vld [vmem:[#allocation20_spill] sm:$0xff] }
  0x67   :  { %v213_v23 = vrot.slane %v210_v27, 2  ;;  %v261_v31 = vadd.f32 %v258_v33, %v250_v36  ;;  %v341_v32 = vadd.f32 %v338_v35, %v330_v34  ;;  %v389_v9 = vmul.f32 %v4064_v45, %v4136_v46 }
  0x68   :  { %v164_v7 = vsel %vm163_vm0, %v7340_v19, %v160_v40  ;;  %v7341_v21 = vrot.slane %v3980_v29, 2  ;;  %v312_v60 = vadd.f32 %v309_v14, %v301_v44  ;;  %v400_v61 = vmul.f32 %v4068_v59, %v4138_v12  ;;  %v7346_v14 = vld [vmem:[#allocation17_spill] sm:$0xff]  ;;  %v7348_v19 = vld [vmem:[#allocation23_spill] sm:$0xff] }
  0x69   :  { %v168_v25 = vadd.f32 %v164_v7, %v115_v62  ;;  %v411_v30 = vmul.f32 %v4070_v56, %v4144_v2  ;;  %v264_v55 = vrot.slane %v261_v31, 3  ;;  %v352_v62 = vadd.f32 %v349_v41, %v341_v32 }
  0x6a   :  { %v215_v37 = vsel %vm214_vm1, %v7341_v21, %v213_v23  ;;  %v392_v20 = vadd.f32 %v389_v9, %v381_v24  ;;  %v315_v13 = vrot.slane %v312_v60, 4  ;;  %v432_v45 = vmul.f32 %v4083_v50, %v4124_v49  ;;  %v7349_v21 = vld [vmem:[#allocation24_spill] sm:$0xff] }
  0x6b   :  { %v219_v3 = vadd.f32 %v215_v37, %v168_v25  ;;  %v440_v29 = vmul.f32 %v4097_v52, %v4136_v46  ;;  %v451_v33 = vmul.f32 %v4103_v11, %v4138_v12  ;;  %v7342_v38 = vrot.slane %v4023_v63, 3 }
  0x6c   :  { %v363_v56 = vadd.f32 %v360_v54, %v352_v62  ;;  %v403_v43 = vadd.f32 %v400_v61, %v392_v20  ;;  %v462_v48 = vmul.f32 %v4111_v0, %v4144_v2  ;;  %v7344_v58 = vrot.slane %v7343_v53, 4  ;;  %v7351_v61 = vld [vmem:[#allocation25_spill] sm:$0xff]  ;;  %v7353_v62 = vld [vmem:[#allocation26_spill] sm:$0xff]  ;;  %v7358_v53 = vld [vmem:[#allocation15_spill] sm:$0xff] }
  0x6d   :  { %v266_v59 = vsel %vm265_vm2, %v7342_v38, %v264_v55  ;;  %v443_v52 = vadd.f32 %v440_v29, %v432_v45  ;;  %v74_v11 = vmul.f32 %v7345_v6, %v4124_v49  ;;  %v85_v27 = vmul.f32 %v7346_v14, %v4136_v46  ;;  %v7355_v29 = vld [vmem:[#allocation27_spill] sm:$0xff]  ;;  %v4307_v6 = vld [vmem:[#allocation7 + $0x8e] ss:$0 sm:$0xff]  ;;  %v4315_v14 = vld [vmem:[#allocation7 + $0x46] ss:$0 sm:$0xff] }
  0x6e   :  { %v270_v5 = vadd.f32 %v266_v59, %v219_v3  ;;  %v317_v50 = vsel %vm316_vm3, %v7344_v58, %v315_v13  ;;  %v366_v10 = vrot.slane %v363_v56, 5  ;;  %v414_v63 = vadd.f32 %v411_v30, %v403_v43  ;;  %v7359_v58 = vld [vmem:[#allocation16_spill] sm:$0xff] }
  0x6f   :  { %v99_v34 = vmul.f32 %v7347_v1, %v4138_v12  ;;  %v454_v0 = vadd.f32 %v451_v33, %v443_v52  ;;  %v88_v54 = vadd.f32 %v85_v27, %v74_v11  ;;  %v113_v7 = vmul.f32 %v7348_v19, %v4144_v2  ;;  %v7361_v52 = vld [vmem:[#allocation19_spill] sm:$0xff]  ;;  %v4309_v11 = vld [vmem:[#allocation7 + $0x16] ss:$0 sm:$0xff] }
  0x70   :  { %v321_v36 = vadd.f32 %v317_v50, %v270_v5  ;;  %v368_v35 = vsel %vm367_vm4, %v365_v28, %v366_v10  ;;  %v417_v41 = vrot.slane %v414_v63, 6  ;;  %v7350_v16 = vrot.slane %v7349_v21, 1  ;;  %v4297_v5 = vld [vmem:[#allocation7 + $0x4e] ss:$0 sm:$0xff]  ;;  %v7360_v50 = vld [vmem:[#allocation18_spill] sm:$0xff] }
  0x71   :  { %v465_v24 = vadd.f32 %v462_v48, %v454_v0  ;;  %v102_v31 = vadd.f32 %v99_v34, %v88_v54  ;;  %v7352_v30 = vrot.slane %v7351_v61, 2  ;;  %v7354_v20 = vrot.slane %v7353_v62, 3  ;;  %v4313_v63 = vld [vmem:[#allocation7 + $0x6] ss:$0 sm:$0xff]  ;;  %v7362_v34 = vld [vmem:[#allocation21_spill] sm:$0xff]  ;;  %v7363_v0 = vld [vmem:[#allocation22_spill] sm:$0xff] }
  0x72   :  { %v372_v44 = vadd.f32 %v368_v35, %v321_v36  ;;  %v419_v25 = vsel %vm418_vm5, %v416_v15, %v417_v41  ;;  %v166_v28 = vsel %vm163_vm0, %v160_v40, %v7350_v16  ;;  %v7356_v22 = vrot.slane %v7355_v29, 4  ;;  %v4361_v29 = vld [vmem:[#allocation7 + $0x9e] ss:$0 sm:$0xff] }
  0x73   :  { %v468_v9 = vrot.slane %v465_v24, 7  ;;  %v116_v37 = vadd.f32 %v113_v7, %v102_v31  ;;  %v217_v8 = vsel %vm214_vm1, %v213_v23, %v7352_v30  ;;  %v268_v45 = vsel %vm265_vm2, %v264_v55, %v7354_v20  ;;  %v4331_v24 = vld [vmem:[#allocation7 + $0x96] ss:$0 sm:$0xff] }
  0x74   :  { %v423_v32 = vadd.f32 %v419_v25, %v372_v44  ;;  %v7357_v38 = vrot.slane %v4099_v39, 5  ;;  %v421_v55 = vsel %vm418_vm5, %v417_v41, %v415_v51  ;;  %v4295_v39 = vld [vmem:[#allocation7 + $0xe] ss:$0 sm:$0xff]  ;;  %v536_v42 = vmul.f32 %v4297_v5, %v7360_v50 }
  0x75   :  { %v470_v60 = vsel %vm469_vm6, %v467_v47, %v468_v9  ;;  %v169_v3 = vadd.f32 %v166_v28, %v116_v37  ;;  %v319_v47 = vsel %vm316_vm3, %v315_v13, %v7356_v22  ;;  %v472_v43 = vsel %vm469_vm6, %v468_v9, %v466_v26  ;;  %v4321_v41 = vld [vmem:[#allocation7 + $0xce] ss:$0 sm:$0xff]  ;;  %v4339_v9 = vld [vmem:[#allocation7 + $0x5e] ss:$0 sm:$0xff] }
  0x76   :  { %v474_v15 = vadd.f32 %v470_v60, %v423_v32  ;;  %v370_v23 = vsel %vm367_vm4, %v366_v10, %v7357_v38  ;;  %v528_v57 = vmul.f32 %v4295_v39, %v7358_v53  ;;  %v529_v51 = vmul.f32 %v4295_v39, %v7359_v58  ;;  %v4311_v10 = vld [vmem:[#allocation7 + $0x56] ss:$0 sm:$0xff]  ;;  %v4337_v32 = vld [vmem:[#allocation7 + $0x1e] ss:$0 sm:$0xff]  ;;  %v4345_v60 = vld [vmem:[#allocation7 + $0x86] ss:$0 sm:$0xff] }
  0x77   :  { %v220_v40 = vadd.f32 %v217_v8, %v169_v3  ;;  %v537_v26 = vmul.f32 %v4297_v5, %v7361_v52  ;;  %v547_v36 = vmul.f32 %v4307_v6, %v7362_v34  ;;  %v548_v35 = vmul.f32 %v4307_v6, %v7363_v0  ;;  %v4351_v3 = vld [vmem:[#allocation7 + $0xd6] ss:$0 sm:$0xff] }
  0x78   :  { %478 = vrot.lane.b32.xlu0 %v474_v15, %s3767_s2  ;;  %v539_v27 = vadd.f32 %v536_v42, %v528_v57  ;;  %v578_v54 = vmul.f32 %v4309_v11, %v7358_v53  ;;  %v579_v19 = vmul.f32 %v4309_v11, %v7359_v58  ;;  %v586_v7 = vmul.f32 %v4311_v10, %v7360_v50 }
  0x79   :  { %v271_v33 = vadd.f32 %v268_v45, %v220_v40  ;;  %v540_v1 = vadd.f32 %v537_v26, %v529_v51  ;;  %v587_v44 = vmul.f32 %v4311_v10, %v7361_v52  ;;  %v487_v25 = vmul.f32 %v4313_v63, %v7358_v53 }
  0x7a   :  { %v495_v31 = vmul.f32 %v4315_v14, %v7360_v50  ;;  %v550_v21 = vadd.f32 %v547_v36, %v539_v27  ;;  %v558_v28 = vmul.f32 %v4321_v41, %v3883_v17  ;;  %v559_v37 = vmul.f32 %v4321_v41, %v3885_v18  ;;  %v4383_v27 = vld [vmem:[#allocation7 + $0xde] ss:$0 sm:$0xff] }
  0x7b   :  { %v322_v59 = vadd.f32 %v319_v47, %v271_v33  ;;  %v551_v16 = vadd.f32 %v548_v35, %v540_v1  ;;  %v589_v61 = vadd.f32 %v586_v7, %v578_v54  ;;  %v590_v30 = vadd.f32 %v587_v44, %v579_v19  ;;  %v4395_v44 = vld [vmem:[#allocation7 + $0xa6] ss:$0 sm:$0xff] }
  0x7c   :  { %v597_v8 = vmul.f32 %v4331_v24, %v7362_v34  ;;  %v598_v15 = vmul.f32 %v4331_v24, %v7363_v0  ;;  %v628_v62 = vmul.f32 %v4337_v32, %v7358_v53  ;;  %v629_v20 = vmul.f32 %v4337_v32, %v7359_v58 }
  0x7d   :  { %v373_v56 = vadd.f32 %v370_v23, %v322_v59  ;;  %v636_v45 = vmul.f32 %v4339_v9, %v7360_v50  ;;  %v637_v40 = vmul.f32 %v4339_v9, %v7361_v52  ;;  %v498_v22 = vadd.f32 %v495_v31, %v487_v25  ;;  %v4369_v23 = vld [vmem:[#allocation7 + $0x26] ss:$0 sm:$0xff] }
  0x7e   :  { %v506_v47 = vmul.f32 %v4345_v60, %v7362_v34  ;;  %v4365_v33 = vadd.f32 %v558_v28, %v550_v21  ;;  %v608_v38 = vmul.f32 %v4351_v3, %v3883_v17  ;;  %v4371_v59 = vld [vmem:[#allocation7 + $0x66] ss:$0 sm:$0xff]  ;;  %v647_v42 = vmul.f32 %v4361_v29, %v7362_v34 }
  0x7f   :  { %v424_v48 = vadd.f32 %v421_v55, %v373_v56  ;;  %v4373_v55 = vld [vmem:[#allocation7 + $0xc6] ss:$0 sm:$0xff]  ;;  %v4375_v56 = vadd.f32 %v559_v37, %v551_v16  ;;  %v639_v57 = vadd.f32 %v636_v45, %v628_v62  ;;  %v640_v51 = vadd.f32 %v637_v40, %v629_v20 }
  0x80   :  { %7364 = vst [vmem:[#allocation28_spill] sm:$0xff] %v4365_v33  ;;  %v648_v26 = vmul.f32 %v4361_v29, %v7363_v0  ;;  %v678_v1 = vmul.f32 %v4369_v23, %v7358_v53  ;;  %v679_v36 = vmul.f32 %v4369_v23, %v7359_v58  ;;  %v686_v35 = vmul.f32 %v4371_v59, %v7360_v50  ;;  %v4411_v45 = vld [vmem:[#allocation7 + $0xe6] ss:$0 sm:$0xff] }
  0x81   :  { %v475_v13 = vadd.f32 %v472_v43, %v424_v48  ;;  %v600_v43 = vadd.f32 %v597_v8, %v589_v61  ;;  %v601_v48 = vadd.f32 %v598_v15, %v590_v30  ;;  %v687_v54 = vmul.f32 %v4371_v59, %v7361_v52 }
  0x82   :  { %v509_v19 = vadd.f32 %v506_v47, %v498_v22  ;;  %v517_v7 = vmul.f32 %v4373_v55, %v3883_v17  ;;  %v7197_v25 = vrot.slane %v4365_v33, 1  ;;  %v7198_v31 = vrot.slane %v4375_v56, 1  ;;  %v4419_v47 = vld [vmem:[#allocation7 + $0x2e] ss:$0 sm:$0xff] }
  0x83   :  { %480 = vrot.lane.b32.xlu1 %v475_v13, %s3767_s2  ;;  %v609_v13 = vmul.f32 %v4351_v3, %v3885_v18  ;;  %v4399_v21 = vadd.f32 %v608_v38, %v600_v43  ;;  %v650_v28 = vadd.f32 %v647_v42, %v639_v57  ;;  %v651_v37 = vadd.f32 %v648_v26, %v640_v51  ;;  %v4421_v38 = vld [vmem:[#allocation7 + $0x6e] ss:$0 sm:$0xff] }
  0x84   :  { %v658_v61 = vmul.f32 %v4383_v27, %v3883_v17  ;;  %v659_v30 = vmul.f32 %v4383_v27, %v3885_v18  ;;  %v689_v8 = vadd.f32 %v686_v35, %v678_v1  ;;  %v690_v15 = vadd.f32 %v687_v54, %v679_v36 }
  0x85   :  { %7365 = vst [vmem:[#allocation14_spill] sm:$0xff] %v4399_v21  ;;  %v4401_v16 = vadd.f32 %v609_v13, %v601_v48  ;;  %v697_v62 = vmul.f32 %v4395_v44, %v7362_v34  ;;  %v698_v20 = vmul.f32 %v4395_v44, %v7363_v0  ;;  %v520_v40 = vadd.f32 %v517_v7, %v509_v19  ;;  %v4437_v19 = vld [vmem:[#allocation7 + $0xae] ss:$0 sm:$0xff] }
  0x86   :  { %v568_v22 = vsel %vm163_vm0, %v7197_v25, %v7198_v31  ;;  %v7199_v43 = vrot.slane %v4399_v21, 2  ;;  %v4425_v13 = vadd.f32 %v658_v61, %v650_v28  ;;  %v4427_v57 = vadd.f32 %v659_v30, %v651_v37  ;;  %v4461_v25 = vld [vmem:[#allocation7 + $0x76] ss:$0 sm:$0xff] }
  0x87   :  { %7366 = vst [vmem:[#allocation17_spill] sm:$0xff] %v4401_v16  ;;  %v7202_v48 = vrot.slane %v4401_v16, 2  ;;  %v700_v51 = vadd.f32 %v697_v62, %v689_v8  ;;  %v701_v42 = vadd.f32 %v698_v20, %v690_v15  ;;  %v708_v26 = vmul.f32 %v4411_v45, %v3883_v17 }
  0x88   :  { %7367 = vst [vmem:[#allocation20_spill] sm:$0xff] %v4425_v13  ;;  %7368 = vst [vmem:[#allocation23_spill] sm:$0xff] %v4427_v57  ;;  %v709_v1 = vmul.f32 %v4411_v45, %v3885_v18  ;;  %v728_v36 = vmul.f32 %v4419_v47, %v7358_v53  ;;  %v736_v35 = vmul.f32 %v4421_v38, %v7360_v50  ;;  %v7200_v7 = vrot.slane %v4425_v13, 3 }
  0x89   :  { %v570_v54 = vadd.f32 %v568_v22, %v520_v40  ;;  %v7201_v28 = vrot.slane %v4427_v57, 3  ;;  %v729_v37 = vmul.f32 %v4419_v47, %v7359_v58  ;;  %v737_v61 = vmul.f32 %v4421_v38, %v7361_v52  ;;  %v4457_v40 = vld [vmem:[#allocation7 + $0xee] ss:$0 sm:$0xff]  ;;  %v4459_v22 = vld [vmem:[#allocation7 + $0x36] ss:$0 sm:$0xff] }
  0x8a   :  { %v618_v30 = vsel %vm214_vm1, %v7199_v43, %v7202_v48  ;;  %v4451_v8 = vadd.f32 %v708_v26, %v700_v51  ;;  %v4453_v15 = vadd.f32 %v709_v1, %v701_v42  ;;  %v739_v62 = vadd.f32 %v736_v35, %v728_v36  ;;  %7371 = vst [vmem:[#allocation26_spill] sm:$0xff] %v4457_v40  ;;  %v4473_v35 = vld [vmem:[#allocation7 + $0xb6] ss:$0 sm:$0xff]  ;;  %v4497_v36 = vld [vmem:[#allocation7 + $0x3e] ss:$0 sm:$0xff] }
  0x8b   :  { %v747_v20 = vmul.f32 %v4437_v19, %v7362_v34  ;;  %v620_v31 = vadd.f32 %v618_v30, %v570_v54  ;;  %v668_v51 = vsel %vm265_vm2, %v7200_v7, %v7201_v28  ;;  %v740_v42 = vadd.f32 %v737_v61, %v729_v37 }
  0x8c   :  { %7369 = vst [vmem:[#allocation24_spill] sm:$0xff] %v4451_v8  ;;  %7370 = vst [vmem:[#allocation25_spill] sm:$0xff] %v4453_v15  ;;  %v748_v26 = vmul.f32 %v4437_v19, %v7363_v0  ;;  %v530_v54 = vmul.f32 %v4295_v39, %v4124_v49  ;;  %v538_v30 = vmul.f32 %v4297_v5, %v4136_v46  ;;  %v7372_v13 = vrot.slane %v4453_v15, 4 }
  0x8d   :  { %v750_v43 = vadd.f32 %v747_v20, %v739_v62  ;;  %v758_v7 = vmul.f32 %v4457_v40, %v3883_v17  ;;  %v778_v37 = vmul.f32 %v4459_v22, %v7358_v53  ;;  %v786_v61 = vmul.f32 %v4461_v25, %v7360_v50  ;;  %v4495_v20 = vld [vmem:[#allocation7 + $0xf6] ss:$0 sm:$0xff] }
  0x8e   :  { %v779_v28 = vmul.f32 %v4459_v22, %v7359_v58  ;;  %v787_v48 = vmul.f32 %v4461_v25, %v7361_v52  ;;  %v4489_v39 = vadd.f32 %v668_v51, %v620_v31  ;;  %v751_v1 = vadd.f32 %v748_v26, %v740_v42  ;;  %v4507_v51 = vld [vmem:[#allocation7 + $0x7e] ss:$0 sm:$0xff] }
  0x8f   :  { %v759_v5 = vmul.f32 %v4457_v40, %v3885_v18  ;;  %v797_v62 = vmul.f32 %v4473_v35, %v7362_v34  ;;  %v7373_v21 = vrot.slane %v4451_v8, 4  ;;  %v798_v31 = vmul.f32 %v4473_v35, %v7363_v0  ;;  %7374 = vst [vmem:[#allocation27_spill] sm:$0xff] %v4507_v51 }
  0x90   :  { %v541_v42 = vadd.f32 %v538_v30, %v530_v54  ;;  %v549_v26 = vmul.f32 %v4307_v6, %v4138_v12  ;;  %v4511_v57 = vadd.f32 %v758_v7, %v750_v43  ;;  %v789_v16 = vadd.f32 %v786_v61, %v778_v37 }
  0x91   :  { %v718_v33 = vsel %vm316_vm3, %v7373_v21, %v7372_v13  ;;  %v580_v15 = vmul.f32 %v4309_v11, %v4124_v49  ;;  %v588_v8 = vmul.f32 %v4311_v10, %v4136_v46  ;;  %v790_v40 = vadd.f32 %v787_v48, %v779_v28  ;;  %v4527_v11 = vld [vmem:[#allocation7 + $0xbe] ss:$0 sm:$0xff] }
  0x92   :  { %v808_v21 = vmul.f32 %v4495_v20, %v3883_v17  ;;  %v828_v13 = vmul.f32 %v4497_v36, %v7358_v53  ;;  %v829_v54 = vmul.f32 %v4497_v36, %v7359_v58  ;;  %v836_v6 = vmul.f32 %v4507_v51, %v7360_v50 }
  0x93   :  { %v837_v43 = vmul.f32 %v4507_v51, %v7361_v52  ;;  %v488_v10 = vmul.f32 %v4313_v63, %v7359_v58  ;;  %v496_v48 = vmul.f32 %v4315_v14, %v7361_v52  ;;  %v552_v7 = vadd.f32 %v549_v26, %v541_v42 }
  0x94   :  { %v560_v53 = vmul.f32 %v4321_v41, %v4144_v2  ;;  %v630_v28 = vmul.f32 %v4337_v32, %v4124_v49  ;;  %v638_v50 = vmul.f32 %v4339_v9, %v4136_v46  ;;  %v4539_v30 = vadd.f32 %v759_v5, %v751_v1  ;;  %v4550_v1 = vld [vmem:[#allocation7 + $0xfe] ss:$0 sm:$0xff] }
  0x95   :  { %v809_v37 = vmul.f32 %v4495_v20, %v3885_v18  ;;  %v591_v61 = vadd.f32 %v588_v8, %v580_v15  ;;  %v599_v58 = vmul.f32 %v4331_v24, %v4138_v12  ;;  %v764_v52 = vrot.slane %v4511_v57, 5 }
  0x96   :  { %v800_v42 = vadd.f32 %v797_v62, %v789_v16  ;;  %v801_v26 = vadd.f32 %v798_v31, %v790_v40  ;;  %v847_v41 = vmul.f32 %v4527_v11, %v7362_v34  ;;  %v839_v32 = vadd.f32 %v836_v6, %v828_v13 }
  0x97   :  { %v840_v51 = vadd.f32 %v837_v43, %v829_v54  ;;  %v848_v9 = vmul.f32 %v4527_v11, %v7363_v0  ;;  %v507_v8 = vmul.f32 %v4345_v60, %v7363_v0  ;;  %v499_v15 = vadd.f32 %v496_v48, %v488_v10 }
  0x98   :  { %v4554_v5 = vadd.f32 %v560_v53, %v552_v7  ;;  %v641_v24 = vadd.f32 %v638_v50, %v630_v28  ;;  %v649_v16 = vmul.f32 %v4361_v29, %v4138_v12  ;;  %v602_v40 = vadd.f32 %v599_v58, %v591_v61 }
  0x99   :  { %v610_v34 = vmul.f32 %v4351_v3, %v4144_v2  ;;  %v680_v62 = vmul.f32 %v4369_v23, %v4124_v49  ;;  %v688_v31 = vmul.f32 %v4371_v59, %v4136_v46  ;;  %v765_v13 = vrot.slane %v4539_v30, 5 }
  0x9a   :  { %v4565_v0 = vadd.f32 %v808_v21, %v800_v42  ;;  %v4567_v54 = vadd.f32 %v809_v37, %v801_v26  ;;  %v858_v6 = vmul.f32 %v4550_v1, %v3883_v17  ;;  %v850_v29 = vadd.f32 %v847_v41, %v839_v32 }
  0x9b   :  { %v851_v43 = vadd.f32 %v848_v9, %v840_v51  ;;  %v859_v3 = vmul.f32 %v4550_v1, %v3885_v18  ;;  %v518_v23 = vmul.f32 %v4373_v55, %v3885_v18  ;;  %v510_v10 = vadd.f32 %v507_v8, %v499_v15 }
  0x9c   :  { %v566_v59 = vrot.slane %v4554_v5, 1  ;;  %v652_v48 = vadd.f32 %v649_v16, %v641_v24  ;;  %v660_v21 = vmul.f32 %v4383_v27, %v4144_v2  ;;  %v4578_v7 = vadd.f32 %v610_v34, %v602_v40  ;;  %v7376_v40 = vld [vmem:[#allocation26_spill] sm:$0xff]  ;;  %v7377_v34 = vld [vmem:[#allocation17_spill] sm:$0xff] }
  0x9d   :  { %v691_v53 = vadd.f32 %v688_v31, %v680_v62  ;;  %v699_v17 = vmul.f32 %v4395_v44, %v4138_v12  ;;  %v720_v51 = vadd.f32 %v718_v33, %v4489_v39  ;;  %v768_v18 = vsel %vm367_vm4, %v764_v52, %v765_v13 }
  0x9e   :  { %v730_v28 = vmul.f32 %v4419_v47, %v4124_v49  ;;  %v738_v27 = vmul.f32 %v4421_v38, %v4136_v46  ;;  %v814_v50 = vrot.slane %v4565_v0, 6  ;;  %v815_v37 = vrot.slane %v4567_v54, 6  ;;  %v4707_v0 = vld [vmem:[#allocation4] sm:$0xff] }
  0x9f   :  { %v4595_v44 = vadd.f32 %v858_v6, %v850_v29  ;;  %v4597_v33 = vadd.f32 %v859_v3, %v851_v43  ;;  %v521_v39 = vadd.f32 %v518_v23, %v510_v10  ;;  %v7375_v61 = vrot.slane %v4375_v56, 1  ;;  %7392 = vst [vmem:[#allocation15_spill] sm:$0xff] %v4707_v0 }
  0xa0   :  { %v663_v47 = vadd.f32 %v660_v21, %v652_v48  ;;  %v710_v38 = vmul.f32 %v4411_v45, %v4144_v2  ;;  %v616_v42 = vrot.slane %v4578_v7, 2  ;;  %v702_v26 = vadd.f32 %v699_v17, %v691_v53  ;;  %v7379_v48 = vld [vmem:[#allocation27_spill] sm:$0xff] }
  0xa1   :  { %v567_v58 = vsel %vm163_vm0, %v7375_v61, %v566_v59  ;;  %v489_v41 = vmul.f32 %v4313_v63, %v4124_v49  ;;  %v497_v32 = vmul.f32 %v4315_v14, %v4136_v46  ;;  %v741_v9 = vadd.f32 %v738_v27, %v730_v28 }
  0xa2   :  { %v749_v56 = vmul.f32 %v4437_v19, %v4138_v12  ;;  %v780_v8 = vmul.f32 %v4459_v22, %v4124_v49  ;;  %v788_v15 = vmul.f32 %v4461_v25, %v4136_v46  ;;  %v770_v45 = vadd.f32 %v768_v18, %v720_v51  ;;  %v7380_v51 = vld [vmem:[#allocation23_spill] sm:$0xff] }
  0xa3   :  { %v818_v63 = vsel %vm418_vm5, %v814_v50, %v815_v37  ;;  %v864_v14 = vrot.slane %v4595_v44, 7  ;;  %v865_v24 = vrot.slane %v4597_v33, 7  ;;  %v571_v16 = vadd.f32 %v567_v58, %v521_v39 }
  0xa4   :  { %v666_v19 = vrot.slane %v663_v47, 3  ;;  %v760_v22 = vmul.f32 %v7376_v40, %v4144_v2  ;;  %v799_v25 = vmul.f32 %v4473_v35, %v4138_v12  ;;  %v7378_v62 = vrot.slane %v7377_v34, 2 }
  0xa5   :  { %v713_v6 = vadd.f32 %v710_v38, %v702_v26  ;;  %v500_v29 = vadd.f32 %v497_v32, %v489_v41  ;;  %v508_v43 = vmul.f32 %v4345_v60, %v4138_v12  ;;  %v752_v3 = vadd.f32 %v749_v56, %v741_v9  ;;  %v7382_v26 = vld [vmem:[#allocation25_spill] sm:$0xff] }
  0xa6   :  { %v617_v31 = vsel %vm214_vm1, %v7378_v62, %v616_v42  ;;  %v791_v23 = vadd.f32 %v788_v15, %v780_v8  ;;  %v830_v10 = vmul.f32 %v4497_v36, %v4124_v49  ;;  %v838_v21 = vmul.f32 %v7379_v48, %v4136_v46 }
  0xa7   :  { %v820_v7 = vadd.f32 %v818_v63, %v770_v45  ;;  %v868_v35 = vsel %vm469_vm6, %v864_v14, %v865_v24  ;;  %v621_v53 = vadd.f32 %v617_v31, %v571_v16  ;;  %v810_v17 = vmul.f32 %v4495_v20, %v4144_v2  ;;  %v7384_v45 = vld [vmem:[#allocation28_spill] sm:$0xff] }
  0xa8   :  { %v7381_v60 = vrot.slane %v7380_v51, 3  ;;  %v716_v28 = vrot.slane %v713_v6, 4  ;;  %v511_v36 = vadd.f32 %v508_v43, %v500_v29  ;;  %v519_v27 = vmul.f32 %v4373_v55, %v4144_v2  ;;  %v7388_v29 = vld [vmem:[#allocation20_spill] sm:$0xff] }
  0xa9   :  { %v763_v33 = vadd.f32 %v760_v22, %v752_v3  ;;  %v802_v39 = vadd.f32 %v799_v25, %v791_v23  ;;  %v841_v61 = vadd.f32 %v838_v21, %v830_v10  ;;  %v849_v58 = vmul.f32 %v4527_v11, %v4138_v12  ;;  %v7386_v25 = vld [vmem:[#allocation14_spill] sm:$0xff]  ;;  %v7390_v10 = vld [vmem:[#allocation24_spill] sm:$0xff] }
  0xaa   :  { %v667_v18 = vsel %vm265_vm2, %v7381_v60, %v666_v19  ;;  %v870_v47 = vadd.f32 %v868_v35, %v820_v7  ;;  %v7383_v20 = vrot.slane %v7382_v26, 4  ;;  %v860_v32 = vmul.f32 %v4550_v1, %v4144_v2 }
  0xab   :  { %v671_v38 = vadd.f32 %v667_v18, %v621_v53  ;;  %v522_v9 = vadd.f32 %v519_v27, %v511_v36  ;;  %v766_v8 = vrot.slane %v763_v33, 5  ;;  %v813_v55 = vadd.f32 %v810_v17, %v802_v39  ;;  %v4705_v18 = vld [vmem:[#allocation7 + $0x4d] ss:$0 sm:$0xff]  ;;  %v4719_v27 = vld [vmem:[#allocation4 + $0x20] sm:$0xff] }
  0xac   :  { %v717_v41 = vsel %vm316_vm3, %v7383_v20, %v716_v28  ;;  %v852_v15 = vadd.f32 %v849_v58, %v841_v61  ;;  %v7385_v63 = vrot.slane %v7384_v45, 1  ;;  %v7387_v34 = vrot.slane %v7386_v25, 2  ;;  %7395 = vst [vmem:[#allocation19_spill] sm:$0xff] %v4719_v27  ;;  %v4723_v39 = vld [vmem:[#allocation7 + $0x8d] ss:$0 sm:$0xff] }
  0xad   :  { %v721_v16 = vadd.f32 %v717_v41, %v671_v38  ;;  %v767_v2 = vsel %vm367_vm4, %v765_v13, %v766_v8  ;;  %v816_v1 = vrot.slane %v813_v55, 6  ;;  %v7389_v30 = vrot.slane %v7388_v29, 3  ;;  %v4725_v61 = vld [vmem:[#allocation7 + $0x15] ss:$0 sm:$0xff]  ;;  %v4731_v38 = vld [vmem:[#allocation7 + $0x45] ss:$0 sm:$0xff] }
  0xae   :  { %v569_v12 = vsel %vm163_vm0, %v566_v59, %v7385_v63  ;;  %v863_v22 = vadd.f32 %v860_v32, %v852_v15  ;;  %v619_v5 = vsel %vm214_vm1, %v616_v42, %v7387_v34  ;;  %v7391_v42 = vrot.slane %v7390_v10, 4  ;;  %v4727_v58 = vld [vmem:[#allocation7 + $0x55] ss:$0 sm:$0xff]  ;;  %v4761_v25 = vld [vmem:[#allocation4 + $0x48] sm:$0xff] }
  0xaf   :  { %v572_v40 = vadd.f32 %v569_v12, %v522_v9  ;;  %v771_v62 = vadd.f32 %v767_v2, %v721_v16  ;;  %v817_v59 = vsel %vm418_vm5, %v815_v37, %v816_v1  ;;  %v669_v13 = vsel %vm265_vm2, %v666_v19, %v7389_v30  ;;  %v4733_v41 = vld [vmem:[#allocation4 + $0x30] sm:$0xff]  ;;  %v4737_v9 = vld [vmem:[#allocation4 + $0x38] sm:$0xff] }
  0xb0   :  { %v866_v6 = vrot.slane %v863_v22, 7  ;;  %v719_v48 = vsel %vm316_vm3, %v716_v28, %v7391_v42  ;;  %v769_v37 = vsel %vm367_vm4, %v766_v8, %v764_v52  ;;  %v4703_v52 = vld [vmem:[#allocation7 + $0xd] ss:$0 sm:$0xff]  ;;  %v937_v33 = vmul.f32 %v4719_v27, %v4705_v18  ;;  %v4751_v12 = vld [vmem:[#allocation7 + $0x95] ss:$0 sm:$0xff] }
  0xb1   :  { %v622_v31 = vadd.f32 %v619_v5, %v572_v40  ;;  %v821_v43 = vadd.f32 %v817_v59, %v771_v62  ;;  %v4711_v28 = vld [vmem:[#allocation4 + $0x8] sm:$0xff]  ;;  %v947_v32 = vmul.f32 %v4733_v41, %v4723_v39  ;;  %v978_v55 = vmul.f32 %v4707_v0, %v4725_v61  ;;  %v4757_v40 = vld [vmem:[#allocation7 + $0x1d] ss:$0 sm:$0xff]  ;;  %v4765_v5 = vld [vmem:[#allocation4 + $0x50] sm:$0xff] }
  0xb2   :  { %v867_v23 = vsel %vm469_vm6, %v865_v24, %v866_v6  ;;  %v819_v24 = vsel %vm418_vm5, %v816_v1, %v814_v50  ;;  %v869_v17 = vsel %vm469_vm6, %v866_v6, %v864_v14  ;;  %v928_v50 = vmul.f32 %v4707_v0, %v4703_v52  ;;  %7393 = vst [vmem:[#allocation16_spill] sm:$0xff] %v4711_v28  ;;  %v4715_v14 = vld [vmem:[#allocation4 + $0x18] sm:$0xff]  ;;  %v4741_v8 = vld [vmem:[#allocation7 + $0xcd] ss:$0 sm:$0xff] }
  0xb3   :  { %v672_v3 = vadd.f32 %v669_v13, %v622_v31  ;;  %v871_v54 = vadd.f32 %v867_v23, %v821_v43  ;;  %v929_v44 = vmul.f32 %v4711_v28, %v4703_v52  ;;  %7394 = vst [vmem:[#allocation18_spill] sm:$0xff] %v4715_v14  ;;  %v936_v36 = vmul.f32 %v4715_v14, %v4705_v18  ;;  %v4759_v2 = vld [vmem:[#allocation7 + $0x5d] ss:$0 sm:$0xff]  ;;  %v4769_v31 = vld [vmem:[#allocation7 + $0x85] ss:$0 sm:$0xff] }
  0xb4   :  { %v979_v15 = vmul.f32 %v4711_v28, %v4725_v61  ;;  %v986_v45 = vmul.f32 %v4715_v14, %v4727_v58  ;;  %v987_v63 = vmul.f32 %v4719_v27, %v4727_v58  ;;  %v895_v16 = vmul.f32 %v4715_v14, %v4731_v38  ;;  %v4775_v13 = vld [vmem:[#allocation7 + $0xd5] ss:$0 sm:$0xff]  ;;  %v4785_v42 = vld [vmem:[#allocation7 + $0x9d] ss:$0 sm:$0xff] }
  0xb5   :  { %v722_v21 = vadd.f32 %v719_v48, %v672_v3  ;;  %v939_v26 = vadd.f32 %v936_v36, %v928_v50  ;;  %v940_v20 = vadd.f32 %v937_v33, %v929_v44  ;;  %v958_v34 = vmul.f32 %v4761_v25, %v4741_v8  ;;  %v4807_v36 = vld [vmem:[#allocation7 + $0xdd] ss:$0 sm:$0xff] }
  0xb6   :  { %v959_v62 = vmul.f32 %v4765_v5, %v4741_v8  ;;  %v989_v59 = vadd.f32 %v986_v45, %v978_v55  ;;  %v990_v6 = vadd.f32 %v987_v63, %v979_v15  ;;  %v997_v29 = vmul.f32 %v4733_v41, %v4751_v12  ;;  %v4821_v63 = vld [vmem:[#allocation7 + $0xa5] ss:$0 sm:$0xff] }
  0xb7   :  { %v772_v19 = vadd.f32 %v769_v37, %v722_v21  ;;  %v950_v1 = vadd.f32 %v947_v32, %v939_v26  ;;  %v998_v30 = vmul.f32 %v4737_v9, %v4751_v12  ;;  %v1028_v43 = vmul.f32 %v4707_v0, %v4757_v40 }
  0xb8   :  { %v1029_v3 = vmul.f32 %v4711_v28, %v4757_v40  ;;  %v1036_v23 = vmul.f32 %v4715_v14, %v4759_v2  ;;  %v1037_v10 = vmul.f32 %v4719_v27, %v4759_v2  ;;  %v1047_v50 = vmul.f32 %v4733_v41, %v4785_v42 }
  0xb9   :  { %v822_v53 = vadd.f32 %v819_v24, %v772_v19  ;;  %v4789_v21 = vadd.f32 %v958_v34, %v950_v1  ;;  %v4797_v19 = vld [vmem:[#allocation7 + $0xc5] ss:$0 sm:$0xff]  ;;  %v1000_v24 = vadd.f32 %v997_v29, %v989_v59  ;;  %v1048_v44 = vmul.f32 %v4737_v9, %v4785_v42  ;;  %v4831_v59 = vld [vmem:[#allocation7 + $0x2d] ss:$0 sm:$0xff] }
  0xba   :  { %v917_v55 = vmul.f32 %v4761_v25, %v4797_v19  ;;  %v1058_v34 = vmul.f32 %v4761_v25, %v4807_v36 }
  0xbb   :  { %v872_v57 = vadd.f32 %v869_v17, %v822_v53  ;;  %7396 = vst [vmem:[#allocation21_spill] sm:$0xff] %v4789_v21  ;;  %v1001_v53 = vadd.f32 %v998_v30, %v990_v6  ;;  %v1008_v17 = vmul.f32 %v4761_v25, %v4775_v13  ;;  %v7213_v15 = vrot.slane %v4789_v21, 1  ;;  %v4833_v6 = vld [vmem:[#allocation7 + $0x6d] ss:$0 sm:$0xff]  ;;  %v4947_v21 = vld [vmem:[#allocation7 + $0xf5] ss:$0 sm:$0xff] }
  0xd7   :  { %v477_v56 = vpop.permute.xlu0 %476 }
  0xd8   :  { %v873_v11 = vadd.f32 %v870_v47, %v477_v56  ;;  %v4729_v47 = vld [vmem:[#allocation7 + $0x5] ss:$0 sm:$0xff]  ;;  %v948_v56 = vmul.f32 %v4737_v9, %v4723_v39 }
  0xda   :  { %876 = vrot.lane.b32.xlu1 %v873_v11, %s3767_s2  ;;  %v887_v11 = vmul.f32 %v4707_v0, %v4729_v47  ;;  %v951_v22 = vadd.f32 %v948_v56, %v940_v20 }
  0xdc   :  { %v898_v48 = vadd.f32 %v895_v16, %v887_v11  ;;  %v4791_v37 = vadd.f32 %v959_v62, %v951_v22  ;;  %v4823_v11 = vadd.f32 %v1008_v17, %v1000_v24  ;;  %v1059_v62 = vmul.f32 %v4765_v5, %v4807_v36 }
  0xdd   :  { %v1136_v17 = vmul.f32 %v4715_v14, %v4833_v6 }
  0xde   :  { %v7217_v45 = vrot.slane %v4791_v37, 1  ;;  %7397 = vst [vmem:[#allocation22_spill] sm:$0xff] %v4823_v11 }
  0xea   :  { %v479_v7 = vpop.permute.xlu0 %478 }
  0xeb   :  { %v874_v35 = vadd.f32 %v871_v54, %v479_v7  ;;  %v906_v54 = vmul.f32 %v4733_v41, %v4769_v31  ;;  %v4793_v7 = vld [vmem:[#allocation7 + $0x25] ss:$0 sm:$0xff] }
  0xec   :  { %v1078_v33 = vmul.f32 %v4707_v0, %v4793_v7  ;;  %v1079_v26 = vmul.f32 %v4711_v28, %v4793_v7 }
  0xed   :  { %878 = vrot.lane.b32.xlu0 %v874_v35, %s3767_s2  ;;  %v4795_v35 = vld [vmem:[#allocation7 + $0x65] ss:$0 sm:$0xff]  ;;  %v909_v56 = vadd.f32 %v906_v54, %v898_v48  ;;  %v968_v48 = vsel %vm163_vm0, %v7213_v15, %v7217_v45  ;;  %v7212_v54 = vrot.slane %v4823_v11, 2  ;;  %v4889_v15 = vld [vmem:[#allocation7 + $0x75] ss:$0 sm:$0xff] }
  0xee   :  { %v1086_v20 = vmul.f32 %v4715_v14, %v4795_v35  ;;  %v1087_v32 = vmul.f32 %v4719_v27, %v4795_v35  ;;  %v4927_v45 = vld [vmem:[#allocation4 + $0x40] sm:$0xff] }
  0xf0   :  { %v1089_v29 = vadd.f32 %v1086_v20, %v1078_v33  ;;  %v1090_v30 = vadd.f32 %v1087_v32, %v1079_v26  ;;  %v1129_v20 = vmul.f32 %v4711_v28, %v4831_v59  ;;  %v1137_v32 = vmul.f32 %v4719_v27, %v4833_v6 }
  0xf5   :  { %v481_v51 = vpop.permute.xlu1 %480 }
  0xf6   :  { %v875_v60 = vadd.f32 %v872_v57, %v481_v51  ;;  %v1009_v57 = vmul.f32 %v4765_v5, %v4775_v13  ;;  %v1039_v51 = vadd.f32 %v1036_v23, %v1028_v43  ;;  %v1097_v43 = vmul.f32 %v4733_v41, %v4821_v63  ;;  %v4839_v23 = vld [vmem:[#allocation7 + $0xe5] ss:$0 sm:$0xff] }
  0xf8   :  { %880 = vrot.lane.b32.xlu1 %v875_v60, %s3767_s2  ;;  %v1040_v60 = vadd.f32 %v1037_v10, %v1029_v3  ;;  %v4825_v16 = vadd.f32 %v1009_v57, %v1001_v53  ;;  %v1050_v1 = vadd.f32 %v1047_v50, %v1039_v51  ;;  %v1098_v3 = vmul.f32 %v4737_v9, %v4821_v63 }
  0xf9   :  { %v920_v10 = vadd.f32 %v917_v55, %v909_v56  ;;  %v1128_v53 = vmul.f32 %v4707_v0, %v4831_v59  ;;  %v1109_v50 = vmul.f32 %v4765_v5, %v4839_v23  ;;  %v1100_v33 = vadd.f32 %v1097_v43, %v1089_v29  ;;  %v4877_v29 = vld [vmem:[#allocation7 + $0xed] ss:$0 sm:$0xff] }
  0xfa   :  { %v1051_v22 = vadd.f32 %v1048_v44, %v1040_v60  ;;  %v7216_v24 = vrot.slane %v4825_v16, 2  ;;  %v4853_v57 = vadd.f32 %v1058_v34, %v1050_v1  ;;  %v1108_v60 = vmul.f32 %v4761_v25, %v4839_v23  ;;  %v4861_v44 = vld [vmem:[#allocation7 + $0xad] ss:$0 sm:$0xff] }
  0xfb   :  { %v1101_v26 = vadd.f32 %v1098_v3, %v1090_v30  ;;  %v970_v56 = vadd.f32 %v968_v48, %v920_v10  ;;  %v1139_v55 = vadd.f32 %v1136_v17, %v1128_v53  ;;  %v1147_v1 = vmul.f32 %v4733_v41, %v4861_v44 }
  0xfc   :  { %7398 = vst [vmem:[#allocation26_spill] sm:$0xff] %v4853_v57  ;;  %v4855_v51 = vadd.f32 %v1059_v62, %v1051_v22  ;;  %v1018_v22 = vsel %vm214_vm1, %v7212_v54, %v7216_v24  ;;  %v7214_v34 = vrot.slane %v4853_v57, 3  ;;  %v4879_v30 = vadd.f32 %v1108_v60, %v1100_v33  ;;  %v4887_v54 = vld [vmem:[#allocation7 + $0x35] ss:$0 sm:$0xff] }
  0xfd   :  { %v4881_v43 = vadd.f32 %v1109_v50, %v1101_v26  ;;  %v1140_v3 = vadd.f32 %v1137_v32, %v1129_v20  ;;  %v1148_v10 = vmul.f32 %v4737_v9, %v4861_v44  ;;  %v1020_v48 = vadd.f32 %v1018_v22, %v970_v56 }
  0xfe   :  { %7399 = vst [vmem:[#allocation17_spill] sm:$0xff] %v4855_v51  ;;  %v7215_v62 = vrot.slane %v4855_v51, 3  ;;  %7400 = vst [vmem:[#allocation27_spill] sm:$0xff] %v4879_v30  ;;  %v1150_v53 = vadd.f32 %v1147_v1, %v1139_v55  ;;  %v1158_v17 = vmul.f32 %v4761_v25, %v4877_v29  ;;  %v930_v50 = vmul.f32 %v4703_v52, %v4124_v49  ;;  %v4905_v55 = vld [vmem:[#allocation7 + $0xb5] ss:$0 sm:$0xff] }
  0xff   :  { %7401 = vst [vmem:[#allocation23_spill] sm:$0xff] %v4881_v43  ;;  %v938_v33 = vmul.f32 %v4705_v18, %v4136_v46  ;;  %v7222_v20 = vrot.slane %v4881_v43, 4  ;;  %v1151_v32 = vadd.f32 %v1148_v10, %v1140_v3  ;;  %v1159_v56 = vmul.f32 %v4765_v5, %v4877_v29  ;;  %v4919_v3 = vld [vmem:[#allocation7 + $0x3d] ss:$0 sm:$0xff] }
 0x100   :  { %v1068_v60 = vsel %vm265_vm2, %v7214_v34, %v7215_v62  ;;  %v1178_v1 = vmul.f32 %v4707_v0, %v4887_v54  ;;  %v1179_v22 = vmul.f32 %v4711_v28, %v4887_v54  ;;  %v1186_v49 = vmul.f32 %v4715_v14, %v4889_v15  ;;  %v4925_v62 = vld [vmem:[#allocation7 + $0x7d] ss:$0 sm:$0xff] }
 0x101   :  { %v1187_v46 = vmul.f32 %v4719_v27, %v4889_v15  ;;  %v4915_v52 = vadd.f32 %v1068_v60, %v1020_v48  ;;  %v4917_v18 = vadd.f32 %v1158_v17, %v1150_v53  ;;  %v1197_v10 = vmul.f32 %v4733_v41, %v4905_v55  ;;  %7402 = vst [vmem:[#allocation25_spill] sm:$0xff] %v4925_v62  ;;  %v4939_v60 = vld [vmem:[#allocation4 + $0x10] sm:$0xff] }
 0x102   :  { %v1198_v34 = vmul.f32 %v4737_v9, %v4905_v55  ;;  %v941_v24 = vadd.f32 %v938_v33, %v930_v50  ;;  %v949_v26 = vmul.f32 %v4927_v45, %v4723_v39  ;;  %v7403_v48 = vrot.slane %v4879_v30, 4  ;;  %v4943_v50 = vld [vmem:[#allocation4 + $0x28] sm:$0xff] }
 0x103   :  { %v4937_v17 = vadd.f32 %v1159_v56, %v1151_v32  ;;  %v980_v57 = vmul.f32 %v4939_v60, %v4725_v61  ;;  %v988_v33 = vmul.f32 %v4943_v50, %v4727_v58  ;;  %v1189_v39 = vadd.f32 %v1186_v49, %v1178_v1  ;;  %v4963_v49 = vld [vmem:[#allocation4 + $0x58] sm:$0xff] }
 0x104   :  { %v1118_v53 = vsel %vm316_vm3, %v7403_v48, %v7222_v20  ;;  %v1190_v11 = vadd.f32 %v1187_v46, %v1179_v22  ;;  %v1228_v30 = vmul.f32 %v4707_v0, %v4919_v3  ;;  %v1229_v32 = vmul.f32 %v4711_v28, %v4919_v3  ;;  %v4957_v48 = vld [vmem:[#allocation7 + $0xbd] ss:$0 sm:$0xff] }
 0x105   :  { %v1236_v56 = vmul.f32 %v4715_v14, %v4925_v62  ;;  %v1237_v61 = vmul.f32 %v4719_v27, %v4925_v62  ;;  %v888_v58 = vmul.f32 %v4711_v28, %v4729_v47  ;;  %v896_v1 = vmul.f32 %v4719_v27, %v4731_v38  ;;  %v4982_v0 = vld [vmem:[#allocation7 + $0xfd] ss:$0 sm:$0xff] }
 0x106   :  { %v952_v22 = vadd.f32 %v949_v26, %v941_v24  ;;  %v960_v46 = vmul.f32 %v4963_v49, %v4741_v8  ;;  %v1030_v20 = vmul.f32 %v4939_v60, %v4757_v40  ;;  %v1038_v14 = vmul.f32 %v4943_v50, %v4759_v2 }
 0x107   :  { %v1208_v28 = vmul.f32 %v4761_v25, %v4947_v21  ;;  %v991_v43 = vadd.f32 %v988_v33, %v980_v57  ;;  %v999_v24 = vmul.f32 %v4927_v45, %v4751_v12  ;;  %v1200_v26 = vadd.f32 %v1197_v10, %v1189_v39 }
 0x108   :  { %v1201_v27 = vadd.f32 %v1198_v34, %v1190_v11  ;;  %v1209_v8 = vmul.f32 %v4765_v5, %v4947_v21  ;;  %v1247_v40 = vmul.f32 %v4733_v41, %v4957_v48  ;;  %v1239_v51 = vadd.f32 %v1236_v56, %v1228_v30 }
 0x109   :  { %v1240_v62 = vadd.f32 %v1237_v61, %v1229_v32  ;;  %v1248_v2 = vmul.f32 %v4737_v9, %v4957_v48  ;;  %v907_v57 = vmul.f32 %v4737_v9, %v4769_v31  ;;  %v899_v33 = vadd.f32 %v896_v1, %v888_v58 }
 0x10a   :  { %v4986_v12 = vadd.f32 %v960_v46, %v952_v22  ;;  %v1041_v11 = vadd.f32 %v1038_v14, %v1030_v20  ;;  %v1049_v34 = vmul.f32 %v4927_v45, %v4785_v42  ;;  %v1002_v10 = vadd.f32 %v999_v24, %v991_v43 }
 0x10b   :  { %v1010_v30 = vmul.f32 %v4963_v49, %v4775_v13  ;;  %v1080_v39 = vmul.f32 %v4939_v60, %v4793_v7  ;;  %v1088_v32 = vmul.f32 %v4943_v50, %v4795_v35  ;;  %v1165_v56 = vrot.slane %v4937_v17, 5 }
 0x10c   :  { %v4997_v61 = vadd.f32 %v1208_v28, %v1200_v26  ;;  %v4999_v58 = vadd.f32 %v1209_v8, %v1201_v27  ;;  %v1258_v14 = vmul.f32 %v4761_v25, %v4982_v0  ;;  %v1250_v42 = vadd.f32 %v1247_v40, %v1239_v51 }
 0x10d   :  { %v1251_v43 = vadd.f32 %v1248_v2, %v1240_v62  ;;  %v1259_v13 = vmul.f32 %v4765_v5, %v4982_v0  ;;  %v918_v7 = vmul.f32 %v4765_v5, %v4797_v19  ;;  %v910_v20 = vadd.f32 %v907_v57, %v899_v33 }
 0x10e   :  { %v966_v35 = vrot.slane %v4986_v12, 1  ;;  %v1052_v1 = vadd.f32 %v1049_v34, %v1041_v11  ;;  %v1060_v28 = vmul.f32 %v4963_v49, %v4807_v36  ;;  %v5010_v27 = vadd.f32 %v1010_v30, %v1002_v10 }
 0x10f   :  { %v1091_v22 = vadd.f32 %v1088_v32, %v1080_v39  ;;  %v1099_v51 = vmul.f32 %v4927_v45, %v4821_v63  ;;  %v1120_v62 = vadd.f32 %v1118_v53, %v4915_v52  ;;  %v7404_v46 = vrot.slane %v4917_v18, 5 }
 0x110   :  { %v1130_v26 = vmul.f32 %v4939_v60, %v4831_v59  ;;  %v1138_v36 = vmul.f32 %v4943_v50, %v4833_v6  ;;  %v1214_v8 = vrot.slane %v4997_v61, 6  ;;  %v1215_v40 = vrot.slane %v4999_v58, 6  ;;  %v7421_v61 = vld [vmem:[#allocation15_spill] sm:$0xff] }
 0x111   :  { %v1168_v24 = vsel %vm367_vm4, %v7404_v46, %v1165_v56  ;;  %v5027_v63 = vadd.f32 %v1258_v14, %v1250_v42  ;;  %v5029_v52 = vadd.f32 %v1259_v13, %v1251_v43  ;;  %v921_v53 = vadd.f32 %v918_v7, %v910_v20 }
 0x112   :  { %v7405_v2 = vrot.slane %v4791_v37, 1  ;;  %v1063_v59 = vadd.f32 %v1060_v28, %v1052_v1  ;;  %v1110_v6 = vmul.f32 %v4963_v49, %v4839_v23  ;;  %v1016_v33 = vrot.slane %v5010_v27, 2 }
 0x113   :  { %v1102_v11 = vadd.f32 %v1099_v51, %v1091_v22  ;;  %v889_v34 = vmul.f32 %v4939_v60, %v4729_v47  ;;  %v897_v10 = vmul.f32 %v4943_v50, %v4731_v38  ;;  %v1141_v30 = vadd.f32 %v1138_v36, %v1130_v26  ;;  %v7407_v51 = vld [vmem:[#allocation25_spill] sm:$0xff] }
 0x114   :  { %v967_v57 = vsel %vm163_vm0, %v7405_v2, %v966_v35  ;;  %v1149_v37 = vmul.f32 %v4927_v45, %v4861_v44  ;;  %v1180_v39 = vmul.f32 %v4939_v60, %v4887_v54  ;;  %v1188_v32 = vmul.f32 %v4943_v50, %v4889_v15 }
 0x115   :  { %v1170_v23 = vadd.f32 %v1168_v24, %v1120_v62  ;;  %v1218_v47 = vsel %vm418_vm5, %v1214_v8, %v1215_v40  ;;  %v1264_v38 = vrot.slane %v5027_v63, 7  ;;  %v1265_v14 = vrot.slane %v5029_v52, 7  ;;  %v7408_v24 = vld [vmem:[#allocation17_spill] sm:$0xff]  ;;  %v7423_v63 = vld [vmem:[#allocation18_spill] sm:$0xff] }
 0x116   :  { %v971_v42 = vadd.f32 %v967_v57, %v921_v53  ;;  %v1066_v44 = vrot.slane %v1063_v59, 3  ;;  %v1160_v54 = vmul.f32 %v4963_v49, %v4877_v29  ;;  %v1199_v15 = vmul.f32 %v4927_v45, %v4905_v55 }
 0x117   :  { %v7406_v43 = vrot.slane %v4825_v16, 2  ;;  %v1113_v7 = vadd.f32 %v1110_v6, %v1102_v11  ;;  %v900_v20 = vadd.f32 %v897_v10, %v889_v34  ;;  %v908_v1 = vmul.f32 %v4927_v45, %v4769_v31  ;;  %v7410_v34 = vld [vmem:[#allocation23_spill] sm:$0xff] }
 0x118   :  { %v1152_v28 = vadd.f32 %v1149_v37, %v1141_v30  ;;  %v1191_v27 = vadd.f32 %v1188_v32, %v1180_v39  ;;  %v1230_v22 = vmul.f32 %v4939_v60, %v4919_v3  ;;  %v1238_v29 = vmul.f32 %v4943_v50, %v7407_v51  ;;  %v7416_v51 = vld [vmem:[#allocation26_spill] sm:$0xff] }
 0x119   :  { %v1017_v13 = vsel %vm214_vm1, %v7406_v43, %v1016_v33  ;;  %v1220_v62 = vadd.f32 %v1218_v47, %v1170_v23  ;;  %v1268_v16 = vsel %vm469_vm6, %v1264_v38, %v1265_v14  ;;  %v1210_v46 = vmul.f32 %v4963_v49, %v4947_v21  ;;  %v7412_v47 = vld [vmem:[#allocation21_spill] sm:$0xff] }
 0x11a   :  { %v1021_v55 = vadd.f32 %v1017_v13, %v971_v42  ;;  %v7409_v31 = vrot.slane %v7408_v24, 3  ;;  %v1116_v36 = vrot.slane %v1113_v7, 4  ;;  %v911_v3 = vadd.f32 %v908_v1, %v900_v20  ;;  %v7414_v20 = vld [vmem:[#allocation22_spill] sm:$0xff] }
 0x11b   :  { %v919_v52 = vmul.f32 %v4963_v49, %v4797_v19  ;;  %v1163_v53 = vadd.f32 %v1160_v54, %v1152_v28  ;;  %v1202_v2 = vadd.f32 %v1199_v15, %v1191_v27  ;;  %v1241_v57 = vadd.f32 %v1238_v29, %v1230_v22 }
 0x11c   :  { %v1067_v26 = vsel %vm265_vm2, %v7409_v31, %v1066_v44  ;;  %v1249_v59 = vmul.f32 %v4927_v45, %v4957_v48  ;;  %v1270_v6 = vadd.f32 %v1268_v16, %v1220_v62  ;;  %v7411_v21 = vrot.slane %v7410_v34, 4 }
 0x11d   :  { %v1071_v11 = vadd.f32 %v1067_v26, %v1021_v55  ;;  %v1260_v30 = vmul.f32 %v4963_v49, %v4982_v0  ;;  %v922_v37 = vadd.f32 %v919_v52, %v911_v3  ;;  %v1166_v32 = vrot.slane %v1163_v53, 5  ;;  %v7418_v55 = vld [vmem:[#allocation27_spill] sm:$0xff] }
 0x11e   :  { %v1117_v10 = vsel %vm316_vm3, %v7411_v21, %v1116_v36  ;;  %v1213_v19 = vadd.f32 %v1210_v46, %v1202_v2  ;;  %v1252_v23 = vadd.f32 %v1249_v59, %v1241_v57  ;;  %v7413_v42 = vrot.slane %v7412_v47, 1  ;;  %v5135_v57 = vld [vmem:[#allocation7 + $0xc] ss:$0 sm:$0xff] }
 0x11f   :  { %v1121_v15 = vadd.f32 %v1117_v10, %v1071_v11  ;;  %v1167_v0 = vsel %vm367_vm4, %v1165_v56, %v1166_v32  ;;  %v7415_v1 = vrot.slane %v7414_v20, 2  ;;  %v7417_v17 = vrot.slane %v7416_v51, 3  ;;  %v5137_v59 = vld [vmem:[#allocation7 + $0x4c] ss:$0 sm:$0xff]  ;;  %v5185_v51 = vld [vmem:[#allocation7 + $0x84] ss:$0 sm:$0xff] }
 0x120   :  { %v969_v48 = vsel %vm163_vm0, %v966_v35, %v7413_v42  ;;  %v1216_v13 = vrot.slane %v1213_v19, 6  ;;  %v1263_v7 = vadd.f32 %v1260_v30, %v1252_v23  ;;  %v1336_v34 = vmul.f32 %v7423_v63, %v5137_v59  ;;  %v5147_v10 = vld [vmem:[#allocation7 + $0x8c] ss:$0 sm:$0xff]  ;;  %v5149_v30 = vld [vmem:[#allocation7 + $0x14] ss:$0 sm:$0xff] }
 0x121   :  { %v972_v43 = vadd.f32 %v969_v48, %v922_v37  ;;  %v1019_v12 = vsel %vm214_vm1, %v1016_v33, %v7415_v1  ;;  %v1171_v28 = vadd.f32 %v1167_v0, %v1121_v15  ;;  %v1069_v56 = vsel %vm265_vm2, %v1066_v44, %v7417_v17  ;;  %v5151_v37 = vld [vmem:[#allocation7 + $0x54] ss:$0 sm:$0xff]  ;;  %v5161_v48 = vld [vmem:[#allocation7 + $0xcc] ss:$0 sm:$0xff]  ;;  %v5177_v1 = vld [vmem:[#allocation7 + $0x1c] ss:$0 sm:$0xff] }
 0x122   :  { %v1217_v35 = vsel %vm418_vm5, %v1215_v40, %v1216_v13  ;;  %v1266_v22 = vrot.slane %v1263_v7, 7  ;;  %v7419_v33 = vrot.slane %v7418_v55, 4  ;;  %v7420_v40 = vrot.slane %v4917_v18, 5 }
 0x123   :  { %v1022_v27 = vadd.f32 %v1019_v12, %v972_v43  ;;  %v1221_v29 = vadd.f32 %v1217_v35, %v1171_v28  ;;  %v1347_v47 = vmul.f32 %v4733_v41, %v5147_v10  ;;  %v1348_v42 = vmul.f32 %v4737_v9, %v5147_v10  ;;  %v5179_v12 = vld [vmem:[#allocation7 + $0x5c] ss:$0 sm:$0xff] }
 0x124   :  { %v1267_v16 = vsel %vm469_vm6, %v1265_v14, %v1266_v22  ;;  %v1119_v46 = vsel %vm316_vm3, %v1116_v36, %v7419_v33  ;;  %v1169_v31 = vsel %vm367_vm4, %v1166_v32, %v7420_v40  ;;  %v1219_v14 = vsel %vm418_vm5, %v1216_v13, %v1214_v8  ;;  %v5155_v32 = vld [vmem:[#allocation7 + $0x44] ss:$0 sm:$0xff]  ;;  %v5171_v13 = vld [vmem:[#allocation7 + $0x94] ss:$0 sm:$0xff] }
 0x125   :  { %v1072_v62 = vadd.f32 %v1069_v56, %v1022_v27  ;;  %v1271_v58 = vadd.f32 %v1267_v16, %v1221_v29  ;;  %v1269_v36 = vsel %vm469_vm6, %v1266_v22, %v1264_v38  ;;  %v1328_v8 = vmul.f32 %v7421_v61, %v5135_v57  ;;  %v7424_v38 = vld [vmem:[#allocation19_spill] sm:$0xff]  ;;  %v5191_v16 = vld [vmem:[#allocation7 + $0xd4] ss:$0 sm:$0xff] }
 0x126   :  { %v1337_v21 = vmul.f32 %v7424_v38, %v5137_v59  ;;  %v1386_v43 = vmul.f32 %v7423_v63, %v5151_v37  ;;  %v1387_v0 = vmul.f32 %v7424_v38, %v5151_v37  ;;  %v1295_v20 = vmul.f32 %v7423_v63, %v5155_v32 }
 0x127   :  { %v1122_v24 = vadd.f32 %v1119_v46, %v1072_v62  ;;  %v1339_v19 = vadd.f32 %v1336_v34, %v1328_v8  ;;  %v1358_v35 = vmul.f32 %v4761_v25, %v5161_v48  ;;  %v1359_v22 = vmul.f32 %v4765_v5, %v5161_v48 }
 0x128   :  { %v1397_v29 = vmul.f32 %v4733_v41, %v5171_v13  ;;  %v1398_v62 = vmul.f32 %v4737_v9, %v5171_v13  ;;  %v1428_v55 = vmul.f32 %v7421_v61, %v5177_v1  ;;  %v1436_v46 = vmul.f32 %v7423_v63, %v5179_v12 }
 0x129   :  { %v1172_v44 = vadd.f32 %v1169_v31, %v1122_v24  ;;  %v1350_v28 = vadd.f32 %v1347_v47, %v1339_v19  ;;  %v5201_v24 = vld [vmem:[#allocation7 + $0x9c] ss:$0 sm:$0xff]  ;;  %v1306_v31 = vmul.f32 %v4733_v41, %v5185_v51 }
 0x12a   :  { %v1439_v8 = vadd.f32 %v1436_v46, %v1428_v55  ;;  %v1447_v34 = vmul.f32 %v4733_v41, %v5201_v24  ;;  %v5223_v19 = vld [vmem:[#allocation7 + $0xdc] ss:$0 sm:$0xff]  ;;  %v5251_v46 = vld [vmem:[#allocation7 + $0xe4] ss:$0 sm:$0xff] }
 0x12b   :  { %v1222_v52 = vadd.f32 %v1219_v14, %v1172_v44  ;;  %v5209_v44 = vld [vmem:[#allocation7 + $0x24] ss:$0 sm:$0xff] }
 0x12c   :  { %v5211_v14 = vld [vmem:[#allocation7 + $0x64] ss:$0 sm:$0xff] }
 0x12d   :  { %v1272_v18 = vadd.f32 %v1269_v36, %v1222_v52  ;;  %v5213_v52 = vld [vmem:[#allocation7 + $0xc4] ss:$0 sm:$0xff] }
 0x14c   :  { %v877_v39 = vpop.permute.xlu1 %876 }
 0x14d   :  { %v1273_v54 = vadd.f32 %v1270_v6, %v877_v39  ;;  %v7422_v6 = vld [vmem:[#allocation16_spill] sm:$0xff] }
 0x14e   :  { %v1329_v11 = vmul.f32 %v7422_v6, %v5135_v57  ;;  %v5153_v39 = vld [vmem:[#allocation7 + $0x4] ss:$0 sm:$0xff]  ;;  %v1379_v15 = vmul.f32 %v7422_v6, %v5149_v30  ;;  %v1429_v33 = vmul.f32 %v7422_v6, %v5177_v1  ;;  %v1479_v47 = vmul.f32 %v7422_v6, %v5209_v44 }
 0x14f   :  { %1276 = vrot.lane.b32.xlu0 %v1273_v54, %s3767_s2  ;;  %v1378_v54 = vmul.f32 %v7421_v61, %v5149_v30  ;;  %v1287_v7 = vmul.f32 %v7421_v61, %v5153_v39 }
 0x150   :  { %v1340_v23 = vadd.f32 %v1337_v21, %v1329_v11  ;;  %v1390_v56 = vadd.f32 %v1387_v0, %v1379_v15  ;;  %v1448_v21 = vmul.f32 %v4737_v9, %v5201_v24  ;;  %v5235_v0 = vld [vmem:[#allocation7 + $0xa4] ss:$0 sm:$0xff] }
 0x151   :  { %v1389_v17 = vadd.f32 %v1386_v43, %v1378_v54  ;;  %v1298_v40 = vadd.f32 %v1295_v20, %v1287_v7  ;;  %v1487_v54 = vmul.f32 %v7424_v38, %v5211_v14  ;;  %v1317_v43 = vmul.f32 %v4761_v25, %v5213_v52 }
 0x152   :  { %v1351_v27 = vadd.f32 %v1348_v42, %v1340_v23  ;;  %v1478_v23 = vmul.f32 %v7421_v61, %v5209_v44  ;;  %v1486_v42 = vmul.f32 %v7423_v63, %v5211_v14  ;;  %v1497_v55 = vmul.f32 %v4733_v41, %v5235_v0 }
 0x153   :  { %v1400_v36 = vadd.f32 %v1397_v29, %v1389_v17  ;;  %v1309_v15 = vadd.f32 %v1306_v31, %v1298_v40  ;;  %v1458_v17 = vmul.f32 %v4761_v25, %v5223_v19  ;;  %v5259_v31 = vld [vmem:[#allocation7 + $0x2c] ss:$0 sm:$0xff] }
 0x154   :  { %v1489_v29 = vadd.f32 %v1486_v42, %v1478_v23  ;;  %v1509_v23 = vmul.f32 %v4765_v5, %v5251_v46  ;;  %v1529_v42 = vmul.f32 %v7422_v6, %v5259_v31 }
 0x15f   :  { %v879_v26 = vpop.permute.xlu0 %878 }
 0x160   :  { %v1274_v3 = vadd.f32 %v1271_v58, %v879_v26  ;;  %v1437_v58 = vmul.f32 %v7424_v38, %v5179_v12  ;;  %v5205_v26 = vadd.f32 %v1358_v35, %v1350_v28  ;;  %v1450_v35 = vadd.f32 %v1447_v34, %v1439_v8 }
 0x162   :  { %1278 = vrot.lane.b32.xlu1 %v1274_v3, %s3767_s2  ;;  %7425 = vst [vmem:[#allocation28_spill] sm:$0xff] %v5205_v26  ;;  %v5207_v3 = vadd.f32 %v1359_v22, %v1351_v27  ;;  %v1440_v11 = vadd.f32 %v1437_v58, %v1429_v33  ;;  %v7234_v7 = vrot.slane %v5205_v26, 1  ;;  %v1498_v33 = vmul.f32 %v4737_v9, %v5235_v0  ;;  %v5341_v26 = vld [vmem:[#allocation7 + $0x3c] ss:$0 sm:$0xff] }
 0x163   :  { %v1320_v58 = vadd.f32 %v1317_v43, %v1309_v15  ;;  %v5281_v43 = vld [vmem:[#allocation7 + $0xac] ss:$0 sm:$0xff]  ;;  %7435 = vst [vmem:[#allocation22_spill] sm:$0xff] %v5341_v26 }
 0x164   :  { %v7235_v20 = vrot.slane %v5207_v3, 1  ;;  %v1451_v22 = vadd.f32 %v1448_v21, %v1440_v11  ;;  %v1500_v11 = vadd.f32 %v1497_v55, %v1489_v29  ;;  %v1508_v21 = vmul.f32 %v4761_v25, %v5251_v46 }
 0x166   :  { %v1368_v40 = vsel %vm163_vm0, %v7234_v7, %v7235_v20  ;;  %v5291_v29 = vadd.f32 %v1508_v21, %v1500_v11  ;;  %v5299_v7 = vld [vmem:[#allocation7 + $0xec] ss:$0 sm:$0xff]  ;;  %v5301_v20 = vld [vmem:[#allocation7 + $0x34] ss:$0 sm:$0xff] }
 0x167   :  { %v1558_v21 = vmul.f32 %v4761_v25, %v5299_v7 }
 0x168   :  { %7430 = vst [vmem:[#allocation17_spill] sm:$0xff] %v5291_v29 }
 0x16a   :  { %v881_v53 = vpop.permute.xlu1 %880 }
 0x16b   :  { %v1275_v2 = vadd.f32 %v1272_v18, %v881_v53  ;;  %v1401_v18 = vadd.f32 %v1398_v62, %v1390_v56  ;;  %v1408_v53 = vmul.f32 %v4761_v25, %v5191_v16  ;;  %v1459_v56 = vmul.f32 %v4765_v5, %v5223_v19 }
 0x16c   :  { %v1490_v62 = vadd.f32 %v1487_v54, %v1479_v47  ;;  %v1528_v47 = vmul.f32 %v7421_v61, %v5259_v31 }
 0x16d   :  { %1280 = vrot.lane.b32.xlu0 %v1275_v2, %s3767_s2  ;;  %v1409_v2 = vmul.f32 %v4765_v5, %v5191_v16  ;;  %v5239_v28 = vadd.f32 %v1408_v53, %v1400_v36  ;;  %v5261_v36 = vld [vmem:[#allocation7 + $0x6c] ss:$0 sm:$0xff]  ;;  %v5267_v8 = vadd.f32 %v1459_v56, %v1451_v22 }
 0x16e   :  { %v1501_v34 = vadd.f32 %v1498_v33, %v1490_v62  ;;  %v1536_v54 = vmul.f32 %v7423_v63, %v5261_v36  ;;  %v1537_v15 = vmul.f32 %v7424_v38, %v5261_v36 }
 0x16f   :  { %7426 = vst [vmem:[#allocation14_spill] sm:$0xff] %v5239_v28  ;;  %v5241_v27 = vadd.f32 %v1409_v2, %v1401_v18  ;;  %v7236_v18 = vrot.slane %v5239_v28, 2  ;;  %v5265_v2 = vadd.f32 %v1458_v17, %v1450_v35  ;;  %7429 = vst [vmem:[#allocation25_spill] sm:$0xff] %v5267_v8  ;;  %v1370_v35 = vadd.f32 %v1368_v40, %v1320_v58 }
 0x170   :  { %v7239_v56 = vrot.slane %v5267_v8, 3  ;;  %v5293_v62 = vadd.f32 %v1509_v23, %v1501_v34  ;;  %v1539_v55 = vadd.f32 %v1536_v54, %v1528_v47  ;;  %v1540_v33 = vadd.f32 %v1537_v15, %v1529_v42  ;;  %v5317_v15 = vld [vmem:[#allocation7 + $0xb4] ss:$0 sm:$0xff] }
 0x171   :  { %7427 = vst [vmem:[#allocation20_spill] sm:$0xff] %v5241_v27  ;;  %v7237_v53 = vrot.slane %v5241_v27, 2  ;;  %7428 = vst [vmem:[#allocation24_spill] sm:$0xff] %v5265_v2  ;;  %v7238_v17 = vrot.slane %v5265_v2, 3  ;;  %v1547_v58 = vmul.f32 %v4733_v41, %v5281_v43  ;;  %v1548_v40 = vmul.f32 %v4737_v9, %v5281_v43 }
 0x172   :  { %7431 = vst [vmem:[#allocation23_spill] sm:$0xff] %v5293_v62  ;;  %v1559_v54 = vmul.f32 %v4765_v5, %v5299_v7  ;;  %v1597_v28 = vmul.f32 %v4733_v41, %v5317_v15 }
 0x173   :  { %v1418_v22 = vsel %vm214_vm1, %v7236_v18, %v7237_v53  ;;  %v5303_v18 = vld [vmem:[#allocation7 + $0x74] ss:$0 sm:$0xff]  ;;  %v1468_v23 = vsel %vm265_vm2, %v7238_v17, %v7239_v56  ;;  %v1550_v47 = vadd.f32 %v1547_v58, %v1539_v55  ;;  %v1551_v42 = vadd.f32 %v1548_v40, %v1540_v33 }
 0x174   :  { %v1420_v53 = vadd.f32 %v1418_v22, %v1370_v35  ;;  %v1578_v35 = vmul.f32 %v7421_v61, %v5301_v20  ;;  %v1579_v22 = vmul.f32 %v7422_v6, %v5301_v20  ;;  %v1586_v11 = vmul.f32 %v7423_v63, %v5303_v18  ;;  %v5327_v17 = vld [vmem:[#allocation7 + $0xf4] ss:$0 sm:$0xff] }
 0x175   :  { %v1587_v34 = vmul.f32 %v7424_v38, %v5303_v18  ;;  %7432 = vst [vmem:[#allocation21_spill] sm:$0xff] %v5327_v17  ;;  %v1330_v55 = vmul.f32 %v4939_v60, %v5135_v57  ;;  %v1338_v33 = vmul.f32 %v4943_v50, %v5137_v59  ;;  %v7433_v40 = vrot.slane %v5293_v62, 4 }
 0x176   :  { %v1470_v58 = vadd.f32 %v1468_v23, %v1420_v53  ;;  %v7434_v56 = vrot.slane %v5291_v29, 4  ;;  %v5343_v8 = vadd.f32 %v1558_v21, %v1550_v47  ;;  %v5345_v27 = vadd.f32 %v1559_v54, %v1551_v42  ;;  %v5351_v53 = vld [vmem:[#allocation7 + $0x7c] ss:$0 sm:$0xff] }
 0x177   :  { %v1598_v57 = vmul.f32 %v4737_v9, %v5317_v15  ;;  %v1608_v59 = vmul.f32 %v4761_v25, %v5327_v17  ;;  %7436 = vst [vmem:[#allocation26_spill] sm:$0xff] %v5351_v53  ;;  %v1589_v23 = vadd.f32 %v1586_v11, %v1578_v35  ;;  %v1590_v29 = vadd.f32 %v1587_v34, %v1579_v22 }
 0x178   :  { %v1518_v2 = vsel %vm316_vm3, %v7434_v56, %v7433_v40  ;;  %v1380_v56 = vmul.f32 %v4939_v60, %v5149_v30  ;;  %v1388_v40 = vmul.f32 %v4943_v50, %v5151_v37  ;;  %v1628_v21 = vmul.f32 %v7421_v61, %v5341_v26  ;;  %v5367_v30 = vld [vmem:[#allocation7 + $0xbc] ss:$0 sm:$0xff] }
 0x179   :  { %v1629_v47 = vmul.f32 %v7422_v6, %v5341_v26  ;;  %v1341_v42 = vadd.f32 %v1338_v33, %v1330_v55  ;;  %v1349_v54 = vmul.f32 %v4927_v45, %v5147_v10  ;;  %v1636_v11 = vmul.f32 %v7423_v63, %v5351_v53 }
 0x17a   :  { %v1637_v34 = vmul.f32 %v7424_v38, %v5351_v53  ;;  %v1288_v37 = vmul.f32 %v7422_v6, %v5153_v39  ;;  %v1296_v61 = vmul.f32 %v7424_v38, %v5155_v32  ;;  %v1609_v22 = vmul.f32 %v4765_v5, %v5327_v17  ;;  %v5386_v53 = vld [vmem:[#allocation7 + $0xfc] ss:$0 sm:$0xff] }
 0x17b   :  { %v1430_v10 = vmul.f32 %v4939_v60, %v5177_v1  ;;  %v1438_v63 = vmul.f32 %v4943_v50, %v5179_v12  ;;  %v1600_v55 = vadd.f32 %v1597_v28, %v1589_v23  ;;  %v1601_v33 = vadd.f32 %v1598_v57, %v1590_v29 }
 0x17c   :  { %v1391_v62 = vadd.f32 %v1388_v40, %v1380_v56  ;;  %v1399_v6 = vmul.f32 %v4927_v45, %v5171_v13  ;;  %v1647_v38 = vmul.f32 %v4733_v41, %v5367_v30  ;;  %v1648_v35 = vmul.f32 %v4737_v9, %v5367_v30 }
 0x17d   :  { %v1352_v17 = vadd.f32 %v1349_v54, %v1341_v42  ;;  %v1360_v1 = vmul.f32 %v4963_v49, %v5161_v48  ;;  %v1639_v26 = vadd.f32 %v1636_v11, %v1628_v21  ;;  %v1640_v12 = vadd.f32 %v1637_v34, %v1629_v47 }
 0x17e   :  { %v1299_v28 = vadd.f32 %v1296_v61, %v1288_v37  ;;  %v1307_v29 = vmul.f32 %v4737_v9, %v5185_v51  ;;  %v1441_v57 = vadd.f32 %v1438_v63, %v1430_v10  ;;  %v1449_v13 = vmul.f32 %v4927_v45, %v5201_v24 }
 0x17f   :  { %v1480_v41 = vmul.f32 %v4939_v60, %v5209_v44  ;;  %v1488_v23 = vmul.f32 %v4943_v50, %v5211_v14  ;;  %v1565_v56 = vrot.slane %v5345_v27, 5  ;;  %v1658_v48 = vmul.f32 %v4761_v25, %v5386_v53 }
 0x180   :  { %v1402_v40 = vadd.f32 %v1399_v6, %v1391_v62  ;;  %v1410_v21 = vmul.f32 %v4963_v49, %v5191_v16  ;;  %v5403_v9 = vadd.f32 %v1608_v59, %v1600_v55  ;;  %v5405_v47 = vadd.f32 %v1609_v22, %v1601_v33 }
 0x181   :  { %v1659_v24 = vmul.f32 %v4765_v5, %v5386_v53  ;;  %v5409_v44 = vadd.f32 %v1360_v1, %v1352_v17  ;;  %v1650_v42 = vadd.f32 %v1647_v38, %v1639_v26  ;;  %v1651_v14 = vadd.f32 %v1648_v35, %v1640_v12 }
 0x182   :  { %v1310_v54 = vadd.f32 %v1307_v29, %v1299_v28  ;;  %v1318_v11 = vmul.f32 %v4765_v5, %v5213_v52  ;;  %v1452_v25 = vadd.f32 %v1449_v13, %v1441_v57  ;;  %v1460_v62 = vmul.f32 %v4963_v49, %v5223_v19 }
 0x183   :  { %v1491_v16 = vadd.f32 %v1488_v23, %v1480_v41  ;;  %v1499_v59 = vmul.f32 %v4927_v45, %v5235_v0  ;;  %v1520_v34 = vadd.f32 %v1518_v2, %v1470_v58  ;;  %v5417_v37 = vadd.f32 %v1410_v21, %v1402_v40  ;;  %v7439_v41 = vld [vmem:[#allocation20_spill] sm:$0xff] }
 0x184   :  { %v7437_v26 = vrot.slane %v5343_v8, 5  ;;  %v1366_v5 = vrot.slane %v5409_v44, 1  ;;  %v1530_v61 = vmul.f32 %v4939_v60, %v5259_v31  ;;  %v1538_v19 = vmul.f32 %v4943_v50, %v5261_v36 }
 0x185   :  { %v1614_v0 = vrot.slane %v5403_v9, 6  ;;  %v1615_v2 = vrot.slane %v5405_v47, 6  ;;  %v5432_v58 = vadd.f32 %v1658_v48, %v1650_v42  ;;  %v5434_v35 = vadd.f32 %v1659_v24, %v1651_v14  ;;  %v7441_v42 = vld [vmem:[#allocation22_spill] sm:$0xff]  ;;  %v5543_v9 = vld [vmem:[#allocation4] sm:$0xff] }
 0x186   :  { %v1568_v17 = vsel %vm367_vm4, %v7437_v26, %v1565_v56  ;;  %v1321_v22 = vadd.f32 %v1318_v11, %v1310_v54  ;;  %v5436_v10 = vadd.f32 %v1460_v62, %v1452_v25  ;;  %v1502_v63 = vadd.f32 %v1499_v59, %v1491_v16  ;;  %v7442_v54 = vld [vmem:[#allocation26_spill] sm:$0xff]  ;;  %v7443_v25 = vld [vmem:[#allocation25_spill] sm:$0xff]  ;;  %7457 = vst [vmem:[#allocation27_spill] sm:$0xff] %v5543_v9 }
 0x187   :  { %v1510_v55 = vmul.f32 %v4963_v49, %v5251_v46  ;;  %v1416_v31 = vrot.slane %v5417_v37, 2  ;;  %v1549_v36 = vmul.f32 %v4927_v45, %v5281_v43  ;;  %v1289_v33 = vmul.f32 %v4939_v60, %v5153_v39 }
 0x188   :  { %v1297_v6 = vmul.f32 %v4943_v50, %v5155_v32  ;;  %v7438_v38 = vrot.slane %v5207_v3, 1  ;;  %v1541_v12 = vadd.f32 %v1538_v19, %v1530_v61  ;;  %v1580_v46 = vmul.f32 %v4939_v60, %v5301_v20 }
 0x189   :  { %v1588_v28 = vmul.f32 %v4943_v50, %v5303_v18  ;;  %v1570_v29 = vadd.f32 %v1568_v17, %v1520_v34  ;;  %v1618_v39 = vsel %vm418_vm5, %v1614_v0, %v1615_v2  ;;  %v1664_v32 = vrot.slane %v5432_v58, 7  ;;  %v7445_v34 = vld [vmem:[#allocation21_spill] sm:$0xff] }
 0x18a   :  { %v1367_v1 = vsel %vm163_vm0, %v7438_v38, %v1366_v5  ;;  %v1665_v3 = vrot.slane %v5434_v35, 7  ;;  %v1466_v43 = vrot.slane %v5436_v10, 3  ;;  %v1513_v57 = vadd.f32 %v1510_v55, %v1502_v63  ;;  %v7446_v10 = vld [vmem:[#allocation23_spill] sm:$0xff] }
 0x18b   :  { %v1560_v20 = vmul.f32 %v4963_v49, %v5299_v7  ;;  %v1599_v18 = vmul.f32 %v4927_v45, %v5317_v15  ;;  %v1371_v13 = vadd.f32 %v1367_v1, %v1321_v22  ;;  %v7440_v23 = vrot.slane %v7439_v41, 2 }
 0x18c   :  { %v1300_v40 = vadd.f32 %v1297_v6, %v1289_v33  ;;  %v1308_v21 = vmul.f32 %v4927_v45, %v5185_v51  ;;  %v1552_v24 = vadd.f32 %v1549_v36, %v1541_v12  ;;  %v1591_v44 = vadd.f32 %v1588_v28, %v1580_v46  ;;  %v7448_v12 = vld [vmem:[#allocation28_spill] sm:$0xff] }
 0x18d   :  { %v1417_v48 = vsel %vm214_vm1, %v7440_v23, %v1416_v31  ;;  %v1630_v14 = vmul.f32 %v4939_v60, %v7441_v42  ;;  %v1638_v7 = vmul.f32 %v4943_v50, %v7442_v54  ;;  %v1620_v11 = vadd.f32 %v1618_v39, %v1570_v29 }
 0x18e   :  { %v1668_v15 = vsel %vm469_vm6, %v1664_v32, %v1665_v3  ;;  %v7444_v62 = vrot.slane %v7443_v25, 3  ;;  %v1516_v51 = vrot.slane %v1513_v57, 4  ;;  %v1421_v59 = vadd.f32 %v1417_v48, %v1371_v13  ;;  %v7450_v57 = vld [vmem:[#allocation14_spill] sm:$0xff]  ;;  %v7452_v48 = vld [vmem:[#allocation24_spill] sm:$0xff] }
 0x18f   :  { %v1610_v37 = vmul.f32 %v4963_v49, %v7445_v34  ;;  %v1311_v60 = vadd.f32 %v1308_v21, %v1300_v40  ;;  %v1319_v50 = vmul.f32 %v4963_v49, %v5213_v52  ;;  %v1563_v26 = vadd.f32 %v1560_v20, %v1552_v24  ;;  %v5547_v34 = vld [vmem:[#allocation4 + $0x8] sm:$0xff] }
 0x190   :  { %v1467_v16 = vsel %vm265_vm2, %v7444_v62, %v1466_v43  ;;  %v1602_v17 = vadd.f32 %v1599_v18, %v1591_v44  ;;  %v1641_v61 = vadd.f32 %v1638_v7, %v1630_v14  ;;  %v1649_v19 = vmul.f32 %v4927_v45, %v5367_v30  ;;  %v7454_v44 = vld [vmem:[#allocation17_spill] sm:$0xff]  ;;  %7458 = vst [vmem:[#allocation15_spill] sm:$0xff] %v5547_v34 }
 0x191   :  { %v1670_v35 = vadd.f32 %v1668_v15, %v1620_v11  ;;  %v1471_v22 = vadd.f32 %v1467_v16, %v1421_v59  ;;  %v7447_v63 = vrot.slane %v7446_v10, 4  ;;  %v1660_v36 = vmul.f32 %v4963_v49, %v5386_v53  ;;  %v5541_v59 = vld [vmem:[#allocation7 + $0x4b] ss:$0 sm:$0xff] }
 0x192   :  { %v1322_v33 = vadd.f32 %v1319_v50, %v1311_v60  ;;  %v1566_v38 = vrot.slane %v1563_v26, 5  ;;  %v1613_v52 = vadd.f32 %v1610_v37, %v1602_v17  ;;  %v1652_v1 = vadd.f32 %v1649_v19, %v1641_v61  ;;  %v5555_v60 = vld [vmem:[#allocation4 + $0x20] sm:$0xff]  ;;  %v5559_v26 = vld [vmem:[#allocation7 + $0x8b] ss:$0 sm:$0xff]  ;;  %v5561_v17 = vld [vmem:[#allocation7 + $0x13] ss:$0 sm:$0xff] }
 0x193   :  { %v1517_v55 = vsel %vm316_vm3, %v7447_v63, %v1516_v51  ;;  %v7449_v46 = vrot.slane %v7448_v12, 1  ;;  %v7451_v20 = vrot.slane %v7450_v57, 2  ;;  %v7453_v27 = vrot.slane %v7452_v48, 3  ;;  %7460 = vst [vmem:[#allocation18_spill] sm:$0xff] %v5555_v60  ;;  %v5563_v61 = vld [vmem:[#allocation7 + $0x53] ss:$0 sm:$0xff] }
 0x194   :  { %v1521_v28 = vadd.f32 %v1517_v55, %v1471_v22  ;;  %v1567_v49 = vsel %vm367_vm4, %v1565_v56, %v1566_v38  ;;  %v1616_v53 = vrot.slane %v1613_v52, 6  ;;  %v1663_v39 = vadd.f32 %v1660_v36, %v1652_v1  ;;  %v5565_v19 = vld [vmem:[#allocation7 + $0x3] ss:$0 sm:$0xff]  ;;  %v5569_v63 = vld [vmem:[#allocation4 + $0x30] sm:$0xff]  ;;  %v5573_v36 = vld [vmem:[#allocation4 + $0x38] sm:$0xff] }
 0x195   :  { %v1369_v45 = vsel %vm163_vm0, %v1366_v5, %v7449_v46  ;;  %v1419_v18 = vsel %vm214_vm1, %v1416_v31, %v7451_v20  ;;  %v1469_v56 = vsel %vm265_vm2, %v1466_v43, %v7453_v27  ;;  %v7455_v31 = vrot.slane %v7454_v44, 4  ;;  %v5587_v46 = vld [vmem:[#allocation7 + $0x93] ss:$0 sm:$0xff]  ;;  %v5621_v44 = vld [vmem:[#allocation7 + $0x9b] ss:$0 sm:$0xff] }
 0x196   :  { %v1372_v29 = vadd.f32 %v1369_v45, %v1322_v33  ;;  %v1571_v13 = vadd.f32 %v1567_v49, %v1521_v28  ;;  %v1617_v5 = vsel %vm418_vm5, %v1615_v2, %v1616_v53  ;;  %v1666_v23 = vrot.slane %v1663_v39, 7  ;;  %v5593_v28 = vld [vmem:[#allocation7 + $0x1b] ss:$0 sm:$0xff]  ;;  %v5597_v39 = vld [vmem:[#allocation4 + $0x48] sm:$0xff]  ;;  %v5601_v20 = vld [vmem:[#allocation4 + $0x50] sm:$0xff] }
 0x197   :  { %v1519_v42 = vsel %vm316_vm3, %v1516_v51, %v7455_v31  ;;  %v7456_v2 = vrot.slane %v5343_v8, 5  ;;  %v5539_v51 = vld [vmem:[#allocation7 + $0xb] ss:$0 sm:$0xff]  ;;  %v1737_v50 = vmul.f32 %v5555_v60, %v5541_v59  ;;  %v1747_v55 = vmul.f32 %v5569_v63, %v5559_v26  ;;  %v5611_v27 = vld [vmem:[#allocation7 + $0xd3] ss:$0 sm:$0xff] }
 0x198   :  { %v1422_v41 = vadd.f32 %v1419_v18, %v1372_v29  ;;  %v1621_v40 = vadd.f32 %v1617_v5, %v1571_v13  ;;  %v1667_v24 = vsel %vm469_vm6, %v1665_v3, %v1666_v23  ;;  %v1619_v3 = vsel %vm418_vm5, %v1616_v53, %v1614_v0  ;;  %v5595_v29 = vld [vmem:[#allocation7 + $0x5b] ss:$0 sm:$0xff]  ;;  %v5605_v13 = vld [vmem:[#allocation7 + $0x83] ss:$0 sm:$0xff] }
 0x199   :  { %v1569_v54 = vsel %vm367_vm4, %v1566_v38, %v7456_v2  ;;  %v1669_v25 = vsel %vm469_vm6, %v1666_v23, %v1664_v32  ;;  %v1728_v0 = vmul.f32 %v5543_v9, %v5539_v51  ;;  %v1729_v58 = vmul.f32 %v5547_v34, %v5539_v51  ;;  %v5551_v32 = vld [vmem:[#allocation4 + $0x18] sm:$0xff]  ;;  %v5629_v2 = vld [vmem:[#allocation7 + $0x23] ss:$0 sm:$0xff] }
 0x19a   :  { %v1472_v21 = vadd.f32 %v1469_v56, %v1422_v41  ;;  %v1671_v47 = vadd.f32 %v1667_v24, %v1621_v40  ;;  %7459 = vst [vmem:[#allocation16_spill] sm:$0xff] %v5551_v32  ;;  %v1736_v37 = vmul.f32 %v5551_v32, %v5541_v59  ;;  %v1748_v33 = vmul.f32 %v5573_v36, %v5559_v26 }
 0x19b   :  { %v1740_v10 = vadd.f32 %v1737_v50, %v1729_v58  ;;  %v1778_v38 = vmul.f32 %v5543_v9, %v5561_v17  ;;  %v1779_v52 = vmul.f32 %v5547_v34, %v5561_v17  ;;  %v1786_v1 = vmul.f32 %v5551_v32, %v5563_v61 }
 0x19c   :  { %v1522_v14 = vadd.f32 %v1519_v42, %v1472_v21  ;;  %v1739_v22 = vadd.f32 %v1736_v37, %v1728_v0  ;;  %v1787_v12 = vmul.f32 %v5555_v60, %v5563_v61  ;;  %v1687_v45 = vmul.f32 %v5543_v9, %v5565_v19  ;;  %v5643_v0 = vld [vmem:[#allocation7 + $0xdb] ss:$0 sm:$0xff] }
 0x19d   :  { %v1751_v53 = vadd.f32 %v1748_v33, %v1740_v10  ;;  %v1789_v41 = vadd.f32 %v1786_v1, %v1778_v38  ;;  %v1797_v23 = vmul.f32 %v5569_v63, %v5587_v46  ;;  %v1798_v48 = vmul.f32 %v5573_v36, %v5587_v46  ;;  %v5655_v33 = vld [vmem:[#allocation7 + $0xa3] ss:$0 sm:$0xff] }
 0x19e   :  { %v1572_v43 = vadd.f32 %v1569_v54, %v1522_v14  ;;  %v1750_v49 = vadd.f32 %v1747_v55, %v1739_v22  ;;  %v1790_v5 = vadd.f32 %v1787_v12, %v1779_v52  ;;  %v1828_v56 = vmul.f32 %v5543_v9, %v5593_v28  ;;  %v5631_v54 = vld [vmem:[#allocation7 + $0x63] ss:$0 sm:$0xff] }
 0x19f   :  { %v1829_v40 = vmul.f32 %v5547_v34, %v5593_v28  ;;  %v1836_v21 = vmul.f32 %v5551_v32, %v5595_v29  ;;  %v1837_v24 = vmul.f32 %v5555_v60, %v5595_v29  ;;  %v1706_v42 = vmul.f32 %v5569_v63, %v5605_v13 }
 0x1a0   :  { %v1622_v15 = vadd.f32 %v1619_v3, %v1572_v43  ;;  %v1801_v43 = vadd.f32 %v1798_v48, %v1790_v5  ;;  %v1808_v3 = vmul.f32 %v5597_v39, %v5611_v27  ;;  %v1878_v58 = vmul.f32 %v5543_v9, %v5629_v2  ;;  %v5673_v48 = vld [vmem:[#allocation7 + $0x2b] ss:$0 sm:$0xff] }
 0x1a1   :  { %v1879_v37 = vmul.f32 %v5547_v34, %v5629_v2  ;;  %v1886_v50 = vmul.f32 %v5551_v32, %v5631_v54  ;;  %v1887_v22 = vmul.f32 %v5555_v60, %v5631_v54  ;;  %v1898_v5 = vmul.f32 %v5573_v36, %v5655_v33 }
 0x1a2   :  { %v1672_v8 = vadd.f32 %v1669_v25, %v1622_v15  ;;  %v1809_v15 = vmul.f32 %v5601_v20, %v5611_v27  ;;  %v1839_v25 = vadd.f32 %v1836_v21, %v1828_v56  ;;  %v5675_v56 = vld [vmem:[#allocation7 + $0x6b] ss:$0 sm:$0xff] }
 0x1a4   :  { %v5661_v12 = vadd.f32 %v1809_v15, %v1801_v43 }
 0x1a6   :  { %7463 = vst [vmem:[#allocation22_spill] sm:$0xff] %v5661_v12 }
 0x1c1   :  { %v1277_v6 = vpop.permute.xlu0 %1276 }
 0x1c2   :  { %v1673_v30 = vadd.f32 %v1670_v35, %v1277_v6  ;;  %v5567_v35 = vld [vmem:[#allocation7 + $0x43] ss:$0 sm:$0xff]  ;;  %v5577_v6 = vld [vmem:[#allocation7 + $0xcb] ss:$0 sm:$0xff] }
 0x1c3   :  { %v1758_v57 = vmul.f32 %v5597_v39, %v5577_v6  ;;  %v1759_v18 = vmul.f32 %v5601_v20, %v5577_v6 }
 0x1c4   :  { %1676 = vrot.lane.b32.xlu1 %v1673_v30, %s3767_s2  ;;  %v1695_v30 = vmul.f32 %v5551_v32, %v5567_v35 }
 0x1c5   :  { %v5627_v14 = vadd.f32 %v1759_v18, %v1751_v53  ;;  %v1859_v53 = vmul.f32 %v5601_v20, %v5643_v0  ;;  %v1890_v18 = vadd.f32 %v1887_v22, %v1879_v37  ;;  %v5701_v37 = vld [vmem:[#allocation7 + $0xab] ss:$0 sm:$0xff] }
 0x1c6   :  { %v1698_v31 = vadd.f32 %v1695_v30, %v1687_v45 }
 0x1c7   :  { %v7255_v52 = vrot.slane %v5627_v14, 1 }
 0x1c8   :  { %v1709_v10 = vadd.f32 %v1706_v42, %v1698_v31  ;;  %v7254_v31 = vrot.slane %v5661_v12, 2 }
 0x1d4   :  { %v1279_v7 = vpop.permute.xlu1 %1278 }
 0x1d5   :  { %v1674_v11 = vadd.f32 %v1671_v47, %v1279_v7  ;;  %v5625_v47 = vadd.f32 %v1758_v57, %v1750_v49  ;;  %v5633_v7 = vld [vmem:[#allocation7 + $0xc3] ss:$0 sm:$0xff]  ;;  %v1858_v49 = vmul.f32 %v5597_v39, %v5643_v0  ;;  %v1889_v57 = vadd.f32 %v1886_v50, %v1878_v58 }
 0x1d6   :  { %v1717_v55 = vmul.f32 %v5597_v39, %v5633_v7  ;;  %v1937_v58 = vmul.f32 %v5555_v60, %v5675_v56 }
 0x1d7   :  { %1678 = vrot.lane.b32.xlu0 %v1674_v11, %s3767_s2  ;;  %7461 = vst [vmem:[#allocation19_spill] sm:$0xff] %v5625_v47  ;;  %v1800_v11 = vadd.f32 %v1797_v23, %v1789_v41  ;;  %v7252_v38 = vrot.slane %v5625_v47, 1  ;;  %v1897_v41 = vmul.f32 %v5569_v63, %v5655_v33  ;;  %v5671_v23 = vld [vmem:[#allocation7 + $0xe3] ss:$0 sm:$0xff] }
 0x1d8   :  { %v1908_v43 = vmul.f32 %v5597_v39, %v5671_v23 }
 0x1d9   :  { %v5659_v1 = vadd.f32 %v1808_v3, %v1800_v11  ;;  %v1768_v21 = vsel %vm163_vm0, %v7252_v38, %v7255_v52  ;;  %v1909_v3 = vmul.f32 %v5601_v20, %v5671_v23  ;;  %v1900_v15 = vadd.f32 %v1897_v41, %v1889_v57  ;;  %v5717_v57 = vld [vmem:[#allocation7 + $0xeb] ss:$0 sm:$0xff]  ;;  %v5747_v38 = vld [vmem:[#allocation7 + $0xf3] ss:$0 sm:$0xff] }
 0x1da   :  { %7468 = vst [vmem:[#allocation28_spill] sm:$0xff] %v5747_v38 }
 0x1db   :  { %7462 = vst [vmem:[#allocation20_spill] sm:$0xff] %v5659_v1 }
 0x1df   :  { %v1281_v62 = vpop.permute.xlu0 %1280 }
 0x1e0   :  { %v1675_v16 = vadd.f32 %v1672_v8, %v1281_v62  ;;  %v1840_v8 = vadd.f32 %v1837_v24, %v1829_v40  ;;  %v1847_v62 = vmul.f32 %v5569_v63, %v5621_v44  ;;  %v1720_v40 = vadd.f32 %v1717_v55, %v1709_v10 }
 0x1e1   :  { %v7251_v24 = vrot.slane %v5659_v1, 2 }
 0x1e2   :  { %1680 = vrot.lane.b32.xlu1 %v1675_v16, %s3767_s2  ;;  %v1848_v16 = vmul.f32 %v5573_v36, %v5621_v44  ;;  %v1850_v45 = vadd.f32 %v1847_v62, %v1839_v25  ;;  %v1901_v25 = vadd.f32 %v1898_v5, %v1890_v18  ;;  %v1936_v62 = vmul.f32 %v5551_v32, %v5675_v56  ;;  %v5719_v18 = vld [vmem:[#allocation7 + $0x33] ss:$0 sm:$0xff] }
 0x1e3   :  { %v1770_v50 = vadd.f32 %v1768_v21, %v1720_v40  ;;  %v1818_v22 = vsel %vm214_vm1, %v7251_v24, %v7254_v31  ;;  %v1948_v5 = vmul.f32 %v5573_v36, %v5701_v37  ;;  %v5723_v40 = vld [vmem:[#allocation7 + $0x73] ss:$0 sm:$0xff] }
 0x1e4   :  { %v1851_v30 = vadd.f32 %v1848_v16, %v1840_v8  ;;  %v5685_v42 = vadd.f32 %v1858_v49, %v1850_v45  ;;  %v1928_v8 = vmul.f32 %v5543_v9, %v5673_v48  ;;  %v1929_v16 = vmul.f32 %v5547_v34, %v5673_v48 }
 0x1e5   :  { %v5711_v45 = vadd.f32 %v1908_v43, %v1900_v15  ;;  %v1820_v21 = vadd.f32 %v1818_v22, %v1770_v50  ;;  %v1978_v15 = vmul.f32 %v5543_v9, %v5719_v18  ;;  %v1959_v22 = vmul.f32 %v5601_v20, %v5717_v57 }
 0x1e6   :  { %7464 = vst [vmem:[#allocation26_spill] sm:$0xff] %v5685_v42  ;;  %v5687_v11 = vadd.f32 %v1859_v53, %v1851_v30  ;;  %v7250_v10 = vrot.slane %v5685_v42, 3  ;;  %v5713_v30 = vadd.f32 %v1909_v3, %v1901_v25  ;;  %v1939_v49 = vadd.f32 %v1936_v62, %v1928_v8  ;;  %v5761_v25 = vld [vmem:[#allocation7 + $0x3b] ss:$0 sm:$0xff] }
 0x1e7   :  { %7466 = vst [vmem:[#allocation21_spill] sm:$0xff] %v5711_v45  ;;  %v1947_v53 = vmul.f32 %v5569_v63, %v5701_v37  ;;  %v1940_v41 = vadd.f32 %v1937_v58, %v1929_v16  ;;  %v1958_v3 = vmul.f32 %v5597_v39, %v5717_v57  ;;  %v1986_v16 = vmul.f32 %v5551_v32, %v5723_v40  ;;  %v5739_v58 = vld [vmem:[#allocation7 + $0xb3] ss:$0 sm:$0xff] }
 0x1e8   :  { %7465 = vst [vmem:[#allocation25_spill] sm:$0xff] %v5687_v11  ;;  %v7253_v55 = vrot.slane %v5687_v11, 3  ;;  %7467 = vst [vmem:[#allocation23_spill] sm:$0xff] %v5713_v30  ;;  %v7262_v8 = vrot.slane %v5713_v30, 4  ;;  %v1987_v24 = vmul.f32 %v5555_v60, %v5723_v40  ;;  %v1997_v31 = vmul.f32 %v5569_v63, %v5739_v58 }
 0x1e9   :  { %v1950_v62 = vadd.f32 %v1947_v53, %v1939_v49  ;;  %v1951_v50 = vadd.f32 %v1948_v5, %v1940_v41  ;;  %v5753_v53 = vld [vmem:[#allocation4 + $0x28] sm:$0xff]  ;;  %v1998_v52 = vmul.f32 %v5573_v36, %v5739_v58  ;;  %v7469_v42 = vrot.slane %v5711_v45, 4 }
 0x1ea   :  { %v1868_v43 = vsel %vm265_vm2, %v7250_v10, %v7253_v55  ;;  %v1979_v10 = vmul.f32 %v5547_v34, %v5719_v18  ;;  %v5749_v55 = vld [vmem:[#allocation4 + $0x10] sm:$0xff]  ;;  %v1738_v41 = vmul.f32 %v5753_v53, %v5541_v59  ;;  %v1989_v47 = vadd.f32 %v1986_v16, %v1978_v15 }
 0x1eb   :  { %v1730_v49 = vmul.f32 %v5749_v55, %v5539_v51  ;;  %v1870_v5 = vadd.f32 %v1868_v43, %v1820_v21  ;;  %v1918_v51 = vsel %vm316_vm3, %v7469_v42, %v7262_v8  ;;  %v5769_v1 = vadd.f32 %v1958_v3, %v1950_v62  ;;  %v5773_v21 = vld [vmem:[#allocation7 + $0x7b] ss:$0 sm:$0xff]  ;;  %v5785_v62 = vld [vmem:[#allocation4 + $0x40] sm:$0xff] }
 0x1ec   :  { %v2008_v59 = vmul.f32 %v5597_v39, %v5747_v38  ;;  %7470 = vst [vmem:[#allocation14_spill] sm:$0xff] %v5773_v21  ;;  %v5775_v43 = vadd.f32 %v1959_v22, %v1951_v50  ;;  %v1990_v11 = vadd.f32 %v1987_v24, %v1979_v10  ;;  %v1780_v12 = vmul.f32 %v5749_v55, %v5561_v17  ;;  %v5793_v10 = vld [vmem:[#allocation7 + $0xbb] ss:$0 sm:$0xff] }
 0x1ed   :  { %v1788_v45 = vmul.f32 %v5753_v53, %v5563_v61  ;;  %v2028_v42 = vmul.f32 %v5543_v9, %v5761_v25  ;;  %v2029_v3 = vmul.f32 %v5547_v34, %v5761_v25  ;;  %v1741_v15 = vadd.f32 %v1738_v41, %v1730_v49 }
 0x1ee   :  { %v1749_v16 = vmul.f32 %v5785_v62, %v5559_v26  ;;  %v2036_v24 = vmul.f32 %v5551_v32, %v5773_v21  ;;  %v2037_v17 = vmul.f32 %v5555_v60, %v5773_v21  ;;  %v1688_v61 = vmul.f32 %v5547_v34, %v5565_v19 }
 0x1ef   :  { %v1696_v50 = vmul.f32 %v5555_v60, %v5567_v35  ;;  %v2009_v49 = vmul.f32 %v5601_v20, %v5747_v38  ;;  %v1830_v26 = vmul.f32 %v5749_v55, %v5593_v28  ;;  %v1838_v41 = vmul.f32 %v5753_v53, %v5595_v29  ;;  %v5812_v38 = vld [vmem:[#allocation4 + $0x58] sm:$0xff] }
 0x1f0   :  { %v2000_v8 = vadd.f32 %v1997_v31, %v1989_v47  ;;  %v2001_v32 = vadd.f32 %v1998_v52, %v1990_v11  ;;  %v1791_v9 = vadd.f32 %v1788_v45, %v1780_v12  ;;  %v1799_v34 = vmul.f32 %v5785_v62, %v5587_v46  ;;  %v5816_v47 = vld [vmem:[#allocation7 + $0xfb] ss:$0 sm:$0xff] }
 0x1f1   :  { %v2047_v60 = vmul.f32 %v5569_v63, %v5793_v10  ;;  %v2048_v22 = vmul.f32 %v5573_v36, %v5793_v10  ;;  %v1752_v30 = vadd.f32 %v1749_v16, %v1741_v15  ;;  %v1760_v28 = vmul.f32 %v5812_v38, %v5577_v6 }
 0x1f2   :  { %v2039_v21 = vadd.f32 %v2036_v24, %v2028_v42  ;;  %v2040_v29 = vadd.f32 %v2037_v17, %v2029_v3  ;;  %v1699_v52 = vadd.f32 %v1696_v50, %v1688_v61  ;;  %v1707_v46 = vmul.f32 %v5573_v36, %v5605_v13 }
 0x1f3   :  { %v1841_v12 = vadd.f32 %v1838_v41, %v1830_v26  ;;  %v1849_v31 = vmul.f32 %v5785_v62, %v5621_v44  ;;  %v1880_v11 = vmul.f32 %v5749_v55, %v5629_v2  ;;  %v1888_v45 = vmul.f32 %v5753_v53, %v5631_v54 }
 0x1f4   :  { %v1965_v6 = vrot.slane %v5775_v43, 5  ;;  %v5827_v42 = vadd.f32 %v2008_v59, %v2000_v8  ;;  %v1802_v3 = vadd.f32 %v1799_v34, %v1791_v9  ;;  %v1810_v15 = vmul.f32 %v5812_v38, %v5611_v27 }
 0x1f5   :  { %v5831_v16 = vadd.f32 %v2009_v49, %v2001_v32  ;;  %v2058_v24 = vmul.f32 %v5597_v39, %v5816_v47  ;;  %v2059_v44 = vmul.f32 %v5601_v20, %v5816_v47  ;;  %v5837_v2 = vadd.f32 %v1760_v28, %v1752_v30 }
 0x1f6   :  { %v2050_v17 = vadd.f32 %v2047_v60, %v2039_v21  ;;  %v2051_v54 = vadd.f32 %v2048_v22, %v2040_v29  ;;  %v1710_v61 = vadd.f32 %v1707_v46, %v1699_v52  ;;  %v1718_v8 = vmul.f32 %v5601_v20, %v5633_v7 }
 0x1f7   :  { %v1852_v9 = vadd.f32 %v1849_v31, %v1841_v12  ;;  %v1860_v34 = vmul.f32 %v5812_v38, %v5643_v0  ;;  %v1891_v32 = vadd.f32 %v1888_v45, %v1880_v11  ;;  %v1899_v27 = vmul.f32 %v5785_v62, %v5655_v33 }
 0x1f8   :  { %v1920_v59 = vadd.f32 %v1918_v51, %v1870_v5  ;;  %v5845_v50 = vadd.f32 %v1810_v15, %v1802_v3  ;;  %v7471_v60 = vrot.slane %v5769_v1, 5  ;;  %v1766_v21 = vrot.slane %v5837_v2, 1 }
 0x1f9   :  { %v1930_v22 = vmul.f32 %v5749_v55, %v5673_v48  ;;  %v1938_v0 = vmul.f32 %v5753_v53, %v5675_v56  ;;  %v2014_v33 = vrot.slane %v5827_v42, 6  ;;  %v2015_v5 = vrot.slane %v5831_v16, 6  ;;  %v7490_v42 = vld [vmem:[#allocation27_spill] sm:$0xff] }
 0x1fa   :  { %v1968_v30 = vsel %vm367_vm4, %v7471_v60, %v1965_v6  ;;  %v5860_v51 = vadd.f32 %v2058_v24, %v2050_v17  ;;  %v5862_v49 = vadd.f32 %v2059_v44, %v2051_v54  ;;  %v1721_v26 = vadd.f32 %v1718_v8, %v1710_v61  ;;  %v7473_v44 = vld [vmem:[#allocation22_spill] sm:$0xff] }
 0x1fb   :  { %v5864_v41 = vadd.f32 %v1860_v34, %v1852_v9  ;;  %v1902_v28 = vadd.f32 %v1899_v27, %v1891_v32  ;;  %v1910_v29 = vmul.f32 %v5812_v38, %v5671_v23  ;;  %v1816_v48 = vrot.slane %v5845_v50, 2  ;;  %v7475_v32 = vld [vmem:[#allocation14_spill] sm:$0xff] }
 0x1fc   :  { %v1949_v56 = vmul.f32 %v5785_v62, %v5701_v37  ;;  %v1689_v52 = vmul.f32 %v5749_v55, %v5565_v19  ;;  %v1697_v46 = vmul.f32 %v5753_v53, %v5567_v35  ;;  %v7472_v12 = vrot.slane %v5627_v14, 1 }
 0x1fd   :  { %v1941_v11 = vadd.f32 %v1938_v0, %v1930_v22  ;;  %v1980_v23 = vmul.f32 %v5749_v55, %v5719_v18  ;;  %v1988_v45 = vmul.f32 %v5753_v53, %v5723_v40  ;;  %v1970_v3 = vadd.f32 %v1968_v30, %v1920_v59  ;;  %v7476_v59 = vld [vmem:[#allocation25_spill] sm:$0xff]  ;;  %v7478_v22 = vld [vmem:[#allocation28_spill] sm:$0xff] }
 0x1fe   :  { %v1767_v31 = vsel %vm163_vm0, %v7472_v12, %v1766_v21  ;;  %v2018_v19 = vsel %vm418_vm5, %v2014_v33, %v2015_v5  ;;  %v2064_v35 = vrot.slane %v5860_v51, 7  ;;  %v2065_v14 = vrot.slane %v5862_v49, 7  ;;  %v7492_v51 = vld [vmem:[#allocation16_spill] sm:$0xff] }
 0x1ff   :  { %v1866_v37 = vrot.slane %v5864_v41, 3  ;;  %v1913_v15 = vadd.f32 %v1910_v29, %v1902_v28  ;;  %v1960_v18 = vmul.f32 %v5812_v38, %v5717_v57  ;;  %v1999_v40 = vmul.f32 %v5785_v62, %v5739_v58 }
 0x200   :  { %v1771_v24 = vadd.f32 %v1767_v31, %v1721_v26  ;;  %v7474_v2 = vrot.slane %v7473_v44, 2  ;;  %v1700_v54 = vadd.f32 %v1697_v46, %v1689_v52  ;;  %v1708_v61 = vmul.f32 %v5785_v62, %v5605_v13  ;;  %v7479_v46 = vld [vmem:[#allocation23_spill] sm:$0xff] }
 0x201   :  { %v1952_v8 = vadd.f32 %v1949_v56, %v1941_v11  ;;  %v1991_v9 = vadd.f32 %v1988_v45, %v1980_v23  ;;  %v2030_v34 = vmul.f32 %v5749_v55, %v5761_v25  ;;  %v2038_v57 = vmul.f32 %v5753_v53, %v7475_v32 }
 0x202   :  { %v1817_v17 = vsel %vm214_vm1, %v7474_v2, %v1816_v48  ;;  %v2020_v27 = vadd.f32 %v2018_v19, %v1970_v3  ;;  %v2068_v58 = vsel %vm469_vm6, %v2064_v35, %v2065_v14  ;;  %v7477_v50 = vrot.slane %v7476_v59, 3 }
 0x203   :  { %v1916_v13 = vrot.slane %v1913_v15, 4  ;;  %v1821_v30 = vadd.f32 %v1817_v17, %v1771_v24  ;;  %v2010_v0 = vmul.f32 %v5812_v38, %v7478_v22  ;;  %v1711_v25 = vadd.f32 %v1708_v61, %v1700_v54  ;;  %v7481_v15 = vld [vmem:[#allocation19_spill] sm:$0xff]  ;;  %v7483_v54 = vld [vmem:[#allocation20_spill] sm:$0xff] }
 0x204   :  { %v1867_v60 = vsel %vm265_vm2, %v7477_v50, %v1866_v37  ;;  %v1719_v49 = vmul.f32 %v5812_v38, %v5633_v7  ;;  %v1963_v26 = vadd.f32 %v1960_v18, %v1952_v8  ;;  %v2002_v41 = vadd.f32 %v1999_v40, %v1991_v9  ;;  %v7487_v50 = vld [vmem:[#allocation21_spill] sm:$0xff] }
 0x205   :  { %v2041_v28 = vadd.f32 %v2038_v57, %v2030_v34  ;;  %v2049_v29 = vmul.f32 %v5785_v62, %v5793_v10  ;;  %v2070_v56 = vadd.f32 %v2068_v58, %v2020_v27  ;;  %v1871_v52 = vadd.f32 %v1867_v60, %v1821_v30  ;;  %v7485_v57 = vld [vmem:[#allocation26_spill] sm:$0xff] }
 0x206   :  { %v7480_v12 = vrot.slane %v7479_v46, 4  ;;  %v2060_v11 = vmul.f32 %v5812_v38, %v5816_v47  ;;  %v1722_v23 = vadd.f32 %v1719_v49, %v1711_v25  ;;  %v1966_v3 = vrot.slane %v1963_v26, 5 }
 0x207   :  { %v2013_v7 = vadd.f32 %v2010_v0, %v2002_v41  ;;  %v2052_v19 = vadd.f32 %v2049_v29, %v2041_v28  ;;  %v7482_v18 = vrot.slane %v7481_v15, 1  ;;  %v7484_v61 = vrot.slane %v7483_v54, 2  ;;  %v5967_v28 = vld [vmem:[#allocation7 + $0xa] ss:$0 sm:$0xff] }
 0x208   :  { %v1917_v31 = vsel %vm316_vm3, %v7480_v12, %v1916_v13  ;;  %v1967_v47 = vsel %vm367_vm4, %v1965_v6, %v1966_v3  ;;  %v7486_v43 = vrot.slane %v7485_v57, 3  ;;  %v5969_v29 = vld [vmem:[#allocation7 + $0x4a] ss:$0 sm:$0xff]  ;;  %v6017_v57 = vld [vmem:[#allocation7 + $0x82] ss:$0 sm:$0xff] }
 0x209   :  { %v1769_v10 = vsel %vm163_vm0, %v1766_v21, %v7482_v18  ;;  %v1921_v24 = vadd.f32 %v1917_v31, %v1871_v52  ;;  %v2016_v2 = vrot.slane %v2013_v7, 6  ;;  %v2063_v17 = vadd.f32 %v2060_v11, %v2052_v19  ;;  %v5979_v31 = vld [vmem:[#allocation7 + $0x8a] ss:$0 sm:$0xff]  ;;  %v5981_v11 = vld [vmem:[#allocation7 + $0x12] ss:$0 sm:$0xff] }
 0x20a   :  { %v1772_v44 = vadd.f32 %v1769_v10, %v1722_v23  ;;  %v1819_v8 = vsel %vm214_vm1, %v1816_v48, %v7484_v61  ;;  %v1869_v6 = vsel %vm265_vm2, %v1866_v37, %v7486_v43  ;;  %v7488_v48 = vrot.slane %v7487_v50, 4  ;;  %v5983_v23 = vld [vmem:[#allocation7 + $0x52] ss:$0 sm:$0xff]  ;;  %v5993_v10 = vld [vmem:[#allocation7 + $0xca] ss:$0 sm:$0xff] }
 0x20b   :  { %v1971_v9 = vadd.f32 %v1967_v47, %v1921_v24  ;;  %v2017_v21 = vsel %vm418_vm5, %v2015_v5, %v2016_v2  ;;  %v2066_v32 = vrot.slane %v2063_v17, 7  ;;  %v7489_v5 = vrot.slane %v5769_v1, 5  ;;  %v6009_v61 = vld [vmem:[#allocation7 + $0x1a] ss:$0 sm:$0xff] }
 0x20c   :  { %v1822_v34 = vadd.f32 %v1819_v8, %v1772_v44  ;;  %v1919_v60 = vsel %vm316_vm3, %v1916_v13, %v7488_v48  ;;  %v2136_v46 = vmul.f32 %v7492_v51, %v5969_v29  ;;  %v2147_v15 = vmul.f32 %v5569_v63, %v5979_v31  ;;  %v6011_v8 = vld [vmem:[#allocation7 + $0x5a] ss:$0 sm:$0xff] }
 0x20d   :  { %v2021_v27 = vadd.f32 %v2017_v21, %v1971_v9  ;;  %v2067_v59 = vsel %vm469_vm6, %v2065_v14, %v2066_v32  ;;  %v1969_v22 = vsel %vm367_vm4, %v1966_v3, %v7489_v5  ;;  %v2019_v14 = vsel %vm418_vm5, %v2016_v2, %v2014_v33  ;;  %v5987_v3 = vld [vmem:[#allocation7 + $0x42] ss:$0 sm:$0xff]  ;;  %v6003_v2 = vld [vmem:[#allocation7 + $0x92] ss:$0 sm:$0xff] }
 0x20e   :  { %v1872_v58 = vadd.f32 %v1869_v6, %v1822_v34  ;;  %v2069_v13 = vsel %vm469_vm6, %v2066_v32, %v2064_v35  ;;  %v2128_v33 = vmul.f32 %v7490_v42, %v5967_v28  ;;  %v7493_v35 = vld [vmem:[#allocation18_spill] sm:$0xff]  ;;  %v2148_v18 = vmul.f32 %v5573_v36, %v5979_v31 }
 0x20f   :  { %v2071_v16 = vadd.f32 %v2067_v59, %v2021_v27  ;;  %v2137_v12 = vmul.f32 %v7493_v35, %v5969_v29  ;;  %v2186_v44 = vmul.f32 %v7492_v51, %v5983_v23  ;;  %v2187_v47 = vmul.f32 %v7493_v35, %v5983_v23  ;;  %v6023_v59 = vld [vmem:[#allocation7 + $0xd2] ss:$0 sm:$0xff] }
 0x210   :  { %v1922_v30 = vadd.f32 %v1919_v60, %v1872_v58  ;;  %v2139_v7 = vadd.f32 %v2136_v46, %v2128_v33  ;;  %v2095_v54 = vmul.f32 %v7492_v51, %v5987_v3  ;;  %v2158_v21 = vmul.f32 %v5597_v39, %v5993_v10 }
 0x211   :  { %v2159_v32 = vmul.f32 %v5601_v20, %v5993_v10  ;;  %v2197_v27 = vmul.f32 %v5569_v63, %v6003_v2  ;;  %v2198_v58 = vmul.f32 %v5573_v36, %v6003_v2  ;;  %v2228_v50 = vmul.f32 %v7490_v42, %v6009_v61 }
 0x212   :  { %v1972_v37 = vadd.f32 %v1969_v22, %v1922_v30  ;;  %v2150_v9 = vadd.f32 %v2147_v15, %v2139_v7  ;;  %v2236_v60 = vmul.f32 %v7492_v51, %v6011_v8  ;;  %v6033_v30 = vld [vmem:[#allocation7 + $0x9a] ss:$0 sm:$0xff]  ;;  %v2106_v22 = vmul.f32 %v5569_v63, %v6017_v57 }
 0x213   :  { %v2247_v46 = vmul.f32 %v5569_v63, %v6033_v30  ;;  %v6055_v7 = vld [vmem:[#allocation7 + $0xda] ss:$0 sm:$0xff] }
 0x214   :  { %v2022_v49 = vadd.f32 %v2019_v14, %v1972_v37  ;;  %v6041_v37 = vld [vmem:[#allocation7 + $0x22] ss:$0 sm:$0xff]  ;;  %v2239_v33 = vadd.f32 %v2236_v60, %v2228_v50 }
 0x215   :  { %v6043_v14 = vld [vmem:[#allocation7 + $0x62] ss:$0 sm:$0xff] }
 0x216   :  { %v2072_v1 = vadd.f32 %v2069_v13, %v2022_v49  ;;  %v6045_v49 = vld [vmem:[#allocation7 + $0xc2] ss:$0 sm:$0xff] }
 0x217   :  { %v6083_v60 = vld [vmem:[#allocation7 + $0xe2] ss:$0 sm:$0xff] }
 0x236   :  { %v1677_v45 = vpop.permute.xlu1 %1676 }
 0x237   :  { %v2073_v40 = vadd.f32 %v2070_v56, %v1677_v45  ;;  %v7491_v56 = vld [vmem:[#allocation15_spill] sm:$0xff]  ;;  %v5985_v45 = vld [vmem:[#allocation7 + $0x2] ss:$0 sm:$0xff] }
 0x238   :  { %v2129_v52 = vmul.f32 %v7491_v56, %v5967_v28  ;;  %v2179_v24 = vmul.f32 %v7491_v56, %v5981_v11  ;;  %v2087_v17 = vmul.f32 %v7490_v42, %v5985_v45  ;;  %v2229_v48 = vmul.f32 %v7491_v56, %v6009_v61 }
 0x239   :  { %2076 = vrot.lane.b32.xlu0 %v2073_v40, %s3767_s2  ;;  %v2178_v40 = vmul.f32 %v7490_v42, %v5981_v11  ;;  %v2279_v15 = vmul.f32 %v7491_v56, %v6041_v37 }
 0x23a   :  { %v2140_v19 = vadd.f32 %v2137_v12, %v2129_v52  ;;  %v2190_v6 = vadd.f32 %v2187_v47, %v2179_v24  ;;  %v2098_v5 = vadd.f32 %v2095_v54, %v2087_v17  ;;  %v2248_v12 = vmul.f32 %v5573_v36, %v6033_v30  ;;  %v6067_v47 = vld [vmem:[#allocation7 + $0xa2] ss:$0 sm:$0xff] }
 0x23b   :  { %v2189_v43 = vadd.f32 %v2186_v44, %v2178_v40  ;;  %v2287_v40 = vmul.f32 %v7493_v35, %v6043_v14  ;;  %v2117_v44 = vmul.f32 %v5597_v39, %v6045_v49  ;;  %v2297_v50 = vmul.f32 %v5569_v63, %v6067_v47 }
 0x23c   :  { %v2151_v34 = vadd.f32 %v2148_v18, %v2140_v19  ;;  %v2278_v19 = vmul.f32 %v7490_v42, %v6041_v37  ;;  %v2286_v18 = vmul.f32 %v7492_v51, %v6043_v14  ;;  %v2109_v24 = vadd.f32 %v2106_v22, %v2098_v5  ;;  %v6087_v5 = vld [vmem:[#allocation7 + $0x6a] ss:$0 sm:$0xff] }
 0x23d   :  { %v2200_v13 = vadd.f32 %v2197_v27, %v2189_v43  ;;  %v2258_v43 = vmul.f32 %v5597_v39, %v6055_v7 }
 0x23e   :  { %v2289_v27 = vadd.f32 %v2286_v18, %v2278_v19  ;;  %v2120_v22 = vadd.f32 %v2117_v44, %v2109_v24  ;;  %v2336_v18 = vmul.f32 %v7492_v51, %v6087_v5  ;;  %v2337_v24 = vmul.f32 %v7493_v35, %v6087_v5  ;;  %v6113_v44 = vld [vmem:[#allocation7 + $0xaa] ss:$0 sm:$0xff] }
 0x249   :  { %v1679_v0 = vpop.permute.xlu0 %1678 }
 0x24a   :  { %v2074_v25 = vadd.f32 %v2071_v16, %v1679_v0  ;;  %v2237_v16 = vmul.f32 %v7493_v35, %v6011_v8  ;;  %v6037_v0 = vadd.f32 %v2158_v21, %v2150_v9  ;;  %v2250_v21 = vadd.f32 %v2247_v46, %v2239_v33 }
 0x24b   :  { %v2309_v46 = vmul.f32 %v5601_v20, %v6083_v60 }
 0x24c   :  { %2078 = vrot.lane.b32.xlu1 %v2074_v25, %s3767_s2  ;;  %7494 = vst [vmem:[#allocation24_spill] sm:$0xff] %v6037_v0  ;;  %v6039_v25 = vadd.f32 %v2159_v32, %v2151_v34  ;;  %v2240_v52 = vadd.f32 %v2237_v16, %v2229_v48  ;;  %v7274_v17 = vrot.slane %v6037_v0, 1  ;;  %v2298_v48 = vmul.f32 %v5573_v36, %v6067_v47  ;;  %v6085_v16 = vld [vmem:[#allocation7 + $0x2a] ss:$0 sm:$0xff] }
 0x24e   :  { %v7277_v54 = vrot.slane %v6039_v25, 1  ;;  %v2251_v32 = vadd.f32 %v2248_v12, %v2240_v52  ;;  %v2308_v52 = vmul.f32 %v5597_v39, %v6083_v60  ;;  %v2300_v12 = vadd.f32 %v2297_v50, %v2289_v27 }
 0x250   :  { %v6123_v27 = vadd.f32 %v2308_v52, %v2300_v12 }
 0x252   :  { %7499 = vst [vmem:[#allocation28_spill] sm:$0xff] %v6123_v27  ;;  %v7505_v0 = vrot.slane %v6123_v27, 4  ;;  %v2188_v27 = vmul.f32 %v5753_v53, %v5983_v23  ;;  %v2088_v23 = vmul.f32 %v7491_v56, %v5985_v45 }
 0x254   :  { %v1681_v26 = vpop.permute.xlu1 %1680 }
 0x255   :  { %v2075_v41 = vadd.f32 %v2072_v1, %v1681_v26  ;;  %v2201_v1 = vadd.f32 %v2198_v58, %v2190_v6  ;;  %v2208_v26 = vmul.f32 %v5597_v39, %v6023_v59  ;;  %v2259_v6 = vmul.f32 %v5601_v20, %v6055_v7 }
 0x256   :  { %v2290_v58 = vadd.f32 %v2287_v40, %v2279_v15  ;;  %v2328_v15 = vmul.f32 %v7490_v42, %v6085_v16  ;;  %v2329_v40 = vmul.f32 %v7491_v56, %v6085_v16 }
 0x257   :  { %2080 = vrot.lane.b32.xlu0 %v2075_v41, %s3767_s2  ;;  %v2209_v41 = vmul.f32 %v5601_v20, %v6023_v59  ;;  %v6071_v9 = vadd.f32 %v2208_v26, %v2200_v13  ;;  %v2168_v13 = vsel %vm163_vm0, %v7274_v17, %v7277_v54  ;;  %v6099_v33 = vadd.f32 %v2259_v6, %v2251_v32 }
 0x258   :  { %v2301_v19 = vadd.f32 %v2298_v48, %v2290_v58  ;;  %v2339_v50 = vadd.f32 %v2336_v18, %v2328_v15  ;;  %v2347_v48 = vmul.f32 %v5569_v63, %v6113_v44  ;;  %v2340_v17 = vadd.f32 %v2337_v24, %v2329_v40  ;;  %v6151_v24 = vld [vmem:[#allocation7 + $0xb2] ss:$0 sm:$0xff]  ;;  %v6169_v15 = vld [vmem:[#allocation7 + $0x3a] ss:$0 sm:$0xff] }
 0x259   :  { %7495 = vst [vmem:[#allocation17_spill] sm:$0xff] %v6071_v9  ;;  %v6073_v34 = vadd.f32 %v2209_v41, %v2201_v1  ;;  %v7275_v1 = vrot.slane %v6071_v9, 2  ;;  %v6097_v41 = vadd.f32 %v2258_v43, %v2250_v21  ;;  %7498 = vst [vmem:[#allocation25_spill] sm:$0xff] %v6099_v33  ;;  %v2170_v21 = vadd.f32 %v2168_v13, %v2120_v22  ;;  %v6129_v22 = vld [vmem:[#allocation7 + $0xea] ss:$0 sm:$0xff] }
 0x25a   :  { %v7279_v6 = vrot.slane %v6099_v33, 3  ;;  %v6125_v58 = vadd.f32 %v2309_v46, %v2301_v19  ;;  %7501 = vst [vmem:[#allocation19_spill] sm:$0xff] %v6129_v22  ;;  %v6131_v13 = vld [vmem:[#allocation7 + $0x32] ss:$0 sm:$0xff]  ;;  %v2358_v46 = vmul.f32 %v5597_v39, %v6129_v22  ;;  %v2350_v18 = vadd.f32 %v2347_v48, %v2339_v50  ;;  %7502 = vst [vmem:[#allocation20_spill] sm:$0xff] %v6151_v24 }
 0x25b   :  { %7496 = vst [vmem:[#allocation22_spill] sm:$0xff] %v6073_v34  ;;  %v7276_v26 = vrot.slane %v6073_v34, 2  ;;  %7497 = vst [vmem:[#allocation14_spill] sm:$0xff] %v6097_v41  ;;  %v7278_v43 = vrot.slane %v6097_v41, 3  ;;  %v2378_v12 = vmul.f32 %v7490_v42, %v6131_v13  ;;  %v6159_v41 = vld [vmem:[#allocation7 + $0xf2] ss:$0 sm:$0xff]  ;;  %v2130_v50 = vmul.f32 %v5749_v55, %v5967_v28 }
 0x25c   :  { %7500 = vst [vmem:[#allocation23_spill] sm:$0xff] %v6125_v58  ;;  %7503 = vst [vmem:[#allocation26_spill] sm:$0xff] %v6159_v41  ;;  %v2138_v48 = vmul.f32 %v5753_v53, %v5969_v29  ;;  %v7504_v9 = vrot.slane %v6125_v58, 4  ;;  %v6177_v28 = vadd.f32 %v2358_v46, %v2350_v18  ;;  %v2408_v29 = vmul.f32 %v5597_v39, %v6159_v41 }
 0x25d   :  { %v2218_v32 = vsel %vm214_vm1, %v7275_v1, %v7276_v26  ;;  %v2348_v1 = vmul.f32 %v5573_v36, %v6113_v44  ;;  %v6135_v26 = vld [vmem:[#allocation7 + $0x72] ss:$0 sm:$0xff]  ;;  %v2268_v52 = vsel %vm265_vm2, %v7278_v43, %v7279_v6  ;;  %v2379_v43 = vmul.f32 %v7491_v56, %v6131_v13 }
 0x25e   :  { %v2220_v54 = vadd.f32 %v2218_v32, %v2170_v21  ;;  %v2386_v40 = vmul.f32 %v7492_v51, %v6135_v26  ;;  %v2359_v32 = vmul.f32 %v5601_v20, %v6129_v22  ;;  %v2387_v6 = vmul.f32 %v7493_v35, %v6135_v26 }
 0x25f   :  { %v2351_v21 = vadd.f32 %v2348_v1, %v2340_v17  ;;  %v2397_v17 = vmul.f32 %v5569_v63, %v6151_v24  ;;  %v2398_v1 = vmul.f32 %v5573_v36, %v6151_v24  ;;  %v2318_v33 = vsel %vm316_vm3, %v7505_v0, %v7504_v9 }
 0x260   :  { %v2270_v19 = vadd.f32 %v2268_v52, %v2220_v54  ;;  %v2389_v34 = vadd.f32 %v2386_v40, %v2378_v12  ;;  %v6181_v54 = vld [vmem:[#allocation7 + $0x7a] ss:$0 sm:$0xff]  ;;  %v2390_v24 = vadd.f32 %v2387_v6, %v2379_v43  ;;  %v2180_v22 = vmul.f32 %v5749_v55, %v5981_v11 }
 0x261   :  { %7506 = vst [vmem:[#allocation21_spill] sm:$0xff] %v6181_v54  ;;  %v6183_v52 = vadd.f32 %v2359_v32, %v2351_v21  ;;  %v2428_v0 = vmul.f32 %v7490_v42, %v6169_v15  ;;  %v2429_v9 = vmul.f32 %v7491_v56, %v6169_v15  ;;  %v2141_v46 = vadd.f32 %v2138_v48, %v2130_v50  ;;  %v6199_v11 = vld [vmem:[#allocation7 + $0xba] ss:$0 sm:$0xff] }
 0x262   :  { %v2149_v12 = vmul.f32 %v5785_v62, %v5979_v31  ;;  %v2436_v18 = vmul.f32 %v7492_v51, %v6181_v54  ;;  %v2437_v43 = vmul.f32 %v7493_v35, %v6181_v54  ;;  %v2096_v42 = vmul.f32 %v7493_v35, %v5987_v3  ;;  %v6220_v54 = vld [vmem:[#allocation7 + $0xfa] ss:$0 sm:$0xff] }
 0x263   :  { %v2409_v40 = vmul.f32 %v5601_v20, %v6159_v41  ;;  %v2230_v31 = vmul.f32 %v5749_v55, %v6009_v61  ;;  %v2238_v51 = vmul.f32 %v5753_v53, %v6011_v8  ;;  %v2400_v21 = vadd.f32 %v2397_v17, %v2389_v34 }
 0x264   :  { %v2401_v32 = vadd.f32 %v2398_v1, %v2390_v24  ;;  %v2191_v50 = vadd.f32 %v2188_v27, %v2180_v22  ;;  %v2199_v56 = vmul.f32 %v5785_v62, %v6003_v2  ;;  %v2447_v35 = vmul.f32 %v5569_v63, %v6199_v11 }
 0x265   :  { %v2448_v48 = vmul.f32 %v5573_v36, %v6199_v11  ;;  %v2152_v6 = vadd.f32 %v2149_v12, %v2141_v46  ;;  %v2160_v58 = vmul.f32 %v5812_v38, %v5993_v10  ;;  %v2439_v61 = vadd.f32 %v2436_v18, %v2428_v0 }
 0x266   :  { %v2440_v41 = vadd.f32 %v2437_v43, %v2429_v9  ;;  %v2099_v8 = vadd.f32 %v2096_v42, %v2088_v23  ;;  %v2107_v34 = vmul.f32 %v5573_v36, %v6017_v57  ;;  %v2241_v27 = vadd.f32 %v2238_v51, %v2230_v31 }
 0x267   :  { %v2249_v2 = vmul.f32 %v5785_v62, %v6033_v30  ;;  %v2280_v63 = vmul.f32 %v5749_v55, %v6041_v37  ;;  %v2288_v22 = vmul.f32 %v5753_v53, %v6043_v14  ;;  %v2365_v10 = vrot.slane %v6183_v52, 5 }
 0x268   :  { %v6231_v24 = vadd.f32 %v2408_v29, %v2400_v21  ;;  %v2202_v17 = vadd.f32 %v2199_v56, %v2191_v50  ;;  %v2210_v1 = vmul.f32 %v5812_v38, %v6023_v59  ;;  %v6235_v0 = vadd.f32 %v2409_v40, %v2401_v32 }
 0x269   :  { %v2458_v36 = vmul.f32 %v5597_v39, %v6220_v54  ;;  %v2459_v30 = vmul.f32 %v5601_v20, %v6220_v54  ;;  %v6241_v37 = vadd.f32 %v2160_v58, %v2152_v6  ;;  %v2450_v9 = vadd.f32 %v2447_v35, %v2439_v61 }
 0x26a   :  { %v2451_v14 = vadd.f32 %v2448_v48, %v2440_v41  ;;  %v2110_v46 = vadd.f32 %v2107_v34, %v2099_v8  ;;  %v2118_v29 = vmul.f32 %v5601_v20, %v6045_v49  ;;  %v2252_v12 = vadd.f32 %v2249_v2, %v2241_v27  ;;  %v7509_v27 = vld [vmem:[#allocation19_spill] sm:$0xff]  ;;  %v7510_v2 = vld [vmem:[#allocation20_spill] sm:$0xff] }
 0x26b   :  { %v2260_v59 = vmul.f32 %v5812_v38, %v6055_v7  ;;  %v2291_v18 = vadd.f32 %v2288_v22, %v2280_v63  ;;  %v2299_v43 = vmul.f32 %v5785_v62, %v6067_v47  ;;  %v2320_v39 = vadd.f32 %v2318_v33, %v2270_v19  ;;  %v7511_v22 = vld [vmem:[#allocation22_spill] sm:$0xff] }
 0x26c   :  { %v6249_v23 = vadd.f32 %v2210_v1, %v2202_v17  ;;  %v7507_v58 = vrot.slane %v6177_v28, 5  ;;  %v2166_v20 = vrot.slane %v6241_v37, 1  ;;  %v2330_v42 = vmul.f32 %v5749_v55, %v6085_v16 }
 0x26d   :  { %v2338_v7 = vmul.f32 %v5753_v53, %v6087_v5  ;;  %v2414_v47 = vrot.slane %v6231_v24, 6  ;;  %v2415_v33 = vrot.slane %v6235_v0, 6  ;;  %v6264_v19 = vadd.f32 %v2458_v36, %v2450_v9  ;;  %v6375_v24 = vld [vmem:[#allocation4] sm:$0xff] }
 0x26e   :  { %v2368_v41 = vsel %vm367_vm4, %v7507_v58, %v2365_v10  ;;  %v6266_v6 = vadd.f32 %v2459_v30, %v2451_v14  ;;  %v2121_v40 = vadd.f32 %v2118_v29, %v2110_v46  ;;  %v6268_v31 = vadd.f32 %v2260_v59, %v2252_v12  ;;  %v7513_v46 = vld [vmem:[#allocation21_spill] sm:$0xff]  ;;  %v7516_v58 = vld [vmem:[#allocation26_spill] sm:$0xff]  ;;  %7528 = vst [vmem:[#allocation27_spill] sm:$0xff] %v6375_v24 }
 0x26f   :  { %v2302_v51 = vadd.f32 %v2299_v43, %v2291_v18  ;;  %v2310_v21 = vmul.f32 %v5812_v38, %v6083_v60  ;;  %v2216_v16 = vrot.slane %v6249_v23, 2  ;;  %v2349_v5 = vmul.f32 %v5785_v62, %v6113_v44  ;;  %v7514_v18 = vld [vmem:[#allocation25_spill] sm:$0xff] }
 0x270   :  { %v2089_v32 = vmul.f32 %v5749_v55, %v5985_v45  ;;  %v2097_v50 = vmul.f32 %v5753_v53, %v5987_v3  ;;  %v7508_v56 = vrot.slane %v6039_v25, 1  ;;  %v2341_v48 = vadd.f32 %v2338_v7, %v2330_v42 }
 0x271   :  { %v2380_v60 = vmul.f32 %v5749_v55, %v6131_v13  ;;  %v2388_v61 = vmul.f32 %v5753_v53, %v6135_v26  ;;  %v2370_v8 = vadd.f32 %v2368_v41, %v2320_v39  ;;  %v2418_v45 = vsel %vm418_vm5, %v2414_v47, %v2415_v33 }
 0x272   :  { %v2167_v35 = vsel %vm163_vm0, %v7508_v56, %v2166_v20  ;;  %v2464_v3 = vrot.slane %v6264_v19, 7  ;;  %v2465_v25 = vrot.slane %v6266_v6, 7  ;;  %v2266_v44 = vrot.slane %v6268_v31, 3 }
 0x273   :  { %v2313_v34 = vadd.f32 %v2310_v21, %v2302_v51  ;;  %v2360_v13 = vmul.f32 %v5812_v38, %v7509_v27  ;;  %v2399_v26 = vmul.f32 %v5785_v62, %v7510_v2  ;;  %v2171_v63 = vadd.f32 %v2167_v35, %v2121_v40  ;;  %v7517_v51 = vld [vmem:[#allocation23_spill] sm:$0xff]  ;;  %v7521_v27 = vld [vmem:[#allocation17_spill] sm:$0xff] }
 0x274   :  { %v7512_v17 = vrot.slane %v7511_v22, 2  ;;  %v2100_v36 = vadd.f32 %v2097_v50, %v2089_v32  ;;  %v2108_v30 = vmul.f32 %v5785_v62, %v6017_v57  ;;  %v2352_v37 = vadd.f32 %v2349_v5, %v2341_v48 }
 0x275   :  { %v2391_v9 = vadd.f32 %v2388_v61, %v2380_v60  ;;  %v2430_v14 = vmul.f32 %v5749_v55, %v6169_v15  ;;  %v2438_v29 = vmul.f32 %v5753_v53, %v7513_v46  ;;  %v2420_v12 = vadd.f32 %v2418_v45, %v2370_v8  ;;  %v7519_v60 = vld [vmem:[#allocation24_spill] sm:$0xff] }
 0x276   :  { %v2217_v1 = vsel %vm214_vm1, %v7512_v17, %v2216_v16  ;;  %v2468_v59 = vsel %vm469_vm6, %v2464_v3, %v2465_v25  ;;  %v7515_v43 = vrot.slane %v7514_v18, 3  ;;  %v2316_v57 = vrot.slane %v2313_v34, 4  ;;  %v7523_v17 = vld [vmem:[#allocation14_spill] sm:$0xff] }
 0x277   :  { %v2221_v23 = vadd.f32 %v2217_v1, %v2171_v63  ;;  %v2410_v41 = vmul.f32 %v5812_v38, %v7516_v58  ;;  %v2111_v55 = vadd.f32 %v2108_v30, %v2100_v36  ;;  %v2119_v53 = vmul.f32 %v5812_v38, %v6045_v49  ;;  %v6379_v58 = vld [vmem:[#allocation4 + $0x8] sm:$0xff] }
 0x278   :  { %v2267_v39 = vsel %vm265_vm2, %v7515_v43, %v2266_v44  ;;  %v2363_v15 = vadd.f32 %v2360_v13, %v2352_v37  ;;  %v2402_v42 = vadd.f32 %v2399_v26, %v2391_v9  ;;  %v2441_v7 = vadd.f32 %v2438_v29, %v2430_v14  ;;  %v7525_v37 = vld [vmem:[#allocation28_spill] sm:$0xff]  ;;  %7529 = vst [vmem:[#allocation15_spill] sm:$0xff] %v6379_v58 }
 0x279   :  { %v2449_v6 = vmul.f32 %v5785_v62, %v6199_v11  ;;  %v2470_v40 = vadd.f32 %v2468_v59, %v2420_v12  ;;  %v2271_v31 = vadd.f32 %v2267_v39, %v2221_v23  ;;  %v7518_v21 = vrot.slane %v7517_v51, 4  ;;  %v6373_v23 = vld [vmem:[#allocation7 + $0x49] ss:$0 sm:$0xff] }
 0x27a   :  { %v2460_v32 = vmul.f32 %v5812_v38, %v6220_v54  ;;  %v2122_v50 = vadd.f32 %v2119_v53, %v2111_v55  ;;  %v2366_v35 = vrot.slane %v2363_v15, 5  ;;  %v2413_v49 = vadd.f32 %v2410_v41, %v2402_v42  ;;  %v6387_v55 = vld [vmem:[#allocation4 + $0x20] sm:$0xff]  ;;  %v6391_v15 = vld [vmem:[#allocation7 + $0x89] ss:$0 sm:$0xff]  ;;  %v6393_v42 = vld [vmem:[#allocation7 + $0x11] ss:$0 sm:$0xff] }
 0x27b   :  { %v2317_v5 = vsel %vm316_vm3, %v7518_v21, %v2316_v57  ;;  %v2452_v48 = vadd.f32 %v2449_v6, %v2441_v7  ;;  %v7520_v61 = vrot.slane %v7519_v60, 1  ;;  %v7522_v13 = vrot.slane %v7521_v27, 2  ;;  %7531 = vst [vmem:[#allocation18_spill] sm:$0xff] %v6387_v55  ;;  %v6395_v7 = vld [vmem:[#allocation7 + $0x51] ss:$0 sm:$0xff] }
 0x27c   :  { %v2321_v8 = vadd.f32 %v2317_v5, %v2271_v31  ;;  %v2367_v38 = vsel %vm367_vm4, %v2365_v10, %v2366_v35  ;;  %v2416_v54 = vrot.slane %v2413_v49, 6  ;;  %v7524_v52 = vrot.slane %v7523_v17, 3  ;;  %v6397_v6 = vld [vmem:[#allocation7 + $0x1] ss:$0 sm:$0xff]  ;;  %v6401_v21 = vld [vmem:[#allocation4 + $0x30] sm:$0xff] }
 0x27d   :  { %v2169_v62 = vsel %vm163_vm0, %v2166_v20, %v7520_v61  ;;  %v2463_v34 = vadd.f32 %v2460_v32, %v2452_v48  ;;  %v2219_v2 = vsel %vm214_vm1, %v2216_v16, %v7522_v13  ;;  %v7526_v16 = vrot.slane %v7525_v37, 4  ;;  %v6405_v32 = vld [vmem:[#allocation4 + $0x38] sm:$0xff]  ;;  %v6419_v61 = vld [vmem:[#allocation7 + $0x91] ss:$0 sm:$0xff] }
 0x27e   :  { %v2172_v45 = vadd.f32 %v2169_v62, %v2122_v50  ;;  %v2371_v26 = vadd.f32 %v2367_v38, %v2321_v8  ;;  %v2417_v20 = vsel %vm418_vm5, %v2415_v33, %v2416_v54  ;;  %v2269_v10 = vsel %vm265_vm2, %v2266_v44, %v7524_v52  ;;  %v6425_v8 = vld [vmem:[#allocation7 + $0x19] ss:$0 sm:$0xff]  ;;  %v6433_v13 = vld [vmem:[#allocation4 + $0x50] sm:$0xff] }
 0x27f   :  { %v2466_v22 = vrot.slane %v2463_v34, 7  ;;  %v2319_v9 = vsel %vm316_vm3, %v2316_v57, %v7526_v16  ;;  %v7527_v33 = vrot.slane %v6177_v28, 5  ;;  %v6371_v57 = vld [vmem:[#allocation7 + $0x9] ss:$0 sm:$0xff]  ;;  %v2537_v53 = vmul.f32 %v6387_v55, %v6373_v23  ;;  %v6443_v52 = vld [vmem:[#allocation7 + $0xd1] ss:$0 sm:$0xff] }
 0x280   :  { %v2222_v63 = vadd.f32 %v2219_v2, %v2172_v45  ;;  %v2421_v1 = vadd.f32 %v2417_v20, %v2371_v26  ;;  %v2529_v19 = vmul.f32 %v6379_v58, %v6371_v57  ;;  %v2547_v5 = vmul.f32 %v6401_v21, %v6391_v15  ;;  %v6427_v45 = vld [vmem:[#allocation7 + $0x59] ss:$0 sm:$0xff]  ;;  %v6429_v34 = vld [vmem:[#allocation4 + $0x48] sm:$0xff]  ;;  %v6437_v26 = vld [vmem:[#allocation7 + $0x81] ss:$0 sm:$0xff] }
 0x281   :  { %v2467_v30 = vsel %vm469_vm6, %v2465_v25, %v2466_v22  ;;  %v2369_v46 = vsel %vm367_vm4, %v2366_v35, %v7527_v33  ;;  %v2419_v25 = vsel %vm418_vm5, %v2416_v54, %v2414_v47  ;;  %v2469_v18 = vsel %vm469_vm6, %v2466_v22, %v2464_v3  ;;  %v6383_v3 = vld [vmem:[#allocation4 + $0x18] sm:$0xff]  ;;  %v6461_v33 = vld [vmem:[#allocation7 + $0x21] ss:$0 sm:$0xff] }
 0x282   :  { %v2272_v36 = vadd.f32 %v2269_v10, %v2222_v63  ;;  %v2471_v0 = vadd.f32 %v2467_v30, %v2421_v1  ;;  %v2528_v47 = vmul.f32 %v6375_v24, %v6371_v57  ;;  %7530 = vst [vmem:[#allocation16_spill] sm:$0xff] %v6383_v3  ;;  %v2536_v41 = vmul.f32 %v6383_v3, %v6373_v23  ;;  %v6453_v37 = vld [vmem:[#allocation7 + $0x99] ss:$0 sm:$0xff] }
 0x283   :  { %v2540_v51 = vadd.f32 %v2537_v53, %v2529_v19  ;;  %v2548_v50 = vmul.f32 %v6405_v32, %v6391_v15  ;;  %v2578_v35 = vmul.f32 %v6375_v24, %v6393_v42  ;;  %v2579_v49 = vmul.f32 %v6379_v58, %v6393_v42 }
 0x284   :  { %v2322_v14 = vadd.f32 %v2319_v9, %v2272_v36  ;;  %v2539_v31 = vadd.f32 %v2536_v41, %v2528_v47  ;;  %v2586_v48 = vmul.f32 %v6383_v3, %v6395_v7  ;;  %v2587_v60 = vmul.f32 %v6387_v55, %v6395_v7  ;;  %v6475_v47 = vld [vmem:[#allocation7 + $0xd9] ss:$0 sm:$0xff] }
 0x285   :  { %v2487_v62 = vmul.f32 %v6375_v24, %v6397_v6  ;;  %v2551_v54 = vadd.f32 %v2548_v50, %v2540_v51  ;;  %v2597_v22 = vmul.f32 %v6401_v21, %v6419_v61  ;;  %v2598_v17 = vmul.f32 %v6405_v32, %v6419_v61  ;;  %v6487_v50 = vld [vmem:[#allocation7 + $0xa1] ss:$0 sm:$0xff] }
 0x286   :  { %v2372_v44 = vadd.f32 %v2369_v46, %v2322_v14  ;;  %v2550_v38 = vadd.f32 %v2547_v5, %v2539_v31  ;;  %v2589_v63 = vadd.f32 %v2586_v48, %v2578_v35  ;;  %v2590_v20 = vadd.f32 %v2587_v60, %v2579_v49  ;;  %v6463_v46 = vld [vmem:[#allocation7 + $0x61] ss:$0 sm:$0xff] }
 0x287   :  { %v2628_v10 = vmul.f32 %v6375_v24, %v6425_v8  ;;  %v2629_v1 = vmul.f32 %v6379_v58, %v6425_v8  ;;  %v2636_v36 = vmul.f32 %v6383_v3, %v6427_v45  ;;  %v2637_v30 = vmul.f32 %v6387_v55, %v6427_v45 }
 0x288   :  { %v2422_v59 = vadd.f32 %v2419_v25, %v2372_v44  ;;  %v2506_v9 = vmul.f32 %v6401_v21, %v6437_v26  ;;  %v2601_v44 = vadd.f32 %v2598_v17, %v2590_v20  ;;  %v2608_v25 = vmul.f32 %v6429_v34, %v6443_v52  ;;  %v6505_v17 = vld [vmem:[#allocation7 + $0x29] ss:$0 sm:$0xff] }
 0x289   :  { %v2678_v19 = vmul.f32 %v6375_v24, %v6461_v33  ;;  %v2679_v41 = vmul.f32 %v6379_v58, %v6461_v33  ;;  %v2686_v53 = vmul.f32 %v6383_v3, %v6463_v46  ;;  %v2687_v31 = vmul.f32 %v6387_v55, %v6463_v46 }
 0x28a   :  { %v2472_v28 = vadd.f32 %v2469_v18, %v2422_v59  ;;  %v2609_v59 = vmul.f32 %v6433_v13, %v6443_v52  ;;  %v2639_v18 = vadd.f32 %v2636_v36, %v2628_v10  ;;  %v2698_v20 = vmul.f32 %v6405_v32, %v6487_v50  ;;  %v6507_v10 = vld [vmem:[#allocation7 + $0x69] ss:$0 sm:$0xff] }
 0x28c   :  { %v6493_v60 = vadd.f32 %v2609_v59, %v2601_v44 }
 0x28e   :  { %7534 = vst [vmem:[#allocation22_spill] sm:$0xff] %v6493_v60 }
 0x2ab   :  { %v2077_v56 = vpop.permute.xlu0 %2076 }
 0x2ac   :  { %v2473_v11 = vadd.f32 %v2470_v40, %v2077_v56  ;;  %v6399_v40 = vld [vmem:[#allocation7 + $0x41] ss:$0 sm:$0xff]  ;;  %v6409_v56 = vld [vmem:[#allocation7 + $0xc9] ss:$0 sm:$0xff] }
 0x2ad   :  { %v2558_v27 = vmul.f32 %v6429_v34, %v6409_v56  ;;  %v2559_v2 = vmul.f32 %v6433_v13, %v6409_v56 }
 0x2ae   :  { %2476 = vrot.lane.b32.xlu1 %v2473_v11, %s3767_s2  ;;  %v2495_v11 = vmul.f32 %v6383_v3, %v6399_v40 }
 0x2af   :  { %v6459_v14 = vadd.f32 %v2559_v2, %v2551_v54  ;;  %v2659_v54 = vmul.f32 %v6433_v13, %v6475_v47  ;;  %v2690_v2 = vadd.f32 %v2687_v31, %v2679_v41  ;;  %v6533_v41 = vld [vmem:[#allocation7 + $0xa9] ss:$0 sm:$0xff] }
 0x2b0   :  { %v2498_v16 = vadd.f32 %v2495_v11, %v2487_v62 }
 0x2b1   :  { %v7296_v49 = vrot.slane %v6459_v14, 1 }
 0x2b2   :  { %v2509_v51 = vadd.f32 %v2506_v9, %v2498_v16  ;;  %v7295_v16 = vrot.slane %v6493_v60, 2 }
 0x2be   :  { %v2079_v29 = vpop.permute.xlu1 %2078 }
 0x2bf   :  { %v2474_v12 = vadd.f32 %v2471_v0, %v2079_v29  ;;  %v6457_v0 = vadd.f32 %v2558_v27, %v2550_v38  ;;  %v6465_v29 = vld [vmem:[#allocation7 + $0xc1] ss:$0 sm:$0xff]  ;;  %v2658_v38 = vmul.f32 %v6429_v34, %v6475_v47  ;;  %v2689_v27 = vadd.f32 %v2686_v53, %v2678_v19 }
 0x2c0   :  { %v2517_v5 = vmul.f32 %v6429_v34, %v6465_v29  ;;  %v2737_v19 = vmul.f32 %v6387_v55, %v6507_v10 }
 0x2c1   :  { %2478 = vrot.lane.b32.xlu0 %v2474_v12, %s3767_s2  ;;  %7532 = vst [vmem:[#allocation19_spill] sm:$0xff] %v6457_v0  ;;  %v2600_v12 = vadd.f32 %v2597_v22, %v2589_v63  ;;  %v7293_v35 = vrot.slane %v6457_v0, 1  ;;  %v2697_v63 = vmul.f32 %v6401_v21, %v6487_v50  ;;  %v6503_v22 = vld [vmem:[#allocation7 + $0xe1] ss:$0 sm:$0xff] }
 0x2c2   :  { %v2708_v44 = vmul.f32 %v6429_v34, %v6503_v22 }
 0x2c3   :  { %v6491_v48 = vadd.f32 %v2608_v25, %v2600_v12  ;;  %v2568_v36 = vsel %vm163_vm0, %v7293_v35, %v7296_v49  ;;  %v2709_v25 = vmul.f32 %v6433_v13, %v6503_v22  ;;  %v2700_v59 = vadd.f32 %v2697_v63, %v2689_v27  ;;  %v6549_v27 = vld [vmem:[#allocation7 + $0xe9] ss:$0 sm:$0xff]  ;;  %v6579_v35 = vld [vmem:[#allocation7 + $0xf1] ss:$0 sm:$0xff] }
 0x2c4   :  { %7539 = vst [vmem:[#allocation24_spill] sm:$0xff] %v6579_v35 }
 0x2c5   :  { %7533 = vst [vmem:[#allocation20_spill] sm:$0xff] %v6491_v48 }
 0x2c9   :  { %v2081_v43 = vpop.permute.xlu0 %2080 }
 0x2ca   :  { %v2475_v39 = vadd.f32 %v2472_v28, %v2081_v43  ;;  %v2640_v28 = vadd.f32 %v2637_v30, %v2629_v1  ;;  %v2647_v43 = vmul.f32 %v6401_v21, %v6453_v37  ;;  %v2520_v1 = vadd.f32 %v2517_v5, %v2509_v51 }
 0x2cb   :  { %v7292_v30 = vrot.slane %v6491_v48, 2 }
 0x2cc   :  { %2480 = vrot.lane.b32.xlu1 %v2475_v39, %s3767_s2  ;;  %v2648_v39 = vmul.f32 %v6405_v32, %v6453_v37  ;;  %v2650_v62 = vadd.f32 %v2647_v43, %v2639_v18  ;;  %v2701_v18 = vadd.f32 %v2698_v20, %v2690_v2  ;;  %v2736_v43 = vmul.f32 %v6383_v3, %v6507_v10  ;;  %v6551_v2 = vld [vmem:[#allocation7 + $0x31] ss:$0 sm:$0xff] }
 0x2cd   :  { %v2570_v53 = vadd.f32 %v2568_v36, %v2520_v1  ;;  %v2618_v31 = vsel %vm214_vm1, %v7292_v30, %v7295_v16  ;;  %v2748_v20 = vmul.f32 %v6405_v32, %v6533_v41  ;;  %v6555_v1 = vld [vmem:[#allocation7 + $0x71] ss:$0 sm:$0xff] }
 0x2ce   :  { %v2651_v11 = vadd.f32 %v2648_v39, %v2640_v28  ;;  %v6517_v9 = vadd.f32 %v2658_v38, %v2650_v62  ;;  %v2728_v28 = vmul.f32 %v6375_v24, %v6505_v17  ;;  %v2729_v39 = vmul.f32 %v6379_v58, %v6505_v17 }
 0x2cf   :  { %v6543_v62 = vadd.f32 %v2708_v44, %v2700_v59  ;;  %v2620_v36 = vadd.f32 %v2618_v31, %v2570_v53  ;;  %v2778_v59 = vmul.f32 %v6375_v24, %v6551_v2  ;;  %v2759_v31 = vmul.f32 %v6433_v13, %v6549_v27 }
 0x2d0   :  { %7535 = vst [vmem:[#allocation21_spill] sm:$0xff] %v6517_v9  ;;  %v6519_v12 = vadd.f32 %v2659_v54, %v2651_v11  ;;  %v7291_v51 = vrot.slane %v6517_v9, 3  ;;  %v6545_v11 = vadd.f32 %v2709_v25, %v2701_v18  ;;  %v2739_v38 = vadd.f32 %v2736_v43, %v2728_v28  ;;  %v6593_v18 = vld [vmem:[#allocation7 + $0x39] ss:$0 sm:$0xff] }
 0x2d1   :  { %7537 = vst [vmem:[#allocation26_spill] sm:$0xff] %v6543_v62  ;;  %v2747_v54 = vmul.f32 %v6401_v21, %v6533_v41  ;;  %v2740_v63 = vadd.f32 %v2737_v19, %v2729_v39  ;;  %v2758_v25 = vmul.f32 %v6429_v34, %v6549_v27  ;;  %v2786_v39 = vmul.f32 %v6383_v3, %v6555_v1  ;;  %v6571_v19 = vld [vmem:[#allocation7 + $0xb1] ss:$0 sm:$0xff] }
 0x2d2   :  { %7536 = vst [vmem:[#allocation25_spill] sm:$0xff] %v6519_v12  ;;  %v7294_v5 = vrot.slane %v6519_v12, 3  ;;  %7538 = vst [vmem:[#allocation23_spill] sm:$0xff] %v6545_v11  ;;  %v7303_v28 = vrot.slane %v6545_v11, 4  ;;  %v2787_v30 = vmul.f32 %v6387_v55, %v6555_v1  ;;  %v2797_v16 = vmul.f32 %v6401_v21, %v6571_v19 }
 0x2d3   :  { %v2750_v43 = vadd.f32 %v2747_v54, %v2739_v38  ;;  %v2751_v53 = vadd.f32 %v2748_v20, %v2740_v63  ;;  %v6585_v54 = vld [vmem:[#allocation4 + $0x28] sm:$0xff]  ;;  %v2798_v49 = vmul.f32 %v6405_v32, %v6571_v19  ;;  %v7540_v9 = vrot.slane %v6543_v62, 4 }
 0x2d4   :  { %v2668_v44 = vsel %vm265_vm2, %v7291_v51, %v7294_v5  ;;  %v2779_v51 = vmul.f32 %v6379_v58, %v6551_v2  ;;  %v6581_v5 = vld [vmem:[#allocation4 + $0x10] sm:$0xff]  ;;  %v2538_v63 = vmul.f32 %v6585_v54, %v6373_v23  ;;  %v2789_v0 = vadd.f32 %v2786_v39, %v2778_v59 }
 0x2d5   :  { %v2530_v38 = vmul.f32 %v6581_v5, %v6371_v57  ;;  %v2670_v20 = vadd.f32 %v2668_v44, %v2620_v36  ;;  %v2718_v57 = vsel %vm316_vm3, %v7540_v9, %v7303_v28  ;;  %v6601_v48 = vadd.f32 %v2758_v25, %v2750_v43  ;;  %v6605_v36 = vld [vmem:[#allocation7 + $0x79] ss:$0 sm:$0xff]  ;;  %v6617_v43 = vld [vmem:[#allocation4 + $0x40] sm:$0xff] }
 0x2d6   :  { %v2808_v23 = vmul.f32 %v6429_v34, %v6579_v35  ;;  %7541 = vst [vmem:[#allocation17_spill] sm:$0xff] %v6605_v36  ;;  %v6607_v44 = vadd.f32 %v2759_v31, %v2751_v53  ;;  %v2790_v12 = vadd.f32 %v2787_v30, %v2779_v51  ;;  %v2580_v60 = vmul.f32 %v6581_v5, %v6393_v42  ;;  %v6625_v51 = vld [vmem:[#allocation7 + $0xb9] ss:$0 sm:$0xff] }
 0x2d7   :  { %v2588_v62 = vmul.f32 %v6585_v54, %v6395_v7  ;;  %v2828_v9 = vmul.f32 %v6375_v24, %v6593_v18  ;;  %v2829_v25 = vmul.f32 %v6379_v58, %v6593_v18  ;;  %v2541_v59 = vadd.f32 %v2538_v63, %v2530_v38 }
 0x2d8   :  { %v2549_v39 = vmul.f32 %v6617_v43, %v6391_v15  ;;  %v2836_v30 = vmul.f32 %v6383_v3, %v6605_v36  ;;  %v2837_v42 = vmul.f32 %v6387_v55, %v6605_v36  ;;  %v2488_v7 = vmul.f32 %v6379_v58, %v6397_v6 }
 0x2d9   :  { %v2496_v53 = vmul.f32 %v6387_v55, %v6399_v40  ;;  %v2809_v38 = vmul.f32 %v6433_v13, %v6579_v35  ;;  %v2630_v15 = vmul.f32 %v6581_v5, %v6425_v8  ;;  %v2638_v63 = vmul.f32 %v6585_v54, %v6427_v45  ;;  %v6644_v35 = vld [vmem:[#allocation4 + $0x58] sm:$0xff] }
 0x2da   :  { %v2800_v28 = vadd.f32 %v2797_v16, %v2789_v0  ;;  %v2801_v3 = vadd.f32 %v2798_v49, %v2790_v12  ;;  %v2591_v24 = vadd.f32 %v2588_v62, %v2580_v60  ;;  %v2599_v58 = vmul.f32 %v6617_v43, %v6419_v61  ;;  %v6648_v0 = vld [vmem:[#allocation7 + $0xf9] ss:$0 sm:$0xff] }
 0x2db   :  { %v2847_v55 = vmul.f32 %v6401_v21, %v6625_v51  ;;  %v2848_v31 = vmul.f32 %v6405_v32, %v6625_v51  ;;  %v2552_v11 = vadd.f32 %v2549_v39, %v2541_v59  ;;  %v2560_v8 = vmul.f32 %v6644_v35, %v6409_v56 }
 0x2dc   :  { %v2839_v36 = vadd.f32 %v2836_v30, %v2828_v9  ;;  %v2840_v45 = vadd.f32 %v2837_v42, %v2829_v25  ;;  %v2499_v49 = vadd.f32 %v2496_v53, %v2488_v7  ;;  %v2507_v61 = vmul.f32 %v6405_v32, %v6437_v26 }
 0x2dd   :  { %v2641_v60 = vadd.f32 %v2638_v63, %v2630_v15  ;;  %v2649_v16 = vmul.f32 %v6617_v43, %v6453_v37  ;;  %v2680_v12 = vmul.f32 %v6581_v5, %v6461_v33  ;;  %v2688_v62 = vmul.f32 %v6585_v54, %v6463_v46 }
 0x2de   :  { %v2765_v56 = vrot.slane %v6607_v44, 5  ;;  %v6659_v9 = vadd.f32 %v2808_v23, %v2800_v28  ;;  %v2602_v25 = vadd.f32 %v2599_v58, %v2591_v24  ;;  %v2610_v59 = vmul.f32 %v6644_v35, %v6443_v52 }
 0x2df   :  { %v6663_v39 = vadd.f32 %v2809_v38, %v2801_v3  ;;  %v2858_v30 = vmul.f32 %v6429_v34, %v6648_v0  ;;  %v2859_v37 = vmul.f32 %v6433_v13, %v6648_v0  ;;  %v6669_v33 = vadd.f32 %v2560_v8, %v2552_v11 }
 0x2e0   :  { %v2850_v42 = vadd.f32 %v2847_v55, %v2839_v36  ;;  %v2851_v46 = vadd.f32 %v2848_v31, %v2840_v45  ;;  %v2510_v7 = vadd.f32 %v2507_v61, %v2499_v49  ;;  %v2518_v28 = vmul.f32 %v6433_v13, %v6465_v29 }
 0x2e1   :  { %v2652_v24 = vadd.f32 %v2649_v16, %v2641_v60  ;;  %v2660_v58 = vmul.f32 %v6644_v35, %v6475_v47  ;;  %v2691_v3 = vadd.f32 %v2688_v62, %v2680_v12  ;;  %v2699_v52 = vmul.f32 %v6617_v43, %v6487_v50 }
 0x2e2   :  { %v2720_v23 = vadd.f32 %v2718_v57, %v2670_v20  ;;  %v6677_v53 = vadd.f32 %v2610_v59, %v2602_v25  ;;  %v7542_v55 = vrot.slane %v6601_v48, 5  ;;  %v2566_v36 = vrot.slane %v6669_v33, 1 }
 0x2e3   :  { %v2730_v31 = vmul.f32 %v6581_v5, %v6505_v17  ;;  %v2738_v47 = vmul.f32 %v6585_v54, %v6507_v10  ;;  %v2814_v50 = vrot.slane %v6659_v9, 6  ;;  %v2815_v20 = vrot.slane %v6663_v39, 6  ;;  %v7561_v9 = vld [vmem:[#allocation27_spill] sm:$0xff] }
 0x2e4   :  { %v2768_v11 = vsel %vm367_vm4, %v7542_v55, %v2765_v56  ;;  %v6692_v57 = vadd.f32 %v2858_v30, %v2850_v42  ;;  %v6694_v38 = vadd.f32 %v2859_v37, %v2851_v46  ;;  %v2521_v15 = vadd.f32 %v2518_v28, %v2510_v7  ;;  %v7544_v37 = vld [vmem:[#allocation22_spill] sm:$0xff] }
 0x2e5   :  { %v6696_v63 = vadd.f32 %v2660_v58, %v2652_v24  ;;  %v2702_v8 = vadd.f32 %v2699_v52, %v2691_v3  ;;  %v2710_v45 = vmul.f32 %v6644_v35, %v6503_v22  ;;  %v2616_v17 = vrot.slane %v6677_v53, 2  ;;  %v7546_v3 = vld [vmem:[#allocation17_spill] sm:$0xff] }
 0x2e6   :  { %v2749_v10 = vmul.f32 %v6617_v43, %v6533_v41  ;;  %v2489_v49 = vmul.f32 %v6581_v5, %v6397_v6  ;;  %v2497_v61 = vmul.f32 %v6585_v54, %v6399_v40  ;;  %v7543_v60 = vrot.slane %v6459_v14, 1 }
 0x2e7   :  { %v2741_v12 = vadd.f32 %v2738_v47, %v2730_v31  ;;  %v2780_v22 = vmul.f32 %v6581_v5, %v6551_v2  ;;  %v2788_v62 = vmul.f32 %v6585_v54, %v6555_v1  ;;  %v2770_v25 = vadd.f32 %v2768_v11, %v2720_v23  ;;  %v7547_v23 = vld [vmem:[#allocation25_spill] sm:$0xff]  ;;  %v7549_v31 = vld [vmem:[#allocation24_spill] sm:$0xff] }
 0x2e8   :  { %v2567_v16 = vsel %vm163_vm0, %v7543_v60, %v2566_v36  ;;  %v2818_v6 = vsel %vm418_vm5, %v2814_v50, %v2815_v20  ;;  %v2864_v40 = vrot.slane %v6692_v57, 7  ;;  %v2865_v14 = vrot.slane %v6694_v38, 7  ;;  %v7563_v57 = vld [vmem:[#allocation16_spill] sm:$0xff] }
 0x2e9   :  { %v2666_v41 = vrot.slane %v6696_v63, 3  ;;  %v2713_v59 = vadd.f32 %v2710_v45, %v2702_v8  ;;  %v2760_v2 = vmul.f32 %v6644_v35, %v6549_v27  ;;  %v2799_v1 = vmul.f32 %v6617_v43, %v6571_v19 }
 0x2ea   :  { %v2571_v30 = vadd.f32 %v2567_v16, %v2521_v15  ;;  %v7545_v33 = vrot.slane %v7544_v37, 2  ;;  %v2500_v46 = vadd.f32 %v2497_v61, %v2489_v49  ;;  %v2508_v7 = vmul.f32 %v6617_v43, %v6437_v26  ;;  %v7550_v61 = vld [vmem:[#allocation23_spill] sm:$0xff] }
 0x2eb   :  { %v2752_v28 = vadd.f32 %v2749_v10, %v2741_v12  ;;  %v2791_v24 = vadd.f32 %v2788_v62, %v2780_v22  ;;  %v2830_v58 = vmul.f32 %v6581_v5, %v6593_v18  ;;  %v2838_v27 = vmul.f32 %v6585_v54, %v7546_v3 }
 0x2ec   :  { %v2617_v42 = vsel %vm214_vm1, %v7545_v33, %v2616_v17  ;;  %v2820_v52 = vadd.f32 %v2818_v6, %v2770_v25  ;;  %v2868_v19 = vsel %vm469_vm6, %v2864_v40, %v2865_v14  ;;  %v7548_v53 = vrot.slane %v7547_v23, 3 }
 0x2ed   :  { %v2716_v26 = vrot.slane %v2713_v59, 4  ;;  %v2621_v11 = vadd.f32 %v2617_v42, %v2571_v30  ;;  %v2810_v47 = vmul.f32 %v6644_v35, %v7549_v31  ;;  %v2511_v18 = vadd.f32 %v2508_v7, %v2500_v46  ;;  %v7552_v59 = vld [vmem:[#allocation19_spill] sm:$0xff]  ;;  %v7554_v46 = vld [vmem:[#allocation20_spill] sm:$0xff] }
 0x2ee   :  { %v2667_v55 = vsel %vm265_vm2, %v7548_v53, %v2666_v41  ;;  %v2519_v38 = vmul.f32 %v6644_v35, %v6465_v29  ;;  %v2763_v15 = vadd.f32 %v2760_v2, %v2752_v28  ;;  %v2802_v63 = vadd.f32 %v2799_v1, %v2791_v24  ;;  %v7558_v53 = vld [vmem:[#allocation26_spill] sm:$0xff] }
 0x2ef   :  { %v2841_v8 = vadd.f32 %v2838_v27, %v2830_v58  ;;  %v2849_v45 = vmul.f32 %v6617_v43, %v6625_v51  ;;  %v2870_v10 = vadd.f32 %v2868_v19, %v2820_v52  ;;  %v2671_v49 = vadd.f32 %v2667_v55, %v2621_v11  ;;  %v7556_v27 = vld [vmem:[#allocation21_spill] sm:$0xff] }
 0x2f0   :  { %v7551_v60 = vrot.slane %v7550_v61, 4  ;;  %v2860_v12 = vmul.f32 %v6644_v35, %v6648_v0  ;;  %v2522_v22 = vadd.f32 %v2519_v38, %v2511_v18  ;;  %v2766_v25 = vrot.slane %v2763_v15, 5 }
 0x2f1   :  { %v2813_v29 = vadd.f32 %v2810_v47, %v2802_v63  ;;  %v2852_v6 = vadd.f32 %v2849_v45, %v2841_v8  ;;  %v7553_v2 = vrot.slane %v7552_v59, 1  ;;  %v7555_v7 = vrot.slane %v7554_v46, 2  ;;  %v6799_v8 = vld [vmem:[#allocation7 + $0x8] ss:$0 sm:$0xff] }
 0x2f2   :  { %v2717_v16 = vsel %vm316_vm3, %v7551_v60, %v2716_v26  ;;  %v2767_v0 = vsel %vm367_vm4, %v2765_v56, %v2766_v25  ;;  %v7557_v44 = vrot.slane %v7556_v27, 3  ;;  %v6801_v45 = vld [vmem:[#allocation7 + $0x48] ss:$0 sm:$0xff] }
 0x2f3   :  { %v2569_v51 = vsel %vm163_vm0, %v2566_v36, %v7553_v2  ;;  %v2721_v30 = vadd.f32 %v2717_v16, %v2671_v49  ;;  %v2816_v33 = vrot.slane %v2813_v29, 6  ;;  %v2863_v42 = vadd.f32 %v2860_v12, %v2852_v6  ;;  %v6811_v16 = vld [vmem:[#allocation7 + $0x88] ss:$0 sm:$0xff]  ;;  %v6813_v12 = vld [vmem:[#allocation7 + $0x10] ss:$0 sm:$0xff] }
 0x2f4   :  { %v2572_v37 = vadd.f32 %v2569_v51, %v2522_v22  ;;  %v2619_v28 = vsel %vm214_vm1, %v2616_v17, %v7555_v7  ;;  %v2669_v56 = vsel %vm265_vm2, %v2666_v41, %v7557_v44  ;;  %v7559_v17 = vrot.slane %v7558_v53, 4  ;;  %v6815_v22 = vld [vmem:[#allocation7 + $0x50] ss:$0 sm:$0xff]  ;;  %v6825_v51 = vld [vmem:[#allocation7 + $0xc8] ss:$0 sm:$0xff] }
 0x2f5   :  { %v2771_v24 = vadd.f32 %v2767_v0, %v2721_v30  ;;  %v2817_v36 = vsel %vm418_vm5, %v2815_v20, %v2816_v33  ;;  %v2866_v3 = vrot.slane %v2863_v42, 7  ;;  %v7560_v20 = vrot.slane %v6601_v48, 5 }
 0x2f6   :  { %v2622_v58 = vadd.f32 %v2619_v28, %v2572_v37  ;;  %v2719_v55 = vsel %vm316_vm3, %v2716_v26, %v7559_v17  ;;  %v2936_v61 = vmul.f32 %v7563_v57, %v6801_v45  ;;  %v2947_v59 = vmul.f32 %v6401_v21, %v6811_v16 }
 0x2f7   :  { %v2821_v52 = vadd.f32 %v2817_v36, %v2771_v24  ;;  %v2867_v23 = vsel %vm469_vm6, %v2865_v14, %v2866_v3  ;;  %v2769_v31 = vsel %vm367_vm4, %v2766_v25, %v7560_v20  ;;  %v2819_v14 = vsel %vm418_vm5, %v2816_v33, %v2814_v50  ;;  %v6819_v25 = vld [vmem:[#allocation7 + $0x40] ss:$0 sm:$0xff]  ;;  %v6835_v33 = vld [vmem:[#allocation7 + $0x90] ss:$0 sm:$0xff] }
 0x2f8   :  { %v2672_v19 = vadd.f32 %v2669_v56, %v2622_v58  ;;  %v2869_v26 = vsel %vm469_vm6, %v2866_v3, %v2864_v40  ;;  %v2928_v50 = vmul.f32 %v7561_v9, %v6799_v8  ;;  %v7564_v40 = vld [vmem:[#allocation18_spill] sm:$0xff]  ;;  %v2948_v2 = vmul.f32 %v6405_v32, %v6811_v16  ;;  %v6845_v36 = vld [vmem:[#allocation7 + $0x80] ss:$0 sm:$0xff] }
 0x2f9   :  { %v2871_v39 = vadd.f32 %v2867_v23, %v2821_v52  ;;  %v2937_v60 = vmul.f32 %v7564_v40, %v6801_v45  ;;  %v2986_v37 = vmul.f32 %v7563_v57, %v6815_v22  ;;  %v2987_v0 = vmul.f32 %v7564_v40, %v6815_v22  ;;  %v6851_v52 = vld [vmem:[#allocation7 + $0xd0] ss:$0 sm:$0xff]  ;;  %v6855_v23 = vld [vmem:[#allocation7 + $0x58] ss:$0 sm:$0xff] }
 0x2fa   :  { %v2722_v11 = vadd.f32 %v2719_v55, %v2672_v19  ;;  %v2939_v29 = vadd.f32 %v2936_v61, %v2928_v50  ;;  %v2895_v46 = vmul.f32 %v7563_v57, %v6819_v25  ;;  %v2958_v24 = vmul.f32 %v6429_v34, %v6825_v51  ;;  %v6853_v19 = vld [vmem:[#allocation7 + $0x18] ss:$0 sm:$0xff] }
 0x2fb   :  { %v2959_v58 = vmul.f32 %v6433_v13, %v6825_v51  ;;  %v2997_v44 = vmul.f32 %v6401_v21, %v6835_v33  ;;  %v2998_v56 = vmul.f32 %v6405_v32, %v6835_v33  ;;  %v2906_v17 = vmul.f32 %v6401_v21, %v6845_v36 }
 0x2fc   :  { %v2772_v41 = vadd.f32 %v2769_v31, %v2722_v11  ;;  %v2950_v7 = vadd.f32 %v2947_v59, %v2939_v29  ;;  %v6863_v11 = vld [vmem:[#allocation7 + $0xc0] ss:$0 sm:$0xff] }
 0x2fe   :  { %v2822_v38 = vadd.f32 %v2819_v14, %v2772_v41  ;;  %v6859_v55 = vadd.f32 %v2958_v24, %v2950_v7  ;;  %v3028_v41 = vmul.f32 %v7561_v9, %v6853_v19 }
 0x300   :  { %v2872_v48 = vadd.f32 %v2869_v26, %v2822_v38  ;;  %v3036_v38 = vmul.f32 %v7563_v57, %v6855_v23  ;;  %v3037_v26 = vmul.f32 %v7564_v40, %v6855_v23  ;;  %v7316_v50 = vrot.slane %v6859_v55, 1 }
 0x302   :  { %v3039_v29 = vadd.f32 %v3036_v38, %v3028_v41  ;;  %v2938_v41 = vmul.f32 %v6585_v54, %v6801_v45 }
 0x320   :  { %v2477_v62 = vpop.permute.xlu1 %2476 }
 0x321   :  { %v2873_v1 = vadd.f32 %v2870_v10, %v2477_v62  ;;  %v7562_v10 = vld [vmem:[#allocation15_spill] sm:$0xff]  ;;  %v6817_v62 = vld [vmem:[#allocation7] ss:$0 sm:$0xff] }
 0x322   :  { %v2929_v49 = vmul.f32 %v7562_v10, %v6799_v8  ;;  %v2979_v30 = vmul.f32 %v7562_v10, %v6813_v12  ;;  %v2887_v42 = vmul.f32 %v7561_v9, %v6817_v62  ;;  %v3029_v14 = vmul.f32 %v7562_v10, %v6853_v19 }
 0x323   :  { %2876 = vrot.lane.b32.xlu0 %v2873_v1, %s3767_s2  ;;  %v2978_v1 = vmul.f32 %v7561_v9, %v6813_v12 }
 0x324   :  { %v2940_v6 = vadd.f32 %v2937_v60, %v2929_v49  ;;  %v2990_v27 = vadd.f32 %v2987_v0, %v2979_v30  ;;  %v2898_v53 = vadd.f32 %v2895_v46, %v2887_v42  ;;  %v6895_v0 = vld [vmem:[#allocation7 + $0x60] ss:$0 sm:$0xff] }
 0x325   :  { %v2989_v3 = vadd.f32 %v2986_v37, %v2978_v1  ;;  %v6891_v1 = vld [vmem:[#allocation7 + $0xd8] ss:$0 sm:$0xff]  ;;  %v6893_v37 = vld [vmem:[#allocation7 + $0x20] ss:$0 sm:$0xff] }
 0x326   :  { %v2951_v28 = vadd.f32 %v2948_v2, %v2940_v6  ;;  %v3001_v31 = vadd.f32 %v2998_v56, %v2990_v27  ;;  %v3040_v6 = vadd.f32 %v3037_v26, %v3029_v14  ;;  %v3078_v27 = vmul.f32 %v7561_v9, %v6893_v37 }
 0x327   :  { %v3000_v20 = vadd.f32 %v2997_v44, %v2989_v3  ;;  %v3059_v3 = vmul.f32 %v6433_v13, %v6891_v1  ;;  %v3079_v44 = vmul.f32 %v7562_v10, %v6893_v37  ;;  %v3086_v56 = vmul.f32 %v7563_v57, %v6895_v0 }
 0x329   :  { %v3089_v26 = vadd.f32 %v3086_v56, %v3078_v27 }
 0x333   :  { %v2479_v47 = vpop.permute.xlu0 %2478 }
 0x334   :  { %v2874_v18 = vadd.f32 %v2871_v39, %v2479_v47  ;;  %v6861_v39 = vadd.f32 %v2959_v58, %v2951_v28  ;;  %v3008_v47 = vmul.f32 %v6429_v34, %v6851_v52  ;;  %v3058_v58 = vmul.f32 %v6429_v34, %v6891_v1 }
 0x336   :  { %2878 = vrot.lane.b32.xlu1 %v2874_v18, %s3767_s2  ;;  %v3009_v18 = vmul.f32 %v6433_v13, %v6851_v52  ;;  %v7320_v49 = vrot.slane %v6861_v39, 1  ;;  %v6883_v61 = vadd.f32 %v3008_v47, %v3000_v20  ;;  %v6917_v20 = vld [vmem:[#allocation7 + $0xa0] ss:$0 sm:$0xff] }
 0x337   :  { %v6925_v47 = vld [vmem:[#allocation7 + $0xe0] ss:$0 sm:$0xff] }
 0x338   :  { %v6885_v60 = vadd.f32 %v3009_v18, %v3001_v31  ;;  %v2968_v42 = vsel %vm163_vm0, %v7316_v50, %v7320_v49  ;;  %v7315_v46 = vrot.slane %v6883_v61, 2  ;;  %v2930_v18 = vmul.f32 %v6581_v5, %v6799_v8 }
 0x339   :  { %v3108_v8 = vmul.f32 %v6429_v34, %v6925_v47  ;;  %v3109_v45 = vmul.f32 %v6433_v13, %v6925_v47  ;;  %v3080_v49 = vmul.f32 %v6581_v5, %v6893_v37 }
 0x33a   :  { %v7317_v7 = vrot.slane %v6885_v60, 2 }
 0x33c   :  { %v3018_v31 = vsel %vm214_vm1, %v7315_v46, %v7317_v7  ;;  %v3038_v46 = vmul.f32 %v6585_v54, %v6855_v23 }
 0x33e   :  { %v2481_v15 = vpop.permute.xlu1 %2480 }
 0x33f   :  { %v2875_v63 = vadd.f32 %v2872_v48, %v2481_v15  ;;  %v6877_v48 = vld [vmem:[#allocation7 + $0x98] ss:$0 sm:$0xff]  ;;  %v2909_v15 = vadd.f32 %v2906_v17, %v2898_v53  ;;  %v3087_v53 = vmul.f32 %v7564_v40, %v6895_v0 }
 0x340   :  { %v3047_v59 = vmul.f32 %v6401_v21, %v6877_v48  ;;  %v3048_v2 = vmul.f32 %v6405_v32, %v6877_v48 }
 0x341   :  { %2880 = vrot.lane.b32.xlu0 %v2875_v63, %s3767_s2  ;;  %v2917_v63 = vmul.f32 %v6429_v34, %v6863_v11 }
 0x342   :  { %v3050_v28 = vadd.f32 %v3047_v59, %v3039_v29  ;;  %v3051_v24 = vadd.f32 %v3048_v2, %v3040_v6  ;;  %v3098_v29 = vmul.f32 %v6405_v32, %v6917_v20  ;;  %v6939_v6 = vld [vmem:[#allocation7 + $0x28] ss:$0 sm:$0xff] }
 0x343   :  { %v2920_v30 = vadd.f32 %v2917_v63, %v2909_v15  ;;  %v3090_v15 = vadd.f32 %v3087_v53, %v3079_v44  ;;  %v3097_v63 = vmul.f32 %v6401_v21, %v6917_v20  ;;  %v3606_v2 = vld [vmem:[#allocation7 + $0x68] ss:$0 sm:$0xff]  ;;  %v3128_v27 = vmul.f32 %v7561_v9, %v6939_v6 }
 0x344   :  { %v6931_v14 = vadd.f32 %v3058_v58, %v3050_v28  ;;  %v6933_v38 = vadd.f32 %v3059_v3, %v3051_v24  ;;  %v2980_v28 = vmul.f32 %v6581_v5, %v6813_v12  ;;  %v2988_v24 = vmul.f32 %v6585_v54, %v6815_v22  ;;  %v6959_v12 = vld [vmem:[#allocation7 + $0xa8] ss:$0 sm:$0xff] }
 0x345   :  { %v2970_v17 = vadd.f32 %v2968_v42, %v2920_v30  ;;  %v2941_v30 = vadd.f32 %v2938_v41, %v2930_v18  ;;  %v2949_v42 = vmul.f32 %v6617_v43, %v6811_v16  ;;  %v3129_v44 = vmul.f32 %v7562_v10, %v6939_v6 }
 0x346   :  { %7565 = vst [vmem:[#allocation14_spill] sm:$0xff] %v6931_v14  ;;  %v7318_v58 = vrot.slane %v6931_v14, 3  ;;  %v7319_v3 = vrot.slane %v6933_v38, 3  ;;  %v3100_v56 = vadd.f32 %v3097_v63, %v3089_v26  ;;  %v3101_v53 = vadd.f32 %v3098_v29, %v3090_v15 }
 0x347   :  { %v3020_v59 = vadd.f32 %v3018_v31, %v2970_v17  ;;  %v3136_v16 = vmul.f32 %v7563_v57, %v3606_v2  ;;  %v3137_v17 = vmul.f32 %v7564_v40, %v3606_v2  ;;  %v6961_v31 = vld [vmem:[#allocation7 + $0xe8] ss:$0 sm:$0xff]  ;;  %v2888_v22 = vmul.f32 %v7562_v10, %v6817_v62 }
 0x348   :  { %v2896_v18 = vmul.f32 %v7564_v40, %v6819_v25  ;;  %v2960_v41 = vmul.f32 %v6644_v35, %v6825_v51  ;;  %v2999_v26 = vmul.f32 %v6617_v43, %v6835_v33  ;;  %v2952_v15 = vadd.f32 %v2949_v42, %v2941_v30 }
 0x349   :  { %v2991_v63 = vadd.f32 %v2988_v24, %v2980_v28  ;;  %v3030_v29 = vmul.f32 %v6581_v5, %v6853_v19  ;;  %v3068_v50 = vsel %vm265_vm2, %v7318_v58, %v7319_v3  ;;  %v3147_v51 = vmul.f32 %v6401_v21, %v6959_v12  ;;  %v3609_v28 = vld [vmem:[#allocation7 + $0x30] ss:$0 sm:$0xff] }
 0x34a   :  { %v3148_v33 = vmul.f32 %v6405_v32, %v6959_v12  ;;  %v3158_v30 = vmul.f32 %v6429_v34, %v6961_v31  ;;  %v6987_v19 = vadd.f32 %v3108_v8, %v3100_v56  ;;  %v6989_v42 = vadd.f32 %v3109_v45, %v3101_v53 }
 0x34b   :  { %v3139_v23 = vadd.f32 %v3136_v16, %v3128_v27  ;;  %v2907_v24 = vmul.f32 %v6405_v32, %v6845_v36  ;;  %v2899_v7 = vadd.f32 %v2896_v18, %v2888_v22  ;;  %v3010_v58 = vmul.f32 %v6644_v35, %v6851_v52 }
 0x34c   :  { %v3049_v3 = vmul.f32 %v6617_v43, %v6877_v48  ;;  %v6999_v14 = vadd.f32 %v2960_v41, %v2952_v15  ;;  %v3002_v8 = vadd.f32 %v2999_v26, %v2991_v63  ;;  %v3041_v45 = vadd.f32 %v3038_v46, %v3030_v29  ;;  %v3610_v41 = vld [vmem:[#allocation7 + $0x70] ss:$0 sm:$0xff] }
 0x34d   :  { %v3088_v27 = vmul.f32 %v6585_v54, %v6895_v0  ;;  %v7003_v56 = vadd.f32 %v3068_v50, %v3020_v59  ;;  %v3140_v53 = vadd.f32 %v3137_v17, %v3129_v44  ;;  %v3159_v16 = vmul.f32 %v6433_v13, %v6961_v31  ;;  %v3611_v46 = vld [vmem:[#allocation7 + $0xb0] ss:$0 sm:$0xff] }
 0x34e   :  { %v3178_v52 = vmul.f32 %v7561_v9, %v3609_v28  ;;  %v7322_v48 = vrot.slane %v6987_v19, 4  ;;  %v7323_v22 = vrot.slane %v6989_v42, 4  ;;  %v3150_v37 = vadd.f32 %v3147_v51, %v3139_v23 }
 0x34f   :  { %v3179_v18 = vmul.f32 %v7562_v10, %v3609_v28  ;;  %v2910_v26 = vadd.f32 %v2907_v24, %v2899_v7  ;;  %v2918_v50 = vmul.f32 %v6433_v13, %v6863_v11  ;;  %v3060_v0 = vmul.f32 %v6644_v35, %v6891_v1 }
 0x350   :  { %v3099_v59 = vmul.f32 %v6617_v43, %v6917_v20  ;;  %v7324_v44 = vrot.slane %v6999_v14, 1  ;;  %v7018_v17 = vadd.f32 %v3010_v58, %v3002_v8  ;;  %v3052_v15 = vadd.f32 %v3049_v3, %v3041_v45 }
 0x351   :  { %v3091_v63 = vadd.f32 %v3088_v27, %v3080_v49  ;;  %v3151_v29 = vadd.f32 %v3148_v33, %v3140_v53  ;;  %v3186_v51 = vmul.f32 %v7563_v57, %v3610_v41  ;;  %v3130_v7 = vmul.f32 %v6581_v5, %v6939_v6  ;;  %v3612_v33 = vld [vmem:[#allocation7 + $0xf0] ss:$0 sm:$0xff] }
 0x352   :  { %v3138_v23 = vmul.f32 %v6585_v54, %v3606_v2  ;;  %v3187_v24 = vmul.f32 %v7564_v40, %v3610_v41  ;;  %v3197_v1 = vmul.f32 %v6401_v21, %v3611_v46  ;;  %v2889_v20 = vmul.f32 %v6581_v5, %v6817_v62 }
 0x353   :  { %v2897_v58 = vmul.f32 %v6585_v54, %v6819_v25  ;;  %v7036_v49 = vsel %vm316_vm3, %v7322_v48, %v7323_v22  ;;  %v3198_v6 = vmul.f32 %v6405_v32, %v3611_v46  ;;  %v2921_v2 = vadd.f32 %v2918_v50, %v2910_v26 }
 0x354   :  { %v3110_v3 = vmul.f32 %v6644_v35, %v6925_v47  ;;  %v7566_v62 = vrot.slane %v6861_v39, 1  ;;  %v3016_v8 = vrot.slane %v7018_v17, 2  ;;  %v7048_v45 = vadd.f32 %v3060_v0, %v3052_v15 }
 0x355   :  { %v3102_v27 = vadd.f32 %v3099_v59, %v3091_v63  ;;  %v3141_v53 = vadd.f32 %v3138_v23, %v3130_v7  ;;  %v3149_v26 = vmul.f32 %v6617_v43, %v6959_v12  ;;  %v3180_v50 = vmul.f32 %v6581_v5, %v3609_v28  ;;  %v3613_v12 = vld [vmem:[#allocation7 + $0x38] ss:$0 sm:$0xff] }
 0x356   :  { %v2967_v25 = vsel %vm163_vm0, %v7566_v62, %v7324_v44  ;;  %v3188_v47 = vmul.f32 %v6585_v54, %v3610_v41  ;;  %v7054_v48 = vadd.f32 %v3158_v30, %v3150_v37  ;;  %v3189_v22 = vadd.f32 %v3186_v51, %v3178_v52  ;;  %v3614_v63 = vld [vmem:[#allocation7 + $0x78] ss:$0 sm:$0xff] }
 0x357   :  { %v2900_v39 = vadd.f32 %v2897_v58, %v2889_v20  ;;  %v2908_v62 = vmul.f32 %v6617_v43, %v6845_v36  ;;  %v7058_v44 = vadd.f32 %v3159_v16, %v3151_v29  ;;  %v3208_v0 = vmul.f32 %v6429_v34, %v3612_v33 }
 0x358   :  { %v2971_v59 = vadd.f32 %v2967_v25, %v2921_v2  ;;  %v3160_v15 = vmul.f32 %v6644_v35, %v6961_v31  ;;  %v7567_v30 = vrot.slane %v6885_v60, 2  ;;  %v3066_v52 = vrot.slane %v7048_v45, 3 }
 0x359   :  { %v7070_v36 = vadd.f32 %v3110_v3, %v3102_v27  ;;  %v3199_v16 = vmul.f32 %v6617_v43, %v3611_v46  ;;  %v3152_v37 = vadd.f32 %v3149_v26, %v3141_v53  ;;  %v3191_v41 = vadd.f32 %v3188_v47, %v3180_v50  ;;  %v3615_v3 = vld [vmem:[#allocation7 + $0xb8] ss:$0 sm:$0xff] }
 0x35a   :  { %v3017_v28 = vsel %vm214_vm1, %v7567_v30, %v3016_v8  ;;  %v3230_v29 = vmul.f32 %v6581_v5, %v3613_v12  ;;  %v3238_v31 = vmul.f32 %v6585_v54, %v3614_v63  ;;  %v3190_v51 = vadd.f32 %v3187_v24, %v3179_v18  ;;  %v3616_v47 = vld [vmem:[#allocation7 + $0xf8] ss:$0 sm:$0xff] }
 0x35b   :  { %v3209_v7 = vmul.f32 %v6433_v13, %v3612_v33  ;;  %v2911_v23 = vadd.f32 %v2908_v62, %v2900_v39  ;;  %v2919_v60 = vmul.f32 %v6644_v35, %v6863_v11  ;;  %v3228_v20 = vmul.f32 %v7561_v9, %v3613_v12 }
 0x35c   :  { %v3229_v58 = vmul.f32 %v7562_v10, %v3613_v12  ;;  %v3236_v2 = vmul.f32 %v7563_v57, %v3614_v63  ;;  %v3237_v46 = vmul.f32 %v7564_v40, %v3614_v63  ;;  %v3021_v25 = vadd.f32 %v3017_v28, %v2971_v59 }
 0x35d   :  { %v7568_v5 = vrot.slane %v6933_v38, 3  ;;  %v3116_v18 = vrot.slane %v7070_v36, 4  ;;  %v3210_v24 = vmul.f32 %v6644_v35, %v3612_v33  ;;  %v3163_v11 = vadd.f32 %v3160_v15, %v3152_v37 }
 0x35e   :  { %v3202_v45 = vadd.f32 %v3199_v16, %v3191_v41  ;;  %v3241_v9 = vadd.f32 %v3238_v31, %v3230_v29  ;;  %v3249_v10 = vmul.f32 %v6617_v43, %v3615_v3  ;;  %v3200_v27 = vadd.f32 %v3197_v1, %v3189_v22 }
 0x35f   :  { %v3067_v54 = vsel %vm265_vm2, %v7568_v5, %v3066_v52  ;;  %v3201_v57 = vadd.f32 %v3198_v6, %v3190_v51  ;;  %v3247_v40 = vmul.f32 %v6401_v21, %v3615_v3  ;;  %v2922_v53 = vadd.f32 %v2919_v60, %v2911_v23  ;;  %v7573_v51 = vld [vmem:[#allocation14_spill] sm:$0xff] }
 0x360   :  { %v3239_v26 = vadd.f32 %v3236_v2, %v3228_v20  ;;  %v3240_v50 = vadd.f32 %v3237_v46, %v3229_v58  ;;  %v3248_v38 = vmul.f32 %v6405_v32, %v3615_v3  ;;  %v7569_v39 = vrot.slane %v6859_v55, 1 }
 0x361   :  { %v7570_v62 = vrot.slane %v6999_v14, 1  ;;  %v3164_v59 = vrot.slane %v7054_v48, 5  ;;  %v3165_v43 = vrot.slane %v7058_v44, 5  ;;  %v3071_v22 = vadd.f32 %v3067_v54, %v3021_v25 }
 0x362   :  { %v3260_v21 = vmul.f32 %v6644_v35, %v3616_v47  ;;  %v7571_v1 = vrot.slane %v6989_v42, 4  ;;  %v3166_v6 = vrot.slane %v3163_v11, 5  ;;  %v3213_v15 = vadd.f32 %v3210_v24, %v3202_v45 }
 0x363   :  { %v2969_v33 = vsel %vm163_vm0, %v7570_v62, %v7569_v39  ;;  %v3252_v55 = vadd.f32 %v3249_v10, %v3241_v9  ;;  %v3211_v12 = vadd.f32 %v3208_v0, %v3200_v27  ;;  %v3212_v14 = vadd.f32 %v3209_v7, %v3201_v57 }
 0x364   :  { %v3117_v32 = vsel %vm316_vm3, %v7571_v1, %v3116_v18  ;;  %v3258_v63 = vmul.f32 %v6429_v34, %v3616_v47  ;;  %v2972_v30 = vadd.f32 %v2969_v33, %v2922_v53  ;;  %v3250_v28 = vadd.f32 %v3247_v40, %v3239_v26  ;;  %v3280_v53 = vld [vmem:[#allocation9 + $0x8] sm:$0xff] }
 0x365   :  { %v3251_v48 = vadd.f32 %v3248_v38, %v3240_v50  ;;  %v3259_v44 = vmul.f32 %v6433_v13, %v3616_v47  ;;  %v7572_v36 = vrot.slane %v6883_v61, 2  ;;  %v3121_v42 = vadd.f32 %v3117_v32, %v3071_v22  ;;  %v3279_v38 = vld [vmem:[#allocation9] sm:$0xff] }
 0x366   :  { %v3167_v16 = vsel %vm367_vm4, %v3165_v43, %v3166_v6  ;;  %v3216_v0 = vrot.slane %v3213_v15, 6  ;;  %v3263_v37 = vadd.f32 %v3260_v21, %v3252_v55  ;;  %v3120_v34 = vadd.f32 %v7036_v49, %v7003_v56 }
 0x367   :  { %v3019_v35 = vsel %vm214_vm1, %v3016_v8, %v7572_v36  ;;  %v3168_v41 = vsel %vm367_vm4, %v3164_v59, %v3165_v43  ;;  %v3214_v13 = vrot.slane %v3211_v12, 6  ;;  %v3215_v61 = vrot.slane %v3212_v14, 6  ;;  %v3281_v43 = vld [vmem:[#allocation9 + $0x10] sm:$0xff] }
 0x368   :  { %v3022_v29 = vadd.f32 %v3019_v35, %v2972_v30  ;;  %v3261_v31 = vadd.f32 %v3258_v63, %v3250_v28  ;;  %v3262_v17 = vadd.f32 %v3259_v44, %v3251_v48  ;;  %v7574_v7 = vrot.slane %v7573_v51, 3 }
 0x369   :  { %v3171_v23 = vadd.f32 %v3167_v16, %v3121_v42  ;;  %v3217_v60 = vsel %vm418_vm5, %v3215_v61, %v3216_v0  ;;  %v3266_v20 = vrot.slane %v3263_v37, 7  ;;  %v3170_v58 = vadd.f32 %v3168_v41, %v3120_v34 }
 0x36a   :  { %v3069_v8 = vsel %vm265_vm2, %v3066_v52, %v7574_v7  ;;  %v3218_v49 = vsel %vm418_vm5, %v3214_v13, %v3215_v61  ;;  %v3264_v2 = vrot.slane %v3261_v31, 7  ;;  %v3265_v46 = vrot.slane %v3262_v17, 7 }
 0x36b   :  { %v3072_v56 = vadd.f32 %v3069_v8, %v3022_v29  ;;  %v7575_v3 = vrot.slane %v6987_v19, 4  ;;  %v3221_v5 = vadd.f32 %v3217_v60, %v3171_v23  ;;  %v3220_v54 = vadd.f32 %v3218_v49, %v3170_v58 }
 0x36c   :  { %v3267_v52 = vsel %vm469_vm6, %v3265_v46, %v3266_v20  ;;  %v3268_v11 = vsel %vm469_vm6, %v3264_v2, %v3265_v46  ;;  %v3169_v45 = vsel %vm367_vm4, %v3166_v6, %v3164_v59  ;;  %v3269_v47 = vsel %vm469_vm6, %v3266_v20, %v3264_v2 }
 0x36d   :  { %v3119_v25 = vsel %vm316_vm3, %v3116_v18, %v7575_v3  ;;  %v3271_v9 = vadd.f32 %v3267_v52, %v3221_v5  ;;  %v3270_v27 = vadd.f32 %v3268_v11, %v3220_v54  ;;  %v3219_v18 = vsel %vm418_vm5, %v3216_v0, %v3214_v13 }
 0x36e   :  { %v3122_v24 = vadd.f32 %v3119_v25, %v3072_v56 }
 0x370   :  { %v3172_v57 = vadd.f32 %v3169_v45, %v3122_v24 }
 0x372   :  { %v3222_v50 = vadd.f32 %v3219_v18, %v3172_v57 }
 0x374   :  { %v3272_v33 = vadd.f32 %v3269_v47, %v3222_v50 }
 0x395   :  { %v2877_v19 = vpop.permute.xlu0 %2876 }
 0x396   :  { %v3273_v26 = vadd.f32 %v3270_v27, %v2877_v19 }
 0x398   :  { %v3282_v62 = vmul.f32 %v3279_v38, %v3273_v26 }
 0x39a   :  { %v3297_v21 = vmul.f32 %v3282_v62, %v3282_v62 }
 0x3a8   :  { %v2879_v10 = vpop.permute.xlu1 %2878 }
 0x3a9   :  { %v3274_v40 = vadd.f32 %v3271_v9, %v2879_v10 }
 0x3ab   :  { %v3283_v39 = vmul.f32 %v3280_v53, %v3274_v40 }
 0x3ad   :  { %v3298_v59 = vmul.f32 %v3283_v39, %v3283_v39  ;;  %v3285_v32 = vadd.f32 %v3283_v39, %v3282_v62 }
 0x3af   :  { %v3300_v15 = vadd.f32 %v3298_v59, %v3297_v21 }
 0x3b3   :  { %v2881_v22 = vpop.permute.xlu0 %2880 }
 0x3b4   :  { %v3275_v1 = vadd.f32 %v3272_v33, %v2881_v22 }
 0x3b6   :  { %v3284_v6 = vmul.f32 %v3281_v43, %v3275_v1 }
 0x3b8   :  { %v3286_v55 = vadd.f32 %v3285_v32, %v3284_v6  ;;  %v3299_v12 = vmul.f32 %v3284_v6, %v3284_v6 }
 0x3ba   :  { %3287 = vadd.xlane.f32.xlu1 %v3286_v55  ;;  %v3301_v14 = vadd.f32 %v3300_v15, %v3299_v12 }
 0x3bc   :  { %3302 = vadd.xlane.f32.xlu0 %v3301_v14 }
 0x447   :  { %v3288_v63 = vpop.xlane.xlu1 %3287 }
 0x448   :  { %v3289_v30 = vrot.slane %v3288_v63, 4 }
 0x449   :  { %v3303_v4 = vpop.xlane.xlu0 %3302 }
 0x44a   :  { %v3290_v28 = vadd.f32 %v3289_v30, %v3288_v63  ;;  %v3304_v48 = vrot.slane %v3303_v4, 4 }
 0x44c   :  { %v3291_v44 = vrot.slane %v3290_v28, 2  ;;  %v3305_v36 = vadd.f32 %v3304_v48, %v3303_v4 }
 0x44e   :  { %v3306_v35 = vrot.slane %v3305_v36, 2  ;;  %v3292_v42 = vadd.f32 %v3291_v44, %v3290_v28 }
 0x450   :  { %v3307_v16 = vadd.f32 %v3306_v35, %v3305_v36  ;;  %v3293_v0 = vrot.slane %v3292_v42, 1 }
 0x452   :  { %v3294_v37 = vadd.f32 %v3293_v0, %v3292_v42  ;;  %v3308_v34 = vrot.slane %v3307_v16, 1 }
 0x454   :  { %3617 = vpush %v3294_v37  ;;  %v3309_v41 = vadd.f32 %v3308_v34, %v3307_v16 }
 0x456   :  { %3619 = vpush %v3309_v41 }
 0x485   :  { %s3618_s29 = spop %3617 }
 0x486   :  { %s3314_s7 = smul.f32 0.0017301039, %s3618_s29 }
 0x487   :  { %s3620_s8 = spop %3619 }
 0x488   :  { %s3318_s9 = smul.f32 %s3314_s7, %s3314_s7 }
 0x489   :  { %s3317_s10 = smul.f32 0.0017301039, %s3620_s8 }
 0x48b   :  { %s3319_s11 = ssub.f32 %s3317_s10, %s3318_s9 }
 0x48d   :  { %s3320_s12 = sadd.f32 1e-05, %s3319_s11 }
 0x48f   :  { %v3321_v13 = vstv %s3320_s12 }
 0x490   :  { %3630 = vrsqrt.f32 %v3321_v13 }
 0x49a   :  { %v3631_v29 = vpop.eup %3630 }
 0x49b   :  { %3621 = vpush %v3631_v29 }
 0x4cc   :  { %s3622_s13 = spop %3621 }
 0x4cd   :  { %s3325_s16 = smul.f32 %s3622_s13, %s7164_s3  ;;  %s3734_s3 = scalar_lea.vmem %s3349_s22, 384 }
 0x4ce   :  { %p3735_p10 = scmp.ne.s32.totalorder %s3349_s22, %s3734_s3  ;;  %p3740_p12 = scmp.lt.s32.totalorder %s3734_s3, %s3734_s3 }
 0x4cf   :  { %s3327_s1 = smul.f32 %s3325_s16, %s3314_s7  ;;  %v3332_v61 = vstv %s3325_s16 }
 0x4d0   :  { %v3333_v31 = vmul.f32 %v3332_v61, %v3273_v26  ;;  %v3334_v17 = vmul.f32 %v3332_v61, %v3274_v40  ;;  %v3335_v51 = vmul.f32 %v3332_v61, %v3275_v1  ;;  %p3741_p13 = por %p3740_p12, %p3739_p11 }
 0x4d1   :  { %s3328_s19 = ssub.f32 %s7165_s4, %s3327_s1 }
 0x4d2   :  { %p3742_p0 = pnand %p3741_p13, %p3735_p10 }
 0x4d3   :  { %v3336_v7 = vstv %s3328_s19 }
 0x4d4   :  { %v3337_v8 = vadd.f32 %v3336_v7, %v3333_v31  ;;  %v3338_v23 = vadd.f32 %v3336_v7, %v3334_v17  ;;  %v3339_v60 = vadd.f32 %v3336_v7, %v3335_v51 }
 0x4d6   :  { %3340 = vst [vmem:[#allocation10] sm:$0xff] %v3337_v8  ;;  %3341 = vst [vmem:[#allocation10 + $0x8] sm:$0xff] %v3338_v23 }
 0x4d7   :  { %3342 = vst [vmem:[#allocation10 + $0x10] sm:$0xff] %v3339_v60 }
 0x4d8   :  { %3745 = shalt.err (!%p3742_p0)
}
 0x4d9   :  { %s3746_s24 = scalar_lea.hbm %s7166_s5, 384 }
 0x4da   :  { %p3747_p1 = scmp.ne.s32.totalorder %s7166_s5, %s3746_s24  ;;  %p3750_p2 = scmp.lt.u32.totalorder %s3746_s24, %s7166_s5 }
 0x4dc   :  { %p3752_p3 = pnand %p3750_p2, %p3747_p1 }
 0x4de   :  { %3755 = shalt.err (!%p3752_p3)
}
 0x4df   :  { %3354 = dma.vmem_to_hbm [thread:$0]  %s3349_s22, 384, %s7166_s5, [#allocation6], %s3764_s30, %s3764_s30, %s3765_s6  }
 0x4e0   :  { %3760 = dma.done.wait [#allocation6], 384  }
 0x4e1   :  { %3761 = vsyncadd [#allocation6], 4294966912 }
 0x4e2   :  { %3358 = vsyncpa [#allocation5], 1 }
 0x4e3   :  { %3359 = vsyncpa [#allocation8], 1 }
 0x4e4   :  { %3360 = vsyncpa [#allocation6], 1 }

</bundles_post_ra>
